<compile_context>
chip_gen: v7x
topology: tpu7x:2x2x1
jax: 0.10.0
libtpu: 0.0.40
codegen_flags: <defaults>
</compile_context>

<pallas_src>
import functools

import jax
import jax.numpy as jnp
import numpy as np
from jax.experimental import pallas as pl
from jax.experimental.pallas import tpu as pltpu


COMPUTE_DTYPE = jnp.bfloat16   # MXU operand dtype (accumulation is f32)
FC_PAD = 128                   # lane-dense width for all FC matmuls / final store


# ----------------------------- in-kernel helpers -----------------------------


def _conv_lhs_per_kw(planes, k, cin, wp):
    """planes: list of 4 [B*h2, w2*cin] corner-plane values.

    Returns, for each kernel column kw, the row-stacked LHS [4*B*h2, wp*cin]
    (rows ordered (corner-plane c, image b, row u)); it is shared by all kh.
    """
    out = []
    for kw in range(k):
        pieces = []
        for c in range(4):
            dw = ((c % 2) - kw) % 2
            co = (dw + kw) // 2                      # column offset, 0..2
            pieces.append(planes[c][:, co * cin:(co + wp) * cin])
        out.append(jnp.concatenate(pieces, axis=0))
    return out


def _conv_relu_pool(planes, w_ref, *, k, cin, cout, wp, hp, h2, b):
    """Fused valid conv(kxk, stride 1) + 2x2/2 max-pool for the whole batch.

    planes: 4 corner planes [b*h2, w2*cin] (bf16), plane c=(ph*2+pw) holds
            input[2u+ph, 2v+pw, ci] at row (img, u), lane v*cin+ci.
    w_ref:  [k*k, wp*cin, wp*cout] per-tap block-diagonal weights.
    Returns pooled, pre-bias activations [b, hp, wp*cout] f32 (bias + ReLU are
    applied by the caller; pool-before-(bias+ReLU) is valid since the bias is a
    per-channel constant and ReLU is monotone).
    """
    n = wp * cout
    lhs = _conv_lhs_per_kw(planes, k, cin, wp)            # k x [4*b*h2, wp*cin]
    accs = [jnp.zeros((b, hp, n), jnp.float32) for _ in range(4)]
    for kh in range(k):
        for kw in range(k):
            p = jnp.dot(lhs[kw], w_ref[kh * k + kw],
                        preferred_element_type=jnp.float32)   # [4*b*h2, n]
            p = p.reshape(4, b, h2, n)                    # tile-aligned split
            for c in range(4):
                dh = ((c // 2) - kh) % 2
                dw = ((c % 2) - kw) % 2
                ro = (dh + kh) // 2                       # row offset, 0..2
                accs[dh * 2 + dw] = accs[dh * 2 + dw] + p[c, :, ro:ro + hp, :]
    return jnp.maximum(jnp.maximum(accs[0], accs[1]),
                       jnp.maximum(accs[2], accs[3]))


# -------------------------------- the kernel ---------------------------------


def _lenet_kernel(x_ref, w1_ref, b1_ref, w2_ref, b2_ref,
                  wf1_ref, bf1_ref, wf2_ref, bf2_ref, wf3_ref, bf3_ref,
                  o_ref, y1_ref, *, batch):
    """Whole Net forward for one batch; everything stays in VMEM/vregs."""
    B = batch

    # ---------------- conv1 + ReLU + pool : 32x32x3 -> 14x14x6 ----------------
    planes1 = [x_ref[c] for c in range(4)]                # each [B*16, 48] bf16
    m1 = _conv_relu_pool(planes1, w1_ref, k=5, cin=3, cout=6,
                         wp=14, hp=14, h2=16, b=B)         # [B, 14, 84] f32
    y1 = jnp.maximum(m1 + b1_ref[...], 0.0)
    # conv1's output lanes are already grouped by pooled-column parity
    # (lane = (j%2)*42 + (j//2)*6 + c), prepared at weight-prep time.

    # Deinterleave y1 rows by parity into a tiny VMEM scratch so conv2's corner
    # planes are plain contiguous reads (pad row u=7 is zero and provably never
    # reaches the output).
    y1_ref[:, :, 7, :] = jnp.zeros((2, B, 84), jnp.float32)
    for i in range(14):
        y1_ref[i % 2, :, i // 2, :] = y1[:, i, :]

    # ---------------- conv2 + ReLU + pool : 14x14x6 -> 5x5x16 -----------------
    planes2 = []
    for ph in range(2):
        slab = y1_ref[ph]                                  # [B, 8, 84] f32
        for pw in range(2):
            piece = slab[:, :, pw * 42:(pw + 1) * 42]      # [B, 8, 42]
            planes2.append(piece.reshape(B * 8, 42).astype(COMPUTE_DTYPE))
    m2 = _conv_relu_pool(planes2, w2_ref, k=5, cin=6, cout=16,
                         wp=5, hp=5, h2=8, b=B)            # [B, 5, 80] f32
    y2 = jnp.maximum(m2 + b2_ref[...], 0.0)

    # ---------------- fc1 -> fc2 -> fc3 (widths padded to 128 lanes) ----------
    # fc1 is stored as [5, 80, 128] with the PyTorch NCHW .view(-1, 400)
    # permutation folded in, so the flatten never materialises.
    h = jnp.zeros((B, FC_PAD), jnp.float32)
    for i in range(5):
        h = h + jnp.dot(y2[:, i, :].astype(COMPUTE_DTYPE), wf1_ref[i],
                        preferred_element_type=jnp.float32)
    h = jnp.maximum(h + bf1_ref[...], 0.0)
    h = jnp.dot(h.astype(COMPUTE_DTYPE), wf2_ref[...],
                preferred_element_type=jnp.float32)
    h = jnp.maximum(h + bf2_ref[...], 0.0)
    h = jnp.dot(h.astype(COMPUTE_DTYPE), wf3_ref[...],
                preferred_element_type=jnp.float32)
    o_ref[...] = (h + bf3_ref[...]).astype(o_ref.dtype)    # lane-dense [B, 128]


# ------------------------------ call wrapper ----------------------------------


def _whole_spec(a):
    nd = a.ndim
    return pl.BlockSpec(a.shape, lambda i, _nd=nd: (0,) * _nd)


def fused_forward(x_split, params):
    """x_split: [4, B*16, 48] bf16 corner-split input -> padded logits [B,128]."""
    B = x_split.shape[1] // 16
    args = (x_split,
            params["conv1_w"], params["conv1_b"],
            params["conv2_w"], params["conv2_b"],
            params["fc1_w"], params["fc1_b"],
            params["fc2_w"], params["fc2_b"],
            params["fc3_w"], params["fc3_b"])
    # True FLOPs (not counting block-diagonal zeros).
    flops = int(2 * B * (28 * 28 * 25 * 3 * 6 + 10 * 10 * 25 * 6 * 16
                         + 400 * 120 + 120 * 84 + 84 * 10))
    bytes_accessed = int(sum(a.size * a.dtype.itemsize for a in args)
                         + B * FC_PAD * 4)
    return pl.pallas_call(
        functools.partial(_lenet_kernel, batch=B),
        out_shape=jax.ShapeDtypeStruct((B, FC_PAD), jnp.float32),
        grid=(1,),
        in_specs=[_whole_spec(a) for a in args],
        out_specs=pl.BlockSpec((B, FC_PAD), lambda i: (0, 0)),
        scratch_shapes=[pltpu.VMEM((2, B, 8, 84), jnp.float32)],
        compiler_params=pltpu.CompilerParams(
            dimension_semantics=("arbitrary",)),
        cost_estimate=pl.CostEstimate(flops=flops, transcendentals=0,
                                      bytes_accessed=bytes_accessed),
    )(*args)


def net_forward(params, x_nchw):
    """Forward pass of Net. x_nchw: [B, 3, 32, 32] f32 -> logits [B, 10] f32."""
    B, C, H, W = x_nchw.shape
    assert (C, H, W) == (3, 32, 32), "architecture requires 3x32x32 input"
    xh = jnp.transpose(x_nchw, (0, 2, 3, 1))               # NHWC
    # Corner split of the network input (the only XLA glue left, ~6 KB).
    parts = [xh[:, ph::2, pw::2, :].reshape(B, 16, 48)
             for ph in (0, 1) for pw in (0, 1)]
    x_split = jnp.stack(parts, axis=0).reshape(4, B * 16, 48).astype(COMPUTE_DTYPE)
    logits = fused_forward(x_split, params)                # [B, 128] padded
    return logits[:, :10]


# -------------------------------- parameters ----------------------------------


def init_params(key):
    """Deterministic synthetic parameters with the exact shapes of Net.__init__."""
    ks = jax.random.split(key, 10)

    def u(k, shape, fan_in):
        bound = 1.0 / jnp.sqrt(fan_in)
        return jax.random.uniform(k, shape, jnp.float32, -bound, bound)

    return {
        "conv1_w": u(ks[0], (6, 3, 5, 5), 3 * 5 * 5),
        "conv1_b": u(ks[1], (6,), 3 * 5 * 5),
        "conv2_w": u(ks[2], (16, 6, 5, 5), 6 * 5 * 5),
        "conv2_b": u(ks[3], (16,), 6 * 5 * 5),
        "fc1_w": u(ks[4], (120, 400), 400),
        "fc1_b": u(ks[5], (120,), 400),
        "fc2_w": u(ks[6], (84, 120), 120),
        "fc2_b": u(ks[7], (84,), 120),
        "fc3_w": u(ks[8], (10, 84), 84),
        "fc3_b": u(ks[9], (10,), 84),
    }


def prepare_params(raw):
    """One-time layout transforms: PyTorch-shaped params -> kernel-ready params."""
    p = {}

    def conv_tap_weights(w, wp, col_perm=None):
        w = np.asarray(w, np.float32)                      # [cout, cin, k, k]
        cout, cin, k, _ = w.shape
        eye = np.eye(wp, dtype=np.float32)
        taps = []
        for kh in range(k):
            for kw in range(k):
                blk = np.kron(eye, w[:, :, kh, kw].T)      # [wp*cin, wp*cout]
                if col_perm is not None:
                    blk = blk[:, col_perm]
                taps.append(blk)
        return jnp.asarray(np.stack(taps, axis=0), dtype=COMPUTE_DTYPE)

    # conv1: group output lanes by pooled-column parity
    #   new lane = (j % 2) * 42 + (j // 2) * 6 + c    (j in [14], c in [6])
    perm1 = np.empty(84, np.int64)
    for lane in range(84):
        pw, v, c = lane // 42, (lane % 42) // 6, lane % 6
        perm1[lane] = (2 * v + pw) * 6 + c
    p["conv1_w"] = conv_tap_weights(raw["conv1_w"], 14, perm1)
    p["conv1_b"] = jnp.asarray(np.tile(np.asarray(raw["conv1_b"]), 14)[None, :],
                               jnp.float32)

    # conv2: natural output lane layout (lane = j*16 + c, j in [5], c in [16])
    p["conv2_w"] = conv_tap_weights(raw["conv2_w"], 5)
    p["conv2_b"] = jnp.asarray(np.tile(np.asarray(raw["conv2_b"]), 5)[None, :],
                               jnp.float32)

    # fc1: fold PyTorch's NCHW .view(-1, 400) (c, h, w order) and our
    # (row=h, lane=w*16+c) conv2 layout into a [5, 80, 128] weight.
    fc1 = np.asarray(raw["fc1_w"], np.float32)             # [120, 400]
    w1 = fc1.reshape(120, 16, 5, 5).transpose(2, 3, 1, 0).reshape(5, 80, 120)
    w1p = np.zeros((5, 80, FC_PAD), np.float32)
    w1p[:, :, :120] = w1
    p["fc1_w"] = jnp.asarray(w1p, COMPUTE_DTYPE)
    b1p = np.zeros((1, FC_PAD), np.float32)
    b1p[0, :120] = np.asarray(raw["fc1_b"])
    p["fc1_b"] = jnp.asarray(b1p)

    def pad2(a, rows, cols):
        a = np.asarray(a, np.float32)
        out = np.zeros((rows, cols), np.float32)
        out[:a.shape[0], :a.shape[1]] = a
        return out

    p["fc2_w"] = jnp.asarray(pad2(np.asarray(raw["fc2_w"]).T, FC_PAD, FC_PAD),
                             COMPUTE_DTYPE)
    p["fc2_b"] = jnp.asarray(pad2(np.asarray(raw["fc2_b"])[None, :], 1, FC_PAD))
    p["fc3_w"] = jnp.asarray(pad2(np.asarray(raw["fc3_w"]).T, FC_PAD, FC_PAD),
                             COMPUTE_DTYPE)
    p["fc3_b"] = jnp.asarray(pad2(np.asarray(raw["fc3_b"])[None, :], 1, FC_PAD))
    return p


# ---------------------------- pure-JAX reference ------------------------------


def reference_forward(raw, x_nchw):
    """f32 reference matching the PyTorch module (for a gross-error check)."""
    x = jnp.transpose(x_nchw, (0, 2, 3, 1))

    def conv_relu(x, w, b):
        out = jax.lax.conv_general_dilated(
            x, jnp.transpose(w, (2, 3, 1, 0)), window_strides=(1, 1),
            padding="VALID", dimension_numbers=("NHWC", "HWIO", "NHWC"))
        return jax.nn.relu(out + b)

    def pool(x):
        return jax.lax.reduce_window(x, -jnp.inf, jax.lax.max,
                                     (1, 2, 2, 1), (1, 2, 2, 1), "VALID")

    y = pool(conv_relu(x, raw["conv1_w"], raw["conv1_b"]))
    y = pool(conv_relu(y, raw["conv2_w"], raw["conv2_b"]))
    feats = jnp.transpose(y, (0, 3, 1, 2)).reshape(x.shape[0], 400)
    h = jax.nn.relu(feats @ raw["fc1_w"].T + raw["fc1_b"])
    h = jax.nn.relu(h @ raw["fc2_w"].T + raw["fc2_b"])
    return h @ raw["fc3_w"].T + raw["fc3_b"]


# ----------------------------------- main --------------------------------------


if __name__ == "__main__":
    key = jax.random.PRNGKey(0)
    k_param, k_input = jax.random.split(key)

    raw = init_params(k_param)
    params = prepare_params(raw)
    # Architecture requires 32x32 spatial input (16*5*5 flatten); batch = 2.
    x = jax.random.normal(k_input, (2, 3, 32, 32), dtype=jnp.float32)

    logits = jax.block_until_ready(jax.jit(net_forward)(params, x))
    assert logits.shape == (2, 10), logits.shape
    assert bool(jnp.all(jnp.isfinite(logits)))

    ref = jax.block_until_ready(reference_forward(raw, x))
    err = float(jnp.max(jnp.abs(logits - ref)))
    assert err < 5e-2, f"mismatch vs f32 reference: max abs err = {err}"

    print("KERNEL_OK")
</pallas_src>

<mosaic_0001>
module attributes {stable_mosaic.version = 11 : i64} {
  func.func @_lenet_kernel(%arg0: i32, %arg1: memref<4x32x48xbf16, #tpu.memory_space<vmem>>, %arg2: memref<25x42x84xbf16, #tpu.memory_space<vmem>>, %arg3: memref<1x84xf32, #tpu.memory_space<vmem>>, %arg4: memref<25x30x80xbf16, #tpu.memory_space<vmem>>, %arg5: memref<1x80xf32, #tpu.memory_space<vmem>>, %arg6: memref<5x80x128xbf16, #tpu.memory_space<vmem>>, %arg7: memref<1x128xf32, #tpu.memory_space<vmem>>, %arg8: memref<128x128xbf16, #tpu.memory_space<vmem>>, %arg9: memref<1x128xf32, #tpu.memory_space<vmem>>, %arg10: memref<128x128xbf16, #tpu.memory_space<vmem>>, %arg11: memref<1x128xf32, #tpu.memory_space<vmem>>, %arg12: memref<2x128xf32, #tpu.memory_space<vmem>>, %arg13: memref<2x2x8x84xf32, #tpu.memory_space<vmem>>) attributes {dimension_semantics = [#tpu.dimension_semantics<arbitrary>], iteration_bounds = array<i64: 1>, scalar_prefetch = 0 : i64, scratch_operands = 1 : i64, tpu.core_type = #tpu.core_type<tc>, window_params = [{pipeline_mode = #tpu.pipeline_mode<synchronous>, transform_indices = @transform_0, window_bounds = array<i64: 4, 32, 48>}, {pipeline_mode = #tpu.pipeline_mode<synchronous>, transform_indices = @transform_1, window_bounds = array<i64: 25, 42, 84>}, {pipeline_mode = #tpu.pipeline_mode<synchronous>, transform_indices = @transform_2, window_bounds = array<i64: 1, 84>}, {pipeline_mode = #tpu.pipeline_mode<synchronous>, transform_indices = @transform_3, window_bounds = array<i64: 25, 30, 80>}, {pipeline_mode = #tpu.pipeline_mode<synchronous>, transform_indices = @transform_4, window_bounds = array<i64: 1, 80>}, {pipeline_mode = #tpu.pipeline_mode<synchronous>, transform_indices = @transform_5, window_bounds = array<i64: 5, 80, 128>}, {pipeline_mode = #tpu.pipeline_mode<synchronous>, transform_indices = @transform_6, window_bounds = array<i64: 1, 128>}, {pipeline_mode = #tpu.pipeline_mode<synchronous>, transform_indices = @transform_7, window_bounds = array<i64: 128, 128>}, {pipeline_mode = #tpu.pipeline_mode<synchronous>, transform_indices = @transform_8, window_bounds = array<i64: 1, 128>}, {pipeline_mode = #tpu.pipeline_mode<synchronous>, transform_indices = @transform_9, window_bounds = array<i64: 128, 128>}, {pipeline_mode = #tpu.pipeline_mode<synchronous>, transform_indices = @transform_10, window_bounds = array<i64: 1, 128>}, {pipeline_mode = #tpu.pipeline_mode<synchronous>, transform_indices = @transform_11, window_bounds = array<i64: 2, 128>}]} {
    %c0 = arith.constant 0 : index
    %c0_0 = arith.constant 0 : index
    %c0_1 = arith.constant 0 : index
    %0 = vector.load %arg1[%c0, %c0_0, %c0_1] : memref<4x32x48xbf16, #tpu.memory_space<vmem>>, vector<1x32x48xbf16>
    %1 = vector.shape_cast %0 : vector<1x32x48xbf16> to vector<32x48xbf16>
    %c1 = arith.constant 1 : index
    %c0_2 = arith.constant 0 : index
    %c0_3 = arith.constant 0 : index
    %2 = vector.load %arg1[%c1, %c0_2, %c0_3] : memref<4x32x48xbf16, #tpu.memory_space<vmem>>, vector<1x32x48xbf16>
    %3 = vector.shape_cast %2 : vector<1x32x48xbf16> to vector<32x48xbf16>
    %c2 = arith.constant 2 : index
    %c0_4 = arith.constant 0 : index
    %c0_5 = arith.constant 0 : index
    %4 = vector.load %arg1[%c2, %c0_4, %c0_5] : memref<4x32x48xbf16, #tpu.memory_space<vmem>>, vector<1x32x48xbf16>
    %5 = vector.shape_cast %4 : vector<1x32x48xbf16> to vector<32x48xbf16>
    %c3 = arith.constant 3 : index
    %c0_6 = arith.constant 0 : index
    %c0_7 = arith.constant 0 : index
    %6 = vector.load %arg1[%c3, %c0_6, %c0_7] : memref<4x32x48xbf16, #tpu.memory_space<vmem>>, vector<1x32x48xbf16>
    %7 = vector.shape_cast %6 : vector<1x32x48xbf16> to vector<32x48xbf16>
    %8 = vector.extract_strided_slice %1 {offsets = [0, 0], sizes = [32, 42], strides = [1, 1]} : vector<32x48xbf16> to vector<32x42xbf16>
    %9 = vector.extract_strided_slice %3 {offsets = [0, 0], sizes = [32, 42], strides = [1, 1]} : vector<32x48xbf16> to vector<32x42xbf16>
    %10 = vector.extract_strided_slice %5 {offsets = [0, 0], sizes = [32, 42], strides = [1, 1]} : vector<32x48xbf16> to vector<32x42xbf16>
    %11 = vector.extract_strided_slice %7 {offsets = [0, 0], sizes = [32, 42], strides = [1, 1]} : vector<32x48xbf16> to vector<32x42xbf16>
    %12 = tpu.concatenate %8, %9, %10, %11 in 0 : vector<32x42xbf16>, vector<32x42xbf16>, vector<32x42xbf16>, vector<32x42xbf16> -> vector<128x42xbf16>
    %13 = vector.extract_strided_slice %1 {offsets = [0, 3], sizes = [32, 42], strides = [1, 1]} : vector<32x48xbf16> to vector<32x42xbf16>
    %14 = vector.extract_strided_slice %3 {offsets = [0, 0], sizes = [32, 42], strides = [1, 1]} : vector<32x48xbf16> to vector<32x42xbf16>
    %15 = vector.extract_strided_slice %5 {offsets = [0, 3], sizes = [32, 42], strides = [1, 1]} : vector<32x48xbf16> to vector<32x42xbf16>
    %16 = vector.extract_strided_slice %7 {offsets = [0, 0], sizes = [32, 42], strides = [1, 1]} : vector<32x48xbf16> to vector<32x42xbf16>
    %17 = tpu.concatenate %13, %14, %15, %16 in 0 : vector<32x42xbf16>, vector<32x42xbf16>, vector<32x42xbf16>, vector<32x42xbf16> -> vector<128x42xbf16>
    %18 = vector.extract_strided_slice %1 {offsets = [0, 3], sizes = [32, 42], strides = [1, 1]} : vector<32x48xbf16> to vector<32x42xbf16>
    %19 = vector.extract_strided_slice %3 {offsets = [0, 3], sizes = [32, 42], strides = [1, 1]} : vector<32x48xbf16> to vector<32x42xbf16>
    %20 = vector.extract_strided_slice %5 {offsets = [0, 3], sizes = [32, 42], strides = [1, 1]} : vector<32x48xbf16> to vector<32x42xbf16>
    %21 = vector.extract_strided_slice %7 {offsets = [0, 3], sizes = [32, 42], strides = [1, 1]} : vector<32x48xbf16> to vector<32x42xbf16>
    %22 = tpu.concatenate %18, %19, %20, %21 in 0 : vector<32x42xbf16>, vector<32x42xbf16>, vector<32x42xbf16>, vector<32x42xbf16> -> vector<128x42xbf16>
    %23 = vector.extract_strided_slice %1 {offsets = [0, 6], sizes = [32, 42], strides = [1, 1]} : vector<32x48xbf16> to vector<32x42xbf16>
    %24 = vector.extract_strided_slice %3 {offsets = [0, 3], sizes = [32, 42], strides = [1, 1]} : vector<32x48xbf16> to vector<32x42xbf16>
    %25 = vector.extract_strided_slice %5 {offsets = [0, 6], sizes = [32, 42], strides = [1, 1]} : vector<32x48xbf16> to vector<32x42xbf16>
    %26 = vector.extract_strided_slice %7 {offsets = [0, 3], sizes = [32, 42], strides = [1, 1]} : vector<32x48xbf16> to vector<32x42xbf16>
    %27 = tpu.concatenate %23, %24, %25, %26 in 0 : vector<32x42xbf16>, vector<32x42xbf16>, vector<32x42xbf16>, vector<32x42xbf16> -> vector<128x42xbf16>
    %28 = vector.extract_strided_slice %1 {offsets = [0, 6], sizes = [32, 42], strides = [1, 1]} : vector<32x48xbf16> to vector<32x42xbf16>
    %29 = vector.extract_strided_slice %3 {offsets = [0, 6], sizes = [32, 42], strides = [1, 1]} : vector<32x48xbf16> to vector<32x42xbf16>
    %30 = vector.extract_strided_slice %5 {offsets = [0, 6], sizes = [32, 42], strides = [1, 1]} : vector<32x48xbf16> to vector<32x42xbf16>
    %31 = vector.extract_strided_slice %7 {offsets = [0, 6], sizes = [32, 42], strides = [1, 1]} : vector<32x48xbf16> to vector<32x42xbf16>
    %32 = tpu.concatenate %28, %29, %30, %31 in 0 : vector<32x42xbf16>, vector<32x42xbf16>, vector<32x42xbf16>, vector<32x42xbf16> -> vector<128x42xbf16>
    %cst = arith.constant 0.000000e+00 : f32
    %33 = vector.broadcast %cst : f32 to vector<2x14x84xf32>
    %cst_8 = arith.constant 0.000000e+00 : f32
    %34 = vector.broadcast %cst_8 : f32 to vector<2x14x84xf32>
    %cst_9 = arith.constant 0.000000e+00 : f32
    %35 = vector.broadcast %cst_9 : f32 to vector<2x14x84xf32>
    %cst_10 = arith.constant 0.000000e+00 : f32
    %36 = vector.broadcast %cst_10 : f32 to vector<2x14x84xf32>
    %c0_11 = arith.constant 0 : index
    %c0_12 = arith.constant 0 : index
    %c0_13 = arith.constant 0 : index
    %37 = vector.load %arg2[%c0_11, %c0_12, %c0_13] : memref<25x42x84xbf16, #tpu.memory_space<vmem>>, vector<1x42x84xbf16>
    %38 = vector.shape_cast %37 : vector<1x42x84xbf16> to vector<42x84xbf16>
    %cst_14 = arith.constant dense<0.000000e+00> : vector<128x84xf32>
    %39 = tpu.matmul %12, %38, %cst_14 {dimension_numbers = #tpu.dot_dimension_numbers<[1], [0], [0], [1], [0, 0, 1, 1], [], []>} : vector<128x42xbf16>, vector<42x84xbf16>, vector<128x84xf32> -> vector<128x84xf32>
    %40 = vector.shape_cast %39 : vector<128x84xf32> to vector<4x2x16x84xf32>
    %41 = vector.extract_strided_slice %40 {offsets = [0, 0, 0, 0], sizes = [1, 2, 14, 84], strides = [1, 1, 1, 1]} : vector<4x2x16x84xf32> to vector<1x2x14x84xf32>
    %42 = vector.shape_cast %41 : vector<1x2x14x84xf32> to vector<2x14x84xf32>
    %43 = arith.addf %33, %42 : vector<2x14x84xf32>
    %44 = vector.extract_strided_slice %40 {offsets = [1, 0, 0, 0], sizes = [1, 2, 14, 84], strides = [1, 1, 1, 1]} : vector<4x2x16x84xf32> to vector<1x2x14x84xf32>
    %45 = vector.shape_cast %44 : vector<1x2x14x84xf32> to vector<2x14x84xf32>
    %46 = arith.addf %34, %45 : vector<2x14x84xf32>
    %47 = vector.extract_strided_slice %40 {offsets = [2, 0, 0, 0], sizes = [1, 2, 14, 84], strides = [1, 1, 1, 1]} : vector<4x2x16x84xf32> to vector<1x2x14x84xf32>
    %48 = vector.shape_cast %47 : vector<1x2x14x84xf32> to vector<2x14x84xf32>
    %49 = arith.addf %35, %48 : vector<2x14x84xf32>
    %50 = vector.extract_strided_slice %40 {offsets = [3, 0, 0, 0], sizes = [1, 2, 14, 84], strides = [1, 1, 1, 1]} : vector<4x2x16x84xf32> to vector<1x2x14x84xf32>
    %51 = vector.shape_cast %50 : vector<1x2x14x84xf32> to vector<2x14x84xf32>
    %52 = arith.addf %36, %51 : vector<2x14x84xf32>
    %c1_15 = arith.constant 1 : index
    %c0_16 = arith.constant 0 : index
    %c0_17 = arith.constant 0 : index
    %53 = vector.load %arg2[%c1_15, %c0_16, %c0_17] : memref<25x42x84xbf16, #tpu.memory_space<vmem>>, vector<1x42x84xbf16>
    %54 = vector.shape_cast %53 : vector<1x42x84xbf16> to vector<42x84xbf16>
    %cst_18 = arith.constant dense<0.000000e+00> : vector<128x84xf32>
    %55 = tpu.matmul %17, %54, %cst_18 {dimension_numbers = #tpu.dot_dimension_numbers<[1], [0], [0], [1], [0, 0, 1, 1], [], []>} : vector<128x42xbf16>, vector<42x84xbf16>, vector<128x84xf32> -> vector<128x84xf32>
    %56 = vector.shape_cast %55 : vector<128x84xf32> to vector<4x2x16x84xf32>
    %57 = vector.extract_strided_slice %56 {offsets = [0, 0, 0, 0], sizes = [1, 2, 14, 84], strides = [1, 1, 1, 1]} : vector<4x2x16x84xf32> to vector<1x2x14x84xf32>
    %58 = vector.shape_cast %57 : vector<1x2x14x84xf32> to vector<2x14x84xf32>
    %59 = arith.addf %46, %58 : vector<2x14x84xf32>
    %60 = vector.extract_strided_slice %56 {offsets = [1, 0, 0, 0], sizes = [1, 2, 14, 84], strides = [1, 1, 1, 1]} : vector<4x2x16x84xf32> to vector<1x2x14x84xf32>
    %61 = vector.shape_cast %60 : vector<1x2x14x84xf32> to vector<2x14x84xf32>
    %62 = arith.addf %43, %61 : vector<2x14x84xf32>
    %63 = vector.extract_strided_slice %56 {offsets = [2, 0, 0, 0], sizes = [1, 2, 14, 84], strides = [1, 1, 1, 1]} : vector<4x2x16x84xf32> to vector<1x2x14x84xf32>
    %64 = vector.shape_cast %63 : vector<1x2x14x84xf32> to vector<2x14x84xf32>
    %65 = arith.addf %52, %64 : vector<2x14x84xf32>
    %66 = vector.extract_strided_slice %56 {offsets = [3, 0, 0, 0], sizes = [1, 2, 14, 84], strides = [1, 1, 1, 1]} : vector<4x2x16x84xf32> to vector<1x2x14x84xf32>
    %67 = vector.shape_cast %66 : vector<1x2x14x84xf32> to vector<2x14x84xf32>
    %68 = arith.addf %49, %67 : vector<2x14x84xf32>
    %c2_19 = arith.constant 2 : index
    %c0_20 = arith.constant 0 : index
    %c0_21 = arith.constant 0 : index
    %69 = vector.load %arg2[%c2_19, %c0_20, %c0_21] : memref<25x42x84xbf16, #tpu.memory_space<vmem>>, vector<1x42x84xbf16>
    %70 = vector.shape_cast %69 : vector<1x42x84xbf16> to vector<42x84xbf16>
    %cst_22 = arith.constant dense<0.000000e+00> : vector<128x84xf32>
    %71 = tpu.matmul %22, %70, %cst_22 {dimension_numbers = #tpu.dot_dimension_numbers<[1], [0], [0], [1], [0, 0, 1, 1], [], []>} : vector<128x42xbf16>, vector<42x84xbf16>, vector<128x84xf32> -> vector<128x84xf32>
    %72 = vector.shape_cast %71 : vector<128x84xf32> to vector<4x2x16x84xf32>
    %73 = vector.extract_strided_slice %72 {offsets = [0, 0, 0, 0], sizes = [1, 2, 14, 84], strides = [1, 1, 1, 1]} : vector<4x2x16x84xf32> to vector<1x2x14x84xf32>
    %74 = vector.shape_cast %73 : vector<1x2x14x84xf32> to vector<2x14x84xf32>
    %75 = arith.addf %62, %74 : vector<2x14x84xf32>
    %76 = vector.extract_strided_slice %72 {offsets = [1, 0, 0, 0], sizes = [1, 2, 14, 84], strides = [1, 1, 1, 1]} : vector<4x2x16x84xf32> to vector<1x2x14x84xf32>
    %77 = vector.shape_cast %76 : vector<1x2x14x84xf32> to vector<2x14x84xf32>
    %78 = arith.addf %59, %77 : vector<2x14x84xf32>
    %79 = vector.extract_strided_slice %72 {offsets = [2, 0, 0, 0], sizes = [1, 2, 14, 84], strides = [1, 1, 1, 1]} : vector<4x2x16x84xf32> to vector<1x2x14x84xf32>
    %80 = vector.shape_cast %79 : vector<1x2x14x84xf32> to vector<2x14x84xf32>
    %81 = arith.addf %68, %80 : vector<2x14x84xf32>
    %82 = vector.extract_strided_slice %72 {offsets = [3, 0, 0, 0], sizes = [1, 2, 14, 84], strides = [1, 1, 1, 1]} : vector<4x2x16x84xf32> to vector<1x2x14x84xf32>
    %83 = vector.shape_cast %82 : vector<1x2x14x84xf32> to vector<2x14x84xf32>
    %84 = arith.addf %65, %83 : vector<2x14x84xf32>
    %c3_23 = arith.constant 3 : index
    %c0_24 = arith.constant 0 : index
    %c0_25 = arith.constant 0 : index
    %85 = vector.load %arg2[%c3_23, %c0_24, %c0_25] : memref<25x42x84xbf16, #tpu.memory_space<vmem>>, vector<1x42x84xbf16>
    %86 = vector.shape_cast %85 : vector<1x42x84xbf16> to vector<42x84xbf16>
    %cst_26 = arith.constant dense<0.000000e+00> : vector<128x84xf32>
    %87 = tpu.matmul %27, %86, %cst_26 {dimension_numbers = #tpu.dot_dimension_numbers<[1], [0], [0], [1], [0, 0, 1, 1], [], []>} : vector<128x42xbf16>, vector<42x84xbf16>, vector<128x84xf32> -> vector<128x84xf32>
    %88 = vector.shape_cast %87 : vector<128x84xf32> to vector<4x2x16x84xf32>
    %89 = vector.extract_strided_slice %88 {offsets = [0, 0, 0, 0], sizes = [1, 2, 14, 84], strides = [1, 1, 1, 1]} : vector<4x2x16x84xf32> to vector<1x2x14x84xf32>
    %90 = vector.shape_cast %89 : vector<1x2x14x84xf32> to vector<2x14x84xf32>
    %91 = arith.addf %78, %90 : vector<2x14x84xf32>
    %92 = vector.extract_strided_slice %88 {offsets = [1, 0, 0, 0], sizes = [1, 2, 14, 84], strides = [1, 1, 1, 1]} : vector<4x2x16x84xf32> to vector<1x2x14x84xf32>
    %93 = vector.shape_cast %92 : vector<1x2x14x84xf32> to vector<2x14x84xf32>
    %94 = arith.addf %75, %93 : vector<2x14x84xf32>
    %95 = vector.extract_strided_slice %88 {offsets = [2, 0, 0, 0], sizes = [1, 2, 14, 84], strides = [1, 1, 1, 1]} : vector<4x2x16x84xf32> to vector<1x2x14x84xf32>
    %96 = vector.shape_cast %95 : vector<1x2x14x84xf32> to vector<2x14x84xf32>
    %97 = arith.addf %84, %96 : vector<2x14x84xf32>
    %98 = vector.extract_strided_slice %88 {offsets = [3, 0, 0, 0], sizes = [1, 2, 14, 84], strides = [1, 1, 1, 1]} : vector<4x2x16x84xf32> to vector<1x2x14x84xf32>
    %99 = vector.shape_cast %98 : vector<1x2x14x84xf32> to vector<2x14x84xf32>
    %100 = arith.addf %81, %99 : vector<2x14x84xf32>
    %c4 = arith.constant 4 : index
    %c0_27 = arith.constant 0 : index
    %c0_28 = arith.constant 0 : index
    %101 = vector.load %arg2[%c4, %c0_27, %c0_28] : memref<25x42x84xbf16, #tpu.memory_space<vmem>>, vector<1x42x84xbf16>
    %102 = vector.shape_cast %101 : vector<1x42x84xbf16> to vector<42x84xbf16>
    %cst_29 = arith.constant dense<0.000000e+00> : vector<128x84xf32>
    %103 = tpu.matmul %32, %102, %cst_29 {dimension_numbers = #tpu.dot_dimension_numbers<[1], [0], [0], [1], [0, 0, 1, 1], [], []>} : vector<128x42xbf16>, vector<42x84xbf16>, vector<128x84xf32> -> vector<128x84xf32>
    %104 = vector.shape_cast %103 : vector<128x84xf32> to vector<4x2x16x84xf32>
    %105 = vector.extract_strided_slice %104 {offsets = [0, 0, 0, 0], sizes = [1, 2, 14, 84], strides = [1, 1, 1, 1]} : vector<4x2x16x84xf32> to vector<1x2x14x84xf32>
    %106 = vector.shape_cast %105 : vector<1x2x14x84xf32> to vector<2x14x84xf32>
    %107 = arith.addf %94, %106 : vector<2x14x84xf32>
    %108 = vector.extract_strided_slice %104 {offsets = [1, 0, 0, 0], sizes = [1, 2, 14, 84], strides = [1, 1, 1, 1]} : vector<4x2x16x84xf32> to vector<1x2x14x84xf32>
    %109 = vector.shape_cast %108 : vector<1x2x14x84xf32> to vector<2x14x84xf32>
    %110 = arith.addf %91, %109 : vector<2x14x84xf32>
    %111 = vector.extract_strided_slice %104 {offsets = [2, 0, 0, 0], sizes = [1, 2, 14, 84], strides = [1, 1, 1, 1]} : vector<4x2x16x84xf32> to vector<1x2x14x84xf32>
    %112 = vector.shape_cast %111 : vector<1x2x14x84xf32> to vector<2x14x84xf32>
    %113 = arith.addf %100, %112 : vector<2x14x84xf32>
    %114 = vector.extract_strided_slice %104 {offsets = [3, 0, 0, 0], sizes = [1, 2, 14, 84], strides = [1, 1, 1, 1]} : vector<4x2x16x84xf32> to vector<1x2x14x84xf32>
    %115 = vector.shape_cast %114 : vector<1x2x14x84xf32> to vector<2x14x84xf32>
    %116 = arith.addf %97, %115 : vector<2x14x84xf32>
    %c5 = arith.constant 5 : index
    %c0_30 = arith.constant 0 : index
    %c0_31 = arith.constant 0 : index
    %117 = vector.load %arg2[%c5, %c0_30, %c0_31] : memref<25x42x84xbf16, #tpu.memory_space<vmem>>, vector<1x42x84xbf16>
    %118 = vector.shape_cast %117 : vector<1x42x84xbf16> to vector<42x84xbf16>
    %cst_32 = arith.constant dense<0.000000e+00> : vector<128x84xf32>
    %119 = tpu.matmul %12, %118, %cst_32 {dimension_numbers = #tpu.dot_dimension_numbers<[1], [0], [0], [1], [0, 0, 1, 1], [], []>} : vector<128x42xbf16>, vector<42x84xbf16>, vector<128x84xf32> -> vector<128x84xf32>
    %120 = vector.shape_cast %119 : vector<128x84xf32> to vector<4x2x16x84xf32>
    %121 = vector.extract_strided_slice %120 {offsets = [0, 0, 1, 0], sizes = [1, 2, 14, 84], strides = [1, 1, 1, 1]} : vector<4x2x16x84xf32> to vector<1x2x14x84xf32>
    %122 = vector.shape_cast %121 : vector<1x2x14x84xf32> to vector<2x14x84xf32>
    %123 = arith.addf %113, %122 : vector<2x14x84xf32>
    %124 = vector.extract_strided_slice %120 {offsets = [1, 0, 1, 0], sizes = [1, 2, 14, 84], strides = [1, 1, 1, 1]} : vector<4x2x16x84xf32> to vector<1x2x14x84xf32>
    %125 = vector.shape_cast %124 : vector<1x2x14x84xf32> to vector<2x14x84xf32>
    %126 = arith.addf %116, %125 : vector<2x14x84xf32>
    %127 = vector.extract_strided_slice %120 {offsets = [2, 0, 0, 0], sizes = [1, 2, 14, 84], strides = [1, 1, 1, 1]} : vector<4x2x16x84xf32> to vector<1x2x14x84xf32>
    %128 = vector.shape_cast %127 : vector<1x2x14x84xf32> to vector<2x14x84xf32>
    %129 = arith.addf %107, %128 : vector<2x14x84xf32>
    %130 = vector.extract_strided_slice %120 {offsets = [3, 0, 0, 0], sizes = [1, 2, 14, 84], strides = [1, 1, 1, 1]} : vector<4x2x16x84xf32> to vector<1x2x14x84xf32>
    %131 = vector.shape_cast %130 : vector<1x2x14x84xf32> to vector<2x14x84xf32>
    %132 = arith.addf %110, %131 : vector<2x14x84xf32>
    %c6 = arith.constant 6 : index
    %c0_33 = arith.constant 0 : index
    %c0_34 = arith.constant 0 : index
    %133 = vector.load %arg2[%c6, %c0_33, %c0_34] : memref<25x42x84xbf16, #tpu.memory_space<vmem>>, vector<1x42x84xbf16>
    %134 = vector.shape_cast %133 : vector<1x42x84xbf16> to vector<42x84xbf16>
    %cst_35 = arith.constant dense<0.000000e+00> : vector<128x84xf32>
    %135 = tpu.matmul %17, %134, %cst_35 {dimension_numbers = #tpu.dot_dimension_numbers<[1], [0], [0], [1], [0, 0, 1, 1], [], []>} : vector<128x42xbf16>, vector<42x84xbf16>, vector<128x84xf32> -> vector<128x84xf32>
    %136 = vector.shape_cast %135 : vector<128x84xf32> to vector<4x2x16x84xf32>
    %137 = vector.extract_strided_slice %136 {offsets = [0, 0, 1, 0], sizes = [1, 2, 14, 84], strides = [1, 1, 1, 1]} : vector<4x2x16x84xf32> to vector<1x2x14x84xf32>
    %138 = vector.shape_cast %137 : vector<1x2x14x84xf32> to vector<2x14x84xf32>
    %139 = arith.addf %126, %138 : vector<2x14x84xf32>
    %140 = vector.extract_strided_slice %136 {offsets = [1, 0, 1, 0], sizes = [1, 2, 14, 84], strides = [1, 1, 1, 1]} : vector<4x2x16x84xf32> to vector<1x2x14x84xf32>
    %141 = vector.shape_cast %140 : vector<1x2x14x84xf32> to vector<2x14x84xf32>
    %142 = arith.addf %123, %141 : vector<2x14x84xf32>
    %143 = vector.extract_strided_slice %136 {offsets = [2, 0, 0, 0], sizes = [1, 2, 14, 84], strides = [1, 1, 1, 1]} : vector<4x2x16x84xf32> to vector<1x2x14x84xf32>
    %144 = vector.shape_cast %143 : vector<1x2x14x84xf32> to vector<2x14x84xf32>
    %145 = arith.addf %132, %144 : vector<2x14x84xf32>
    %146 = vector.extract_strided_slice %136 {offsets = [3, 0, 0, 0], sizes = [1, 2, 14, 84], strides = [1, 1, 1, 1]} : vector<4x2x16x84xf32> to vector<1x2x14x84xf32>
    %147 = vector.shape_cast %146 : vector<1x2x14x84xf32> to vector<2x14x84xf32>
    %148 = arith.addf %129, %147 : vector<2x14x84xf32>
    %c7 = arith.constant 7 : index
    %c0_36 = arith.constant 0 : index
    %c0_37 = arith.constant 0 : index
    %149 = vector.load %arg2[%c7, %c0_36, %c0_37] : memref<25x42x84xbf16, #tpu.memory_space<vmem>>, vector<1x42x84xbf16>
    %150 = vector.shape_cast %149 : vector<1x42x84xbf16> to vector<42x84xbf16>
    %cst_38 = arith.constant dense<0.000000e+00> : vector<128x84xf32>
    %151 = tpu.matmul %22, %150, %cst_38 {dimension_numbers = #tpu.dot_dimension_numbers<[1], [0], [0], [1], [0, 0, 1, 1], [], []>} : vector<128x42xbf16>, vector<42x84xbf16>, vector<128x84xf32> -> vector<128x84xf32>
    %152 = vector.shape_cast %151 : vector<128x84xf32> to vector<4x2x16x84xf32>
    %153 = vector.extract_strided_slice %152 {offsets = [0, 0, 1, 0], sizes = [1, 2, 14, 84], strides = [1, 1, 1, 1]} : vector<4x2x16x84xf32> to vector<1x2x14x84xf32>
    %154 = vector.shape_cast %153 : vector<1x2x14x84xf32> to vector<2x14x84xf32>
    %155 = arith.addf %142, %154 : vector<2x14x84xf32>
    %156 = vector.extract_strided_slice %152 {offsets = [1, 0, 1, 0], sizes = [1, 2, 14, 84], strides = [1, 1, 1, 1]} : vector<4x2x16x84xf32> to vector<1x2x14x84xf32>
    %157 = vector.shape_cast %156 : vector<1x2x14x84xf32> to vector<2x14x84xf32>
    %158 = arith.addf %139, %157 : vector<2x14x84xf32>
    %159 = vector.extract_strided_slice %152 {offsets = [2, 0, 0, 0], sizes = [1, 2, 14, 84], strides = [1, 1, 1, 1]} : vector<4x2x16x84xf32> to vector<1x2x14x84xf32>
    %160 = vector.shape_cast %159 : vector<1x2x14x84xf32> to vector<2x14x84xf32>
    %161 = arith.addf %148, %160 : vector<2x14x84xf32>
    %162 = vector.extract_strided_slice %152 {offsets = [3, 0, 0, 0], sizes = [1, 2, 14, 84], strides = [1, 1, 1, 1]} : vector<4x2x16x84xf32> to vector<1x2x14x84xf32>
    %163 = vector.shape_cast %162 : vector<1x2x14x84xf32> to vector<2x14x84xf32>
    %164 = arith.addf %145, %163 : vector<2x14x84xf32>
    %c8 = arith.constant 8 : index
    %c0_39 = arith.constant 0 : index
    %c0_40 = arith.constant 0 : index
    %165 = vector.load %arg2[%c8, %c0_39, %c0_40] : memref<25x42x84xbf16, #tpu.memory_space<vmem>>, vector<1x42x84xbf16>
    %166 = vector.shape_cast %165 : vector<1x42x84xbf16> to vector<42x84xbf16>
    %cst_41 = arith.constant dense<0.000000e+00> : vector<128x84xf32>
    %167 = tpu.matmul %27, %166, %cst_41 {dimension_numbers = #tpu.dot_dimension_numbers<[1], [0], [0], [1], [0, 0, 1, 1], [], []>} : vector<128x42xbf16>, vector<42x84xbf16>, vector<128x84xf32> -> vector<128x84xf32>
    %168 = vector.shape_cast %167 : vector<128x84xf32> to vector<4x2x16x84xf32>
    %169 = vector.extract_strided_slice %168 {offsets = [0, 0, 1, 0], sizes = [1, 2, 14, 84], strides = [1, 1, 1, 1]} : vector<4x2x16x84xf32> to vector<1x2x14x84xf32>
    %170 = vector.shape_cast %169 : vector<1x2x14x84xf32> to vector<2x14x84xf32>
    %171 = arith.addf %158, %170 : vector<2x14x84xf32>
    %172 = vector.extract_strided_slice %168 {offsets = [1, 0, 1, 0], sizes = [1, 2, 14, 84], strides = [1, 1, 1, 1]} : vector<4x2x16x84xf32> to vector<1x2x14x84xf32>
    %173 = vector.shape_cast %172 : vector<1x2x14x84xf32> to vector<2x14x84xf32>
    %174 = arith.addf %155, %173 : vector<2x14x84xf32>
    %175 = vector.extract_strided_slice %168 {offsets = [2, 0, 0, 0], sizes = [1, 2, 14, 84], strides = [1, 1, 1, 1]} : vector<4x2x16x84xf32> to vector<1x2x14x84xf32>
    %176 = vector.shape_cast %175 : vector<1x2x14x84xf32> to vector<2x14x84xf32>
    %177 = arith.addf %164, %176 : vector<2x14x84xf32>
    %178 = vector.extract_strided_slice %168 {offsets = [3, 0, 0, 0], sizes = [1, 2, 14, 84], strides = [1, 1, 1, 1]} : vector<4x2x16x84xf32> to vector<1x2x14x84xf32>
    %179 = vector.shape_cast %178 : vector<1x2x14x84xf32> to vector<2x14x84xf32>
    %180 = arith.addf %161, %179 : vector<2x14x84xf32>
    %c9 = arith.constant 9 : index
    %c0_42 = arith.constant 0 : index
    %c0_43 = arith.constant 0 : index
    %181 = vector.load %arg2[%c9, %c0_42, %c0_43] : memref<25x42x84xbf16, #tpu.memory_space<vmem>>, vector<1x42x84xbf16>
    %182 = vector.shape_cast %181 : vector<1x42x84xbf16> to vector<42x84xbf16>
    %cst_44 = arith.constant dense<0.000000e+00> : vector<128x84xf32>
    %183 = tpu.matmul %32, %182, %cst_44 {dimension_numbers = #tpu.dot_dimension_numbers<[1], [0], [0], [1], [0, 0, 1, 1], [], []>} : vector<128x42xbf16>, vector<42x84xbf16>, vector<128x84xf32> -> vector<128x84xf32>
    %184 = vector.shape_cast %183 : vector<128x84xf32> to vector<4x2x16x84xf32>
    %185 = vector.extract_strided_slice %184 {offsets = [0, 0, 1, 0], sizes = [1, 2, 14, 84], strides = [1, 1, 1, 1]} : vector<4x2x16x84xf32> to vector<1x2x14x84xf32>
    %186 = vector.shape_cast %185 : vector<1x2x14x84xf32> to vector<2x14x84xf32>
    %187 = arith.addf %174, %186 : vector<2x14x84xf32>
    %188 = vector.extract_strided_slice %184 {offsets = [1, 0, 1, 0], sizes = [1, 2, 14, 84], strides = [1, 1, 1, 1]} : vector<4x2x16x84xf32> to vector<1x2x14x84xf32>
    %189 = vector.shape_cast %188 : vector<1x2x14x84xf32> to vector<2x14x84xf32>
    %190 = arith.addf %171, %189 : vector<2x14x84xf32>
    %191 = vector.extract_strided_slice %184 {offsets = [2, 0, 0, 0], sizes = [1, 2, 14, 84], strides = [1, 1, 1, 1]} : vector<4x2x16x84xf32> to vector<1x2x14x84xf32>
    %192 = vector.shape_cast %191 : vector<1x2x14x84xf32> to vector<2x14x84xf32>
    %193 = arith.addf %180, %192 : vector<2x14x84xf32>
    %194 = vector.extract_strided_slice %184 {offsets = [3, 0, 0, 0], sizes = [1, 2, 14, 84], strides = [1, 1, 1, 1]} : vector<4x2x16x84xf32> to vector<1x2x14x84xf32>
    %195 = vector.shape_cast %194 : vector<1x2x14x84xf32> to vector<2x14x84xf32>
    %196 = arith.addf %177, %195 : vector<2x14x84xf32>
    %c10 = arith.constant 10 : index
    %c0_45 = arith.constant 0 : index
    %c0_46 = arith.constant 0 : index
    %197 = vector.load %arg2[%c10, %c0_45, %c0_46] : memref<25x42x84xbf16, #tpu.memory_space<vmem>>, vector<1x42x84xbf16>
    %198 = vector.shape_cast %197 : vector<1x42x84xbf16> to vector<42x84xbf16>
    %cst_47 = arith.constant dense<0.000000e+00> : vector<128x84xf32>
    %199 = tpu.matmul %12, %198, %cst_47 {dimension_numbers = #tpu.dot_dimension_numbers<[1], [0], [0], [1], [0, 0, 1, 1], [], []>} : vector<128x42xbf16>, vector<42x84xbf16>, vector<128x84xf32> -> vector<128x84xf32>
    %200 = vector.shape_cast %199 : vector<128x84xf32> to vector<4x2x16x84xf32>
    %201 = vector.extract_strided_slice %200 {offsets = [0, 0, 1, 0], sizes = [1, 2, 14, 84], strides = [1, 1, 1, 1]} : vector<4x2x16x84xf32> to vector<1x2x14x84xf32>
    %202 = vector.shape_cast %201 : vector<1x2x14x84xf32> to vector<2x14x84xf32>
    %203 = arith.addf %193, %202 : vector<2x14x84xf32>
    %204 = vector.extract_strided_slice %200 {offsets = [1, 0, 1, 0], sizes = [1, 2, 14, 84], strides = [1, 1, 1, 1]} : vector<4x2x16x84xf32> to vector<1x2x14x84xf32>
    %205 = vector.shape_cast %204 : vector<1x2x14x84xf32> to vector<2x14x84xf32>
    %206 = arith.addf %196, %205 : vector<2x14x84xf32>
    %207 = vector.extract_strided_slice %200 {offsets = [2, 0, 1, 0], sizes = [1, 2, 14, 84], strides = [1, 1, 1, 1]} : vector<4x2x16x84xf32> to vector<1x2x14x84xf32>
    %208 = vector.shape_cast %207 : vector<1x2x14x84xf32> to vector<2x14x84xf32>
    %209 = arith.addf %187, %208 : vector<2x14x84xf32>
    %210 = vector.extract_strided_slice %200 {offsets = [3, 0, 1, 0], sizes = [1, 2, 14, 84], strides = [1, 1, 1, 1]} : vector<4x2x16x84xf32> to vector<1x2x14x84xf32>
    %211 = vector.shape_cast %210 : vector<1x2x14x84xf32> to vector<2x14x84xf32>
    %212 = arith.addf %190, %211 : vector<2x14x84xf32>
    %c11 = arith.constant 11 : index
    %c0_48 = arith.constant 0 : index
    %c0_49 = arith.constant 0 : index
    %213 = vector.load %arg2[%c11, %c0_48, %c0_49] : memref<25x42x84xbf16, #tpu.memory_space<vmem>>, vector<1x42x84xbf16>
    %214 = vector.shape_cast %213 : vector<1x42x84xbf16> to vector<42x84xbf16>
    %cst_50 = arith.constant dense<0.000000e+00> : vector<128x84xf32>
    %215 = tpu.matmul %17, %214, %cst_50 {dimension_numbers = #tpu.dot_dimension_numbers<[1], [0], [0], [1], [0, 0, 1, 1], [], []>} : vector<128x42xbf16>, vector<42x84xbf16>, vector<128x84xf32> -> vector<128x84xf32>
    %216 = vector.shape_cast %215 : vector<128x84xf32> to vector<4x2x16x84xf32>
    %217 = vector.extract_strided_slice %216 {offsets = [0, 0, 1, 0], sizes = [1, 2, 14, 84], strides = [1, 1, 1, 1]} : vector<4x2x16x84xf32> to vector<1x2x14x84xf32>
    %218 = vector.shape_cast %217 : vector<1x2x14x84xf32> to vector<2x14x84xf32>
    %219 = arith.addf %206, %218 : vector<2x14x84xf32>
    %220 = vector.extract_strided_slice %216 {offsets = [1, 0, 1, 0], sizes = [1, 2, 14, 84], strides = [1, 1, 1, 1]} : vector<4x2x16x84xf32> to vector<1x2x14x84xf32>
    %221 = vector.shape_cast %220 : vector<1x2x14x84xf32> to vector<2x14x84xf32>
    %222 = arith.addf %203, %221 : vector<2x14x84xf32>
    %223 = vector.extract_strided_slice %216 {offsets = [2, 0, 1, 0], sizes = [1, 2, 14, 84], strides = [1, 1, 1, 1]} : vector<4x2x16x84xf32> to vector<1x2x14x84xf32>
    %224 = vector.shape_cast %223 : vector<1x2x14x84xf32> to vector<2x14x84xf32>
    %225 = arith.addf %212, %224 : vector<2x14x84xf32>
    %226 = vector.extract_strided_slice %216 {offsets = [3, 0, 1, 0], sizes = [1, 2, 14, 84], strides = [1, 1, 1, 1]} : vector<4x2x16x84xf32> to vector<1x2x14x84xf32>
    %227 = vector.shape_cast %226 : vector<1x2x14x84xf32> to vector<2x14x84xf32>
    %228 = arith.addf %209, %227 : vector<2x14x84xf32>
    %c12 = arith.constant 12 : index
    %c0_51 = arith.constant 0 : index
    %c0_52 = arith.constant 0 : index
    %229 = vector.load %arg2[%c12, %c0_51, %c0_52] : memref<25x42x84xbf16, #tpu.memory_space<vmem>>, vector<1x42x84xbf16>
    %230 = vector.shape_cast %229 : vector<1x42x84xbf16> to vector<42x84xbf16>
    %cst_53 = arith.constant dense<0.000000e+00> : vector<128x84xf32>
    %231 = tpu.matmul %22, %230, %cst_53 {dimension_numbers = #tpu.dot_dimension_numbers<[1], [0], [0], [1], [0, 0, 1, 1], [], []>} : vector<128x42xbf16>, vector<42x84xbf16>, vector<128x84xf32> -> vector<128x84xf32>
    %232 = vector.shape_cast %231 : vector<128x84xf32> to vector<4x2x16x84xf32>
    %233 = vector.extract_strided_slice %232 {offsets = [0, 0, 1, 0], sizes = [1, 2, 14, 84], strides = [1, 1, 1, 1]} : vector<4x2x16x84xf32> to vector<1x2x14x84xf32>
    %234 = vector.shape_cast %233 : vector<1x2x14x84xf32> to vector<2x14x84xf32>
    %235 = arith.addf %222, %234 : vector<2x14x84xf32>
    %236 = vector.extract_strided_slice %232 {offsets = [1, 0, 1, 0], sizes = [1, 2, 14, 84], strides = [1, 1, 1, 1]} : vector<4x2x16x84xf32> to vector<1x2x14x84xf32>
    %237 = vector.shape_cast %236 : vector<1x2x14x84xf32> to vector<2x14x84xf32>
    %238 = arith.addf %219, %237 : vector<2x14x84xf32>
    %239 = vector.extract_strided_slice %232 {offsets = [2, 0, 1, 0], sizes = [1, 2, 14, 84], strides = [1, 1, 1, 1]} : vector<4x2x16x84xf32> to vector<1x2x14x84xf32>
    %240 = vector.shape_cast %239 : vector<1x2x14x84xf32> to vector<2x14x84xf32>
    %241 = arith.addf %228, %240 : vector<2x14x84xf32>
    %242 = vector.extract_strided_slice %232 {offsets = [3, 0, 1, 0], sizes = [1, 2, 14, 84], strides = [1, 1, 1, 1]} : vector<4x2x16x84xf32> to vector<1x2x14x84xf32>
    %243 = vector.shape_cast %242 : vector<1x2x14x84xf32> to vector<2x14x84xf32>
    %244 = arith.addf %225, %243 : vector<2x14x84xf32>
    %c13 = arith.constant 13 : index
    %c0_54 = arith.constant 0 : index
    %c0_55 = arith.constant 0 : index
    %245 = vector.load %arg2[%c13, %c0_54, %c0_55] : memref<25x42x84xbf16, #tpu.memory_space<vmem>>, vector<1x42x84xbf16>
    %246 = vector.shape_cast %245 : vector<1x42x84xbf16> to vector<42x84xbf16>
    %cst_56 = arith.constant dense<0.000000e+00> : vector<128x84xf32>
    %247 = tpu.matmul %27, %246, %cst_56 {dimension_numbers = #tpu.dot_dimension_numbers<[1], [0], [0], [1], [0, 0, 1, 1], [], []>} : vector<128x42xbf16>, vector<42x84xbf16>, vector<128x84xf32> -> vector<128x84xf32>
    %248 = vector.shape_cast %247 : vector<128x84xf32> to vector<4x2x16x84xf32>
    %249 = vector.extract_strided_slice %248 {offsets = [0, 0, 1, 0], sizes = [1, 2, 14, 84], strides = [1, 1, 1, 1]} : vector<4x2x16x84xf32> to vector<1x2x14x84xf32>
    %250 = vector.shape_cast %249 : vector<1x2x14x84xf32> to vector<2x14x84xf32>
    %251 = arith.addf %238, %250 : vector<2x14x84xf32>
    %252 = vector.extract_strided_slice %248 {offsets = [1, 0, 1, 0], sizes = [1, 2, 14, 84], strides = [1, 1, 1, 1]} : vector<4x2x16x84xf32> to vector<1x2x14x84xf32>
    %253 = vector.shape_cast %252 : vector<1x2x14x84xf32> to vector<2x14x84xf32>
    %254 = arith.addf %235, %253 : vector<2x14x84xf32>
    %255 = vector.extract_strided_slice %248 {offsets = [2, 0, 1, 0], sizes = [1, 2, 14, 84], strides = [1, 1, 1, 1]} : vector<4x2x16x84xf32> to vector<1x2x14x84xf32>
    %256 = vector.shape_cast %255 : vector<1x2x14x84xf32> to vector<2x14x84xf32>
    %257 = arith.addf %244, %256 : vector<2x14x84xf32>
    %258 = vector.extract_strided_slice %248 {offsets = [3, 0, 1, 0], sizes = [1, 2, 14, 84], strides = [1, 1, 1, 1]} : vector<4x2x16x84xf32> to vector<1x2x14x84xf32>
    %259 = vector.shape_cast %258 : vector<1x2x14x84xf32> to vector<2x14x84xf32>
    %260 = arith.addf %241, %259 : vector<2x14x84xf32>
    %c14 = arith.constant 14 : index
    %c0_57 = arith.constant 0 : index
    %c0_58 = arith.constant 0 : index
    %261 = vector.load %arg2[%c14, %c0_57, %c0_58] : memref<25x42x84xbf16, #tpu.memory_space<vmem>>, vector<1x42x84xbf16>
    %262 = vector.shape_cast %261 : vector<1x42x84xbf16> to vector<42x84xbf16>
    %cst_59 = arith.constant dense<0.000000e+00> : vector<128x84xf32>
    %263 = tpu.matmul %32, %262, %cst_59 {dimension_numbers = #tpu.dot_dimension_numbers<[1], [0], [0], [1], [0, 0, 1, 1], [], []>} : vector<128x42xbf16>, vector<42x84xbf16>, vector<128x84xf32> -> vector<128x84xf32>
    %264 = vector.shape_cast %263 : vector<128x84xf32> to vector<4x2x16x84xf32>
    %265 = vector.extract_strided_slice %264 {offsets = [0, 0, 1, 0], sizes = [1, 2, 14, 84], strides = [1, 1, 1, 1]} : vector<4x2x16x84xf32> to vector<1x2x14x84xf32>
    %266 = vector.shape_cast %265 : vector<1x2x14x84xf32> to vector<2x14x84xf32>
    %267 = arith.addf %254, %266 : vector<2x14x84xf32>
    %268 = vector.extract_strided_slice %264 {offsets = [1, 0, 1, 0], sizes = [1, 2, 14, 84], strides = [1, 1, 1, 1]} : vector<4x2x16x84xf32> to vector<1x2x14x84xf32>
    %269 = vector.shape_cast %268 : vector<1x2x14x84xf32> to vector<2x14x84xf32>
    %270 = arith.addf %251, %269 : vector<2x14x84xf32>
    %271 = vector.extract_strided_slice %264 {offsets = [2, 0, 1, 0], sizes = [1, 2, 14, 84], strides = [1, 1, 1, 1]} : vector<4x2x16x84xf32> to vector<1x2x14x84xf32>
    %272 = vector.shape_cast %271 : vector<1x2x14x84xf32> to vector<2x14x84xf32>
    %273 = arith.addf %260, %272 : vector<2x14x84xf32>
    %274 = vector.extract_strided_slice %264 {offsets = [3, 0, 1, 0], sizes = [1, 2, 14, 84], strides = [1, 1, 1, 1]} : vector<4x2x16x84xf32> to vector<1x2x14x84xf32>
    %275 = vector.shape_cast %274 : vector<1x2x14x84xf32> to vector<2x14x84xf32>
    %276 = arith.addf %257, %275 : vector<2x14x84xf32>
    %c15 = arith.constant 15 : index
    %c0_60 = arith.constant 0 : index
    %c0_61 = arith.constant 0 : index
    %277 = vector.load %arg2[%c15, %c0_60, %c0_61] : memref<25x42x84xbf16, #tpu.memory_space<vmem>>, vector<1x42x84xbf16>
    %278 = vector.shape_cast %277 : vector<1x42x84xbf16> to vector<42x84xbf16>
    %cst_62 = arith.constant dense<0.000000e+00> : vector<128x84xf32>
    %279 = tpu.matmul %12, %278, %cst_62 {dimension_numbers = #tpu.dot_dimension_numbers<[1], [0], [0], [1], [0, 0, 1, 1], [], []>} : vector<128x42xbf16>, vector<42x84xbf16>, vector<128x84xf32> -> vector<128x84xf32>
    %280 = vector.shape_cast %279 : vector<128x84xf32> to vector<4x2x16x84xf32>
    %281 = vector.extract_strided_slice %280 {offsets = [0, 0, 2, 0], sizes = [1, 2, 14, 84], strides = [1, 1, 1, 1]} : vector<4x2x16x84xf32> to vector<1x2x14x84xf32>
    %282 = vector.shape_cast %281 : vector<1x2x14x84xf32> to vector<2x14x84xf32>
    %283 = arith.addf %273, %282 : vector<2x14x84xf32>
    %284 = vector.extract_strided_slice %280 {offsets = [1, 0, 2, 0], sizes = [1, 2, 14, 84], strides = [1, 1, 1, 1]} : vector<4x2x16x84xf32> to vector<1x2x14x84xf32>
    %285 = vector.shape_cast %284 : vector<1x2x14x84xf32> to vector<2x14x84xf32>
    %286 = arith.addf %276, %285 : vector<2x14x84xf32>
    %287 = vector.extract_strided_slice %280 {offsets = [2, 0, 1, 0], sizes = [1, 2, 14, 84], strides = [1, 1, 1, 1]} : vector<4x2x16x84xf32> to vector<1x2x14x84xf32>
    %288 = vector.shape_cast %287 : vector<1x2x14x84xf32> to vector<2x14x84xf32>
    %289 = arith.addf %267, %288 : vector<2x14x84xf32>
    %290 = vector.extract_strided_slice %280 {offsets = [3, 0, 1, 0], sizes = [1, 2, 14, 84], strides = [1, 1, 1, 1]} : vector<4x2x16x84xf32> to vector<1x2x14x84xf32>
    %291 = vector.shape_cast %290 : vector<1x2x14x84xf32> to vector<2x14x84xf32>
    %292 = arith.addf %270, %291 : vector<2x14x84xf32>
    %c16 = arith.constant 16 : index
    %c0_63 = arith.constant 0 : index
    %c0_64 = arith.constant 0 : index
    %293 = vector.load %arg2[%c16, %c0_63, %c0_64] : memref<25x42x84xbf16, #tpu.memory_space<vmem>>, vector<1x42x84xbf16>
    %294 = vector.shape_cast %293 : vector<1x42x84xbf16> to vector<42x84xbf16>
    %cst_65 = arith.constant dense<0.000000e+00> : vector<128x84xf32>
    %295 = tpu.matmul %17, %294, %cst_65 {dimension_numbers = #tpu.dot_dimension_numbers<[1], [0], [0], [1], [0, 0, 1, 1], [], []>} : vector<128x42xbf16>, vector<42x84xbf16>, vector<128x84xf32> -> vector<128x84xf32>
    %296 = vector.shape_cast %295 : vector<128x84xf32> to vector<4x2x16x84xf32>
    %297 = vector.extract_strided_slice %296 {offsets = [0, 0, 2, 0], sizes = [1, 2, 14, 84], strides = [1, 1, 1, 1]} : vector<4x2x16x84xf32> to vector<1x2x14x84xf32>
    %298 = vector.shape_cast %297 : vector<1x2x14x84xf32> to vector<2x14x84xf32>
    %299 = arith.addf %286, %298 : vector<2x14x84xf32>
    %300 = vector.extract_strided_slice %296 {offsets = [1, 0, 2, 0], sizes = [1, 2, 14, 84], strides = [1, 1, 1, 1]} : vector<4x2x16x84xf32> to vector<1x2x14x84xf32>
    %301 = vector.shape_cast %300 : vector<1x2x14x84xf32> to vector<2x14x84xf32>
    %302 = arith.addf %283, %301 : vector<2x14x84xf32>
    %303 = vector.extract_strided_slice %296 {offsets = [2, 0, 1, 0], sizes = [1, 2, 14, 84], strides = [1, 1, 1, 1]} : vector<4x2x16x84xf32> to vector<1x2x14x84xf32>
    %304 = vector.shape_cast %303 : vector<1x2x14x84xf32> to vector<2x14x84xf32>
    %305 = arith.addf %292, %304 : vector<2x14x84xf32>
    %306 = vector.extract_strided_slice %296 {offsets = [3, 0, 1, 0], sizes = [1, 2, 14, 84], strides = [1, 1, 1, 1]} : vector<4x2x16x84xf32> to vector<1x2x14x84xf32>
    %307 = vector.shape_cast %306 : vector<1x2x14x84xf32> to vector<2x14x84xf32>
    %308 = arith.addf %289, %307 : vector<2x14x84xf32>
    %c17 = arith.constant 17 : index
    %c0_66 = arith.constant 0 : index
    %c0_67 = arith.constant 0 : index
    %309 = vector.load %arg2[%c17, %c0_66, %c0_67] : memref<25x42x84xbf16, #tpu.memory_space<vmem>>, vector<1x42x84xbf16>
    %310 = vector.shape_cast %309 : vector<1x42x84xbf16> to vector<42x84xbf16>
    %cst_68 = arith.constant dense<0.000000e+00> : vector<128x84xf32>
    %311 = tpu.matmul %22, %310, %cst_68 {dimension_numbers = #tpu.dot_dimension_numbers<[1], [0], [0], [1], [0, 0, 1, 1], [], []>} : vector<128x42xbf16>, vector<42x84xbf16>, vector<128x84xf32> -> vector<128x84xf32>
    %312 = vector.shape_cast %311 : vector<128x84xf32> to vector<4x2x16x84xf32>
    %313 = vector.extract_strided_slice %312 {offsets = [0, 0, 2, 0], sizes = [1, 2, 14, 84], strides = [1, 1, 1, 1]} : vector<4x2x16x84xf32> to vector<1x2x14x84xf32>
    %314 = vector.shape_cast %313 : vector<1x2x14x84xf32> to vector<2x14x84xf32>
    %315 = arith.addf %302, %314 : vector<2x14x84xf32>
    %316 = vector.extract_strided_slice %312 {offsets = [1, 0, 2, 0], sizes = [1, 2, 14, 84], strides = [1, 1, 1, 1]} : vector<4x2x16x84xf32> to vector<1x2x14x84xf32>
    %317 = vector.shape_cast %316 : vector<1x2x14x84xf32> to vector<2x14x84xf32>
    %318 = arith.addf %299, %317 : vector<2x14x84xf32>
    %319 = vector.extract_strided_slice %312 {offsets = [2, 0, 1, 0], sizes = [1, 2, 14, 84], strides = [1, 1, 1, 1]} : vector<4x2x16x84xf32> to vector<1x2x14x84xf32>
    %320 = vector.shape_cast %319 : vector<1x2x14x84xf32> to vector<2x14x84xf32>
    %321 = arith.addf %308, %320 : vector<2x14x84xf32>
    %322 = vector.extract_strided_slice %312 {offsets = [3, 0, 1, 0], sizes = [1, 2, 14, 84], strides = [1, 1, 1, 1]} : vector<4x2x16x84xf32> to vector<1x2x14x84xf32>
    %323 = vector.shape_cast %322 : vector<1x2x14x84xf32> to vector<2x14x84xf32>
    %324 = arith.addf %305, %323 : vector<2x14x84xf32>
    %c18 = arith.constant 18 : index
    %c0_69 = arith.constant 0 : index
    %c0_70 = arith.constant 0 : index
    %325 = vector.load %arg2[%c18, %c0_69, %c0_70] : memref<25x42x84xbf16, #tpu.memory_space<vmem>>, vector<1x42x84xbf16>
    %326 = vector.shape_cast %325 : vector<1x42x84xbf16> to vector<42x84xbf16>
    %cst_71 = arith.constant dense<0.000000e+00> : vector<128x84xf32>
    %327 = tpu.matmul %27, %326, %cst_71 {dimension_numbers = #tpu.dot_dimension_numbers<[1], [0], [0], [1], [0, 0, 1, 1], [], []>} : vector<128x42xbf16>, vector<42x84xbf16>, vector<128x84xf32> -> vector<128x84xf32>
    %328 = vector.shape_cast %327 : vector<128x84xf32> to vector<4x2x16x84xf32>
    %329 = vector.extract_strided_slice %328 {offsets = [0, 0, 2, 0], sizes = [1, 2, 14, 84], strides = [1, 1, 1, 1]} : vector<4x2x16x84xf32> to vector<1x2x14x84xf32>
    %330 = vector.shape_cast %329 : vector<1x2x14x84xf32> to vector<2x14x84xf32>
    %331 = arith.addf %318, %330 : vector<2x14x84xf32>
    %332 = vector.extract_strided_slice %328 {offsets = [1, 0, 2, 0], sizes = [1, 2, 14, 84], strides = [1, 1, 1, 1]} : vector<4x2x16x84xf32> to vector<1x2x14x84xf32>
    %333 = vector.shape_cast %332 : vector<1x2x14x84xf32> to vector<2x14x84xf32>
    %334 = arith.addf %315, %333 : vector<2x14x84xf32>
    %335 = vector.extract_strided_slice %328 {offsets = [2, 0, 1, 0], sizes = [1, 2, 14, 84], strides = [1, 1, 1, 1]} : vector<4x2x16x84xf32> to vector<1x2x14x84xf32>
    %336 = vector.shape_cast %335 : vector<1x2x14x84xf32> to vector<2x14x84xf32>
    %337 = arith.addf %324, %336 : vector<2x14x84xf32>
    %338 = vector.extract_strided_slice %328 {offsets = [3, 0, 1, 0], sizes = [1, 2, 14, 84], strides = [1, 1, 1, 1]} : vector<4x2x16x84xf32> to vector<1x2x14x84xf32>
    %339 = vector.shape_cast %338 : vector<1x2x14x84xf32> to vector<2x14x84xf32>
    %340 = arith.addf %321, %339 : vector<2x14x84xf32>
    %c19 = arith.constant 19 : index
    %c0_72 = arith.constant 0 : index
    %c0_73 = arith.constant 0 : index
    %341 = vector.load %arg2[%c19, %c0_72, %c0_73] : memref<25x42x84xbf16, #tpu.memory_space<vmem>>, vector<1x42x84xbf16>
    %342 = vector.shape_cast %341 : vector<1x42x84xbf16> to vector<42x84xbf16>
    %cst_74 = arith.constant dense<0.000000e+00> : vector<128x84xf32>
    %343 = tpu.matmul %32, %342, %cst_74 {dimension_numbers = #tpu.dot_dimension_numbers<[1], [0], [0], [1], [0, 0, 1, 1], [], []>} : vector<128x42xbf16>, vector<42x84xbf16>, vector<128x84xf32> -> vector<128x84xf32>
    %344 = vector.shape_cast %343 : vector<128x84xf32> to vector<4x2x16x84xf32>
    %345 = vector.extract_strided_slice %344 {offsets = [0, 0, 2, 0], sizes = [1, 2, 14, 84], strides = [1, 1, 1, 1]} : vector<4x2x16x84xf32> to vector<1x2x14x84xf32>
    %346 = vector.shape_cast %345 : vector<1x2x14x84xf32> to vector<2x14x84xf32>
    %347 = arith.addf %334, %346 : vector<2x14x84xf32>
    %348 = vector.extract_strided_slice %344 {offsets = [1, 0, 2, 0], sizes = [1, 2, 14, 84], strides = [1, 1, 1, 1]} : vector<4x2x16x84xf32> to vector<1x2x14x84xf32>
    %349 = vector.shape_cast %348 : vector<1x2x14x84xf32> to vector<2x14x84xf32>
    %350 = arith.addf %331, %349 : vector<2x14x84xf32>
    %351 = vector.extract_strided_slice %344 {offsets = [2, 0, 1, 0], sizes = [1, 2, 14, 84], strides = [1, 1, 1, 1]} : vector<4x2x16x84xf32> to vector<1x2x14x84xf32>
    %352 = vector.shape_cast %351 : vector<1x2x14x84xf32> to vector<2x14x84xf32>
    %353 = arith.addf %340, %352 : vector<2x14x84xf32>
    %354 = vector.extract_strided_slice %344 {offsets = [3, 0, 1, 0], sizes = [1, 2, 14, 84], strides = [1, 1, 1, 1]} : vector<4x2x16x84xf32> to vector<1x2x14x84xf32>
    %355 = vector.shape_cast %354 : vector<1x2x14x84xf32> to vector<2x14x84xf32>
    %356 = arith.addf %337, %355 : vector<2x14x84xf32>
    %c20 = arith.constant 20 : index
    %c0_75 = arith.constant 0 : index
    %c0_76 = arith.constant 0 : index
    %357 = vector.load %arg2[%c20, %c0_75, %c0_76] : memref<25x42x84xbf16, #tpu.memory_space<vmem>>, vector<1x42x84xbf16>
    %358 = vector.shape_cast %357 : vector<1x42x84xbf16> to vector<42x84xbf16>
    %cst_77 = arith.constant dense<0.000000e+00> : vector<128x84xf32>
    %359 = tpu.matmul %12, %358, %cst_77 {dimension_numbers = #tpu.dot_dimension_numbers<[1], [0], [0], [1], [0, 0, 1, 1], [], []>} : vector<128x42xbf16>, vector<42x84xbf16>, vector<128x84xf32> -> vector<128x84xf32>
    %360 = vector.shape_cast %359 : vector<128x84xf32> to vector<4x2x16x84xf32>
    %361 = vector.extract_strided_slice %360 {offsets = [0, 0, 2, 0], sizes = [1, 2, 14, 84], strides = [1, 1, 1, 1]} : vector<4x2x16x84xf32> to vector<1x2x14x84xf32>
    %362 = vector.shape_cast %361 : vector<1x2x14x84xf32> to vector<2x14x84xf32>
    %363 = arith.addf %353, %362 : vector<2x14x84xf32>
    %364 = vector.extract_strided_slice %360 {offsets = [1, 0, 2, 0], sizes = [1, 2, 14, 84], strides = [1, 1, 1, 1]} : vector<4x2x16x84xf32> to vector<1x2x14x84xf32>
    %365 = vector.shape_cast %364 : vector<1x2x14x84xf32> to vector<2x14x84xf32>
    %366 = arith.addf %356, %365 : vector<2x14x84xf32>
    %367 = vector.extract_strided_slice %360 {offsets = [2, 0, 2, 0], sizes = [1, 2, 14, 84], strides = [1, 1, 1, 1]} : vector<4x2x16x84xf32> to vector<1x2x14x84xf32>
    %368 = vector.shape_cast %367 : vector<1x2x14x84xf32> to vector<2x14x84xf32>
    %369 = arith.addf %347, %368 : vector<2x14x84xf32>
    %370 = vector.extract_strided_slice %360 {offsets = [3, 0, 2, 0], sizes = [1, 2, 14, 84], strides = [1, 1, 1, 1]} : vector<4x2x16x84xf32> to vector<1x2x14x84xf32>
    %371 = vector.shape_cast %370 : vector<1x2x14x84xf32> to vector<2x14x84xf32>
    %372 = arith.addf %350, %371 : vector<2x14x84xf32>
    %c21 = arith.constant 21 : index
    %c0_78 = arith.constant 0 : index
    %c0_79 = arith.constant 0 : index
    %373 = vector.load %arg2[%c21, %c0_78, %c0_79] : memref<25x42x84xbf16, #tpu.memory_space<vmem>>, vector<1x42x84xbf16>
    %374 = vector.shape_cast %373 : vector<1x42x84xbf16> to vector<42x84xbf16>
    %cst_80 = arith.constant dense<0.000000e+00> : vector<128x84xf32>
    %375 = tpu.matmul %17, %374, %cst_80 {dimension_numbers = #tpu.dot_dimension_numbers<[1], [0], [0], [1], [0, 0, 1, 1], [], []>} : vector<128x42xbf16>, vector<42x84xbf16>, vector<128x84xf32> -> vector<128x84xf32>
    %376 = vector.shape_cast %375 : vector<128x84xf32> to vector<4x2x16x84xf32>
    %377 = vector.extract_strided_slice %376 {offsets = [0, 0, 2, 0], sizes = [1, 2, 14, 84], strides = [1, 1, 1, 1]} : vector<4x2x16x84xf32> to vector<1x2x14x84xf32>
    %378 = vector.shape_cast %377 : vector<1x2x14x84xf32> to vector<2x14x84xf32>
    %379 = arith.addf %366, %378 : vector<2x14x84xf32>
    %380 = vector.extract_strided_slice %376 {offsets = [1, 0, 2, 0], sizes = [1, 2, 14, 84], strides = [1, 1, 1, 1]} : vector<4x2x16x84xf32> to vector<1x2x14x84xf32>
    %381 = vector.shape_cast %380 : vector<1x2x14x84xf32> to vector<2x14x84xf32>
    %382 = arith.addf %363, %381 : vector<2x14x84xf32>
    %383 = vector.extract_strided_slice %376 {offsets = [2, 0, 2, 0], sizes = [1, 2, 14, 84], strides = [1, 1, 1, 1]} : vector<4x2x16x84xf32> to vector<1x2x14x84xf32>
    %384 = vector.shape_cast %383 : vector<1x2x14x84xf32> to vector<2x14x84xf32>
    %385 = arith.addf %372, %384 : vector<2x14x84xf32>
    %386 = vector.extract_strided_slice %376 {offsets = [3, 0, 2, 0], sizes = [1, 2, 14, 84], strides = [1, 1, 1, 1]} : vector<4x2x16x84xf32> to vector<1x2x14x84xf32>
    %387 = vector.shape_cast %386 : vector<1x2x14x84xf32> to vector<2x14x84xf32>
    %388 = arith.addf %369, %387 : vector<2x14x84xf32>
    %c22 = arith.constant 22 : index
    %c0_81 = arith.constant 0 : index
    %c0_82 = arith.constant 0 : index
    %389 = vector.load %arg2[%c22, %c0_81, %c0_82] : memref<25x42x84xbf16, #tpu.memory_space<vmem>>, vector<1x42x84xbf16>
    %390 = vector.shape_cast %389 : vector<1x42x84xbf16> to vector<42x84xbf16>
    %cst_83 = arith.constant dense<0.000000e+00> : vector<128x84xf32>
    %391 = tpu.matmul %22, %390, %cst_83 {dimension_numbers = #tpu.dot_dimension_numbers<[1], [0], [0], [1], [0, 0, 1, 1], [], []>} : vector<128x42xbf16>, vector<42x84xbf16>, vector<128x84xf32> -> vector<128x84xf32>
    %392 = vector.shape_cast %391 : vector<128x84xf32> to vector<4x2x16x84xf32>
    %393 = vector.extract_strided_slice %392 {offsets = [0, 0, 2, 0], sizes = [1, 2, 14, 84], strides = [1, 1, 1, 1]} : vector<4x2x16x84xf32> to vector<1x2x14x84xf32>
    %394 = vector.shape_cast %393 : vector<1x2x14x84xf32> to vector<2x14x84xf32>
    %395 = arith.addf %382, %394 : vector<2x14x84xf32>
    %396 = vector.extract_strided_slice %392 {offsets = [1, 0, 2, 0], sizes = [1, 2, 14, 84], strides = [1, 1, 1, 1]} : vector<4x2x16x84xf32> to vector<1x2x14x84xf32>
    %397 = vector.shape_cast %396 : vector<1x2x14x84xf32> to vector<2x14x84xf32>
    %398 = arith.addf %379, %397 : vector<2x14x84xf32>
    %399 = vector.extract_strided_slice %392 {offsets = [2, 0, 2, 0], sizes = [1, 2, 14, 84], strides = [1, 1, 1, 1]} : vector<4x2x16x84xf32> to vector<1x2x14x84xf32>
    %400 = vector.shape_cast %399 : vector<1x2x14x84xf32> to vector<2x14x84xf32>
    %401 = arith.addf %388, %400 : vector<2x14x84xf32>
    %402 = vector.extract_strided_slice %392 {offsets = [3, 0, 2, 0], sizes = [1, 2, 14, 84], strides = [1, 1, 1, 1]} : vector<4x2x16x84xf32> to vector<1x2x14x84xf32>
    %403 = vector.shape_cast %402 : vector<1x2x14x84xf32> to vector<2x14x84xf32>
    %404 = arith.addf %385, %403 : vector<2x14x84xf32>
    %c23 = arith.constant 23 : index
    %c0_84 = arith.constant 0 : index
    %c0_85 = arith.constant 0 : index
    %405 = vector.load %arg2[%c23, %c0_84, %c0_85] : memref<25x42x84xbf16, #tpu.memory_space<vmem>>, vector<1x42x84xbf16>
    %406 = vector.shape_cast %405 : vector<1x42x84xbf16> to vector<42x84xbf16>
    %cst_86 = arith.constant dense<0.000000e+00> : vector<128x84xf32>
    %407 = tpu.matmul %27, %406, %cst_86 {dimension_numbers = #tpu.dot_dimension_numbers<[1], [0], [0], [1], [0, 0, 1, 1], [], []>} : vector<128x42xbf16>, vector<42x84xbf16>, vector<128x84xf32> -> vector<128x84xf32>
    %408 = vector.shape_cast %407 : vector<128x84xf32> to vector<4x2x16x84xf32>
    %409 = vector.extract_strided_slice %408 {offsets = [0, 0, 2, 0], sizes = [1, 2, 14, 84], strides = [1, 1, 1, 1]} : vector<4x2x16x84xf32> to vector<1x2x14x84xf32>
    %410 = vector.shape_cast %409 : vector<1x2x14x84xf32> to vector<2x14x84xf32>
    %411 = arith.addf %398, %410 : vector<2x14x84xf32>
    %412 = vector.extract_strided_slice %408 {offsets = [1, 0, 2, 0], sizes = [1, 2, 14, 84], strides = [1, 1, 1, 1]} : vector<4x2x16x84xf32> to vector<1x2x14x84xf32>
    %413 = vector.shape_cast %412 : vector<1x2x14x84xf32> to vector<2x14x84xf32>
    %414 = arith.addf %395, %413 : vector<2x14x84xf32>
    %415 = vector.extract_strided_slice %408 {offsets = [2, 0, 2, 0], sizes = [1, 2, 14, 84], strides = [1, 1, 1, 1]} : vector<4x2x16x84xf32> to vector<1x2x14x84xf32>
    %416 = vector.shape_cast %415 : vector<1x2x14x84xf32> to vector<2x14x84xf32>
    %417 = arith.addf %404, %416 : vector<2x14x84xf32>
    %418 = vector.extract_strided_slice %408 {offsets = [3, 0, 2, 0], sizes = [1, 2, 14, 84], strides = [1, 1, 1, 1]} : vector<4x2x16x84xf32> to vector<1x2x14x84xf32>
    %419 = vector.shape_cast %418 : vector<1x2x14x84xf32> to vector<2x14x84xf32>
    %420 = arith.addf %401, %419 : vector<2x14x84xf32>
    %c24 = arith.constant 24 : index
    %c0_87 = arith.constant 0 : index
    %c0_88 = arith.constant 0 : index
    %421 = vector.load %arg2[%c24, %c0_87, %c0_88] : memref<25x42x84xbf16, #tpu.memory_space<vmem>>, vector<1x42x84xbf16>
    %422 = vector.shape_cast %421 : vector<1x42x84xbf16> to vector<42x84xbf16>
    %cst_89 = arith.constant dense<0.000000e+00> : vector<128x84xf32>
    %423 = tpu.matmul %32, %422, %cst_89 {dimension_numbers = #tpu.dot_dimension_numbers<[1], [0], [0], [1], [0, 0, 1, 1], [], []>} : vector<128x42xbf16>, vector<42x84xbf16>, vector<128x84xf32> -> vector<128x84xf32>
    %424 = vector.shape_cast %423 : vector<128x84xf32> to vector<4x2x16x84xf32>
    %425 = vector.extract_strided_slice %424 {offsets = [0, 0, 2, 0], sizes = [1, 2, 14, 84], strides = [1, 1, 1, 1]} : vector<4x2x16x84xf32> to vector<1x2x14x84xf32>
    %426 = vector.shape_cast %425 : vector<1x2x14x84xf32> to vector<2x14x84xf32>
    %427 = arith.addf %414, %426 : vector<2x14x84xf32>
    %428 = vector.extract_strided_slice %424 {offsets = [1, 0, 2, 0], sizes = [1, 2, 14, 84], strides = [1, 1, 1, 1]} : vector<4x2x16x84xf32> to vector<1x2x14x84xf32>
    %429 = vector.shape_cast %428 : vector<1x2x14x84xf32> to vector<2x14x84xf32>
    %430 = arith.addf %411, %429 : vector<2x14x84xf32>
    %431 = vector.extract_strided_slice %424 {offsets = [2, 0, 2, 0], sizes = [1, 2, 14, 84], strides = [1, 1, 1, 1]} : vector<4x2x16x84xf32> to vector<1x2x14x84xf32>
    %432 = vector.shape_cast %431 : vector<1x2x14x84xf32> to vector<2x14x84xf32>
    %433 = arith.addf %420, %432 : vector<2x14x84xf32>
    %434 = vector.extract_strided_slice %424 {offsets = [3, 0, 2, 0], sizes = [1, 2, 14, 84], strides = [1, 1, 1, 1]} : vector<4x2x16x84xf32> to vector<1x2x14x84xf32>
    %435 = vector.shape_cast %434 : vector<1x2x14x84xf32> to vector<2x14x84xf32>
    %436 = arith.addf %417, %435 : vector<2x14x84xf32>
    %437 = arith.maximumf %427, %430 : vector<2x14x84xf32>
    %438 = arith.maximumf %433, %436 : vector<2x14x84xf32>
    %439 = arith.maximumf %437, %438 : vector<2x14x84xf32>
    %c0_90 = arith.constant 0 : index
    %c0_91 = arith.constant 0 : index
    %440 = vector.load %arg3[%c0_90, %c0_91] : memref<1x84xf32, #tpu.memory_space<vmem>>, vector<1x84xf32>
    %441 = vector.shape_cast %440 : vector<1x84xf32> to vector<1x1x84xf32>
    %442 = vector.broadcast %441 : vector<1x1x84xf32> to vector<2x14x84xf32>
    %443 = arith.addf %439, %442 : vector<2x14x84xf32>
    %cst_92 = arith.constant 0.000000e+00 : f32
    %444 = vector.broadcast %cst_92 : f32 to vector<2x14x84xf32>
    %445 = arith.maximumf %443, %444 : vector<2x14x84xf32>
    %cst_93 = arith.constant 0.000000e+00 : f32
    %446 = vector.broadcast %cst_93 : f32 to vector<2x2x84xf32>
    %c0_94 = arith.constant 0 : index
    %c0_95 = arith.constant 0 : index
    %c7_96 = arith.constant 7 : index
    %c0_97 = arith.constant 0 : index
    %447 = vector.load %arg13[%c0_94, %c0_95, %c7_96, %c0_97] : memref<2x2x8x84xf32, #tpu.memory_space<vmem>>, vector<2x2x1x84xf32>
    %448 = vector.shape_cast %447 : vector<2x2x1x84xf32> to vector<2x2x84xf32>
    %449 = vector.shape_cast %446 : vector<2x2x84xf32> to vector<2x2x1x84xf32>
    tpu.vector_store %arg13[%c0_94, %c0_95, %c7_96, %c0_97], %449 {strides = array<i32>} : memref<2x2x8x84xf32, #tpu.memory_space<vmem>>, vector<2x2x1x84xf32>,
    %450 = vector.extract_strided_slice %445 {offsets = [0, 0, 0], sizes = [2, 1, 84], strides = [1, 1, 1]} : vector<2x14x84xf32> to vector<2x1x84xf32>
    %451 = vector.shape_cast %450 : vector<2x1x84xf32> to vector<2x84xf32>
    %c0_98 = arith.constant 0 : index
    %c0_99 = arith.constant 0 : index
    %c0_100 = arith.constant 0 : index
    %c0_101 = arith.constant 0 : index
    %452 = vector.load %arg13[%c0_98, %c0_99, %c0_100, %c0_101] : memref<2x2x8x84xf32, #tpu.memory_space<vmem>>, vector<1x2x1x84xf32>
    %453 = vector.shape_cast %452 : vector<1x2x1x84xf32> to vector<2x84xf32>
    %454 = vector.shape_cast %451 : vector<2x84xf32> to vector<1x2x1x84xf32>
    tpu.vector_store %arg13[%c0_98, %c0_99, %c0_100, %c0_101], %454 {strides = array<i32>} : memref<2x2x8x84xf32, #tpu.memory_space<vmem>>, vector<1x2x1x84xf32>,
    %455 = vector.extract_strided_slice %445 {offsets = [0, 1, 0], sizes = [2, 1, 84], strides = [1, 1, 1]} : vector<2x14x84xf32> to vector<2x1x84xf32>
    %456 = vector.shape_cast %455 : vector<2x1x84xf32> to vector<2x84xf32>
    %c1_102 = arith.constant 1 : index
    %c0_103 = arith.constant 0 : index
    %c0_104 = arith.constant 0 : index
    %c0_105 = arith.constant 0 : index
    %457 = vector.load %arg13[%c1_102, %c0_103, %c0_104, %c0_105] : memref<2x2x8x84xf32, #tpu.memory_space<vmem>>, vector<1x2x1x84xf32>
    %458 = vector.shape_cast %457 : vector<1x2x1x84xf32> to vector<2x84xf32>
    %459 = vector.shape_cast %456 : vector<2x84xf32> to vector<1x2x1x84xf32>
    tpu.vector_store %arg13[%c1_102, %c0_103, %c0_104, %c0_105], %459 {strides = array<i32>} : memref<2x2x8x84xf32, #tpu.memory_space<vmem>>, vector<1x2x1x84xf32>,
    %460 = vector.extract_strided_slice %445 {offsets = [0, 2, 0], sizes = [2, 1, 84], strides = [1, 1, 1]} : vector<2x14x84xf32> to vector<2x1x84xf32>
    %461 = vector.shape_cast %460 : vector<2x1x84xf32> to vector<2x84xf32>
    %c0_106 = arith.constant 0 : index
    %c0_107 = arith.constant 0 : index
    %c1_108 = arith.constant 1 : index
    %c0_109 = arith.constant 0 : index
    %462 = vector.load %arg13[%c0_106, %c0_107, %c1_108, %c0_109] : memref<2x2x8x84xf32, #tpu.memory_space<vmem>>, vector<1x2x1x84xf32>
    %463 = vector.shape_cast %462 : vector<1x2x1x84xf32> to vector<2x84xf32>
    %464 = vector.shape_cast %461 : vector<2x84xf32> to vector<1x2x1x84xf32>
    tpu.vector_store %arg13[%c0_106, %c0_107, %c1_108, %c0_109], %464 {strides = array<i32>} : memref<2x2x8x84xf32, #tpu.memory_space<vmem>>, vector<1x2x1x84xf32>,
    %465 = vector.extract_strided_slice %445 {offsets = [0, 3, 0], sizes = [2, 1, 84], strides = [1, 1, 1]} : vector<2x14x84xf32> to vector<2x1x84xf32>
    %466 = vector.shape_cast %465 : vector<2x1x84xf32> to vector<2x84xf32>
    %c1_110 = arith.constant 1 : index
    %c0_111 = arith.constant 0 : index
    %c1_112 = arith.constant 1 : index
    %c0_113 = arith.constant 0 : index
    %467 = vector.load %arg13[%c1_110, %c0_111, %c1_112, %c0_113] : memref<2x2x8x84xf32, #tpu.memory_space<vmem>>, vector<1x2x1x84xf32>
    %468 = vector.shape_cast %467 : vector<1x2x1x84xf32> to vector<2x84xf32>
    %469 = vector.shape_cast %466 : vector<2x84xf32> to vector<1x2x1x84xf32>
    tpu.vector_store %arg13[%c1_110, %c0_111, %c1_112, %c0_113], %469 {strides = array<i32>} : memref<2x2x8x84xf32, #tpu.memory_space<vmem>>, vector<1x2x1x84xf32>,
    %470 = vector.extract_strided_slice %445 {offsets = [0, 4, 0], sizes = [2, 1, 84], strides = [1, 1, 1]} : vector<2x14x84xf32> to vector<2x1x84xf32>
    %471 = vector.shape_cast %470 : vector<2x1x84xf32> to vector<2x84xf32>
    %c0_114 = arith.constant 0 : index
    %c0_115 = arith.constant 0 : index
    %c2_116 = arith.constant 2 : index
    %c0_117 = arith.constant 0 : index
    %472 = vector.load %arg13[%c0_114, %c0_115, %c2_116, %c0_117] : memref<2x2x8x84xf32, #tpu.memory_space<vmem>>, vector<1x2x1x84xf32>
    %473 = vector.shape_cast %472 : vector<1x2x1x84xf32> to vector<2x84xf32>
    %474 = vector.shape_cast %471 : vector<2x84xf32> to vector<1x2x1x84xf32>
    tpu.vector_store %arg13[%c0_114, %c0_115, %c2_116, %c0_117], %474 {strides = array<i32>} : memref<2x2x8x84xf32, #tpu.memory_space<vmem>>, vector<1x2x1x84xf32>,
    %475 = vector.extract_strided_slice %445 {offsets = [0, 5, 0], sizes = [2, 1, 84], strides = [1, 1, 1]} : vector<2x14x84xf32> to vector<2x1x84xf32>
    %476 = vector.shape_cast %475 : vector<2x1x84xf32> to vector<2x84xf32>
    %c1_118 = arith.constant 1 : index
    %c0_119 = arith.constant 0 : index
    %c2_120 = arith.constant 2 : index
    %c0_121 = arith.constant 0 : index
    %477 = vector.load %arg13[%c1_118, %c0_119, %c2_120, %c0_121] : memref<2x2x8x84xf32, #tpu.memory_space<vmem>>, vector<1x2x1x84xf32>
    %478 = vector.shape_cast %477 : vector<1x2x1x84xf32> to vector<2x84xf32>
    %479 = vector.shape_cast %476 : vector<2x84xf32> to vector<1x2x1x84xf32>
    tpu.vector_store %arg13[%c1_118, %c0_119, %c2_120, %c0_121], %479 {strides = array<i32>} : memref<2x2x8x84xf32, #tpu.memory_space<vmem>>, vector<1x2x1x84xf32>,
    %480 = vector.extract_strided_slice %445 {offsets = [0, 6, 0], sizes = [2, 1, 84], strides = [1, 1, 1]} : vector<2x14x84xf32> to vector<2x1x84xf32>
    %481 = vector.shape_cast %480 : vector<2x1x84xf32> to vector<2x84xf32>
    %c0_122 = arith.constant 0 : index
    %c0_123 = arith.constant 0 : index
    %c3_124 = arith.constant 3 : index
    %c0_125 = arith.constant 0 : index
    %482 = vector.load %arg13[%c0_122, %c0_123, %c3_124, %c0_125] : memref<2x2x8x84xf32, #tpu.memory_space<vmem>>, vector<1x2x1x84xf32>
    %483 = vector.shape_cast %482 : vector<1x2x1x84xf32> to vector<2x84xf32>
    %484 = vector.shape_cast %481 : vector<2x84xf32> to vector<1x2x1x84xf32>
    tpu.vector_store %arg13[%c0_122, %c0_123, %c3_124, %c0_125], %484 {strides = array<i32>} : memref<2x2x8x84xf32, #tpu.memory_space<vmem>>, vector<1x2x1x84xf32>,
    %485 = vector.extract_strided_slice %445 {offsets = [0, 7, 0], sizes = [2, 1, 84], strides = [1, 1, 1]} : vector<2x14x84xf32> to vector<2x1x84xf32>
    %486 = vector.shape_cast %485 : vector<2x1x84xf32> to vector<2x84xf32>
    %c1_126 = arith.constant 1 : index
    %c0_127 = arith.constant 0 : index
    %c3_128 = arith.constant 3 : index
    %c0_129 = arith.constant 0 : index
    %487 = vector.load %arg13[%c1_126, %c0_127, %c3_128, %c0_129] : memref<2x2x8x84xf32, #tpu.memory_space<vmem>>, vector<1x2x1x84xf32>
    %488 = vector.shape_cast %487 : vector<1x2x1x84xf32> to vector<2x84xf32>
    %489 = vector.shape_cast %486 : vector<2x84xf32> to vector<1x2x1x84xf32>
    tpu.vector_store %arg13[%c1_126, %c0_127, %c3_128, %c0_129], %489 {strides = array<i32>} : memref<2x2x8x84xf32, #tpu.memory_space<vmem>>, vector<1x2x1x84xf32>,
    %490 = vector.extract_strided_slice %445 {offsets = [0, 8, 0], sizes = [2, 1, 84], strides = [1, 1, 1]} : vector<2x14x84xf32> to vector<2x1x84xf32>
    %491 = vector.shape_cast %490 : vector<2x1x84xf32> to vector<2x84xf32>
    %c0_130 = arith.constant 0 : index
    %c0_131 = arith.constant 0 : index
    %c4_132 = arith.constant 4 : index
    %c0_133 = arith.constant 0 : index
    %492 = vector.load %arg13[%c0_130, %c0_131, %c4_132, %c0_133] : memref<2x2x8x84xf32, #tpu.memory_space<vmem>>, vector<1x2x1x84xf32>
    %493 = vector.shape_cast %492 : vector<1x2x1x84xf32> to vector<2x84xf32>
    %494 = vector.shape_cast %491 : vector<2x84xf32> to vector<1x2x1x84xf32>
    tpu.vector_store %arg13[%c0_130, %c0_131, %c4_132, %c0_133], %494 {strides = array<i32>} : memref<2x2x8x84xf32, #tpu.memory_space<vmem>>, vector<1x2x1x84xf32>,
    %495 = vector.extract_strided_slice %445 {offsets = [0, 9, 0], sizes = [2, 1, 84], strides = [1, 1, 1]} : vector<2x14x84xf32> to vector<2x1x84xf32>
    %496 = vector.shape_cast %495 : vector<2x1x84xf32> to vector<2x84xf32>
    %c1_134 = arith.constant 1 : index
    %c0_135 = arith.constant 0 : index
    %c4_136 = arith.constant 4 : index
    %c0_137 = arith.constant 0 : index
    %497 = vector.load %arg13[%c1_134, %c0_135, %c4_136, %c0_137] : memref<2x2x8x84xf32, #tpu.memory_space<vmem>>, vector<1x2x1x84xf32>
    %498 = vector.shape_cast %497 : vector<1x2x1x84xf32> to vector<2x84xf32>
    %499 = vector.shape_cast %496 : vector<2x84xf32> to vector<1x2x1x84xf32>
    tpu.vector_store %arg13[%c1_134, %c0_135, %c4_136, %c0_137], %499 {strides = array<i32>} : memref<2x2x8x84xf32, #tpu.memory_space<vmem>>, vector<1x2x1x84xf32>,
    %500 = vector.extract_strided_slice %445 {offsets = [0, 10, 0], sizes = [2, 1, 84], strides = [1, 1, 1]} : vector<2x14x84xf32> to vector<2x1x84xf32>
    %501 = vector.shape_cast %500 : vector<2x1x84xf32> to vector<2x84xf32>
    %c0_138 = arith.constant 0 : index
    %c0_139 = arith.constant 0 : index
    %c5_140 = arith.constant 5 : index
    %c0_141 = arith.constant 0 : index
    %502 = vector.load %arg13[%c0_138, %c0_139, %c5_140, %c0_141] : memref<2x2x8x84xf32, #tpu.memory_space<vmem>>, vector<1x2x1x84xf32>
    %503 = vector.shape_cast %502 : vector<1x2x1x84xf32> to vector<2x84xf32>
    %504 = vector.shape_cast %501 : vector<2x84xf32> to vector<1x2x1x84xf32>
    tpu.vector_store %arg13[%c0_138, %c0_139, %c5_140, %c0_141], %504 {strides = array<i32>} : memref<2x2x8x84xf32, #tpu.memory_space<vmem>>, vector<1x2x1x84xf32>,
    %505 = vector.extract_strided_slice %445 {offsets = [0, 11, 0], sizes = [2, 1, 84], strides = [1, 1, 1]} : vector<2x14x84xf32> to vector<2x1x84xf32>
    %506 = vector.shape_cast %505 : vector<2x1x84xf32> to vector<2x84xf32>
    %c1_142 = arith.constant 1 : index
    %c0_143 = arith.constant 0 : index
    %c5_144 = arith.constant 5 : index
    %c0_145 = arith.constant 0 : index
    %507 = vector.load %arg13[%c1_142, %c0_143, %c5_144, %c0_145] : memref<2x2x8x84xf32, #tpu.memory_space<vmem>>, vector<1x2x1x84xf32>
    %508 = vector.shape_cast %507 : vector<1x2x1x84xf32> to vector<2x84xf32>
    %509 = vector.shape_cast %506 : vector<2x84xf32> to vector<1x2x1x84xf32>
    tpu.vector_store %arg13[%c1_142, %c0_143, %c5_144, %c0_145], %509 {strides = array<i32>} : memref<2x2x8x84xf32, #tpu.memory_space<vmem>>, vector<1x2x1x84xf32>,
    %510 = vector.extract_strided_slice %445 {offsets = [0, 12, 0], sizes = [2, 1, 84], strides = [1, 1, 1]} : vector<2x14x84xf32> to vector<2x1x84xf32>
    %511 = vector.shape_cast %510 : vector<2x1x84xf32> to vector<2x84xf32>
    %c0_146 = arith.constant 0 : index
    %c0_147 = arith.constant 0 : index
    %c6_148 = arith.constant 6 : index
    %c0_149 = arith.constant 0 : index
    %512 = vector.load %arg13[%c0_146, %c0_147, %c6_148, %c0_149] : memref<2x2x8x84xf32, #tpu.memory_space<vmem>>, vector<1x2x1x84xf32>
    %513 = vector.shape_cast %512 : vector<1x2x1x84xf32> to vector<2x84xf32>
    %514 = vector.shape_cast %511 : vector<2x84xf32> to vector<1x2x1x84xf32>
    tpu.vector_store %arg13[%c0_146, %c0_147, %c6_148, %c0_149], %514 {strides = array<i32>} : memref<2x2x8x84xf32, #tpu.memory_space<vmem>>, vector<1x2x1x84xf32>,
    %515 = vector.extract_strided_slice %445 {offsets = [0, 13, 0], sizes = [2, 1, 84], strides = [1, 1, 1]} : vector<2x14x84xf32> to vector<2x1x84xf32>
    %516 = vector.shape_cast %515 : vector<2x1x84xf32> to vector<2x84xf32>
    %c1_150 = arith.constant 1 : index
    %c0_151 = arith.constant 0 : index
    %c6_152 = arith.constant 6 : index
    %c0_153 = arith.constant 0 : index
    %517 = vector.load %arg13[%c1_150, %c0_151, %c6_152, %c0_153] : memref<2x2x8x84xf32, #tpu.memory_space<vmem>>, vector<1x2x1x84xf32>
    %518 = vector.shape_cast %517 : vector<1x2x1x84xf32> to vector<2x84xf32>
    %519 = vector.shape_cast %516 : vector<2x84xf32> to vector<1x2x1x84xf32>
    tpu.vector_store %arg13[%c1_150, %c0_151, %c6_152, %c0_153], %519 {strides = array<i32>} : memref<2x2x8x84xf32, #tpu.memory_space<vmem>>, vector<1x2x1x84xf32>,
    %c0_154 = arith.constant 0 : index
    %c0_155 = arith.constant 0 : index
    %c0_156 = arith.constant 0 : index
    %c0_157 = arith.constant 0 : index
    %520 = vector.load %arg13[%c0_154, %c0_155, %c0_156, %c0_157] : memref<2x2x8x84xf32, #tpu.memory_space<vmem>>, vector<1x2x8x84xf32>
    %521 = vector.shape_cast %520 : vector<1x2x8x84xf32> to vector<2x8x84xf32>
    %522 = vector.extract_strided_slice %521 {offsets = [0, 0, 0], sizes = [2, 8, 42], strides = [1, 1, 1]} : vector<2x8x84xf32> to vector<2x8x42xf32>
    %523 = vector.shape_cast %522 : vector<2x8x42xf32> to vector<16x42xf32>
    %524 = arith.truncf %523 : vector<16x42xf32> to vector<16x42xbf16>
    %525 = vector.extract_strided_slice %521 {offsets = [0, 0, 42], sizes = [2, 8, 42], strides = [1, 1, 1]} : vector<2x8x84xf32> to vector<2x8x42xf32>
    %526 = vector.shape_cast %525 : vector<2x8x42xf32> to vector<16x42xf32>
    %527 = arith.truncf %526 : vector<16x42xf32> to vector<16x42xbf16>
    %c1_158 = arith.constant 1 : index
    %c0_159 = arith.constant 0 : index
    %c0_160 = arith.constant 0 : index
    %c0_161 = arith.constant 0 : index
    %528 = vector.load %arg13[%c1_158, %c0_159, %c0_160, %c0_161] : memref<2x2x8x84xf32, #tpu.memory_space<vmem>>, vector<1x2x8x84xf32>
    %529 = vector.shape_cast %528 : vector<1x2x8x84xf32> to vector<2x8x84xf32>
    %530 = vector.extract_strided_slice %529 {offsets = [0, 0, 0], sizes = [2, 8, 42], strides = [1, 1, 1]} : vector<2x8x84xf32> to vector<2x8x42xf32>
    %531 = vector.shape_cast %530 : vector<2x8x42xf32> to vector<16x42xf32>
    %532 = arith.truncf %531 : vector<16x42xf32> to vector<16x42xbf16>
    %533 = vector.extract_strided_slice %529 {offsets = [0, 0, 42], sizes = [2, 8, 42], strides = [1, 1, 1]} : vector<2x8x84xf32> to vector<2x8x42xf32>
    %534 = vector.shape_cast %533 : vector<2x8x42xf32> to vector<16x42xf32>
    %535 = arith.truncf %534 : vector<16x42xf32> to vector<16x42xbf16>
    %536 = vector.extract_strided_slice %524 {offsets = [0, 0], sizes = [16, 30], strides = [1, 1]} : vector<16x42xbf16> to vector<16x30xbf16>
    %537 = vector.extract_strided_slice %527 {offsets = [0, 0], sizes = [16, 30], strides = [1, 1]} : vector<16x42xbf16> to vector<16x30xbf16>
    %538 = vector.extract_strided_slice %532 {offsets = [0, 0], sizes = [16, 30], strides = [1, 1]} : vector<16x42xbf16> to vector<16x30xbf16>
    %539 = vector.extract_strided_slice %535 {offsets = [0, 0], sizes = [16, 30], strides = [1, 1]} : vector<16x42xbf16> to vector<16x30xbf16>
    %540 = tpu.concatenate %536, %537, %538, %539 in 0 : vector<16x30xbf16>, vector<16x30xbf16>, vector<16x30xbf16>, vector<16x30xbf16> -> vector<64x30xbf16>
    %541 = vector.extract_strided_slice %524 {offsets = [0, 6], sizes = [16, 30], strides = [1, 1]} : vector<16x42xbf16> to vector<16x30xbf16>
    %542 = vector.extract_strided_slice %527 {offsets = [0, 0], sizes = [16, 30], strides = [1, 1]} : vector<16x42xbf16> to vector<16x30xbf16>
    %543 = vector.extract_strided_slice %532 {offsets = [0, 6], sizes = [16, 30], strides = [1, 1]} : vector<16x42xbf16> to vector<16x30xbf16>
    %544 = vector.extract_strided_slice %535 {offsets = [0, 0], sizes = [16, 30], strides = [1, 1]} : vector<16x42xbf16> to vector<16x30xbf16>
    %545 = tpu.concatenate %541, %542, %543, %544 in 0 : vector<16x30xbf16>, vector<16x30xbf16>, vector<16x30xbf16>, vector<16x30xbf16> -> vector<64x30xbf16>
    %546 = vector.extract_strided_slice %524 {offsets = [0, 6], sizes = [16, 30], strides = [1, 1]} : vector<16x42xbf16> to vector<16x30xbf16>
    %547 = vector.extract_strided_slice %527 {offsets = [0, 6], sizes = [16, 30], strides = [1, 1]} : vector<16x42xbf16> to vector<16x30xbf16>
    %548 = vector.extract_strided_slice %532 {offsets = [0, 6], sizes = [16, 30], strides = [1, 1]} : vector<16x42xbf16> to vector<16x30xbf16>
    %549 = vector.extract_strided_slice %535 {offsets = [0, 6], sizes = [16, 30], strides = [1, 1]} : vector<16x42xbf16> to vector<16x30xbf16>
    %550 = tpu.concatenate %546, %547, %548, %549 in 0 : vector<16x30xbf16>, vector<16x30xbf16>, vector<16x30xbf16>, vector<16x30xbf16> -> vector<64x30xbf16>
    %551 = vector.extract_strided_slice %524 {offsets = [0, 12], sizes = [16, 30], strides = [1, 1]} : vector<16x42xbf16> to vector<16x30xbf16>
    %552 = vector.extract_strided_slice %527 {offsets = [0, 6], sizes = [16, 30], strides = [1, 1]} : vector<16x42xbf16> to vector<16x30xbf16>
    %553 = vector.extract_strided_slice %532 {offsets = [0, 12], sizes = [16, 30], strides = [1, 1]} : vector<16x42xbf16> to vector<16x30xbf16>
    %554 = vector.extract_strided_slice %535 {offsets = [0, 6], sizes = [16, 30], strides = [1, 1]} : vector<16x42xbf16> to vector<16x30xbf16>
    %555 = tpu.concatenate %551, %552, %553, %554 in 0 : vector<16x30xbf16>, vector<16x30xbf16>, vector<16x30xbf16>, vector<16x30xbf16> -> vector<64x30xbf16>
    %556 = vector.extract_strided_slice %524 {offsets = [0, 12], sizes = [16, 30], strides = [1, 1]} : vector<16x42xbf16> to vector<16x30xbf16>
    %557 = vector.extract_strided_slice %527 {offsets = [0, 12], sizes = [16, 30], strides = [1, 1]} : vector<16x42xbf16> to vector<16x30xbf16>
    %558 = vector.extract_strided_slice %532 {offsets = [0, 12], sizes = [16, 30], strides = [1, 1]} : vector<16x42xbf16> to vector<16x30xbf16>
    %559 = vector.extract_strided_slice %535 {offsets = [0, 12], sizes = [16, 30], strides = [1, 1]} : vector<16x42xbf16> to vector<16x30xbf16>
    %560 = tpu.concatenate %556, %557, %558, %559 in 0 : vector<16x30xbf16>, vector<16x30xbf16>, vector<16x30xbf16>, vector<16x30xbf16> -> vector<64x30xbf16>
    %cst_162 = arith.constant 0.000000e+00 : f32
    %561 = vector.broadcast %cst_162 : f32 to vector<2x5x80xf32>
    %cst_163 = arith.constant 0.000000e+00 : f32
    %562 = vector.broadcast %cst_163 : f32 to vector<2x5x80xf32>
    %cst_164 = arith.constant 0.000000e+00 : f32
    %563 = vector.broadcast %cst_164 : f32 to vector<2x5x80xf32>
    %cst_165 = arith.constant 0.000000e+00 : f32
    %564 = vector.broadcast %cst_165 : f32 to vector<2x5x80xf32>
    %c0_166 = arith.constant 0 : index
    %c0_167 = arith.constant 0 : index
    %c0_168 = arith.constant 0 : index
    %565 = vector.load %arg4[%c0_166, %c0_167, %c0_168] : memref<25x30x80xbf16, #tpu.memory_space<vmem>>, vector<1x30x80xbf16>
    %566 = vector.shape_cast %565 : vector<1x30x80xbf16> to vector<30x80xbf16>
    %cst_169 = arith.constant dense<0.000000e+00> : vector<64x80xf32>
    %567 = tpu.matmul %540, %566, %cst_169 {dimension_numbers = #tpu.dot_dimension_numbers<[1], [0], [0], [1], [0, 0, 1, 1], [], []>} : vector<64x30xbf16>, vector<30x80xbf16>, vector<64x80xf32> -> vector<64x80xf32>
    %568 = vector.shape_cast %567 : vector<64x80xf32> to vector<4x2x8x80xf32>
    %569 = vector.extract_strided_slice %568 {offsets = [0, 0, 0, 0], sizes = [1, 2, 5, 80], strides = [1, 1, 1, 1]} : vector<4x2x8x80xf32> to vector<1x2x5x80xf32>
    %570 = vector.shape_cast %569 : vector<1x2x5x80xf32> to vector<2x5x80xf32>
    %571 = arith.addf %561, %570 : vector<2x5x80xf32>
    %572 = vector.extract_strided_slice %568 {offsets = [1, 0, 0, 0], sizes = [1, 2, 5, 80], strides = [1, 1, 1, 1]} : vector<4x2x8x80xf32> to vector<1x2x5x80xf32>
    %573 = vector.shape_cast %572 : vector<1x2x5x80xf32> to vector<2x5x80xf32>
    %574 = arith.addf %562, %573 : vector<2x5x80xf32>
    %575 = vector.extract_strided_slice %568 {offsets = [2, 0, 0, 0], sizes = [1, 2, 5, 80], strides = [1, 1, 1, 1]} : vector<4x2x8x80xf32> to vector<1x2x5x80xf32>
    %576 = vector.shape_cast %575 : vector<1x2x5x80xf32> to vector<2x5x80xf32>
    %577 = arith.addf %563, %576 : vector<2x5x80xf32>
    %578 = vector.extract_strided_slice %568 {offsets = [3, 0, 0, 0], sizes = [1, 2, 5, 80], strides = [1, 1, 1, 1]} : vector<4x2x8x80xf32> to vector<1x2x5x80xf32>
    %579 = vector.shape_cast %578 : vector<1x2x5x80xf32> to vector<2x5x80xf32>
    %580 = arith.addf %564, %579 : vector<2x5x80xf32>
    %c1_170 = arith.constant 1 : index
    %c0_171 = arith.constant 0 : index
    %c0_172 = arith.constant 0 : index
    %581 = vector.load %arg4[%c1_170, %c0_171, %c0_172] : memref<25x30x80xbf16, #tpu.memory_space<vmem>>, vector<1x30x80xbf16>
    %582 = vector.shape_cast %581 : vector<1x30x80xbf16> to vector<30x80xbf16>
    %cst_173 = arith.constant dense<0.000000e+00> : vector<64x80xf32>
    %583 = tpu.matmul %545, %582, %cst_173 {dimension_numbers = #tpu.dot_dimension_numbers<[1], [0], [0], [1], [0, 0, 1, 1], [], []>} : vector<64x30xbf16>, vector<30x80xbf16>, vector<64x80xf32> -> vector<64x80xf32>
    %584 = vector.shape_cast %583 : vector<64x80xf32> to vector<4x2x8x80xf32>
    %585 = vector.extract_strided_slice %584 {offsets = [0, 0, 0, 0], sizes = [1, 2, 5, 80], strides = [1, 1, 1, 1]} : vector<4x2x8x80xf32> to vector<1x2x5x80xf32>
    %586 = vector.shape_cast %585 : vector<1x2x5x80xf32> to vector<2x5x80xf32>
    %587 = arith.addf %574, %586 : vector<2x5x80xf32>
    %588 = vector.extract_strided_slice %584 {offsets = [1, 0, 0, 0], sizes = [1, 2, 5, 80], strides = [1, 1, 1, 1]} : vector<4x2x8x80xf32> to vector<1x2x5x80xf32>
    %589 = vector.shape_cast %588 : vector<1x2x5x80xf32> to vector<2x5x80xf32>
    %590 = arith.addf %571, %589 : vector<2x5x80xf32>
    %591 = vector.extract_strided_slice %584 {offsets = [2, 0, 0, 0], sizes = [1, 2, 5, 80], strides = [1, 1, 1, 1]} : vector<4x2x8x80xf32> to vector<1x2x5x80xf32>
    %592 = vector.shape_cast %591 : vector<1x2x5x80xf32> to vector<2x5x80xf32>
    %593 = arith.addf %580, %592 : vector<2x5x80xf32>
    %594 = vector.extract_strided_slice %584 {offsets = [3, 0, 0, 0], sizes = [1, 2, 5, 80], strides = [1, 1, 1, 1]} : vector<4x2x8x80xf32> to vector<1x2x5x80xf32>
    %595 = vector.shape_cast %594 : vector<1x2x5x80xf32> to vector<2x5x80xf32>
    %596 = arith.addf %577, %595 : vector<2x5x80xf32>
    %c2_174 = arith.constant 2 : index
    %c0_175 = arith.constant 0 : index
    %c0_176 = arith.constant 0 : index
    %597 = vector.load %arg4[%c2_174, %c0_175, %c0_176] : memref<25x30x80xbf16, #tpu.memory_space<vmem>>, vector<1x30x80xbf16>
    %598 = vector.shape_cast %597 : vector<1x30x80xbf16> to vector<30x80xbf16>
    %cst_177 = arith.constant dense<0.000000e+00> : vector<64x80xf32>
    %599 = tpu.matmul %550, %598, %cst_177 {dimension_numbers = #tpu.dot_dimension_numbers<[1], [0], [0], [1], [0, 0, 1, 1], [], []>} : vector<64x30xbf16>, vector<30x80xbf16>, vector<64x80xf32> -> vector<64x80xf32>
    %600 = vector.shape_cast %599 : vector<64x80xf32> to vector<4x2x8x80xf32>
    %601 = vector.extract_strided_slice %600 {offsets = [0, 0, 0, 0], sizes = [1, 2, 5, 80], strides = [1, 1, 1, 1]} : vector<4x2x8x80xf32> to vector<1x2x5x80xf32>
    %602 = vector.shape_cast %601 : vector<1x2x5x80xf32> to vector<2x5x80xf32>
    %603 = arith.addf %590, %602 : vector<2x5x80xf32>
    %604 = vector.extract_strided_slice %600 {offsets = [1, 0, 0, 0], sizes = [1, 2, 5, 80], strides = [1, 1, 1, 1]} : vector<4x2x8x80xf32> to vector<1x2x5x80xf32>
    %605 = vector.shape_cast %604 : vector<1x2x5x80xf32> to vector<2x5x80xf32>
    %606 = arith.addf %587, %605 : vector<2x5x80xf32>
    %607 = vector.extract_strided_slice %600 {offsets = [2, 0, 0, 0], sizes = [1, 2, 5, 80], strides = [1, 1, 1, 1]} : vector<4x2x8x80xf32> to vector<1x2x5x80xf32>
    %608 = vector.shape_cast %607 : vector<1x2x5x80xf32> to vector<2x5x80xf32>
    %609 = arith.addf %596, %608 : vector<2x5x80xf32>
    %610 = vector.extract_strided_slice %600 {offsets = [3, 0, 0, 0], sizes = [1, 2, 5, 80], strides = [1, 1, 1, 1]} : vector<4x2x8x80xf32> to vector<1x2x5x80xf32>
    %611 = vector.shape_cast %610 : vector<1x2x5x80xf32> to vector<2x5x80xf32>
    %612 = arith.addf %593, %611 : vector<2x5x80xf32>
    %c3_178 = arith.constant 3 : index
    %c0_179 = arith.constant 0 : index
    %c0_180 = arith.constant 0 : index
    %613 = vector.load %arg4[%c3_178, %c0_179, %c0_180] : memref<25x30x80xbf16, #tpu.memory_space<vmem>>, vector<1x30x80xbf16>
    %614 = vector.shape_cast %613 : vector<1x30x80xbf16> to vector<30x80xbf16>
    %cst_181 = arith.constant dense<0.000000e+00> : vector<64x80xf32>
    %615 = tpu.matmul %555, %614, %cst_181 {dimension_numbers = #tpu.dot_dimension_numbers<[1], [0], [0], [1], [0, 0, 1, 1], [], []>} : vector<64x30xbf16>, vector<30x80xbf16>, vector<64x80xf32> -> vector<64x80xf32>
    %616 = vector.shape_cast %615 : vector<64x80xf32> to vector<4x2x8x80xf32>
    %617 = vector.extract_strided_slice %616 {offsets = [0, 0, 0, 0], sizes = [1, 2, 5, 80], strides = [1, 1, 1, 1]} : vector<4x2x8x80xf32> to vector<1x2x5x80xf32>
    %618 = vector.shape_cast %617 : vector<1x2x5x80xf32> to vector<2x5x80xf32>
    %619 = arith.addf %606, %618 : vector<2x5x80xf32>
    %620 = vector.extract_strided_slice %616 {offsets = [1, 0, 0, 0], sizes = [1, 2, 5, 80], strides = [1, 1, 1, 1]} : vector<4x2x8x80xf32> to vector<1x2x5x80xf32>
    %621 = vector.shape_cast %620 : vector<1x2x5x80xf32> to vector<2x5x80xf32>
    %622 = arith.addf %603, %621 : vector<2x5x80xf32>
    %623 = vector.extract_strided_slice %616 {offsets = [2, 0, 0, 0], sizes = [1, 2, 5, 80], strides = [1, 1, 1, 1]} : vector<4x2x8x80xf32> to vector<1x2x5x80xf32>
    %624 = vector.shape_cast %623 : vector<1x2x5x80xf32> to vector<2x5x80xf32>
    %625 = arith.addf %612, %624 : vector<2x5x80xf32>
    %626 = vector.extract_strided_slice %616 {offsets = [3, 0, 0, 0], sizes = [1, 2, 5, 80], strides = [1, 1, 1, 1]} : vector<4x2x8x80xf32> to vector<1x2x5x80xf32>
    %627 = vector.shape_cast %626 : vector<1x2x5x80xf32> to vector<2x5x80xf32>
    %628 = arith.addf %609, %627 : vector<2x5x80xf32>
    %c4_182 = arith.constant 4 : index
    %c0_183 = arith.constant 0 : index
    %c0_184 = arith.constant 0 : index
    %629 = vector.load %arg4[%c4_182, %c0_183, %c0_184] : memref<25x30x80xbf16, #tpu.memory_space<vmem>>, vector<1x30x80xbf16>
    %630 = vector.shape_cast %629 : vector<1x30x80xbf16> to vector<30x80xbf16>
    %cst_185 = arith.constant dense<0.000000e+00> : vector<64x80xf32>
    %631 = tpu.matmul %560, %630, %cst_185 {dimension_numbers = #tpu.dot_dimension_numbers<[1], [0], [0], [1], [0, 0, 1, 1], [], []>} : vector<64x30xbf16>, vector<30x80xbf16>, vector<64x80xf32> -> vector<64x80xf32>
    %632 = vector.shape_cast %631 : vector<64x80xf32> to vector<4x2x8x80xf32>
    %633 = vector.extract_strided_slice %632 {offsets = [0, 0, 0, 0], sizes = [1, 2, 5, 80], strides = [1, 1, 1, 1]} : vector<4x2x8x80xf32> to vector<1x2x5x80xf32>
    %634 = vector.shape_cast %633 : vector<1x2x5x80xf32> to vector<2x5x80xf32>
    %635 = arith.addf %622, %634 : vector<2x5x80xf32>
    %636 = vector.extract_strided_slice %632 {offsets = [1, 0, 0, 0], sizes = [1, 2, 5, 80], strides = [1, 1, 1, 1]} : vector<4x2x8x80xf32> to vector<1x2x5x80xf32>
    %637 = vector.shape_cast %636 : vector<1x2x5x80xf32> to vector<2x5x80xf32>
    %638 = arith.addf %619, %637 : vector<2x5x80xf32>
    %639 = vector.extract_strided_slice %632 {offsets = [2, 0, 0, 0], sizes = [1, 2, 5, 80], strides = [1, 1, 1, 1]} : vector<4x2x8x80xf32> to vector<1x2x5x80xf32>
    %640 = vector.shape_cast %639 : vector<1x2x5x80xf32> to vector<2x5x80xf32>
    %641 = arith.addf %628, %640 : vector<2x5x80xf32>
    %642 = vector.extract_strided_slice %632 {offsets = [3, 0, 0, 0], sizes = [1, 2, 5, 80], strides = [1, 1, 1, 1]} : vector<4x2x8x80xf32> to vector<1x2x5x80xf32>
    %643 = vector.shape_cast %642 : vector<1x2x5x80xf32> to vector<2x5x80xf32>
    %644 = arith.addf %625, %643 : vector<2x5x80xf32>
    %c5_186 = arith.constant 5 : index
    %c0_187 = arith.constant 0 : index
    %c0_188 = arith.constant 0 : index
    %645 = vector.load %arg4[%c5_186, %c0_187, %c0_188] : memref<25x30x80xbf16, #tpu.memory_space<vmem>>, vector<1x30x80xbf16>
    %646 = vector.shape_cast %645 : vector<1x30x80xbf16> to vector<30x80xbf16>
    %cst_189 = arith.constant dense<0.000000e+00> : vector<64x80xf32>
    %647 = tpu.matmul %540, %646, %cst_189 {dimension_numbers = #tpu.dot_dimension_numbers<[1], [0], [0], [1], [0, 0, 1, 1], [], []>} : vector<64x30xbf16>, vector<30x80xbf16>, vector<64x80xf32> -> vector<64x80xf32>
    %648 = vector.shape_cast %647 : vector<64x80xf32> to vector<4x2x8x80xf32>
    %649 = vector.extract_strided_slice %648 {offsets = [0, 0, 1, 0], sizes = [1, 2, 5, 80], strides = [1, 1, 1, 1]} : vector<4x2x8x80xf32> to vector<1x2x5x80xf32>
    %650 = vector.shape_cast %649 : vector<1x2x5x80xf32> to vector<2x5x80xf32>
    %651 = arith.addf %641, %650 : vector<2x5x80xf32>
    %652 = vector.extract_strided_slice %648 {offsets = [1, 0, 1, 0], sizes = [1, 2, 5, 80], strides = [1, 1, 1, 1]} : vector<4x2x8x80xf32> to vector<1x2x5x80xf32>
    %653 = vector.shape_cast %652 : vector<1x2x5x80xf32> to vector<2x5x80xf32>
    %654 = arith.addf %644, %653 : vector<2x5x80xf32>
    %655 = vector.extract_strided_slice %648 {offsets = [2, 0, 0, 0], sizes = [1, 2, 5, 80], strides = [1, 1, 1, 1]} : vector<4x2x8x80xf32> to vector<1x2x5x80xf32>
    %656 = vector.shape_cast %655 : vector<1x2x5x80xf32> to vector<2x5x80xf32>
    %657 = arith.addf %635, %656 : vector<2x5x80xf32>
    %658 = vector.extract_strided_slice %648 {offsets = [3, 0, 0, 0], sizes = [1, 2, 5, 80], strides = [1, 1, 1, 1]} : vector<4x2x8x80xf32> to vector<1x2x5x80xf32>
    %659 = vector.shape_cast %658 : vector<1x2x5x80xf32> to vector<2x5x80xf32>
    %660 = arith.addf %638, %659 : vector<2x5x80xf32>
    %c6_190 = arith.constant 6 : index
    %c0_191 = arith.constant 0 : index
    %c0_192 = arith.constant 0 : index
    %661 = vector.load %arg4[%c6_190, %c0_191, %c0_192] : memref<25x30x80xbf16, #tpu.memory_space<vmem>>, vector<1x30x80xbf16>
    %662 = vector.shape_cast %661 : vector<1x30x80xbf16> to vector<30x80xbf16>
    %cst_193 = arith.constant dense<0.000000e+00> : vector<64x80xf32>
    %663 = tpu.matmul %545, %662, %cst_193 {dimension_numbers = #tpu.dot_dimension_numbers<[1], [0], [0], [1], [0, 0, 1, 1], [], []>} : vector<64x30xbf16>, vector<30x80xbf16>, vector<64x80xf32> -> vector<64x80xf32>
    %664 = vector.shape_cast %663 : vector<64x80xf32> to vector<4x2x8x80xf32>
    %665 = vector.extract_strided_slice %664 {offsets = [0, 0, 1, 0], sizes = [1, 2, 5, 80], strides = [1, 1, 1, 1]} : vector<4x2x8x80xf32> to vector<1x2x5x80xf32>
    %666 = vector.shape_cast %665 : vector<1x2x5x80xf32> to vector<2x5x80xf32>
    %667 = arith.addf %654, %666 : vector<2x5x80xf32>
    %668 = vector.extract_strided_slice %664 {offsets = [1, 0, 1, 0], sizes = [1, 2, 5, 80], strides = [1, 1, 1, 1]} : vector<4x2x8x80xf32> to vector<1x2x5x80xf32>
    %669 = vector.shape_cast %668 : vector<1x2x5x80xf32> to vector<2x5x80xf32>
    %670 = arith.addf %651, %669 : vector<2x5x80xf32>
    %671 = vector.extract_strided_slice %664 {offsets = [2, 0, 0, 0], sizes = [1, 2, 5, 80], strides = [1, 1, 1, 1]} : vector<4x2x8x80xf32> to vector<1x2x5x80xf32>
    %672 = vector.shape_cast %671 : vector<1x2x5x80xf32> to vector<2x5x80xf32>
    %673 = arith.addf %660, %672 : vector<2x5x80xf32>
    %674 = vector.extract_strided_slice %664 {offsets = [3, 0, 0, 0], sizes = [1, 2, 5, 80], strides = [1, 1, 1, 1]} : vector<4x2x8x80xf32> to vector<1x2x5x80xf32>
    %675 = vector.shape_cast %674 : vector<1x2x5x80xf32> to vector<2x5x80xf32>
    %676 = arith.addf %657, %675 : vector<2x5x80xf32>
    %c7_194 = arith.constant 7 : index
    %c0_195 = arith.constant 0 : index
    %c0_196 = arith.constant 0 : index
    %677 = vector.load %arg4[%c7_194, %c0_195, %c0_196] : memref<25x30x80xbf16, #tpu.memory_space<vmem>>, vector<1x30x80xbf16>
    %678 = vector.shape_cast %677 : vector<1x30x80xbf16> to vector<30x80xbf16>
    %cst_197 = arith.constant dense<0.000000e+00> : vector<64x80xf32>
    %679 = tpu.matmul %550, %678, %cst_197 {dimension_numbers = #tpu.dot_dimension_numbers<[1], [0], [0], [1], [0, 0, 1, 1], [], []>} : vector<64x30xbf16>, vector<30x80xbf16>, vector<64x80xf32> -> vector<64x80xf32>
    %680 = vector.shape_cast %679 : vector<64x80xf32> to vector<4x2x8x80xf32>
    %681 = vector.extract_strided_slice %680 {offsets = [0, 0, 1, 0], sizes = [1, 2, 5, 80], strides = [1, 1, 1, 1]} : vector<4x2x8x80xf32> to vector<1x2x5x80xf32>
    %682 = vector.shape_cast %681 : vector<1x2x5x80xf32> to vector<2x5x80xf32>
    %683 = arith.addf %670, %682 : vector<2x5x80xf32>
    %684 = vector.extract_strided_slice %680 {offsets = [1, 0, 1, 0], sizes = [1, 2, 5, 80], strides = [1, 1, 1, 1]} : vector<4x2x8x80xf32> to vector<1x2x5x80xf32>
    %685 = vector.shape_cast %684 : vector<1x2x5x80xf32> to vector<2x5x80xf32>
    %686 = arith.addf %667, %685 : vector<2x5x80xf32>
    %687 = vector.extract_strided_slice %680 {offsets = [2, 0, 0, 0], sizes = [1, 2, 5, 80], strides = [1, 1, 1, 1]} : vector<4x2x8x80xf32> to vector<1x2x5x80xf32>
    %688 = vector.shape_cast %687 : vector<1x2x5x80xf32> to vector<2x5x80xf32>
    %689 = arith.addf %676, %688 : vector<2x5x80xf32>
    %690 = vector.extract_strided_slice %680 {offsets = [3, 0, 0, 0], sizes = [1, 2, 5, 80], strides = [1, 1, 1, 1]} : vector<4x2x8x80xf32> to vector<1x2x5x80xf32>
    %691 = vector.shape_cast %690 : vector<1x2x5x80xf32> to vector<2x5x80xf32>
    %692 = arith.addf %673, %691 : vector<2x5x80xf32>
    %c8_198 = arith.constant 8 : index
    %c0_199 = arith.constant 0 : index
    %c0_200 = arith.constant 0 : index
    %693 = vector.load %arg4[%c8_198, %c0_199, %c0_200] : memref<25x30x80xbf16, #tpu.memory_space<vmem>>, vector<1x30x80xbf16>
    %694 = vector.shape_cast %693 : vector<1x30x80xbf16> to vector<30x80xbf16>
    %cst_201 = arith.constant dense<0.000000e+00> : vector<64x80xf32>
    %695 = tpu.matmul %555, %694, %cst_201 {dimension_numbers = #tpu.dot_dimension_numbers<[1], [0], [0], [1], [0, 0, 1, 1], [], []>} : vector<64x30xbf16>, vector<30x80xbf16>, vector<64x80xf32> -> vector<64x80xf32>
    %696 = vector.shape_cast %695 : vector<64x80xf32> to vector<4x2x8x80xf32>
    %697 = vector.extract_strided_slice %696 {offsets = [0, 0, 1, 0], sizes = [1, 2, 5, 80], strides = [1, 1, 1, 1]} : vector<4x2x8x80xf32> to vector<1x2x5x80xf32>
    %698 = vector.shape_cast %697 : vector<1x2x5x80xf32> to vector<2x5x80xf32>
    %699 = arith.addf %686, %698 : vector<2x5x80xf32>
    %700 = vector.extract_strided_slice %696 {offsets = [1, 0, 1, 0], sizes = [1, 2, 5, 80], strides = [1, 1, 1, 1]} : vector<4x2x8x80xf32> to vector<1x2x5x80xf32>
    %701 = vector.shape_cast %700 : vector<1x2x5x80xf32> to vector<2x5x80xf32>
    %702 = arith.addf %683, %701 : vector<2x5x80xf32>
    %703 = vector.extract_strided_slice %696 {offsets = [2, 0, 0, 0], sizes = [1, 2, 5, 80], strides = [1, 1, 1, 1]} : vector<4x2x8x80xf32> to vector<1x2x5x80xf32>
    %704 = vector.shape_cast %703 : vector<1x2x5x80xf32> to vector<2x5x80xf32>
    %705 = arith.addf %692, %704 : vector<2x5x80xf32>
    %706 = vector.extract_strided_slice %696 {offsets = [3, 0, 0, 0], sizes = [1, 2, 5, 80], strides = [1, 1, 1, 1]} : vector<4x2x8x80xf32> to vector<1x2x5x80xf32>
    %707 = vector.shape_cast %706 : vector<1x2x5x80xf32> to vector<2x5x80xf32>
    %708 = arith.addf %689, %707 : vector<2x5x80xf32>
    %c9_202 = arith.constant 9 : index
    %c0_203 = arith.constant 0 : index
    %c0_204 = arith.constant 0 : index
    %709 = vector.load %arg4[%c9_202, %c0_203, %c0_204] : memref<25x30x80xbf16, #tpu.memory_space<vmem>>, vector<1x30x80xbf16>
    %710 = vector.shape_cast %709 : vector<1x30x80xbf16> to vector<30x80xbf16>
    %cst_205 = arith.constant dense<0.000000e+00> : vector<64x80xf32>
    %711 = tpu.matmul %560, %710, %cst_205 {dimension_numbers = #tpu.dot_dimension_numbers<[1], [0], [0], [1], [0, 0, 1, 1], [], []>} : vector<64x30xbf16>, vector<30x80xbf16>, vector<64x80xf32> -> vector<64x80xf32>
    %712 = vector.shape_cast %711 : vector<64x80xf32> to vector<4x2x8x80xf32>
    %713 = vector.extract_strided_slice %712 {offsets = [0, 0, 1, 0], sizes = [1, 2, 5, 80], strides = [1, 1, 1, 1]} : vector<4x2x8x80xf32> to vector<1x2x5x80xf32>
    %714 = vector.shape_cast %713 : vector<1x2x5x80xf32> to vector<2x5x80xf32>
    %715 = arith.addf %702, %714 : vector<2x5x80xf32>
    %716 = vector.extract_strided_slice %712 {offsets = [1, 0, 1, 0], sizes = [1, 2, 5, 80], strides = [1, 1, 1, 1]} : vector<4x2x8x80xf32> to vector<1x2x5x80xf32>
    %717 = vector.shape_cast %716 : vector<1x2x5x80xf32> to vector<2x5x80xf32>
    %718 = arith.addf %699, %717 : vector<2x5x80xf32>
    %719 = vector.extract_strided_slice %712 {offsets = [2, 0, 0, 0], sizes = [1, 2, 5, 80], strides = [1, 1, 1, 1]} : vector<4x2x8x80xf32> to vector<1x2x5x80xf32>
    %720 = vector.shape_cast %719 : vector<1x2x5x80xf32> to vector<2x5x80xf32>
    %721 = arith.addf %708, %720 : vector<2x5x80xf32>
    %722 = vector.extract_strided_slice %712 {offsets = [3, 0, 0, 0], sizes = [1, 2, 5, 80], strides = [1, 1, 1, 1]} : vector<4x2x8x80xf32> to vector<1x2x5x80xf32>
    %723 = vector.shape_cast %722 : vector<1x2x5x80xf32> to vector<2x5x80xf32>
    %724 = arith.addf %705, %723 : vector<2x5x80xf32>
    %c10_206 = arith.constant 10 : index
    %c0_207 = arith.constant 0 : index
    %c0_208 = arith.constant 0 : index
    %725 = vector.load %arg4[%c10_206, %c0_207, %c0_208] : memref<25x30x80xbf16, #tpu.memory_space<vmem>>, vector<1x30x80xbf16>
    %726 = vector.shape_cast %725 : vector<1x30x80xbf16> to vector<30x80xbf16>
    %cst_209 = arith.constant dense<0.000000e+00> : vector<64x80xf32>
    %727 = tpu.matmul %540, %726, %cst_209 {dimension_numbers = #tpu.dot_dimension_numbers<[1], [0], [0], [1], [0, 0, 1, 1], [], []>} : vector<64x30xbf16>, vector<30x80xbf16>, vector<64x80xf32> -> vector<64x80xf32>
    %728 = vector.shape_cast %727 : vector<64x80xf32> to vector<4x2x8x80xf32>
    %729 = vector.extract_strided_slice %728 {offsets = [0, 0, 1, 0], sizes = [1, 2, 5, 80], strides = [1, 1, 1, 1]} : vector<4x2x8x80xf32> to vector<1x2x5x80xf32>
    %730 = vector.shape_cast %729 : vector<1x2x5x80xf32> to vector<2x5x80xf32>
    %731 = arith.addf %721, %730 : vector<2x5x80xf32>
    %732 = vector.extract_strided_slice %728 {offsets = [1, 0, 1, 0], sizes = [1, 2, 5, 80], strides = [1, 1, 1, 1]} : vector<4x2x8x80xf32> to vector<1x2x5x80xf32>
    %733 = vector.shape_cast %732 : vector<1x2x5x80xf32> to vector<2x5x80xf32>
    %734 = arith.addf %724, %733 : vector<2x5x80xf32>
    %735 = vector.extract_strided_slice %728 {offsets = [2, 0, 1, 0], sizes = [1, 2, 5, 80], strides = [1, 1, 1, 1]} : vector<4x2x8x80xf32> to vector<1x2x5x80xf32>
    %736 = vector.shape_cast %735 : vector<1x2x5x80xf32> to vector<2x5x80xf32>
    %737 = arith.addf %715, %736 : vector<2x5x80xf32>
    %738 = vector.extract_strided_slice %728 {offsets = [3, 0, 1, 0], sizes = [1, 2, 5, 80], strides = [1, 1, 1, 1]} : vector<4x2x8x80xf32> to vector<1x2x5x80xf32>
    %739 = vector.shape_cast %738 : vector<1x2x5x80xf32> to vector<2x5x80xf32>
    %740 = arith.addf %718, %739 : vector<2x5x80xf32>
    %c11_210 = arith.constant 11 : index
    %c0_211 = arith.constant 0 : index
    %c0_212 = arith.constant 0 : index
    %741 = vector.load %arg4[%c11_210, %c0_211, %c0_212] : memref<25x30x80xbf16, #tpu.memory_space<vmem>>, vector<1x30x80xbf16>
    %742 = vector.shape_cast %741 : vector<1x30x80xbf16> to vector<30x80xbf16>
    %cst_213 = arith.constant dense<0.000000e+00> : vector<64x80xf32>
    %743 = tpu.matmul %545, %742, %cst_213 {dimension_numbers = #tpu.dot_dimension_numbers<[1], [0], [0], [1], [0, 0, 1, 1], [], []>} : vector<64x30xbf16>, vector<30x80xbf16>, vector<64x80xf32> -> vector<64x80xf32>
    %744 = vector.shape_cast %743 : vector<64x80xf32> to vector<4x2x8x80xf32>
    %745 = vector.extract_strided_slice %744 {offsets = [0, 0, 1, 0], sizes = [1, 2, 5, 80], strides = [1, 1, 1, 1]} : vector<4x2x8x80xf32> to vector<1x2x5x80xf32>
    %746 = vector.shape_cast %745 : vector<1x2x5x80xf32> to vector<2x5x80xf32>
    %747 = arith.addf %734, %746 : vector<2x5x80xf32>
    %748 = vector.extract_strided_slice %744 {offsets = [1, 0, 1, 0], sizes = [1, 2, 5, 80], strides = [1, 1, 1, 1]} : vector<4x2x8x80xf32> to vector<1x2x5x80xf32>
    %749 = vector.shape_cast %748 : vector<1x2x5x80xf32> to vector<2x5x80xf32>
    %750 = arith.addf %731, %749 : vector<2x5x80xf32>
    %751 = vector.extract_strided_slice %744 {offsets = [2, 0, 1, 0], sizes = [1, 2, 5, 80], strides = [1, 1, 1, 1]} : vector<4x2x8x80xf32> to vector<1x2x5x80xf32>
    %752 = vector.shape_cast %751 : vector<1x2x5x80xf32> to vector<2x5x80xf32>
    %753 = arith.addf %740, %752 : vector<2x5x80xf32>
    %754 = vector.extract_strided_slice %744 {offsets = [3, 0, 1, 0], sizes = [1, 2, 5, 80], strides = [1, 1, 1, 1]} : vector<4x2x8x80xf32> to vector<1x2x5x80xf32>
    %755 = vector.shape_cast %754 : vector<1x2x5x80xf32> to vector<2x5x80xf32>
    %756 = arith.addf %737, %755 : vector<2x5x80xf32>
    %c12_214 = arith.constant 12 : index
    %c0_215 = arith.constant 0 : index
    %c0_216 = arith.constant 0 : index
    %757 = vector.load %arg4[%c12_214, %c0_215, %c0_216] : memref<25x30x80xbf16, #tpu.memory_space<vmem>>, vector<1x30x80xbf16>
    %758 = vector.shape_cast %757 : vector<1x30x80xbf16> to vector<30x80xbf16>
    %cst_217 = arith.constant dense<0.000000e+00> : vector<64x80xf32>
    %759 = tpu.matmul %550, %758, %cst_217 {dimension_numbers = #tpu.dot_dimension_numbers<[1], [0], [0], [1], [0, 0, 1, 1], [], []>} : vector<64x30xbf16>, vector<30x80xbf16>, vector<64x80xf32> -> vector<64x80xf32>
    %760 = vector.shape_cast %759 : vector<64x80xf32> to vector<4x2x8x80xf32>
    %761 = vector.extract_strided_slice %760 {offsets = [0, 0, 1, 0], sizes = [1, 2, 5, 80], strides = [1, 1, 1, 1]} : vector<4x2x8x80xf32> to vector<1x2x5x80xf32>
    %762 = vector.shape_cast %761 : vector<1x2x5x80xf32> to vector<2x5x80xf32>
    %763 = arith.addf %750, %762 : vector<2x5x80xf32>
    %764 = vector.extract_strided_slice %760 {offsets = [1, 0, 1, 0], sizes = [1, 2, 5, 80], strides = [1, 1, 1, 1]} : vector<4x2x8x80xf32> to vector<1x2x5x80xf32>
    %765 = vector.shape_cast %764 : vector<1x2x5x80xf32> to vector<2x5x80xf32>
    %766 = arith.addf %747, %765 : vector<2x5x80xf32>
    %767 = vector.extract_strided_slice %760 {offsets = [2, 0, 1, 0], sizes = [1, 2, 5, 80], strides = [1, 1, 1, 1]} : vector<4x2x8x80xf32> to vector<1x2x5x80xf32>
    %768 = vector.shape_cast %767 : vector<1x2x5x80xf32> to vector<2x5x80xf32>
    %769 = arith.addf %756, %768 : vector<2x5x80xf32>
    %770 = vector.extract_strided_slice %760 {offsets = [3, 0, 1, 0], sizes = [1, 2, 5, 80], strides = [1, 1, 1, 1]} : vector<4x2x8x80xf32> to vector<1x2x5x80xf32>
    %771 = vector.shape_cast %770 : vector<1x2x5x80xf32> to vector<2x5x80xf32>
    %772 = arith.addf %753, %771 : vector<2x5x80xf32>
    %c13_218 = arith.constant 13 : index
    %c0_219 = arith.constant 0 : index
    %c0_220 = arith.constant 0 : index
    %773 = vector.load %arg4[%c13_218, %c0_219, %c0_220] : memref<25x30x80xbf16, #tpu.memory_space<vmem>>, vector<1x30x80xbf16>
    %774 = vector.shape_cast %773 : vector<1x30x80xbf16> to vector<30x80xbf16>
    %cst_221 = arith.constant dense<0.000000e+00> : vector<64x80xf32>
    %775 = tpu.matmul %555, %774, %cst_221 {dimension_numbers = #tpu.dot_dimension_numbers<[1], [0], [0], [1], [0, 0, 1, 1], [], []>} : vector<64x30xbf16>, vector<30x80xbf16>, vector<64x80xf32> -> vector<64x80xf32>
    %776 = vector.shape_cast %775 : vector<64x80xf32> to vector<4x2x8x80xf32>
    %777 = vector.extract_strided_slice %776 {offsets = [0, 0, 1, 0], sizes = [1, 2, 5, 80], strides = [1, 1, 1, 1]} : vector<4x2x8x80xf32> to vector<1x2x5x80xf32>
    %778 = vector.shape_cast %777 : vector<1x2x5x80xf32> to vector<2x5x80xf32>
    %779 = arith.addf %766, %778 : vector<2x5x80xf32>
    %780 = vector.extract_strided_slice %776 {offsets = [1, 0, 1, 0], sizes = [1, 2, 5, 80], strides = [1, 1, 1, 1]} : vector<4x2x8x80xf32> to vector<1x2x5x80xf32>
    %781 = vector.shape_cast %780 : vector<1x2x5x80xf32> to vector<2x5x80xf32>
    %782 = arith.addf %763, %781 : vector<2x5x80xf32>
    %783 = vector.extract_strided_slice %776 {offsets = [2, 0, 1, 0], sizes = [1, 2, 5, 80], strides = [1, 1, 1, 1]} : vector<4x2x8x80xf32> to vector<1x2x5x80xf32>
    %784 = vector.shape_cast %783 : vector<1x2x5x80xf32> to vector<2x5x80xf32>
    %785 = arith.addf %772, %784 : vector<2x5x80xf32>
    %786 = vector.extract_strided_slice %776 {offsets = [3, 0, 1, 0], sizes = [1, 2, 5, 80], strides = [1, 1, 1, 1]} : vector<4x2x8x80xf32> to vector<1x2x5x80xf32>
    %787 = vector.shape_cast %786 : vector<1x2x5x80xf32> to vector<2x5x80xf32>
    %788 = arith.addf %769, %787 : vector<2x5x80xf32>
    %c14_222 = arith.constant 14 : index
    %c0_223 = arith.constant 0 : index
    %c0_224 = arith.constant 0 : index
    %789 = vector.load %arg4[%c14_222, %c0_223, %c0_224] : memref<25x30x80xbf16, #tpu.memory_space<vmem>>, vector<1x30x80xbf16>
    %790 = vector.shape_cast %789 : vector<1x30x80xbf16> to vector<30x80xbf16>
    %cst_225 = arith.constant dense<0.000000e+00> : vector<64x80xf32>
    %791 = tpu.matmul %560, %790, %cst_225 {dimension_numbers = #tpu.dot_dimension_numbers<[1], [0], [0], [1], [0, 0, 1, 1], [], []>} : vector<64x30xbf16>, vector<30x80xbf16>, vector<64x80xf32> -> vector<64x80xf32>
    %792 = vector.shape_cast %791 : vector<64x80xf32> to vector<4x2x8x80xf32>
    %793 = vector.extract_strided_slice %792 {offsets = [0, 0, 1, 0], sizes = [1, 2, 5, 80], strides = [1, 1, 1, 1]} : vector<4x2x8x80xf32> to vector<1x2x5x80xf32>
    %794 = vector.shape_cast %793 : vector<1x2x5x80xf32> to vector<2x5x80xf32>
    %795 = arith.addf %782, %794 : vector<2x5x80xf32>
    %796 = vector.extract_strided_slice %792 {offsets = [1, 0, 1, 0], sizes = [1, 2, 5, 80], strides = [1, 1, 1, 1]} : vector<4x2x8x80xf32> to vector<1x2x5x80xf32>
    %797 = vector.shape_cast %796 : vector<1x2x5x80xf32> to vector<2x5x80xf32>
    %798 = arith.addf %779, %797 : vector<2x5x80xf32>
    %799 = vector.extract_strided_slice %792 {offsets = [2, 0, 1, 0], sizes = [1, 2, 5, 80], strides = [1, 1, 1, 1]} : vector<4x2x8x80xf32> to vector<1x2x5x80xf32>
    %800 = vector.shape_cast %799 : vector<1x2x5x80xf32> to vector<2x5x80xf32>
    %801 = arith.addf %788, %800 : vector<2x5x80xf32>
    %802 = vector.extract_strided_slice %792 {offsets = [3, 0, 1, 0], sizes = [1, 2, 5, 80], strides = [1, 1, 1, 1]} : vector<4x2x8x80xf32> to vector<1x2x5x80xf32>
    %803 = vector.shape_cast %802 : vector<1x2x5x80xf32> to vector<2x5x80xf32>
    %804 = arith.addf %785, %803 : vector<2x5x80xf32>
    %c15_226 = arith.constant 15 : index
    %c0_227 = arith.constant 0 : index
    %c0_228 = arith.constant 0 : index
    %805 = vector.load %arg4[%c15_226, %c0_227, %c0_228] : memref<25x30x80xbf16, #tpu.memory_space<vmem>>, vector<1x30x80xbf16>
    %806 = vector.shape_cast %805 : vector<1x30x80xbf16> to vector<30x80xbf16>
    %cst_229 = arith.constant dense<0.000000e+00> : vector<64x80xf32>
    %807 = tpu.matmul %540, %806, %cst_229 {dimension_numbers = #tpu.dot_dimension_numbers<[1], [0], [0], [1], [0, 0, 1, 1], [], []>} : vector<64x30xbf16>, vector<30x80xbf16>, vector<64x80xf32> -> vector<64x80xf32>
    %808 = vector.shape_cast %807 : vector<64x80xf32> to vector<4x2x8x80xf32>
    %809 = vector.extract_strided_slice %808 {offsets = [0, 0, 2, 0], sizes = [1, 2, 5, 80], strides = [1, 1, 1, 1]} : vector<4x2x8x80xf32> to vector<1x2x5x80xf32>
    %810 = vector.shape_cast %809 : vector<1x2x5x80xf32> to vector<2x5x80xf32>
    %811 = arith.addf %801, %810 : vector<2x5x80xf32>
    %812 = vector.extract_strided_slice %808 {offsets = [1, 0, 2, 0], sizes = [1, 2, 5, 80], strides = [1, 1, 1, 1]} : vector<4x2x8x80xf32> to vector<1x2x5x80xf32>
    %813 = vector.shape_cast %812 : vector<1x2x5x80xf32> to vector<2x5x80xf32>
    %814 = arith.addf %804, %813 : vector<2x5x80xf32>
    %815 = vector.extract_strided_slice %808 {offsets = [2, 0, 1, 0], sizes = [1, 2, 5, 80], strides = [1, 1, 1, 1]} : vector<4x2x8x80xf32> to vector<1x2x5x80xf32>
    %816 = vector.shape_cast %815 : vector<1x2x5x80xf32> to vector<2x5x80xf32>
    %817 = arith.addf %795, %816 : vector<2x5x80xf32>
    %818 = vector.extract_strided_slice %808 {offsets = [3, 0, 1, 0], sizes = [1, 2, 5, 80], strides = [1, 1, 1, 1]} : vector<4x2x8x80xf32> to vector<1x2x5x80xf32>
    %819 = vector.shape_cast %818 : vector<1x2x5x80xf32> to vector<2x5x80xf32>
    %820 = arith.addf %798, %819 : vector<2x5x80xf32>
    %c16_230 = arith.constant 16 : index
    %c0_231 = arith.constant 0 : index
    %c0_232 = arith.constant 0 : index
    %821 = vector.load %arg4[%c16_230, %c0_231, %c0_232] : memref<25x30x80xbf16, #tpu.memory_space<vmem>>, vector<1x30x80xbf16>
    %822 = vector.shape_cast %821 : vector<1x30x80xbf16> to vector<30x80xbf16>
    %cst_233 = arith.constant dense<0.000000e+00> : vector<64x80xf32>
    %823 = tpu.matmul %545, %822, %cst_233 {dimension_numbers = #tpu.dot_dimension_numbers<[1], [0], [0], [1], [0, 0, 1, 1], [], []>} : vector<64x30xbf16>, vector<30x80xbf16>, vector<64x80xf32> -> vector<64x80xf32>
    %824 = vector.shape_cast %823 : vector<64x80xf32> to vector<4x2x8x80xf32>
    %825 = vector.extract_strided_slice %824 {offsets = [0, 0, 2, 0], sizes = [1, 2, 5, 80], strides = [1, 1, 1, 1]} : vector<4x2x8x80xf32> to vector<1x2x5x80xf32>
    %826 = vector.shape_cast %825 : vector<1x2x5x80xf32> to vector<2x5x80xf32>
    %827 = arith.addf %814, %826 : vector<2x5x80xf32>
    %828 = vector.extract_strided_slice %824 {offsets = [1, 0, 2, 0], sizes = [1, 2, 5, 80], strides = [1, 1, 1, 1]} : vector<4x2x8x80xf32> to vector<1x2x5x80xf32>
    %829 = vector.shape_cast %828 : vector<1x2x5x80xf32> to vector<2x5x80xf32>
    %830 = arith.addf %811, %829 : vector<2x5x80xf32>
    %831 = vector.extract_strided_slice %824 {offsets = [2, 0, 1, 0], sizes = [1, 2, 5, 80], strides = [1, 1, 1, 1]} : vector<4x2x8x80xf32> to vector<1x2x5x80xf32>
    %832 = vector.shape_cast %831 : vector<1x2x5x80xf32> to vector<2x5x80xf32>
    %833 = arith.addf %820, %832 : vector<2x5x80xf32>
    %834 = vector.extract_strided_slice %824 {offsets = [3, 0, 1, 0], sizes = [1, 2, 5, 80], strides = [1, 1, 1, 1]} : vector<4x2x8x80xf32> to vector<1x2x5x80xf32>
    %835 = vector.shape_cast %834 : vector<1x2x5x80xf32> to vector<2x5x80xf32>
    %836 = arith.addf %817, %835 : vector<2x5x80xf32>
    %c17_234 = arith.constant 17 : index
    %c0_235 = arith.constant 0 : index
    %c0_236 = arith.constant 0 : index
    %837 = vector.load %arg4[%c17_234, %c0_235, %c0_236] : memref<25x30x80xbf16, #tpu.memory_space<vmem>>, vector<1x30x80xbf16>
    %838 = vector.shape_cast %837 : vector<1x30x80xbf16> to vector<30x80xbf16>
    %cst_237 = arith.constant dense<0.000000e+00> : vector<64x80xf32>
    %839 = tpu.matmul %550, %838, %cst_237 {dimension_numbers = #tpu.dot_dimension_numbers<[1], [0], [0], [1], [0, 0, 1, 1], [], []>} : vector<64x30xbf16>, vector<30x80xbf16>, vector<64x80xf32> -> vector<64x80xf32>
    %840 = vector.shape_cast %839 : vector<64x80xf32> to vector<4x2x8x80xf32>
    %841 = vector.extract_strided_slice %840 {offsets = [0, 0, 2, 0], sizes = [1, 2, 5, 80], strides = [1, 1, 1, 1]} : vector<4x2x8x80xf32> to vector<1x2x5x80xf32>
    %842 = vector.shape_cast %841 : vector<1x2x5x80xf32> to vector<2x5x80xf32>
    %843 = arith.addf %830, %842 : vector<2x5x80xf32>
    %844 = vector.extract_strided_slice %840 {offsets = [1, 0, 2, 0], sizes = [1, 2, 5, 80], strides = [1, 1, 1, 1]} : vector<4x2x8x80xf32> to vector<1x2x5x80xf32>
    %845 = vector.shape_cast %844 : vector<1x2x5x80xf32> to vector<2x5x80xf32>
    %846 = arith.addf %827, %845 : vector<2x5x80xf32>
    %847 = vector.extract_strided_slice %840 {offsets = [2, 0, 1, 0], sizes = [1, 2, 5, 80], strides = [1, 1, 1, 1]} : vector<4x2x8x80xf32> to vector<1x2x5x80xf32>
    %848 = vector.shape_cast %847 : vector<1x2x5x80xf32> to vector<2x5x80xf32>
    %849 = arith.addf %836, %848 : vector<2x5x80xf32>
    %850 = vector.extract_strided_slice %840 {offsets = [3, 0, 1, 0], sizes = [1, 2, 5, 80], strides = [1, 1, 1, 1]} : vector<4x2x8x80xf32> to vector<1x2x5x80xf32>
    %851 = vector.shape_cast %850 : vector<1x2x5x80xf32> to vector<2x5x80xf32>
    %852 = arith.addf %833, %851 : vector<2x5x80xf32>
    %c18_238 = arith.constant 18 : index
    %c0_239 = arith.constant 0 : index
    %c0_240 = arith.constant 0 : index
    %853 = vector.load %arg4[%c18_238, %c0_239, %c0_240] : memref<25x30x80xbf16, #tpu.memory_space<vmem>>, vector<1x30x80xbf16>
    %854 = vector.shape_cast %853 : vector<1x30x80xbf16> to vector<30x80xbf16>
    %cst_241 = arith.constant dense<0.000000e+00> : vector<64x80xf32>
    %855 = tpu.matmul %555, %854, %cst_241 {dimension_numbers = #tpu.dot_dimension_numbers<[1], [0], [0], [1], [0, 0, 1, 1], [], []>} : vector<64x30xbf16>, vector<30x80xbf16>, vector<64x80xf32> -> vector<64x80xf32>
    %856 = vector.shape_cast %855 : vector<64x80xf32> to vector<4x2x8x80xf32>
    %857 = vector.extract_strided_slice %856 {offsets = [0, 0, 2, 0], sizes = [1, 2, 5, 80], strides = [1, 1, 1, 1]} : vector<4x2x8x80xf32> to vector<1x2x5x80xf32>
    %858 = vector.shape_cast %857 : vector<1x2x5x80xf32> to vector<2x5x80xf32>
    %859 = arith.addf %846, %858 : vector<2x5x80xf32>
    %860 = vector.extract_strided_slice %856 {offsets = [1, 0, 2, 0], sizes = [1, 2, 5, 80], strides = [1, 1, 1, 1]} : vector<4x2x8x80xf32> to vector<1x2x5x80xf32>
    %861 = vector.shape_cast %860 : vector<1x2x5x80xf32> to vector<2x5x80xf32>
    %862 = arith.addf %843, %861 : vector<2x5x80xf32>
    %863 = vector.extract_strided_slice %856 {offsets = [2, 0, 1, 0], sizes = [1, 2, 5, 80], strides = [1, 1, 1, 1]} : vector<4x2x8x80xf32> to vector<1x2x5x80xf32>
    %864 = vector.shape_cast %863 : vector<1x2x5x80xf32> to vector<2x5x80xf32>
    %865 = arith.addf %852, %864 : vector<2x5x80xf32>
    %866 = vector.extract_strided_slice %856 {offsets = [3, 0, 1, 0], sizes = [1, 2, 5, 80], strides = [1, 1, 1, 1]} : vector<4x2x8x80xf32> to vector<1x2x5x80xf32>
    %867 = vector.shape_cast %866 : vector<1x2x5x80xf32> to vector<2x5x80xf32>
    %868 = arith.addf %849, %867 : vector<2x5x80xf32>
    %c19_242 = arith.constant 19 : index
    %c0_243 = arith.constant 0 : index
    %c0_244 = arith.constant 0 : index
    %869 = vector.load %arg4[%c19_242, %c0_243, %c0_244] : memref<25x30x80xbf16, #tpu.memory_space<vmem>>, vector<1x30x80xbf16>
    %870 = vector.shape_cast %869 : vector<1x30x80xbf16> to vector<30x80xbf16>
    %cst_245 = arith.constant dense<0.000000e+00> : vector<64x80xf32>
    %871 = tpu.matmul %560, %870, %cst_245 {dimension_numbers = #tpu.dot_dimension_numbers<[1], [0], [0], [1], [0, 0, 1, 1], [], []>} : vector<64x30xbf16>, vector<30x80xbf16>, vector<64x80xf32> -> vector<64x80xf32>
    %872 = vector.shape_cast %871 : vector<64x80xf32> to vector<4x2x8x80xf32>
    %873 = vector.extract_strided_slice %872 {offsets = [0, 0, 2, 0], sizes = [1, 2, 5, 80], strides = [1, 1, 1, 1]} : vector<4x2x8x80xf32> to vector<1x2x5x80xf32>
    %874 = vector.shape_cast %873 : vector<1x2x5x80xf32> to vector<2x5x80xf32>
    %875 = arith.addf %862, %874 : vector<2x5x80xf32>
    %876 = vector.extract_strided_slice %872 {offsets = [1, 0, 2, 0], sizes = [1, 2, 5, 80], strides = [1, 1, 1, 1]} : vector<4x2x8x80xf32> to vector<1x2x5x80xf32>
    %877 = vector.shape_cast %876 : vector<1x2x5x80xf32> to vector<2x5x80xf32>
    %878 = arith.addf %859, %877 : vector<2x5x80xf32>
    %879 = vector.extract_strided_slice %872 {offsets = [2, 0, 1, 0], sizes = [1, 2, 5, 80], strides = [1, 1, 1, 1]} : vector<4x2x8x80xf32> to vector<1x2x5x80xf32>
    %880 = vector.shape_cast %879 : vector<1x2x5x80xf32> to vector<2x5x80xf32>
    %881 = arith.addf %868, %880 : vector<2x5x80xf32>
    %882 = vector.extract_strided_slice %872 {offsets = [3, 0, 1, 0], sizes = [1, 2, 5, 80], strides = [1, 1, 1, 1]} : vector<4x2x8x80xf32> to vector<1x2x5x80xf32>
    %883 = vector.shape_cast %882 : vector<1x2x5x80xf32> to vector<2x5x80xf32>
    %884 = arith.addf %865, %883 : vector<2x5x80xf32>
    %c20_246 = arith.constant 20 : index
    %c0_247 = arith.constant 0 : index
    %c0_248 = arith.constant 0 : index
    %885 = vector.load %arg4[%c20_246, %c0_247, %c0_248] : memref<25x30x80xbf16, #tpu.memory_space<vmem>>, vector<1x30x80xbf16>
    %886 = vector.shape_cast %885 : vector<1x30x80xbf16> to vector<30x80xbf16>
    %cst_249 = arith.constant dense<0.000000e+00> : vector<64x80xf32>
    %887 = tpu.matmul %540, %886, %cst_249 {dimension_numbers = #tpu.dot_dimension_numbers<[1], [0], [0], [1], [0, 0, 1, 1], [], []>} : vector<64x30xbf16>, vector<30x80xbf16>, vector<64x80xf32> -> vector<64x80xf32>
    %888 = vector.shape_cast %887 : vector<64x80xf32> to vector<4x2x8x80xf32>
    %889 = vector.extract_strided_slice %888 {offsets = [0, 0, 2, 0], sizes = [1, 2, 5, 80], strides = [1, 1, 1, 1]} : vector<4x2x8x80xf32> to vector<1x2x5x80xf32>
    %890 = vector.shape_cast %889 : vector<1x2x5x80xf32> to vector<2x5x80xf32>
    %891 = arith.addf %881, %890 : vector<2x5x80xf32>
    %892 = vector.extract_strided_slice %888 {offsets = [1, 0, 2, 0], sizes = [1, 2, 5, 80], strides = [1, 1, 1, 1]} : vector<4x2x8x80xf32> to vector<1x2x5x80xf32>
    %893 = vector.shape_cast %892 : vector<1x2x5x80xf32> to vector<2x5x80xf32>
    %894 = arith.addf %884, %893 : vector<2x5x80xf32>
    %895 = vector.extract_strided_slice %888 {offsets = [2, 0, 2, 0], sizes = [1, 2, 5, 80], strides = [1, 1, 1, 1]} : vector<4x2x8x80xf32> to vector<1x2x5x80xf32>
    %896 = vector.shape_cast %895 : vector<1x2x5x80xf32> to vector<2x5x80xf32>
    %897 = arith.addf %875, %896 : vector<2x5x80xf32>
    %898 = vector.extract_strided_slice %888 {offsets = [3, 0, 2, 0], sizes = [1, 2, 5, 80], strides = [1, 1, 1, 1]} : vector<4x2x8x80xf32> to vector<1x2x5x80xf32>
    %899 = vector.shape_cast %898 : vector<1x2x5x80xf32> to vector<2x5x80xf32>
    %900 = arith.addf %878, %899 : vector<2x5x80xf32>
    %c21_250 = arith.constant 21 : index
    %c0_251 = arith.constant 0 : index
    %c0_252 = arith.constant 0 : index
    %901 = vector.load %arg4[%c21_250, %c0_251, %c0_252] : memref<25x30x80xbf16, #tpu.memory_space<vmem>>, vector<1x30x80xbf16>
    %902 = vector.shape_cast %901 : vector<1x30x80xbf16> to vector<30x80xbf16>
    %cst_253 = arith.constant dense<0.000000e+00> : vector<64x80xf32>
    %903 = tpu.matmul %545, %902, %cst_253 {dimension_numbers = #tpu.dot_dimension_numbers<[1], [0], [0], [1], [0, 0, 1, 1], [], []>} : vector<64x30xbf16>, vector<30x80xbf16>, vector<64x80xf32> -> vector<64x80xf32>
    %904 = vector.shape_cast %903 : vector<64x80xf32> to vector<4x2x8x80xf32>
    %905 = vector.extract_strided_slice %904 {offsets = [0, 0, 2, 0], sizes = [1, 2, 5, 80], strides = [1, 1, 1, 1]} : vector<4x2x8x80xf32> to vector<1x2x5x80xf32>
    %906 = vector.shape_cast %905 : vector<1x2x5x80xf32> to vector<2x5x80xf32>
    %907 = arith.addf %894, %906 : vector<2x5x80xf32>
    %908 = vector.extract_strided_slice %904 {offsets = [1, 0, 2, 0], sizes = [1, 2, 5, 80], strides = [1, 1, 1, 1]} : vector<4x2x8x80xf32> to vector<1x2x5x80xf32>
    %909 = vector.shape_cast %908 : vector<1x2x5x80xf32> to vector<2x5x80xf32>
    %910 = arith.addf %891, %909 : vector<2x5x80xf32>
    %911 = vector.extract_strided_slice %904 {offsets = [2, 0, 2, 0], sizes = [1, 2, 5, 80], strides = [1, 1, 1, 1]} : vector<4x2x8x80xf32> to vector<1x2x5x80xf32>
    %912 = vector.shape_cast %911 : vector<1x2x5x80xf32> to vector<2x5x80xf32>
    %913 = arith.addf %900, %912 : vector<2x5x80xf32>
    %914 = vector.extract_strided_slice %904 {offsets = [3, 0, 2, 0], sizes = [1, 2, 5, 80], strides = [1, 1, 1, 1]} : vector<4x2x8x80xf32> to vector<1x2x5x80xf32>
    %915 = vector.shape_cast %914 : vector<1x2x5x80xf32> to vector<2x5x80xf32>
    %916 = arith.addf %897, %915 : vector<2x5x80xf32>
    %c22_254 = arith.constant 22 : index
    %c0_255 = arith.constant 0 : index
    %c0_256 = arith.constant 0 : index
    %917 = vector.load %arg4[%c22_254, %c0_255, %c0_256] : memref<25x30x80xbf16, #tpu.memory_space<vmem>>, vector<1x30x80xbf16>
    %918 = vector.shape_cast %917 : vector<1x30x80xbf16> to vector<30x80xbf16>
    %cst_257 = arith.constant dense<0.000000e+00> : vector<64x80xf32>
    %919 = tpu.matmul %550, %918, %cst_257 {dimension_numbers = #tpu.dot_dimension_numbers<[1], [0], [0], [1], [0, 0, 1, 1], [], []>} : vector<64x30xbf16>, vector<30x80xbf16>, vector<64x80xf32> -> vector<64x80xf32>
    %920 = vector.shape_cast %919 : vector<64x80xf32> to vector<4x2x8x80xf32>
    %921 = vector.extract_strided_slice %920 {offsets = [0, 0, 2, 0], sizes = [1, 2, 5, 80], strides = [1, 1, 1, 1]} : vector<4x2x8x80xf32> to vector<1x2x5x80xf32>
    %922 = vector.shape_cast %921 : vector<1x2x5x80xf32> to vector<2x5x80xf32>
    %923 = arith.addf %910, %922 : vector<2x5x80xf32>
    %924 = vector.extract_strided_slice %920 {offsets = [1, 0, 2, 0], sizes = [1, 2, 5, 80], strides = [1, 1, 1, 1]} : vector<4x2x8x80xf32> to vector<1x2x5x80xf32>
    %925 = vector.shape_cast %924 : vector<1x2x5x80xf32> to vector<2x5x80xf32>
    %926 = arith.addf %907, %925 : vector<2x5x80xf32>
    %927 = vector.extract_strided_slice %920 {offsets = [2, 0, 2, 0], sizes = [1, 2, 5, 80], strides = [1, 1, 1, 1]} : vector<4x2x8x80xf32> to vector<1x2x5x80xf32>
    %928 = vector.shape_cast %927 : vector<1x2x5x80xf32> to vector<2x5x80xf32>
    %929 = arith.addf %916, %928 : vector<2x5x80xf32>
    %930 = vector.extract_strided_slice %920 {offsets = [3, 0, 2, 0], sizes = [1, 2, 5, 80], strides = [1, 1, 1, 1]} : vector<4x2x8x80xf32> to vector<1x2x5x80xf32>
    %931 = vector.shape_cast %930 : vector<1x2x5x80xf32> to vector<2x5x80xf32>
    %932 = arith.addf %913, %931 : vector<2x5x80xf32>
    %c23_258 = arith.constant 23 : index
    %c0_259 = arith.constant 0 : index
    %c0_260 = arith.constant 0 : index
    %933 = vector.load %arg4[%c23_258, %c0_259, %c0_260] : memref<25x30x80xbf16, #tpu.memory_space<vmem>>, vector<1x30x80xbf16>
    %934 = vector.shape_cast %933 : vector<1x30x80xbf16> to vector<30x80xbf16>
    %cst_261 = arith.constant dense<0.000000e+00> : vector<64x80xf32>
    %935 = tpu.matmul %555, %934, %cst_261 {dimension_numbers = #tpu.dot_dimension_numbers<[1], [0], [0], [1], [0, 0, 1, 1], [], []>} : vector<64x30xbf16>, vector<30x80xbf16>, vector<64x80xf32> -> vector<64x80xf32>
    %936 = vector.shape_cast %935 : vector<64x80xf32> to vector<4x2x8x80xf32>
    %937 = vector.extract_strided_slice %936 {offsets = [0, 0, 2, 0], sizes = [1, 2, 5, 80], strides = [1, 1, 1, 1]} : vector<4x2x8x80xf32> to vector<1x2x5x80xf32>
    %938 = vector.shape_cast %937 : vector<1x2x5x80xf32> to vector<2x5x80xf32>
    %939 = arith.addf %926, %938 : vector<2x5x80xf32>
    %940 = vector.extract_strided_slice %936 {offsets = [1, 0, 2, 0], sizes = [1, 2, 5, 80], strides = [1, 1, 1, 1]} : vector<4x2x8x80xf32> to vector<1x2x5x80xf32>
    %941 = vector.shape_cast %940 : vector<1x2x5x80xf32> to vector<2x5x80xf32>
    %942 = arith.addf %923, %941 : vector<2x5x80xf32>
    %943 = vector.extract_strided_slice %936 {offsets = [2, 0, 2, 0], sizes = [1, 2, 5, 80], strides = [1, 1, 1, 1]} : vector<4x2x8x80xf32> to vector<1x2x5x80xf32>
    %944 = vector.shape_cast %943 : vector<1x2x5x80xf32> to vector<2x5x80xf32>
    %945 = arith.addf %932, %944 : vector<2x5x80xf32>
    %946 = vector.extract_strided_slice %936 {offsets = [3, 0, 2, 0], sizes = [1, 2, 5, 80], strides = [1, 1, 1, 1]} : vector<4x2x8x80xf32> to vector<1x2x5x80xf32>
    %947 = vector.shape_cast %946 : vector<1x2x5x80xf32> to vector<2x5x80xf32>
    %948 = arith.addf %929, %947 : vector<2x5x80xf32>
    %c24_262 = arith.constant 24 : index
    %c0_263 = arith.constant 0 : index
    %c0_264 = arith.constant 0 : index
    %949 = vector.load %arg4[%c24_262, %c0_263, %c0_264] : memref<25x30x80xbf16, #tpu.memory_space<vmem>>, vector<1x30x80xbf16>
    %950 = vector.shape_cast %949 : vector<1x30x80xbf16> to vector<30x80xbf16>
    %cst_265 = arith.constant dense<0.000000e+00> : vector<64x80xf32>
    %951 = tpu.matmul %560, %950, %cst_265 {dimension_numbers = #tpu.dot_dimension_numbers<[1], [0], [0], [1], [0, 0, 1, 1], [], []>} : vector<64x30xbf16>, vector<30x80xbf16>, vector<64x80xf32> -> vector<64x80xf32>
    %952 = vector.shape_cast %951 : vector<64x80xf32> to vector<4x2x8x80xf32>
    %953 = vector.extract_strided_slice %952 {offsets = [0, 0, 2, 0], sizes = [1, 2, 5, 80], strides = [1, 1, 1, 1]} : vector<4x2x8x80xf32> to vector<1x2x5x80xf32>
    %954 = vector.shape_cast %953 : vector<1x2x5x80xf32> to vector<2x5x80xf32>
    %955 = arith.addf %942, %954 : vector<2x5x80xf32>
    %956 = vector.extract_strided_slice %952 {offsets = [1, 0, 2, 0], sizes = [1, 2, 5, 80], strides = [1, 1, 1, 1]} : vector<4x2x8x80xf32> to vector<1x2x5x80xf32>
    %957 = vector.shape_cast %956 : vector<1x2x5x80xf32> to vector<2x5x80xf32>
    %958 = arith.addf %939, %957 : vector<2x5x80xf32>
    %959 = vector.extract_strided_slice %952 {offsets = [2, 0, 2, 0], sizes = [1, 2, 5, 80], strides = [1, 1, 1, 1]} : vector<4x2x8x80xf32> to vector<1x2x5x80xf32>
    %960 = vector.shape_cast %959 : vector<1x2x5x80xf32> to vector<2x5x80xf32>
    %961 = arith.addf %948, %960 : vector<2x5x80xf32>
    %962 = vector.extract_strided_slice %952 {offsets = [3, 0, 2, 0], sizes = [1, 2, 5, 80], strides = [1, 1, 1, 1]} : vector<4x2x8x80xf32> to vector<1x2x5x80xf32>
    %963 = vector.shape_cast %962 : vector<1x2x5x80xf32> to vector<2x5x80xf32>
    %964 = arith.addf %945, %963 : vector<2x5x80xf32>
    %965 = arith.maximumf %955, %958 : vector<2x5x80xf32>
    %966 = arith.maximumf %961, %964 : vector<2x5x80xf32>
    %967 = arith.maximumf %965, %966 : vector<2x5x80xf32>
    %c0_266 = arith.constant 0 : index
    %c0_267 = arith.constant 0 : index
    %968 = vector.load %arg5[%c0_266, %c0_267] : memref<1x80xf32, #tpu.memory_space<vmem>>, vector<1x80xf32>
    %969 = vector.shape_cast %968 : vector<1x80xf32> to vector<1x1x80xf32>
    %970 = vector.broadcast %969 : vector<1x1x80xf32> to vector<2x5x80xf32>
    %971 = arith.addf %967, %970 : vector<2x5x80xf32>
    %cst_268 = arith.constant 0.000000e+00 : f32
    %972 = vector.broadcast %cst_268 : f32 to vector<2x5x80xf32>
    %973 = arith.maximumf %971, %972 : vector<2x5x80xf32>
    %cst_269 = arith.constant 0.000000e+00 : f32
    %974 = vector.broadcast %cst_269 : f32 to vector<2x128xf32>
    %975 = vector.extract_strided_slice %973 {offsets = [0, 0, 0], sizes = [2, 1, 80], strides = [1, 1, 1]} : vector<2x5x80xf32> to vector<2x1x80xf32>
    %976 = vector.shape_cast %975 : vector<2x1x80xf32> to vector<2x80xf32>
    %977 = arith.truncf %976 : vector<2x80xf32> to vector<2x80xbf16>
    %c0_270 = arith.constant 0 : index
    %c0_271 = arith.constant 0 : index
    %c0_272 = arith.constant 0 : index
    %978 = vector.load %arg6[%c0_270, %c0_271, %c0_272] : memref<5x80x128xbf16, #tpu.memory_space<vmem>>, vector<1x80x128xbf16>
    %979 = vector.shape_cast %978 : vector<1x80x128xbf16> to vector<80x128xbf16>
    %cst_273 = arith.constant dense<0.000000e+00> : vector<2x128xf32>
    %980 = tpu.matmul %977, %979, %cst_273 {dimension_numbers = #tpu.dot_dimension_numbers<[1], [0], [0], [1], [0, 0, 1, 1], [], []>} : vector<2x80xbf16>, vector<80x128xbf16>, vector<2x128xf32> -> vector<2x128xf32>
    %981 = arith.addf %974, %980 : vector<2x128xf32>
    %982 = vector.extract_strided_slice %973 {offsets = [0, 1, 0], sizes = [2, 1, 80], strides = [1, 1, 1]} : vector<2x5x80xf32> to vector<2x1x80xf32>
    %983 = vector.shape_cast %982 : vector<2x1x80xf32> to vector<2x80xf32>
    %984 = arith.truncf %983 : vector<2x80xf32> to vector<2x80xbf16>
    %c1_274 = arith.constant 1 : index
    %c0_275 = arith.constant 0 : index
    %c0_276 = arith.constant 0 : index
    %985 = vector.load %arg6[%c1_274, %c0_275, %c0_276] : memref<5x80x128xbf16, #tpu.memory_space<vmem>>, vector<1x80x128xbf16>
    %986 = vector.shape_cast %985 : vector<1x80x128xbf16> to vector<80x128xbf16>
    %cst_277 = arith.constant dense<0.000000e+00> : vector<2x128xf32>
    %987 = tpu.matmul %984, %986, %cst_277 {dimension_numbers = #tpu.dot_dimension_numbers<[1], [0], [0], [1], [0, 0, 1, 1], [], []>} : vector<2x80xbf16>, vector<80x128xbf16>, vector<2x128xf32> -> vector<2x128xf32>
    %988 = arith.addf %981, %987 : vector<2x128xf32>
    %989 = vector.extract_strided_slice %973 {offsets = [0, 2, 0], sizes = [2, 1, 80], strides = [1, 1, 1]} : vector<2x5x80xf32> to vector<2x1x80xf32>
    %990 = vector.shape_cast %989 : vector<2x1x80xf32> to vector<2x80xf32>
    %991 = arith.truncf %990 : vector<2x80xf32> to vector<2x80xbf16>
    %c2_278 = arith.constant 2 : index
    %c0_279 = arith.constant 0 : index
    %c0_280 = arith.constant 0 : index
    %992 = vector.load %arg6[%c2_278, %c0_279, %c0_280] : memref<5x80x128xbf16, #tpu.memory_space<vmem>>, vector<1x80x128xbf16>
    %993 = vector.shape_cast %992 : vector<1x80x128xbf16> to vector<80x128xbf16>
    %cst_281 = arith.constant dense<0.000000e+00> : vector<2x128xf32>
    %994 = tpu.matmul %991, %993, %cst_281 {dimension_numbers = #tpu.dot_dimension_numbers<[1], [0], [0], [1], [0, 0, 1, 1], [], []>} : vector<2x80xbf16>, vector<80x128xbf16>, vector<2x128xf32> -> vector<2x128xf32>
    %995 = arith.addf %988, %994 : vector<2x128xf32>
    %996 = vector.extract_strided_slice %973 {offsets = [0, 3, 0], sizes = [2, 1, 80], strides = [1, 1, 1]} : vector<2x5x80xf32> to vector<2x1x80xf32>
    %997 = vector.shape_cast %996 : vector<2x1x80xf32> to vector<2x80xf32>
    %998 = arith.truncf %997 : vector<2x80xf32> to vector<2x80xbf16>
    %c3_282 = arith.constant 3 : index
    %c0_283 = arith.constant 0 : index
    %c0_284 = arith.constant 0 : index
    %999 = vector.load %arg6[%c3_282, %c0_283, %c0_284] : memref<5x80x128xbf16, #tpu.memory_space<vmem>>, vector<1x80x128xbf16>
    %1000 = vector.shape_cast %999 : vector<1x80x128xbf16> to vector<80x128xbf16>
    %cst_285 = arith.constant dense<0.000000e+00> : vector<2x128xf32>
    %1001 = tpu.matmul %998, %1000, %cst_285 {dimension_numbers = #tpu.dot_dimension_numbers<[1], [0], [0], [1], [0, 0, 1, 1], [], []>} : vector<2x80xbf16>, vector<80x128xbf16>, vector<2x128xf32> -> vector<2x128xf32>
    %1002 = arith.addf %995, %1001 : vector<2x128xf32>
    %1003 = vector.extract_strided_slice %973 {offsets = [0, 4, 0], sizes = [2, 1, 80], strides = [1, 1, 1]} : vector<2x5x80xf32> to vector<2x1x80xf32>
    %1004 = vector.shape_cast %1003 : vector<2x1x80xf32> to vector<2x80xf32>
    %1005 = arith.truncf %1004 : vector<2x80xf32> to vector<2x80xbf16>
    %c4_286 = arith.constant 4 : index
    %c0_287 = arith.constant 0 : index
    %c0_288 = arith.constant 0 : index
    %1006 = vector.load %arg6[%c4_286, %c0_287, %c0_288] : memref<5x80x128xbf16, #tpu.memory_space<vmem>>, vector<1x80x128xbf16>
    %1007 = vector.shape_cast %1006 : vector<1x80x128xbf16> to vector<80x128xbf16>
    %cst_289 = arith.constant dense<0.000000e+00> : vector<2x128xf32>
    %1008 = tpu.matmul %1005, %1007, %cst_289 {dimension_numbers = #tpu.dot_dimension_numbers<[1], [0], [0], [1], [0, 0, 1, 1], [], []>} : vector<2x80xbf16>, vector<80x128xbf16>, vector<2x128xf32> -> vector<2x128xf32>
    %1009 = arith.addf %1002, %1008 : vector<2x128xf32>
    %c0_290 = arith.constant 0 : index
    %c0_291 = arith.constant 0 : index
    %1010 = vector.load %arg7[%c0_290, %c0_291] : memref<1x128xf32, #tpu.memory_space<vmem>>, vector<1x128xf32>
    %1011 = vector.broadcast %1010 : vector<1x128xf32> to vector<2x128xf32>
    %1012 = arith.addf %1009, %1011 : vector<2x128xf32>
    %cst_292 = arith.constant 0.000000e+00 : f32
    %1013 = vector.broadcast %cst_292 : f32 to vector<2x128xf32>
    %1014 = arith.maximumf %1012, %1013 : vector<2x128xf32>
    %1015 = arith.truncf %1014 : vector<2x128xf32> to vector<2x128xbf16>
    %c0_293 = arith.constant 0 : index
    %c0_294 = arith.constant 0 : index
    %1016 = vector.load %arg8[%c0_293, %c0_294] : memref<128x128xbf16, #tpu.memory_space<vmem>>, vector<128x128xbf16>
    %cst_295 = arith.constant dense<0.000000e+00> : vector<2x128xf32>
    %1017 = tpu.matmul %1015, %1016, %cst_295 {dimension_numbers = #tpu.dot_dimension_numbers<[1], [0], [0], [1], [0, 0, 1, 1], [], []>} : vector<2x128xbf16>, vector<128x128xbf16>, vector<2x128xf32> -> vector<2x128xf32>
    %c0_296 = arith.constant 0 : index
    %c0_297 = arith.constant 0 : index
    %1018 = vector.load %arg9[%c0_296, %c0_297] : memref<1x128xf32, #tpu.memory_space<vmem>>, vector<1x128xf32>
    %1019 = vector.broadcast %1018 : vector<1x128xf32> to vector<2x128xf32>
    %1020 = arith.addf %1017, %1019 : vector<2x128xf32>
    %cst_298 = arith.constant 0.000000e+00 : f32
    %1021 = vector.broadcast %cst_298 : f32 to vector<2x128xf32>
    %1022 = arith.maximumf %1020, %1021 : vector<2x128xf32>
    %1023 = arith.truncf %1022 : vector<2x128xf32> to vector<2x128xbf16>
    %c0_299 = arith.constant 0 : index
    %c0_300 = arith.constant 0 : index
    %1024 = vector.load %arg10[%c0_299, %c0_300] : memref<128x128xbf16, #tpu.memory_space<vmem>>, vector<128x128xbf16>
    %cst_301 = arith.constant dense<0.000000e+00> : vector<2x128xf32>
    %1025 = tpu.matmul %1023, %1024, %cst_301 {dimension_numbers = #tpu.dot_dimension_numbers<[1], [0], [0], [1], [0, 0, 1, 1], [], []>} : vector<2x128xbf16>, vector<128x128xbf16>, vector<2x128xf32> -> vector<2x128xf32>
    %c0_302 = arith.constant 0 : index
    %c0_303 = arith.constant 0 : index
    %1026 = vector.load %arg11[%c0_302, %c0_303] : memref<1x128xf32, #tpu.memory_space<vmem>>, vector<1x128xf32>
    %1027 = vector.broadcast %1026 : vector<1x128xf32> to vector<2x128xf32>
    %1028 = arith.addf %1025, %1027 : vector<2x128xf32>
    %c0_304 = arith.constant 0 : index
    %c0_305 = arith.constant 0 : index
    %1029 = vector.load %arg12[%c0_304, %c0_305] : memref<2x128xf32, #tpu.memory_space<vmem>>, vector<2x128xf32>
    tpu.vector_store %arg12[%c0_304, %c0_305], %1028 {strides = array<i32>} : memref<2x128xf32, #tpu.memory_space<vmem>>, vector<2x128xf32>,
    return
  }
  func.func @transform_0(%arg0: i32) -> (i32, i32, i32) {
    %c0_i32 = arith.constant 0 : i32
    %c0_i32_0 = arith.constant 0 : i32
    %c0_i32_1 = arith.constant 0 : i32
    %c0_i32_2 = arith.constant 0 : i32
    return %c0_i32, %c0_i32_0, %c0_i32_1 : i32, i32, i32
  }
  func.func @transform_1(%arg0: i32) -> (i32, i32, i32) {
    %c0_i32 = arith.constant 0 : i32
    %c0_i32_0 = arith.constant 0 : i32
    %c0_i32_1 = arith.constant 0 : i32
    %c0_i32_2 = arith.constant 0 : i32
    return %c0_i32, %c0_i32_0, %c0_i32_1 : i32, i32, i32
  }
  func.func @transform_2(%arg0: i32) -> (i32, i32) {
    %c0_i32 = arith.constant 0 : i32
    %c0_i32_0 = arith.constant 0 : i32
    %c0_i32_1 = arith.constant 0 : i32
    return %c0_i32, %c0_i32_0 : i32, i32
  }
  func.func @transform_3(%arg0: i32) -> (i32, i32, i32) {
    %c0_i32 = arith.constant 0 : i32
    %c0_i32_0 = arith.constant 0 : i32
    %c0_i32_1 = arith.constant 0 : i32
    %c0_i32_2 = arith.constant 0 : i32
    return %c0_i32, %c0_i32_0, %c0_i32_1 : i32, i32, i32
  }
  func.func @transform_4(%arg0: i32) -> (i32, i32) {
    %c0_i32 = arith.constant 0 : i32
    %c0_i32_0 = arith.constant 0 : i32
    %c0_i32_1 = arith.constant 0 : i32
    return %c0_i32, %c0_i32_0 : i32, i32
  }
  func.func @transform_5(%arg0: i32) -> (i32, i32, i32) {
    %c0_i32 = arith.constant 0 : i32
    %c0_i32_0 = arith.constant 0 : i32
    %c0_i32_1 = arith.constant 0 : i32
    %c0_i32_2 = arith.constant 0 : i32
    return %c0_i32, %c0_i32_0, %c0_i32_1 : i32, i32, i32
  }
  func.func @transform_6(%arg0: i32) -> (i32, i32) {
    %c0_i32 = arith.constant 0 : i32
    %c0_i32_0 = arith.constant 0 : i32
    %c0_i32_1 = arith.constant 0 : i32
    return %c0_i32, %c0_i32_0 : i32, i32
  }
  func.func @transform_7(%arg0: i32) -> (i32, i32) {
    %c0_i32 = arith.constant 0 : i32
    %c0_i32_0 = arith.constant 0 : i32
    %c0_i32_1 = arith.constant 0 : i32
    return %c0_i32, %c0_i32_0 : i32, i32
  }
  func.func @transform_8(%arg0: i32) -> (i32, i32) {
    %c0_i32 = arith.constant 0 : i32
    %c0_i32_0 = arith.constant 0 : i32
    %c0_i32_1 = arith.constant 0 : i32
    return %c0_i32, %c0_i32_0 : i32, i32
  }
  func.func @transform_9(%arg0: i32) -> (i32, i32) {
    %c0_i32 = arith.constant 0 : i32
    %c0_i32_0 = arith.constant 0 : i32
    %c0_i32_1 = arith.constant 0 : i32
    return %c0_i32, %c0_i32_0 : i32, i32
  }
  func.func @transform_10(%arg0: i32) -> (i32, i32) {
    %c0_i32 = arith.constant 0 : i32
    %c0_i32_0 = arith.constant 0 : i32
    %c0_i32_1 = arith.constant 0 : i32
    return %c0_i32, %c0_i32_0 : i32, i32
  }
  func.func @transform_11(%arg0: i32) -> (i32, i32) {
    %c0_i32 = arith.constant 0 : i32
    %c0_i32_0 = arith.constant 0 : i32
    %c0_i32_1 = arith.constant 0 : i32
    return %c0_i32, %c0_i32_0 : i32, i32
  }
}

</mosaic_0001>

<bundles_post_ra>
// kernel: net_forward.1
= control target key start
LH: loop header
LB: loop body
LE: loop exit
PB: predicated region body
PF: predicated region fallthrough
CT: control target
= control target key end

     0   :  { %s10910_s21 = smov 3   ;;  %s10911_s30 = smov 125   ;;  %vm130_vm0 = vcmask 343040   ;;  %vm155_vm1 = vcmask 1044480   ;;  %s13824_s0 = inlined_call_operand.vmem [shape: bf16[4,32,48], index: 0, kind: input, shape index: {}]   ;;  %s13825_s1 = inlined_call_operand.vmem [shape: bf16[25,42,84], index: 1, kind: input, shape index: {}]   ;;  %s13826_s2 = inlined_call_operand.vmem [shape: f32[1,84], index: 2, kind: input, shape index: {}]   ;;  %s13827_s3 = inlined_call_operand.vmem [shape: bf16[25,30,80], index: 3, kind: input, shape index: {}]   ;;  %s13828_s4 = inlined_call_operand.vmem [shape: f32[1,80], index: 4, kind: input, shape index: {}]   ;;  %s13829_s5 = inlined_call_operand.vmem [shape: bf16[5,80,128], index: 5, kind: input, shape index: {}]   ;;  %s13830_s6 = inlined_call_operand.vmem [shape: f32[1,128], index: 6, kind: input, shape index: {}]   ;;  %s13831_s7 = inlined_call_operand.vmem [shape: bf16[128,128], index: 7, kind: input, shape index: {}]   ;;  %s13832_s8 = inlined_call_operand.vmem [shape: f32[1,128], index: 8, kind: input, shape index: {}]   ;;  %s13833_s9 = inlined_call_operand.vmem [shape: bf16[128,128], index: 9, kind: input, shape index: {}]   ;;  %s13834_s10 = inlined_call_operand.vmem [shape: f32[1,128], index: 10, kind: input, shape index: {}]   ;;  %s13835_s11 = inlined_call_operand.hbm [shape: f32[2,128], index: 11, kind: output, shape index: {}]  }
   0x1   :  { %v10982_v0 = vld [vmem:[%s13824_s0 + $0x10] sm:$0xff]   ;;  %v10987_v1 = vld [vmem:[%s13824_s0 + $0x18] sm:$0xff]   ;;  %v11005_v4 = vld [vmem:[%s13824_s0] sm:$0xff]  }
   0x2   :  { %99 = vrot.lane.b32.xlu0 %v10982_v0, %s10910_s21  ;;  %v10993_v2 = vld [vmem:[%s13824_s0 + $0x30] sm:$0xff]   ;;  %v10999_v3 = vld [vmem:[%s13824_s0 + $0x38] sm:$0xff]   ;;  %v11011_v5 = vld [vmem:[%s13824_s0 + $0x8] sm:$0xff]   ;;  %9799 = vmatprep.mubr.msk.bf16.mxu1 %vm130_vm0, %v11005_v4 }
   0x3   :  { %103 = vrot.lane.b32.xlu1 %v10993_v2, %s10910_s21  ;;  %v10712_v6 = vld [vmem:[%s13825_s1 + $0xf0] sm:$0xff]   ;;  %v10713_v7 = vld [vmem:[%s13825_s1] sm:$0xff]   ;;  %v10714_v8 = vld [vmem:[%s13825_s1 + $0xf8] sm:$0xff]   ;;  %9579 = vmatprep.mubr.msk.bf16.mxu0 %vm130_vm0, %v11005_v4 }
   0x4   :  { %v10715_v9 = vld [vmem:[%s13825_s1 + $0x8] sm:$0xff]   ;;  %v10716_v10 = vld [vmem:[%s13825_s1 + $0x100] sm:$0x1f]   ;;  %v10717_v11 = vld [vmem:[%s13825_s1 + $0x10] sm:$0x1f]   ;;  %9793 = vmatprep.subr.bf16.mxu1 %v10712_v6  ;;  %9573 = vmatprep.subr.bf16.mxu0 %v10713_v7 }
   0x5   :  { %9794 = vmatpush3.bf16.msra.mxu1 %v10712_v6  ;;  %9574 = vmatpush3.bf16.msra.mxu0 %v10713_v7  ;;  %v10721_v12 = vld [vmem:[%s13825_s1 + $0x28] sm:$0x1f]   ;;  %v10723_v13 = vld [vmem:[%s13825_s1 + $0x118] sm:$0x1f]   ;;  %v1818_v14 = vsel %vm155_vm1, %v10716_v10, 0  ;;  %v157_v15 = vsel %vm155_vm1, %v10717_v11, 0 }
   0x6   :  { %101 = vrot.lane.b32.xlu0 %v10987_v1, %s10910_s21  ;;  %9795 = vmatprep.subr.bf16.mxu1 %v10714_v8  ;;  %v10718_v16 = vld [vmem:[%s13825_s1 + $0x18] sm:$0xff]   ;;  %v10720_v17 = vld [vmem:[%s13825_s1 + $0x108] sm:$0xff]   ;;  %v337_v18 = vsel %vm155_vm1, %v10721_v12, 0  ;;  %v2014_v19 = vsel %vm155_vm1, %v10723_v13, 0  ;;  %v10719_v20 = vld [vmem:[%s13825_s1 + $0x20] sm:$0xff]  }
   0x7   :  { %105 = vrot.lane.b32.xlu1 %v10999_v3, %s10910_s21  ;;  %9575 = vmatprep.subr.bf16.mxu0 %v10715_v9  ;;  %v10722_v21 = vld [vmem:[%s13825_s1 + $0x110] sm:$0xff]   ;;  %v11074_v22 = vld [vmem:[%s13824_s0 + $0x20] sm:$0xff]   ;;  %v11092_v24 = vld [vmem:[%s13824_s0 + $0x28] sm:$0xff]  }
   0x8   :  { %v10724_v23 = vld [vmem:[%s13825_s1 + $0x30] sm:$0xff]   ;;  %v10726_v27 = vld [vmem:[%s13825_s1 + $0x120] sm:$0xff]   ;;  %v10725_v32 = vld [vmem:[%s13825_s1 + $0x38] sm:$0xff]  }
   0x9   :  { %9796 = vmatpush3.bf16.msra.mxu1 %v10714_v8  ;;  %9576 = vmatpush3.bf16.msra.mxu0 %v10715_v9  ;;  %v10728_v33 = vld [vmem:[%s13825_s1 + $0x128] sm:$0xff]  }
   0xa   :  { %279 = vrot.lane.b32.xlu0 %v11005_v4, %s10911_s30  ;;  %10655 = vmatprep.subr.msk.bf16.mxu1 %vm155_vm1, %v10716_v10 }
   0xb   :  { %281 = vrot.lane.b32.xlu1 %v11011_v5, %s10911_s30  ;;  %10645 = vmatprep.subr.msk.bf16.mxu0 %vm155_vm1, %v10717_v11 }
   0xd   :  { %9798 = vmatpush3.bf16.msra.mxu1 %v1818_v14  ;;  %9578 = vmatpush3.bf16.msra.mxu0 %v157_v15 }
   0xe   :  { %9595 = vmatprep.subr.bf16.mxu0 %v10718_v16  ;;  %9815 = vmatprep.subr.bf16.mxu1 %v10720_v17 }
  0x10   :  { %9800 = vmatmul.mubr.msk.bf16.vlgmr.msra.gmra.mrb[0].mxu1 %vm130_vm0, %v11011_v5  ;;  %9580 = vmatmul.mubr.msk.bf16.vlgmr.msra.gmra.mrb[0].mxu0 %vm130_vm0, %v11011_v5 }
  0x11   :  { %9596 = vmatpush3.bf16.msra.mxu0 %v10718_v16  ;;  %9803 = vmatprep.mubr.msk.bf16.mxu1 %vm130_vm0, %v10982_v0 }
  0x12   :  { %9583 = vmatprep.mubr.msk.bf16.mxu0 %vm130_vm0, %v10982_v0  ;;  %9597 = vmatprep.subr.bf16.mxu0 %v10719_v20 }
  0x13   :  { %9816 = vmatpush3.bf16.msra.mxu1 %v10720_v17 }
  0x14   :  { %9817 = vmatprep.subr.bf16.mxu1 %v10722_v21 }
  0x15   :  { %9598 = vmatpush3.bf16.msra.mxu0 %v10719_v20 }
  0x16   :  { %10646 = vmatprep.subr.msk.bf16.mxu0 %vm155_vm1, %v10721_v12 }
  0x17   :  { %9818 = vmatpush3.bf16.msra.mxu1 %v10722_v21 }
  0x18   :  { %9804 = vmatmul.mubr.msk.bf16.gmra.mrb[4].mxu1 %vm130_vm0, %v10987_v1  ;;  %9584 = vmatmul.mubr.msk.bf16.gmra.mrb[4].mxu0 %vm130_vm0, %v10987_v1 }
  0x19   :  { %9807 = vmatprep.mubr.msk.bf16.mxu1 %vm130_vm0, %v11074_v22  ;;  %9587 = vmatprep.mubr.msk.bf16.mxu0 %vm130_vm0, %v11074_v22 }
  0x1a   :  { %9600 = vmatpush3.bf16.msra.mxu0 %v337_v18  ;;  %10656 = vmatprep.subr.msk.bf16.mxu1 %vm155_vm1, %v10723_v13 }
  0x1b   :  { %9820 = vmatpush3.bf16.msra.mxu1 %v2014_v19  ;;  %9617 = vmatprep.subr.bf16.mxu0 %v10724_v23 }
  0x1c   :  { %9837 = vmatprep.subr.bf16.mxu1 %v10726_v27 }
  0x20   :  { %9808 = vmatmul.mubr.msk.bf16.gmra.mrb[8].mxu1 %vm130_vm0, %v11092_v24  ;;  %9588 = vmatmul.mubr.msk.bf16.gmra.mrb[8].mxu0 %vm130_vm0, %v11092_v24 }
  0x21   :  { %9811 = vmatprep.mubr.msk.bf16.mxu1 %vm130_vm0, %v10993_v2  ;;  %9591 = vmatprep.mubr.msk.bf16.mxu0 %vm130_vm0, %v10993_v2 }
  0x28   :  { %9812 = vmatmul.mubr.msk.bf16.gmra.mrb[12].mxu1 %vm130_vm0, %v10999_v3  ;;  %9592 = vmatmul.mubr.msk.bf16.gmra.mrb[12].mxu0 %vm130_vm0, %v10999_v3 }
  0x74   :  { %v100_v25 = vpop.permute.xlu0 %99 }
  0x75   :  { %283 = vrot.lane.b32.xlu0 %v100_v25, %s10911_s30  ;;  %v104_v26 = vpop.permute.xlu1 %103 }
  0x78   :  { %v102_v28 = vpop.permute.xlu0 %101 }
  0x79   :  { %285 = vrot.lane.b32.xlu1 %v102_v28, %s10911_s30  ;;  %287 = vrot.lane.b32.xlu0 %v11074_v22, %s10911_s30  ;;  %v106_v29 = vpop.permute.xlu1 %105 }
  0x7c   :  { %v11113_v30 = vpop.permute.xlu0 %279 }
  0x7d   :  { %289 = vrot.lane.b32.xlu1 %v11092_v24, %s10911_s30  ;;  %291 = vrot.lane.b32.xlu0 %v104_v26, %s10911_s30  ;;  %v11118_v31 = vpop.permute.xlu1 %281 }
  0x7e   :  { %9821 = vmatprep.mubr.msk.bf16.mxu1 %vm130_vm0, %v11113_v30  ;;  %9601 = vmatprep.mubr.msk.bf16.mxu0 %vm130_vm0, %v11113_v30 }
  0x7f   :  { %16 = vsyncpa [#allocation4], 0  ;;  %9822 = vmatmul.mubr.msk.bf16.vlgmr.msra.gmra.mrb[16].mxu1 %vm130_vm0, %v11118_v31  ;;  %9602 = vmatmul.mubr.msk.bf16.vlgmr.msra.gmra.mrb[4].mxu0 %vm130_vm0, %v11118_v31  ;;  %v10727_v34 = vld [vmem:[%s13825_s1 + $0x40] sm:$0x1f]   ;;  %v10729_v35 = vld [vmem:[%s13825_s1 + $0x130] sm:$0x1f]  }
  0x80   :  { %9618 = vmatpush3.bf16.msra.mxu0 %v10724_v23  ;;  %9838 = vmatpush3.bf16.msra.mxu1 %v10726_v27  ;;  %v497_v36 = vsel %vm155_vm1, %v10727_v34, 0  ;;  %v2210_v37 = vsel %vm155_vm1, %v10729_v35, 0  ;;  %v10730_v38 = vld [vmem:[%s13825_s1 + $0x48] sm:$0xff]   ;;  %s10912_s18 = smov 122   ;;  %v10732_v39 = vld [vmem:[%s13825_s1 + $0x138] sm:$0xff]   ;;  %v10731_v46 = vld [vmem:[%s13825_s1 + $0x50] sm:$0xff]  }
  0x81   :  { %293 = vrot.lane.b32.xlu1 %v106_v29, %s10911_s30  ;;  %459 = vrot.lane.b32.xlu0 %v10982_v0, %s10911_s30  ;;  %v10734_v48 = vld [vmem:[%s13825_s1 + $0x140] sm:$0xff]   ;;  %v10733_v49 = vld [vmem:[%s13825_s1 + $0x58] sm:$0x1f]   ;;  %vm1080_vm2 = vcmask 1046528   ;;  %vm2901_vm3 = vcmask 1045504   ;;  %vm4761_vm4 = vcmask 679936  }
  0x82   :  { %9619 = vmatprep.subr.bf16.mxu0 %v10725_v32  ;;  %9839 = vmatprep.subr.bf16.mxu1 %v10728_v33  ;;  %v10735_v50 = vld [vmem:[%s13825_s1 + $0x148] sm:$0x1f]   ;;  %v677_v52 = vsel %vm155_vm1, %v10733_v49, 0  ;;  %v10736_v53 = vld [vmem:[%s13825_s1 + $0x60] sm:$0xff]   ;;  %v10738_v55 = vld [vmem:[%s13825_s1 + $0x150] sm:$0xff]   ;;  %vm4769_vm5 = vcmask 680961  }
  0x83   :  { %v2406_v54 = vsel %vm155_vm1, %v10735_v50, 0  ;;  %v10737_v59 = vld [vmem:[%s13825_s1 + $0x68] sm:$0xff]   ;;  %v10740_v62 = vld [vmem:[%s13825_s1 + $0x158] sm:$0xff]   ;;  %vm4772_vm6 = vcmask 681986   ;;  %vm4775_vm7 = vcmask 683011   ;;  %vm4778_vm8 = vcmask 684036  }
  0x84   :  { %9620 = vmatpush3.bf16.msra.mxu0 %v10725_v32  ;;  %9840 = vmatpush3.bf16.msra.mxu1 %v10728_v33  ;;  %v10742_v9 = vld [vmem:[%s13825_s1 + $0x78] sm:$0xff]   ;;  %v10744_v13 = vld [vmem:[%s13825_s1 + $0x168] sm:$0xff]   ;;  %vm4781_vm9 = vcmask 685061   ;;  %vm4784_vm10 = vcmask 686086   ;;  %vm4787_vm11 = vcmask 687111   ;;  %vm4833_vm12 = vcmask 244736  }
  0x85   :  { %461 = vrot.lane.b32.xlu1 %v10987_v1, %s10911_s30  ;;  %463 = vrot.lane.b32.xlu0 %v10993_v2, %s10911_s30  ;;  %s10915_s24 = smov 92   ;;  %s10916_s19 = smov 116   ;;  %vm10917_vm13 = vmmov 0   ;;  %vm7655_vm14 = vcmask 1041409   ;;  %vm7688_vm15 = vcmask 654336  }
  0x86   :  { %10647 = vmatprep.subr.msk.bf16.mxu0 %vm155_vm1, %v10727_v34  ;;  %10657 = vmatprep.subr.msk.bf16.mxu1 %vm155_vm1, %v10729_v35 }
  0x88   :  { %9622 = vmatpush3.bf16.msra.mxu0 %v497_v36  ;;  %9842 = vmatpush3.bf16.msra.mxu1 %v2210_v37 }
  0x89   :  { %465 = vrot.lane.b32.xlu1 %v10999_v3, %s10911_s30  ;;  %619 = vrot.lane.b32.xlu0 %v11005_v4, %s10912_s18 }
  0x8a   :  { %9639 = vmatprep.subr.bf16.mxu0 %v10730_v38  ;;  %9859 = vmatprep.subr.bf16.mxu1 %v10732_v39 }
  0x8d   :  { %621 = vrot.lane.b32.xlu1 %v11011_v5, %s10912_s18  ;;  %623 = vrot.lane.b32.xlu0 %v100_v25, %s10912_s18 }
  0x91   :  { %625 = vrot.lane.b32.xlu1 %v102_v28, %s10912_s18  ;;  %627 = vrot.lane.b32.xlu0 %v11074_v22, %s10912_s18 }
  0x95   :  { %629 = vrot.lane.b32.xlu1 %v11092_v24, %s10912_s18  ;;  %631 = vrot.lane.b32.xlu0 %v104_v26, %s10912_s18 }
  0x99   :  { %633 = vrot.lane.b32.xlu1 %v106_v29, %s10912_s18  ;;  %799 = vrot.lane.b32.xlu0 %v10982_v0, %s10912_s18  ;;  %v10739_v0 = vld [vmem:[%s13825_s1 + $0x70] sm:$0x1f]  }
  0x9a   :  { %v837_v8 = vsel %vm155_vm1, %v10739_v0, 0 }
  0x9d   :  { %801 = vrot.lane.b32.xlu1 %v10987_v1, %s10912_s18  ;;  %803 = vrot.lane.b32.xlu0 %v10993_v2, %s10912_s18 }
  0xa1   :  { %805 = vrot.lane.b32.xlu1 %v10999_v3, %s10912_s18  ;;  %v10741_v3 = vld [vmem:[%s13825_s1 + $0x160] sm:$0x1f]  }
  0xa2   :  { %v2602_v12 = vsel %vm155_vm1, %v10741_v3, 0 }
  0xe3   :  { %v11299_v63 = vpop.f32.mrb[0].mxu1 }
  0xe4   :  { %v11306_v1 = vpop.f32.mrb[1].mxu1 }
  0xe5   :  { %v11308_v2 = vpop.f32.mrb[2].mxu1 }
  0xe6   :  { %13965 = vst [vmem:[#allocation6_spill] sm:$0xff] %v11308_v2  ;;  %v11313_v4 = vpop.f32.mrb[3].mxu1 }
  0xe7   :  { %v11179_v40 = vpop.permute.xlu0 %283  ;;  %13966 = vst [vmem:[#allocation7_spill] sm:$0xff] %v11313_v4 }
  0xe8   :  { %9605 = vmatprep.mubr.msk.bf16.mxu0 %vm130_vm0, %v11179_v40  ;;  %9825 = vmatprep.mubr.msk.bf16.mxu1 %vm130_vm0, %v11179_v40 }
  0xeb   :  { %v11185_v41 = vpop.permute.xlu1 %285  ;;  %v11187_v42 = vpop.permute.xlu0 %287 }
  0xec   :  { %9606 = vmatmul.mubr.msk.bf16.gmra.mrb[0].mxu0 %vm130_vm0, %v11185_v41  ;;  %9826 = vmatmul.mubr.msk.bf16.gmra.mrb[20].mxu1 %vm130_vm0, %v11185_v41  ;;  %v11315_v5 = vpop.f32.mrb[4].mxu1 }
  0xed   :  { %9609 = vmatprep.mubr.msk.bf16.mxu0 %vm130_vm0, %v11187_v42  ;;  %9829 = vmatprep.mubr.msk.bf16.mxu1 %vm130_vm0, %v11187_v42  ;;  %v11318_v6 = vpop.f32.mrb[5].mxu1 }
  0xee   :  { %v11326_v10 = vpop.f32.mrb[6].mxu1 }
  0xef   :  { %v11197_v43 = vpop.permute.xlu1 %289  ;;  %v11199_v44 = vpop.permute.xlu0 %291  ;;  %13967 = vst [vmem:[#allocation8_spill] sm:$0xff] %v11326_v10 }
  0xf0   :  { %v11338_v14 = vpop.f32.mrb[7].mxu1 }
  0xf1   :  { %13968 = vst [vmem:[#allocation9_spill] sm:$0xff] %v11338_v14 }
  0xf3   :  { %v11209_v45 = vpop.permute.xlu1 %293  ;;  %v11222_v47 = vpop.permute.xlu0 %459 }
  0xf4   :  { %9610 = vmatmul.mubr.msk.bf16.gmra.mrb[12].mxu0 %vm130_vm0, %v11197_v43  ;;  %9830 = vmatmul.mubr.msk.bf16.gmra.mrb[24].mxu1 %vm130_vm0, %v11197_v43  ;;  %v9809_v15 = vpop.f32.mrb[8].mxu1 }
  0xf5   :  { %9613 = vmatprep.mubr.msk.bf16.mxu0 %vm130_vm0, %v11199_v44  ;;  %9833 = vmatprep.mubr.msk.bf16.mxu1 %vm130_vm0, %v11199_v44  ;;  %v1960_v16 = vrot.slane %v9809_v15, 1  ;;  %v1886_v17 = vpop.f32.mrb[9].mxu1  ;;  %v13837_v15 = vrot.slane %v11338_v14, 1 }
  0xf6   :  { %v1957_v18 = vrot.slane %v1886_v17, 1  ;;  %v11345_v19 = vpop.f32.mrb[10].mxu1  ;;  %v10750_v17 = vld [vmem:[%s13825_s1 + $0x180] sm:$0xff]  }
  0xf7   :  { %v11242_v51 = vpop.permute.xlu1 %461  ;;  %v11261_v56 = vpop.permute.xlu0 %463  ;;  %v13845_v20 = vrot.slane %v11345_v19, 1 }
  0xf8   :  { %v11348_v21 = vpop.f32.mrb[11].mxu1 }
  0xf9   :  { %v13844_v22 = vrot.slane %v11348_v21, 1  ;;  %v11354_v25 = vsel %vm1080_vm2, %v1960_v16, %v13845_v20  ;;  %v10769_v20 = vld [vmem:[%s13825_s1 + $0xe8] sm:$0x1f]  }
  0xfb   :  { %v11271_v57 = vpop.permute.xlu1 %465  ;;  %v11273_v58 = vpop.permute.xlu0 %619  ;;  %v11361_v29 = vsel %vm1080_vm2, %v1957_v18, %v13844_v22 }
  0xfc   :  { %9614 = vmatmul.mubr.msk.bf16.gmra.mrb[8].mxu0 %vm130_vm0, %v11209_v45  ;;  %9834 = vmatmul.mubr.msk.bf16.gmra.mrb[28].mxu1 %vm130_vm0, %v11209_v45  ;;  %v9813_v23 = vpop.f32.mrb[12].mxu1 }
  0xfd   :  { %9623 = vmatprep.mubr.msk.bf16.mxu0 %vm130_vm0, %v11113_v30  ;;  %9843 = vmatprep.mubr.msk.bf16.mxu1 %vm130_vm0, %v11113_v30  ;;  %v1978_v26 = vrot.slane %v9813_v23, 1  ;;  %v1902_v27 = vpop.f32.mrb[13].mxu1 }
  0xfe   :  { %v1975_v32 = vrot.slane %v1902_v27, 1  ;;  %v11363_v33 = vpop.f32.mrb[14].mxu1 }
  0xff   :  { %v11286_v60 = vpop.permute.xlu1 %621  ;;  %v11288_v61 = vpop.permute.xlu0 %623  ;;  %v13843_v35 = vrot.slane %v11363_v33, 1 }
 0x100   :  { %v11372_v36 = vpop.f32.mrb[15].mxu1 }
 0x101   :  { %v13842_v37 = vrot.slane %v11372_v36, 1 }
 0x103   :  { %v11320_v7 = vpop.permute.xlu1 %625  ;;  %v11328_v11 = vpop.permute.xlu0 %627 }
 0x104   :  { %9624 = vmatmul.mubr.msk.bf16.vlgmr.msra.gmra.mrb[0].mxu0 %vm130_vm0, %v11118_v31  ;;  %9844 = vmatmul.mubr.msk.bf16.vlgmr.msra.gmra.mrb[32].mxu1 %vm130_vm0, %v11118_v31 }
 0x105   :  { %9640 = vmatpush3.bf16.msra.mxu0 %v10730_v38  ;;  %9627 = vmatprep.mubr.msk.bf16.mxu0 %vm130_vm0, %v11222_v47  ;;  %v11382_v38 = vsel %vm1080_vm2, %v1978_v26, %v13843_v35 }
 0x106   :  { %9847 = vmatprep.mubr.msk.bf16.mxu1 %vm130_vm0, %v11222_v47  ;;  %9641 = vmatprep.subr.bf16.mxu0 %v10731_v46 }
 0x107   :  { %9860 = vmatpush3.bf16.msra.mxu1 %v10732_v39  ;;  %v11356_v28 = vpop.permute.xlu1 %629  ;;  %v11365_v34 = vpop.permute.xlu0 %631  ;;  %v11387_v39 = vsel %vm1080_vm2, %v1975_v32, %v13842_v37 }
 0x108   :  { %9861 = vmatprep.subr.bf16.mxu1 %v10734_v48 }
 0x109   :  { %9642 = vmatpush3.bf16.msra.mxu0 %v10731_v46 }
 0x10a   :  { %10648 = vmatprep.subr.msk.bf16.mxu0 %vm155_vm1, %v10733_v49  ;;  %v1921_v49 = vrot.slane %v11306_v1, 1 }
 0x10b   :  { %9862 = vmatpush3.bf16.msra.mxu1 %v10734_v48  ;;  %v11389_v46 = vpop.permute.xlu1 %633  ;;  %v1924_v48 = vrot.slane %v11299_v63, 1  ;;  %v10745_v63 = vld [vmem:[%s13825_s1 + $0x88] sm:$0x1f]  }
 0x10c   :  { %9628 = vmatmul.mubr.msk.bf16.gmra.mrb[4].mxu0 %vm130_vm0, %v11242_v51  ;;  %9848 = vmatmul.mubr.msk.bf16.gmra.mrb[36].mxu1 %vm130_vm0, %v11242_v51 }
 0x10d   :  { %9631 = vmatprep.mubr.msk.bf16.mxu0 %vm130_vm0, %v11187_v42  ;;  %9851 = vmatprep.mubr.msk.bf16.mxu1 %vm130_vm0, %v11187_v42 }
 0x10e   :  { %9644 = vmatpush3.bf16.msra.mxu0 %v677_v52  ;;  %10658 = vmatprep.subr.msk.bf16.mxu1 %vm155_vm1, %v10735_v50  ;;  %v13841_v50 = vrot.slane %v11308_v2, 1  ;;  %v13840_v52 = vrot.slane %v11313_v4, 1 }
 0x10f   :  { %9864 = vmatpush3.bf16.msra.mxu1 %v2406_v54  ;;  %9661 = vmatprep.subr.bf16.mxu0 %v10736_v53  ;;  %v10743_v54 = vld [vmem:[%s13825_s1 + $0x80] sm:$0xff]   ;;  %v11435_v1 = vpop.permute.xlu1 %801 }
 0x110   :  { %9881 = vmatprep.subr.bf16.mxu1 %v10738_v55 }
 0x114   :  { %9632 = vmatmul.mubr.msk.bf16.gmra.mrb[8].mxu0 %vm130_vm0, %v11197_v43  ;;  %9852 = vmatmul.mubr.msk.bf16.gmra.mrb[40].mxu1 %vm130_vm0, %v11197_v43 }
 0x115   :  { %9635 = vmatprep.mubr.msk.bf16.mxu0 %vm130_vm0, %v11261_v56  ;;  %9855 = vmatprep.mubr.msk.bf16.mxu1 %vm130_vm0, %v11261_v56 }
 0x11c   :  { %9636 = vmatmul.mubr.msk.bf16.gmra.mrb[12].mxu0 %vm130_vm0, %v11271_v57  ;;  %9856 = vmatmul.mubr.msk.bf16.gmra.mrb[44].mxu1 %vm130_vm0, %v11271_v57 }
 0x11d   :  { %9645 = vmatprep.mubr.msk.bf16.mxu0 %vm130_vm0, %v11273_v58  ;;  %9865 = vmatprep.mubr.msk.bf16.mxu1 %vm130_vm0, %v11273_v58 }
 0x124   :  { %9646 = vmatmul.mubr.msk.bf16.vlgmr.msra.gmra.mrb[4].mxu0 %vm130_vm0, %v11286_v60  ;;  %9866 = vmatmul.mubr.msk.bf16.vlgmr.msra.gmra.mrb[48].mxu1 %vm130_vm0, %v11286_v60 }
 0x125   :  { %9662 = vmatpush3.bf16.msra.mxu0 %v10736_v53  ;;  %9649 = vmatprep.mubr.msk.bf16.mxu0 %vm130_vm0, %v11288_v61  ;;  %v11403_v53 = vpop.permute.xlu0 %799 }
 0x126   :  { %9869 = vmatprep.mubr.msk.bf16.mxu1 %vm130_vm0, %v11288_v61  ;;  %9663 = vmatprep.subr.bf16.mxu0 %v10737_v59 }
 0x127   :  { %9882 = vmatpush3.bf16.msra.mxu1 %v10738_v55  ;;  %v10746_v55 = vld [vmem:[%s13825_s1 + $0x170] sm:$0xff]  }
 0x128   :  { %9883 = vmatprep.subr.bf16.mxu1 %v10740_v62 }
 0x129   :  { %9664 = vmatpush3.bf16.msra.mxu0 %v10737_v59  ;;  %v11420_v59 = vsel %vm1080_vm2, %v1924_v48, %v13841_v50  ;;  %v11469_v18 = vpop.permute.xlu0 %803  ;;  %v10767_v50 = vld [vmem:[%s13825_s1 + $0xe0] sm:$0xff]  }
 0x12a   :  { %10649 = vmatprep.subr.msk.bf16.mxu0 %vm155_vm1, %v10739_v0  ;;  %13969 = vst [vmem:[#allocation10_spill] sm:$0xff] %v11420_v59  ;;  %v10747_v0 = vld [vmem:[%s13825_s1 + $0x178] sm:$0x1f]  }
 0x12b   :  { %9884 = vmatpush3.bf16.msra.mxu1 %v10740_v62  ;;  %v11425_v62 = vsel %vm1080_vm2, %v1921_v49, %v13840_v52  ;;  %v2798_v16 = vsel %vm155_vm1, %v10747_v0, 0 }
 0x12c   :  { %9650 = vmatmul.mubr.msk.bf16.gmra.mrb[0].mxu0 %vm130_vm0, %v11320_v7  ;;  %9870 = vmatmul.mubr.msk.bf16.gmra.mrb[52].mxu1 %vm130_vm0, %v11320_v7  ;;  %13970 = vst [vmem:[#allocation11_spill] sm:$0xff] %v11425_v62 }
 0x12d   :  { %9653 = vmatprep.mubr.msk.bf16.mxu0 %vm130_vm0, %v11328_v11  ;;  %9873 = vmatprep.mubr.msk.bf16.mxu1 %vm130_vm0, %v11328_v11 }
 0x12e   :  { %9666 = vmatpush3.bf16.msra.mxu0 %v837_v8  ;;  %10659 = vmatprep.subr.msk.bf16.mxu1 %vm155_vm1, %v10741_v3  ;;  %v977_v3 = vsel %vm155_vm1, %v10745_v63, 0  ;;  %v10748_v8 = vld [vmem:[%s13825_s1 + $0x90] sm:$0xff]  }
 0x12f   :  { %9886 = vmatpush3.bf16.msra.mxu1 %v2602_v12  ;;  %9683 = vmatprep.subr.bf16.mxu0 %v10742_v9  ;;  %v1939_v12 = vrot.slane %v11318_v6, 1 }
 0x130   :  { %9903 = vmatprep.subr.bf16.mxu1 %v10744_v13 }
 0x131   :  { %v11467_v6 = vsel %vm1080_vm2, %v1939_v12, %v13837_v15  ;;  %v10749_v12 = vld [vmem:[%s13825_s1 + $0x98] sm:$0xff]  }
 0x132   :  { %13972 = vst [vmem:[#allocation13_spill] sm:$0xff] %v11467_v6  ;;  %v11548_v15 = vld [vmem:[%s13824_s0 + $0x18] sm:$0xff]  }
 0x134   :  { %9654 = vmatmul.mubr.msk.bf16.gmra.mrb[12].mxu0 %vm130_vm0, %v11356_v28  ;;  %9874 = vmatmul.mubr.msk.bf16.gmra.mrb[56].mxu1 %vm130_vm0, %v11356_v28 }
 0x135   :  { %9657 = vmatprep.mubr.msk.bf16.mxu0 %vm130_vm0, %v11365_v34  ;;  %9877 = vmatprep.mubr.msk.bf16.mxu1 %vm130_vm0, %v11365_v34 }
 0x13c   :  { %9658 = vmatmul.mubr.msk.bf16.gmra.mrb[8].mxu0 %vm130_vm0, %v11389_v46  ;;  %9878 = vmatmul.mubr.msk.bf16.gmra.mrb[60].mxu1 %vm130_vm0, %v11389_v46 }
 0x13d   :  { %9667 = vmatprep.mubr.msk.bf16.mxu0 %vm130_vm0, %v11273_v58  ;;  %9887 = vmatprep.mubr.msk.bf16.mxu1 %vm130_vm0, %v11273_v58 }
 0x144   :  { %9668 = vmatmul.mubr.msk.bf16.vlgmr.msra.gmra.mrb[0].mxu0 %vm130_vm0, %v11286_v60  ;;  %9888 = vmatmul.mubr.msk.bf16.vlgmr.msra.gmra.mrb[64].mxu1 %vm130_vm0, %v11286_v60 }
 0x145   :  { %9684 = vmatpush3.bf16.msra.mxu0 %v10742_v9  ;;  %9671 = vmatprep.mubr.msk.bf16.mxu0 %vm130_vm0, %v11403_v53  ;;  %v1942_v9 = vrot.slane %v11315_v5, 1 }
 0x146   :  { %9891 = vmatprep.mubr.msk.bf16.mxu1 %vm130_vm0, %v11403_v53  ;;  %9685 = vmatprep.subr.bf16.mxu0 %v10743_v54 }
 0x147   :  { %9904 = vmatpush3.bf16.msra.mxu1 %v10744_v13  ;;  %v13839_v13 = vrot.slane %v11326_v10, 1  ;;  %v10772_v10 = vld [vmem:[%s13825_s1 + $0x1e0] sm:$0xff]  }
 0x148   :  { %9905 = vmatprep.subr.bf16.mxu1 %v10746_v55 }
 0x149   :  { %9686 = vmatpush3.bf16.msra.mxu0 %v10743_v54  ;;  %v11462_v5 = vsel %vm1080_vm2, %v1942_v9, %v13839_v13  ;;  %v11504_v9 = vld [vmem:[%s13824_s0] sm:$0xff]  }
 0x14a   :  { %10650 = vmatprep.subr.msk.bf16.mxu0 %vm155_vm1, %v10745_v63  ;;  %13971 = vst [vmem:[#allocation12_spill] sm:$0xff] %v11462_v5  ;;  %v10760_v13 = vld [vmem:[%s13825_s1 + $0xc0] sm:$0xff]  }
 0x14b   :  { %9906 = vmatpush3.bf16.msra.mxu1 %v10746_v55 }
 0x14c   :  { %9672 = vmatmul.mubr.msk.bf16.gmra.mrb[4].mxu0 %vm130_vm0, %v11435_v1  ;;  %9892 = vmatmul.mubr.msk.bf16.gmra.mrb[68].mxu1 %vm130_vm0, %v11435_v1 }
 0x14d   :  { %9675 = vmatprep.mubr.msk.bf16.mxu0 %vm130_vm0, %v11328_v11  ;;  %9895 = vmatprep.mubr.msk.bf16.mxu1 %vm130_vm0, %v11328_v11 }
 0x14e   :  { %9688 = vmatpush3.bf16.msra.mxu0 %v977_v3  ;;  %10660 = vmatprep.subr.msk.bf16.mxu1 %vm155_vm1, %v10747_v0  ;;  %v11495_v3 = vpop.permute.xlu1 %805 }
 0x14f   :  { %9908 = vmatpush3.bf16.msra.mxu1 %v2798_v16  ;;  %9705 = vmatprep.subr.bf16.mxu0 %v10748_v8  ;;  %v11516_v16 = vld [vmem:[%s13824_s0 + $0x8] sm:$0xff]  }
 0x150   :  { %9925 = vmatprep.subr.bf16.mxu1 %v10750_v17 }
 0x152   :  { %v9823_v23 = vpop.f32.mrb[16].mxu1 }
 0x153   :  { %v2120_v26 = vrot.slane %v9823_v23, 1  ;;  %v2050_v27 = vpop.f32.mrb[17].mxu1  ;;  %v10752_v23 = vld [vmem:[%s13825_s1 + $0x188] sm:$0xff]  }
 0x154   :  { %9676 = vmatmul.mubr.msk.bf16.gmra.mrb[8].mxu0 %vm130_vm0, %v11356_v28  ;;  %9896 = vmatmul.mubr.msk.bf16.gmra.mrb[72].mxu1 %vm130_vm0, %v11356_v28  ;;  %v2117_v32 = vrot.slane %v2050_v27, 1  ;;  %v11475_v48 = vpop.f32.mrb[18].mxu1  ;;  %v10751_v27 = vld [vmem:[%s13825_s1 + $0xa0] sm:$0x1f]  }
 0x155   :  { %13973 = vst [vmem:[#allocation14_spill] sm:$0xff] %v11475_v48  ;;  %9679 = vmatprep.mubr.msk.bf16.mxu0 %vm130_vm0, %v11469_v18  ;;  %9899 = vmatprep.mubr.msk.bf16.mxu1 %vm130_vm0, %v11469_v18  ;;  %v13838_v49 = vrot.slane %v11475_v48, 1  ;;  %v11482_v54 = vpop.f32.mrb[19].mxu1 }
 0x156   :  { %13974 = vst [vmem:[#allocation15_spill] sm:$0xff] %v11482_v54  ;;  %v13836_v55 = vrot.slane %v11482_v54, 1 }
 0x157   :  { %v11488_v63 = vsel %vm1080_vm2, %v2120_v26, %v13838_v49  ;;  %v11528_v26 = vld [vmem:[%s13824_s0 + $0x10] sm:$0xff]   ;;  %v10759_v49 = vld [vmem:[%s13825_s1 + $0x1a8] sm:$0x1f]  }
 0x158   :  { %13975 = vst [vmem:[#allocation16_spill] sm:$0xff] %v11488_v63  ;;  %v11493_v0 = vsel %vm1080_vm2, %v2117_v32, %v13836_v55  ;;  %v1146_v32 = vsel %vm155_vm1, %v10751_v27, 0  ;;  %v10754_v55 = vld [vmem:[%s13825_s1 + $0xa8] sm:$0xff]  }
 0x159   :  { %13976 = vst [vmem:[#allocation17_spill] sm:$0xff] %v11493_v0 }
 0x15c   :  { %9680 = vmatmul.mubr.msk.bf16.gmra.mrb[12].mxu0 %vm130_vm0, %v11495_v3  ;;  %9900 = vmatmul.mubr.msk.bf16.gmra.mrb[76].mxu1 %vm130_vm0, %v11495_v3 }
 0x15d   :  { %9689 = vmatprep.mubr.msk.bf16.mxu0 %vm130_vm0, %v11504_v9  ;;  %9909 = vmatprep.mubr.msk.bf16.mxu1 %vm130_vm0, %v11504_v9 }
 0x164   :  { %9690 = vmatmul.mubr.msk.bf16.vlgmr.msra.gmra.mrb[16].mxu0 %vm130_vm0, %v11516_v16  ;;  %9910 = vmatmul.mubr.msk.bf16.vlgmr.msra.gmra.mrb[80].mxu1 %vm130_vm0, %v11516_v16 }
 0x165   :  { %9706 = vmatpush3.bf16.msra.mxu0 %v10748_v8  ;;  %9693 = vmatprep.mubr.msk.bf16.mxu0 %vm130_vm0, %v11528_v26  ;;  %v10753_v8 = vld [vmem:[%s13825_s1 + $0x190] sm:$0x1f]  }
 0x166   :  { %9913 = vmatprep.mubr.msk.bf16.mxu1 %vm130_vm0, %v11528_v26  ;;  %9707 = vmatprep.subr.bf16.mxu0 %v10749_v12 }
 0x167   :  { %9926 = vmatpush3.bf16.msra.mxu1 %v10750_v17  ;;  %v2995_v17 = vsel %vm155_vm1, %v10753_v8, 0 }
 0x168   :  { %9927 = vmatprep.subr.bf16.mxu1 %v10752_v23 }
 0x169   :  { %9708 = vmatpush3.bf16.msra.mxu0 %v10749_v12  ;;  %v10756_v12 = vld [vmem:[%s13825_s1 + $0x198] sm:$0xff]  }
 0x16a   :  { %10651 = vmatprep.subr.msk.bf16.mxu0 %vm155_vm1, %v10751_v27  ;;  %v11575_v27 = vld [vmem:[%s13824_s0 + $0x30] sm:$0xff]  }
 0x16b   :  { %9928 = vmatpush3.bf16.msra.mxu1 %v10752_v23  ;;  %v11561_v23 = vld [vmem:[%s13824_s0 + $0x20] sm:$0xff]  }
 0x16c   :  { %9694 = vmatmul.mubr.msk.bf16.gmra.mrb[20].mxu0 %vm130_vm0, %v11548_v15  ;;  %9914 = vmatmul.mubr.msk.bf16.gmra.mrb[84].mxu1 %vm130_vm0, %v11548_v15 }
 0x16d   :  { %9697 = vmatprep.mubr.msk.bf16.mxu0 %vm130_vm0, %v11561_v23  ;;  %9917 = vmatprep.mubr.msk.bf16.mxu1 %vm130_vm0, %v11561_v23 }
 0x16e   :  { %9710 = vmatpush3.bf16.msra.mxu0 %v1146_v32  ;;  %10661 = vmatprep.subr.msk.bf16.mxu1 %vm155_vm1, %v10753_v8  ;;  %v11584_v8 = vld [vmem:[%s13824_s0 + $0x38] sm:$0xff]   ;;  %v10758_v32 = vld [vmem:[%s13825_s1 + $0x1a0] sm:$0xff]  }
 0x16f   :  { %9930 = vmatpush3.bf16.msra.mxu1 %v2995_v17  ;;  %9727 = vmatprep.subr.bf16.mxu0 %v10754_v55  ;;  %v10757_v17 = vld [vmem:[%s13825_s1 + $0xb8] sm:$0x1f]  }
 0x170   :  { %9947 = vmatprep.subr.bf16.mxu1 %v10756_v12 }
 0x174   :  { %9698 = vmatmul.mubr.msk.bf16.gmra.mrb[0].mxu0 %vm130_vm0, %v11092_v24  ;;  %9918 = vmatmul.mubr.msk.bf16.gmra.mrb[88].mxu1 %vm130_vm0, %v11092_v24  ;;  %v10755_v24 = vld [vmem:[%s13825_s1 + $0xb0] sm:$0xff]  }
 0x175   :  { %9701 = vmatprep.mubr.msk.bf16.mxu0 %vm130_vm0, %v11575_v27  ;;  %9921 = vmatprep.mubr.msk.bf16.mxu1 %vm130_vm0, %v11575_v27 }
 0x17c   :  { %9702 = vmatmul.mubr.msk.bf16.gmra.mrb[4].mxu0 %vm130_vm0, %v11584_v8  ;;  %9922 = vmatmul.mubr.msk.bf16.gmra.mrb[92].mxu1 %vm130_vm0, %v11584_v8 }
 0x17d   :  { %9711 = vmatprep.mubr.msk.bf16.mxu0 %vm130_vm0, %v11113_v30  ;;  %9931 = vmatprep.mubr.msk.bf16.mxu1 %vm130_vm0, %v11113_v30 }
 0x184   :  { %9712 = vmatmul.mubr.msk.bf16.vlgmr.msra.gmra.mrb[24].mxu0 %vm130_vm0, %v11118_v31  ;;  %9932 = vmatmul.mubr.msk.bf16.vlgmr.msra.gmra.mrb[96].mxu1 %vm130_vm0, %v11118_v31 }
 0x185   :  { %9728 = vmatpush3.bf16.msra.mxu0 %v10754_v55  ;;  %9715 = vmatprep.mubr.msk.bf16.mxu0 %vm130_vm0, %v11179_v40  ;;  %v1314_v55 = vsel %vm155_vm1, %v10757_v17, 0 }
 0x186   :  { %9935 = vmatprep.mubr.msk.bf16.mxu1 %vm130_vm0, %v11179_v40  ;;  %9729 = vmatprep.subr.bf16.mxu0 %v10755_v24 }
 0x187   :  { %9948 = vmatpush3.bf16.msra.mxu1 %v10756_v12  ;;  %v3191_v12 = vsel %vm155_vm1, %v10759_v49, 0 }
 0x188   :  { %9949 = vmatprep.subr.bf16.mxu1 %v10758_v32 }
 0x189   :  { %9730 = vmatpush3.bf16.msra.mxu0 %v10755_v24  ;;  %v10762_v24 = vld [vmem:[%s13825_s1 + $0x1b0] sm:$0xff]  }
 0x18a   :  { %10652 = vmatprep.subr.msk.bf16.mxu0 %vm155_vm1, %v10757_v17  ;;  %v10763_v17 = vld [vmem:[%s13825_s1 + $0xd0] sm:$0x1f]  }
 0x18b   :  { %9950 = vmatpush3.bf16.msra.mxu1 %v10758_v32  ;;  %v10764_v32 = vld [vmem:[%s13825_s1 + $0x1b8] sm:$0xff]  }
 0x18c   :  { %9716 = vmatmul.mubr.msk.bf16.gmra.mrb[28].mxu0 %vm130_vm0, %v11185_v41  ;;  %9936 = vmatmul.mubr.msk.bf16.gmra.mrb[100].mxu1 %vm130_vm0, %v11185_v41 }
 0x18d   :  { %9719 = vmatprep.mubr.msk.bf16.mxu0 %vm130_vm0, %v11187_v42  ;;  %9939 = vmatprep.mubr.msk.bf16.mxu1 %vm130_vm0, %v11187_v42 }
 0x18e   :  { %9732 = vmatpush3.bf16.msra.mxu0 %v1314_v55  ;;  %10662 = vmatprep.subr.msk.bf16.mxu1 %vm155_vm1, %v10759_v49  ;;  %v10761_v49 = vld [vmem:[%s13825_s1 + $0xc8] sm:$0xff]   ;;  %v10765_v55 = vld [vmem:[%s13825_s1 + $0x1c0] sm:$0x1f]  }
 0x18f   :  { %9952 = vmatpush3.bf16.msra.mxu1 %v3191_v12  ;;  %9749 = vmatprep.subr.bf16.mxu0 %v10760_v13  ;;  %v10766_v12 = vld [vmem:[%s13825_s1 + $0xd8] sm:$0xff]  }
 0x190   :  { %9969 = vmatprep.subr.bf16.mxu1 %v10762_v24 }
 0x194   :  { %9720 = vmatmul.mubr.msk.bf16.gmra.mrb[4].mxu0 %vm130_vm0, %v11197_v43  ;;  %9940 = vmatmul.mubr.msk.bf16.gmra.mrb[104].mxu1 %vm130_vm0, %v11197_v43 }
 0x195   :  { %9723 = vmatprep.mubr.msk.bf16.mxu0 %vm130_vm0, %v11199_v44  ;;  %9943 = vmatprep.mubr.msk.bf16.mxu1 %vm130_vm0, %v11199_v44 }
 0x19c   :  { %9724 = vmatmul.mubr.msk.bf16.gmra.mrb[0].mxu0 %vm130_vm0, %v11209_v45  ;;  %9944 = vmatmul.mubr.msk.bf16.gmra.mrb[108].mxu1 %vm130_vm0, %v11209_v45 }
 0x19d   :  { %9733 = vmatprep.mubr.msk.bf16.mxu0 %vm130_vm0, %v11113_v30  ;;  %9953 = vmatprep.mubr.msk.bf16.mxu1 %vm130_vm0, %v11113_v30 }
 0x1a4   :  { %9734 = vmatmul.mubr.msk.bf16.vlgmr.msra.gmra.mrb[32].mxu0 %vm130_vm0, %v11118_v31  ;;  %9954 = vmatmul.mubr.msk.bf16.vlgmr.msra.gmra.mrb[112].mxu1 %vm130_vm0, %v11118_v31 }
 0x1a5   :  { %9750 = vmatpush3.bf16.msra.mxu0 %v10760_v13  ;;  %9737 = vmatprep.mubr.msk.bf16.mxu0 %vm130_vm0, %v11222_v47  ;;  %v1482_v13 = vsel %vm155_vm1, %v10763_v17, 0 }
 0x1a6   :  { %9957 = vmatprep.mubr.msk.bf16.mxu1 %vm130_vm0, %v11222_v47  ;;  %9751 = vmatprep.subr.bf16.mxu0 %v10761_v49 }
 0x1a7   :  { %9970 = vmatpush3.bf16.msra.mxu1 %v10762_v24  ;;  %v3387_v24 = vsel %vm155_vm1, %v10765_v55, 0 }
 0x1a8   :  { %9971 = vmatprep.subr.bf16.mxu1 %v10764_v32 }
 0x1a9   :  { %9752 = vmatpush3.bf16.msra.mxu0 %v10761_v49  ;;  %v10768_v49 = vld [vmem:[%s13825_s1 + $0x1c8] sm:$0xff]  }
 0x1aa   :  { %10653 = vmatprep.subr.msk.bf16.mxu0 %vm155_vm1, %v10763_v17 }
 0x1ab   :  { %9972 = vmatpush3.bf16.msra.mxu1 %v10764_v32 }
 0x1ac   :  { %9738 = vmatmul.mubr.msk.bf16.gmra.mrb[36].mxu0 %vm130_vm0, %v11242_v51  ;;  %9958 = vmatmul.mubr.msk.bf16.gmra.mrb[116].mxu1 %vm130_vm0, %v11242_v51 }
 0x1ad   :  { %9741 = vmatprep.mubr.msk.bf16.mxu0 %vm130_vm0, %v11187_v42  ;;  %9961 = vmatprep.mubr.msk.bf16.mxu1 %vm130_vm0, %v11187_v42 }
 0x1ae   :  { %9754 = vmatpush3.bf16.msra.mxu0 %v1482_v13  ;;  %10663 = vmatprep.subr.msk.bf16.mxu1 %vm155_vm1, %v10765_v55 }
 0x1af   :  { %9974 = vmatpush3.bf16.msra.mxu1 %v3387_v24  ;;  %9771 = vmatprep.subr.bf16.mxu0 %v10766_v12 }
 0x1b0   :  { %9991 = vmatprep.subr.bf16.mxu1 %v10768_v49 }
 0x1b4   :  { %9742 = vmatmul.mubr.msk.bf16.gmra.mrb[0].mxu0 %vm130_vm0, %v11197_v43  ;;  %9962 = vmatmul.mubr.msk.bf16.gmra.mrb[120].mxu1 %vm130_vm0, %v11197_v43 }
 0x1b5   :  { %9745 = vmatprep.mubr.msk.bf16.mxu0 %vm130_vm0, %v11261_v56  ;;  %9965 = vmatprep.mubr.msk.bf16.mxu1 %vm130_vm0, %v11261_v56 }
 0x1bc   :  { %9746 = vmatmul.mubr.msk.bf16.gmra.mrb[4].mxu0 %vm130_vm0, %v11271_v57  ;;  %9966 = vmatmul.mubr.msk.bf16.gmra.mrb[124].mxu1 %vm130_vm0, %v11271_v57 }
 0x1bd   :  { %9755 = vmatprep.mubr.msk.bf16.mxu0 %vm130_vm0, %v11273_v58  ;;  %9975 = vmatprep.mubr.msk.bf16.mxu1 %vm130_vm0, %v11273_v58 }
 0x1bf   :  { %v9827_v32 = vpop.f32.mrb[20].mxu1 }
 0x1c0   :  { %v2066_v17 = vpop.f32.mrb[21].mxu1  ;;  %v2138_v13 = vrot.slane %v9827_v32, 1  ;;  %v10770_v32 = vld [vmem:[%s13825_s1 + $0x1d0] sm:$0xff]  }
 0x1c1   :  { %v11702_v55 = vpop.f32.mrb[22].mxu1  ;;  %v2135_v37 = vrot.slane %v2066_v17, 1 }
 0x1c2   :  { %13977 = vst [vmem:[#allocation18_spill] sm:$0xff] %v11702_v55  ;;  %v13847_v24 = vrot.slane %v11702_v55, 1  ;;  %v11705_v52 = vpop.f32.mrb[23].mxu1 }
 0x1c3   :  { %13978 = vst [vmem:[#allocation19_spill] sm:$0xff] %v11705_v52  ;;  %v13848_v35 = vrot.slane %v11705_v52, 1 }
 0x1c4   :  { %9756 = vmatmul.mubr.msk.bf16.vlgmr.msra.gmra.mrb[40].mxu0 %vm130_vm0, %v11286_v60  ;;  %9976 = vmatmul.mubr.msk.bf16.vlgmr.msra.gmra.mrb[128].mxu1 %vm130_vm0, %v11286_v60  ;;  %v11721_v22 = vsel %vm1080_vm2, %v2138_v13, %v13847_v24 }
 0x1c5   :  { %13979 = vst [vmem:[#allocation20_spill] sm:$0xff] %v11721_v22  ;;  %9772 = vmatpush3.bf16.msra.mxu0 %v10766_v12  ;;  %9759 = vmatprep.mubr.msk.bf16.mxu0 %vm130_vm0, %v11288_v61  ;;  %v11728_v17 = vsel %vm1080_vm2, %v2135_v37, %v13848_v35  ;;  %v10771_v12 = vld [vmem:[%s13825_s1 + $0x1d8] sm:$0x1f]  }
 0x1c6   :  { %13980 = vst [vmem:[#allocation21_spill] sm:$0xff] %v11728_v17  ;;  %9979 = vmatprep.mubr.msk.bf16.mxu1 %vm130_vm0, %v11288_v61  ;;  %9773 = vmatprep.subr.bf16.mxu0 %v10767_v50 }
 0x1c7   :  { %v9831_v54 = vpop.f32.mrb[24].mxu1  ;;  %9992 = vmatpush3.bf16.msra.mxu1 %v10768_v49  ;;  %v1650_v49 = vsel %vm155_vm1, %v10769_v20, 0 }
 0x1c8   :  { %v2082_v13 = vpop.f32.mrb[25].mxu1  ;;  %9993 = vmatprep.subr.bf16.mxu1 %v10770_v32  ;;  %v2156_v37 = vrot.slane %v9831_v54, 1  ;;  %v3583_v54 = vsel %vm155_vm1, %v10771_v12, 0 }
 0x1c9   :  { %v11738_v24 = vpop.f32.mrb[26].mxu1  ;;  %9774 = vmatpush3.bf16.msra.mxu0 %v10767_v50  ;;  %v2153_v48 = vrot.slane %v2082_v13, 1 }
 0x1ca   :  { %v13852_v35 = vrot.slane %v11738_v24, 1  ;;  %v11741_v14 = vpop.f32.mrb[27].mxu1  ;;  %10654 = vmatprep.subr.msk.bf16.mxu0 %vm155_vm1, %v10769_v20  ;;  %v10774_v20 = vld [vmem:[%s13825_s1 + $0x1f8] sm:$0xff]  }
 0x1cb   :  { %13981 = vst [vmem:[#allocation22_spill] sm:$0xff] %v11741_v14  ;;  %v13853_v0 = vrot.slane %v11741_v14, 1  ;;  %9994 = vmatpush3.bf16.msra.mxu1 %v10770_v32 }
 0x1cc   :  { %v11752_v50 = vsel %vm1080_vm2, %v2156_v37, %v13852_v35  ;;  %9760 = vmatmul.mubr.msk.bf16.gmra.mrb[44].mxu0 %vm130_vm0, %v11320_v7  ;;  %9980 = vmatmul.mubr.msk.bf16.gmra.mrb[132].mxu1 %vm130_vm0, %v11320_v7 }
 0x1cd   :  { %v11765_v32 = vsel %vm1080_vm2, %v2153_v48, %v13853_v0  ;;  %9763 = vmatprep.mubr.msk.bf16.mxu0 %vm130_vm0, %v11328_v11  ;;  %9983 = vmatprep.mubr.msk.bf16.mxu1 %vm130_vm0, %v11328_v11 }
 0x1ce   :  { %13982 = vst [vmem:[#allocation23_spill] sm:$0xff] %v11765_v32  ;;  %9776 = vmatpush3.bf16.msra.mxu0 %v1650_v49  ;;  %10664 = vmatprep.subr.msk.bf16.mxu1 %vm155_vm1, %v10771_v12 }
 0x1cf   :  { %v9835_v13 = vpop.f32.mrb[28].mxu1  ;;  %9996 = vmatpush3.bf16.msra.mxu1 %v3583_v54  ;;  %10013 = vmatprep.subr.bf16.mxu0 %v10772_v10 }
 0x1d0   :  { %v2098_v37 = vpop.f32.mrb[29].mxu1  ;;  %10035 = vmatprep.subr.bf16.mxu1 %v10774_v20  ;;  %v2174_v6 = vrot.slane %v9835_v13, 1 }
 0x1d1   :  { %v11772_v35 = vpop.f32.mrb[30].mxu1  ;;  %v2171_v63 = vrot.slane %v2098_v37, 1 }
 0x1d2   :  { %v13855_v48 = vrot.slane %v11772_v35, 1  ;;  %v11775_v0 = vpop.f32.mrb[31].mxu1 }
 0x1d3   :  { %v13858_v52 = vrot.slane %v11775_v0, 1 }
 0x1d4   :  { %v11781_v49 = vsel %vm1080_vm2, %v2174_v6, %v13855_v48  ;;  %9764 = vmatmul.mubr.msk.bf16.gmra.mrb[4].mxu0 %vm130_vm0, %v11356_v28  ;;  %9984 = vmatmul.mubr.msk.bf16.gmra.mrb[136].mxu1 %vm130_vm0, %v11356_v28 }
 0x1d5   :  { %v11790_v12 = vsel %vm1080_vm2, %v2171_v63, %v13858_v52  ;;  %9767 = vmatprep.mubr.msk.bf16.mxu0 %vm130_vm0, %v11365_v34  ;;  %9987 = vmatprep.mubr.msk.bf16.mxu1 %vm130_vm0, %v11365_v34 }
 0x1d7   :  { %v9845_v54 = vpop.f32.mrb[32].mxu1 }
 0x1d8   :  { %v2246_v6 = vpop.f32.mrb[33].mxu1  ;;  %v2316_v37 = vrot.slane %v9845_v54, 1 }
 0x1d9   :  { %v11796_v13 = vpop.f32.mrb[34].mxu1  ;;  %v2313_v4 = vrot.slane %v2246_v6, 1 }
 0x1da   :  { %13983 = vst [vmem:[#allocation24_spill] sm:$0xff] %v11796_v13  ;;  %v13861_v48 = vrot.slane %v11796_v13, 1  ;;  %v11799_v5 = vpop.f32.mrb[35].mxu1 }
 0x1db   :  { %13984 = vst [vmem:[#allocation25_spill] sm:$0xff] %v11799_v5  ;;  %v13862_v55 = vrot.slane %v11799_v5, 1  ;;  %v10778_v5 = vld [vmem:[%s13825_s1 + $0x210] sm:$0xff]  }
 0x1dc   :  { %9768 = vmatmul.mubr.msk.bf16.gmra.mrb[0].mxu0 %vm130_vm0, %v11389_v46  ;;  %9988 = vmatmul.mubr.msk.bf16.gmra.mrb[140].mxu1 %vm130_vm0, %v11389_v46  ;;  %v11809_v63 = vsel %vm1080_vm2, %v2316_v37, %v13861_v48  ;;  %v10773_v48 = vld [vmem:[%s13825_s1 + $0x1e8] sm:$0xff]  }
 0x1dd   :  { %13985 = vst [vmem:[#allocation26_spill] sm:$0xff] %v11809_v63  ;;  %9777 = vmatprep.mubr.msk.bf16.mxu0 %vm130_vm0, %v11273_v58  ;;  %9997 = vmatprep.mubr.msk.bf16.mxu1 %vm130_vm0, %v11273_v58  ;;  %v11818_v54 = vsel %vm1080_vm2, %v2313_v4, %v13862_v55  ;;  %v10776_v4 = vld [vmem:[%s13825_s1 + $0x200] sm:$0xff]   ;;  %v10775_v55 = vld [vmem:[%s13825_s1 + $0x1f0] sm:$0x1f]  }
 0x1de   :  { %13986 = vst [vmem:[#allocation27_spill] sm:$0xff] %v11818_v54 }
 0x1df   :  { %v9849_v6 = vpop.f32.mrb[36].mxu1 }
 0x1e0   :  { %v2262_v52 = vpop.f32.mrb[37].mxu1  ;;  %v2334_v2 = vrot.slane %v9849_v6, 1 }
 0x1e1   :  { %v11820_v17 = vpop.f32.mrb[38].mxu1  ;;  %v2331_v63 = vrot.slane %v2262_v52, 1 }
 0x1e2   :  { %13987 = vst [vmem:[#allocation28_spill] sm:$0xff] %v11820_v17  ;;  %v13864_v13 = vrot.slane %v11820_v17, 1  ;;  %v11823_v37 = vpop.f32.mrb[39].mxu1 }
 0x1e3   :  { %13988 = vst [vmem:[#allocation29_spill] sm:$0xff] %v11823_v37  ;;  %v13865_v22 = vrot.slane %v11823_v37, 1 }
 0x1e4   :  { %9778 = vmatmul.mubr.msk.bf16.vlgmr.msra.gmra.mrb[48].mxu0 %vm130_vm0, %v11286_v60  ;;  %9998 = vmatmul.mubr.msk.bf16.vlgmr.msra.gmra.mrb[144].mxu1 %vm130_vm0, %v11286_v60  ;;  %v11839_v6 = vsel %vm1080_vm2, %v2334_v2, %v13864_v13 }
 0x1e5   :  { %13989 = vst [vmem:[#allocation30_spill] sm:$0xff] %v11839_v6  ;;  %10014 = vmatpush3.bf16.msra.mxu0 %v10772_v10  ;;  %9781 = vmatprep.mubr.msk.bf16.mxu0 %vm130_vm0, %v11403_v53  ;;  %v11846_v52 = vsel %vm1080_vm2, %v2331_v63, %v13865_v22  ;;  %v10777_v10 = vld [vmem:[%s13825_s1 + $0x208] sm:$0x1f]  }
 0x1e6   :  { %13990 = vst [vmem:[#allocation31_spill] sm:$0xff] %v11846_v52  ;;  %10001 = vmatprep.mubr.msk.bf16.mxu1 %vm130_vm0, %v11403_v53  ;;  %10015 = vmatprep.subr.bf16.mxu0 %v10773_v48 }
 0x1e7   :  { %v9853_v17 = vpop.f32.mrb[40].mxu1  ;;  %10036 = vmatpush3.bf16.msra.mxu1 %v10774_v20  ;;  %v3779_v20 = vsel %vm155_vm1, %v10775_v55, 0 }
 0x1e8   :  { %v2278_v2 = vpop.f32.mrb[41].mxu1  ;;  %10037 = vmatprep.subr.bf16.mxu1 %v10776_v4  ;;  %v2352_v63 = vrot.slane %v9853_v17, 1 }
 0x1e9   :  { %v11856_v13 = vpop.f32.mrb[42].mxu1  ;;  %10016 = vmatpush3.bf16.msra.mxu0 %v10773_v48  ;;  %v2349_v52 = vrot.slane %v2278_v2, 1  ;;  %v3975_v48 = vsel %vm155_vm1, %v10777_v10, 0 }
 0x1ea   :  { %v13868_v22 = vrot.slane %v11856_v13, 1  ;;  %v11859_v37 = vpop.f32.mrb[43].mxu1  ;;  %10665 = vmatprep.subr.msk.bf16.mxu0 %vm155_vm1, %v10775_v55  ;;  %v10780_v55 = vld [vmem:[%s13825_s1 + $0x228] sm:$0xff]  }
 0x1eb   :  { %v13869_v6 = vrot.slane %v11859_v37, 1  ;;  %10038 = vmatpush3.bf16.msra.mxu1 %v10776_v4 }
 0x1ec   :  { %v11870_v17 = vsel %vm1080_vm2, %v2352_v63, %v13868_v22  ;;  %9782 = vmatmul.mubr.msk.bf16.gmra.mrb[52].mxu0 %vm130_vm0, %v11435_v1  ;;  %10002 = vmatmul.mubr.msk.bf16.gmra.mrb[148].mxu1 %vm130_vm0, %v11435_v1 }
 0x1ed   :  { %v11883_v4 = vsel %vm1080_vm2, %v2349_v52, %v13869_v6  ;;  %9785 = vmatprep.mubr.msk.bf16.mxu0 %vm130_vm0, %v11328_v11  ;;  %10005 = vmatprep.mubr.msk.bf16.mxu1 %vm130_vm0, %v11328_v11 }
 0x1ee   :  { %10018 = vmatpush3.bf16.msra.mxu0 %v3779_v20  ;;  %10666 = vmatprep.subr.msk.bf16.mxu1 %vm155_vm1, %v10777_v10 }
 0x1ef   :  { %v9857_v2 = vpop.f32.mrb[44].mxu1  ;;  %10040 = vmatpush3.bf16.msra.mxu1 %v3975_v48  ;;  %10057 = vmatprep.subr.bf16.mxu0 %v10778_v5 }
 0x1f0   :  { %v2294_v63 = vpop.f32.mrb[45].mxu1  ;;  %10079 = vmatprep.subr.bf16.mxu1 %v10780_v55  ;;  %v2370_v54 = vrot.slane %v9857_v2, 1 }
 0x1f1   :  { %v11890_v22 = vpop.f32.mrb[46].mxu1  ;;  %v2367_v62 = vrot.slane %v2294_v63, 1 }
 0x1f2   :  { %v13870_v52 = vrot.slane %v11890_v22, 1  ;;  %v11893_v6 = vpop.f32.mrb[47].mxu1 }
 0x1f3   :  { %13991 = vst [vmem:[#allocation32_spill] sm:$0xff] %v11893_v6  ;;  %v13873_v59 = vrot.slane %v11893_v6, 1 }
 0x1f4   :  { %v11899_v20 = vsel %vm1080_vm2, %v2370_v54, %v13870_v52  ;;  %9786 = vmatmul.mubr.msk.bf16.gmra.mrb[0].mxu0 %vm130_vm0, %v11356_v28  ;;  %10006 = vmatmul.mubr.msk.bf16.gmra.mrb[152].mxu1 %vm130_vm0, %v11356_v28 }
 0x1f5   :  { %13992 = vst [vmem:[#allocation33_spill] sm:$0xff] %v11899_v20  ;;  %v11908_v10 = vsel %vm1080_vm2, %v2367_v62, %v13873_v59  ;;  %9789 = vmatprep.mubr.msk.bf16.mxu0 %vm130_vm0, %v11469_v18  ;;  %10009 = vmatprep.mubr.msk.bf16.mxu1 %vm130_vm0, %v11469_v18 }
 0x1f6   :  { %13993 = vst [vmem:[#allocation34_spill] sm:$0xff] %v11908_v10 }
 0x1f7   :  { %v9867_v48 = vpop.f32.mrb[48].mxu1 }
 0x1f8   :  { %v2442_v54 = vpop.f32.mrb[49].mxu1  ;;  %v2512_v63 = vrot.slane %v9867_v48, 1 }
 0x1f9   :  { %v11914_v2 = vpop.f32.mrb[50].mxu1  ;;  %v2509_v32 = vrot.slane %v2442_v54, 1 }
 0x1fa   :  { %13994 = vst [vmem:[#allocation35_spill] sm:$0xff] %v11914_v2  ;;  %v13875_v52 = vrot.slane %v11914_v2, 1  ;;  %v11917_v14 = vpop.f32.mrb[51].mxu1 }
 0x1fb   :  { %13995 = vst [vmem:[#allocation36_spill] sm:$0xff] %v11917_v14  ;;  %v13876_v6 = vrot.slane %v11917_v14, 1 }
 0x1fc   :  { %9790 = vmatmul.mubr.msk.bf16.gmra.mrb[4].mxu0 %vm130_vm0, %v11495_v3  ;;  %10010 = vmatmul.mubr.msk.bf16.gmra.mrb[156].mxu1 %vm130_vm0, %v11495_v3  ;;  %v11927_v62 = vsel %vm1080_vm2, %v2512_v63, %v13875_v52  ;;  %v10779_v52 = vld [vmem:[%s13825_s1 + $0x218] sm:$0xff]  }
 0x1fd   :  { %13996 = vst [vmem:[#allocation37_spill] sm:$0xff] %v11927_v62  ;;  %10041 = vmatprep.mubr.msk.bf16.mxu1 %vm130_vm0, %v11113_v30  ;;  %10019 = vmatprep.mubr.msk.bf16.mxu0 %vm130_vm0, %v11504_v9  ;;  %v11936_v48 = vsel %vm1080_vm2, %v2509_v32, %v13876_v6  ;;  %v10782_v32 = vld [vmem:[%s13825_s1 + $0x230] sm:$0xff]  }
 0x1fe   :  { %13997 = vst [vmem:[#allocation38_spill] sm:$0xff] %v11936_v48  ;;  %v10784_v48 = vld [vmem:[%s13825_s1 + $0x240] sm:$0xff]  }
 0x1ff   :  { %v9871_v54 = vpop.f32.mrb[52].mxu1 }
 0x200   :  { %v2458_v59 = vpop.f32.mrb[53].mxu1  ;;  %v2530_v20 = vrot.slane %v9871_v54, 1 }
 0x201   :  { %v11938_v10 = vpop.f32.mrb[54].mxu1  ;;  %v2527_v62 = vrot.slane %v2458_v59, 1 }
 0x202   :  { %13998 = vst [vmem:[#allocation39_spill] sm:$0xff] %v11938_v10  ;;  %v13878_v2 = vrot.slane %v11938_v10, 1  ;;  %v11941_v63 = vpop.f32.mrb[55].mxu1 }
 0x203   :  { %13999 = vst [vmem:[#allocation40_spill] sm:$0xff] %v11941_v63  ;;  %v13877_v9 = vrot.slane %v11941_v63, 1 }
 0x204   :  { %10020 = vmatmul.mubr.msk.bf16.vlgmr.msra.gmra.mrb[56].mxu0 %vm130_vm0, %v11516_v16  ;;  %10042 = vmatmul.mubr.msk.bf16.vlgmr.msra.gmra.mrb[160].mxu1 %vm130_vm0, %v11118_v31  ;;  %v11957_v54 = vsel %vm1080_vm2, %v2530_v20, %v13878_v2  ;;  %v10781_v16 = vld [vmem:[%s13825_s1 + $0x220] sm:$0x1f]  }
 0x205   :  { %14000 = vst [vmem:[#allocation41_spill] sm:$0xff] %v11957_v54  ;;  %10058 = vmatpush3.bf16.msra.mxu0 %v10778_v5  ;;  %10045 = vmatprep.mubr.msk.bf16.mxu1 %vm130_vm0, %v11179_v40  ;;  %v11964_v59 = vsel %vm1080_vm2, %v2527_v62, %v13877_v9  ;;  %v10783_v40 = vld [vmem:[%s13825_s1 + $0x238] sm:$0x1f]  }
 0x206   :  { %14001 = vst [vmem:[#allocation42_spill] sm:$0xff] %v11964_v59  ;;  %10023 = vmatprep.mubr.msk.bf16.mxu0 %vm130_vm0, %v11528_v26  ;;  %10059 = vmatprep.subr.bf16.mxu0 %v10779_v52 }
 0x207   :  { %v9875_v6 = vpop.f32.mrb[56].mxu1  ;;  %10080 = vmatpush3.bf16.msra.mxu1 %v10780_v55  ;;  %v4171_v55 = vsel %vm155_vm1, %v10781_v16, 0 }
 0x208   :  { %v2474_v20 = vpop.f32.mrb[57].mxu1  ;;  %10081 = vmatprep.subr.bf16.mxu1 %v10782_v32  ;;  %v2548_v62 = vrot.slane %v9875_v6, 1 }
 0x209   :  { %v11974_v5 = vpop.f32.mrb[58].mxu1  ;;  %10060 = vmatpush3.bf16.msra.mxu0 %v10779_v52  ;;  %v2545_v2 = vrot.slane %v2474_v20, 1  ;;  %v4367_v52 = vsel %vm155_vm1, %v10783_v40, 0 }
 0x20a   :  { %14002 = vst [vmem:[#allocation43_spill] sm:$0xff] %v11974_v5  ;;  %v13881_v9 = vrot.slane %v11974_v5, 1  ;;  %v11977_v26 = vpop.f32.mrb[59].mxu1  ;;  %10667 = vmatprep.subr.msk.bf16.mxu0 %vm155_vm1, %v10781_v16 }
 0x20b   :  { %14003 = vst [vmem:[#allocation44_spill] sm:$0xff] %v11977_v26  ;;  %v13880_v14 = vrot.slane %v11977_v26, 1  ;;  %10082 = vmatpush3.bf16.msra.mxu1 %v10782_v32 }
 0x20c   :  { %v11988_v6 = vsel %vm1080_vm2, %v2548_v62, %v13881_v9  ;;  %10024 = vmatmul.mubr.msk.bf16.gmra.mrb[60].mxu0 %vm130_vm0, %v11548_v15  ;;  %10046 = vmatmul.mubr.msk.bf16.gmra.mrb[164].mxu1 %vm130_vm0, %v11185_v41 }
 0x20d   :  { %14004 = vst [vmem:[#allocation45_spill] sm:$0xff] %v11988_v6  ;;  %v11998_v32 = vsel %vm1080_vm2, %v2545_v2, %v13880_v14  ;;  %10049 = vmatprep.mubr.msk.bf16.mxu1 %vm130_vm0, %v11187_v42  ;;  %10027 = vmatprep.mubr.msk.bf16.mxu0 %vm130_vm0, %v11561_v23 }
 0x20e   :  { %14005 = vst [vmem:[#allocation46_spill] sm:$0xff] %v11998_v32  ;;  %10062 = vmatpush3.bf16.msra.mxu0 %v4171_v55  ;;  %10668 = vmatprep.subr.msk.bf16.mxu1 %vm155_vm1, %v10783_v40  ;;  %v10885_v40 = vld [vmem:[%s13824_s0 + $0x28] sm:$0xff]  }
 0x20f   :  { %v9879_v15 = vpop.f32.mrb[60].mxu1  ;;  %10084 = vmatpush3.bf16.msra.mxu1 %v4367_v52  ;;  %10101 = vmatprep.subr.bf16.mxu0 %v10784_v48 }
 0x210   :  { %v2490_v41 = vpop.f32.mrb[61].mxu1  ;;  %v2566_v20 = vrot.slane %v9879_v15, 1 }
 0x211   :  { %v12005_v16 = vpop.f32.mrb[62].mxu1  ;;  %v2563_v14 = vrot.slane %v2490_v41, 1 }
 0x212   :  { %v13882_v62 = vrot.slane %v12005_v16, 1  ;;  %v12008_v2 = vpop.f32.mrb[63].mxu1 }
 0x213   :  { %v13888_v9 = vrot.slane %v12008_v2, 1 }
 0x214   :  { %v12014_v23 = vsel %vm1080_vm2, %v2566_v20, %v13882_v62  ;;  %10028 = vmatmul.mubr.msk.bf16.gmra.mrb[64].mxu0 %vm130_vm0, %v10885_v40  ;;  %10050 = vmatmul.mubr.msk.bf16.gmra.mrb[168].mxu1 %vm130_vm0, %v11197_v43 }
 0x215   :  { %v12025_v55 = vsel %vm1080_vm2, %v2563_v14, %v13888_v9  ;;  %10053 = vmatprep.mubr.msk.bf16.mxu1 %vm130_vm0, %v11199_v44  ;;  %10031 = vmatprep.mubr.msk.bf16.mxu0 %vm130_vm0, %v11575_v27 }
 0x217   :  { %v9889_v52 = vpop.f32.mrb[64].mxu1 }
 0x218   :  { %v2638_v15 = vpop.f32.mrb[65].mxu1  ;;  %v2708_v20 = vrot.slane %v9889_v52, 1 }
 0x219   :  { %v12031_v41 = vpop.f32.mrb[66].mxu1  ;;  %v2705_v63 = vrot.slane %v2638_v15, 1 }
 0x21a   :  { %14006 = vst [vmem:[#allocation47_spill] sm:$0xff] %v12031_v41  ;;  %v13885_v40 = vrot.slane %v12031_v41, 1  ;;  %v12034_v62 = vpop.f32.mrb[67].mxu1 }
 0x21b   :  { %14007 = vst [vmem:[#allocation48_spill] sm:$0xff] %v12034_v62  ;;  %v13886_v10 = vrot.slane %v12034_v62, 1 }
 0x21c   :  { %v12040_v14 = vsel %vm1080_vm2, %v2708_v20, %v13885_v40  ;;  %10032 = vmatmul.mubr.msk.bf16.gmra.mrb[68].mxu0 %vm130_vm0, %v11584_v8  ;;  %10054 = vmatmul.mubr.msk.bf16.gmra.mrb[172].mxu1 %vm130_vm0, %v11209_v45  ;;  %v10785_v45 = vld [vmem:[%s13825_s1 + $0x248] sm:$0xff]  }
 0x21d   :  { %14008 = vst [vmem:[#allocation49_spill] sm:$0xff] %v12040_v14  ;;  %v12049_v44 = vsel %vm1080_vm2, %v2705_v63, %v13886_v10  ;;  %10063 = vmatprep.mubr.msk.bf16.mxu0 %vm130_vm0, %v11113_v30  ;;  %10085 = vmatprep.mubr.msk.bf16.mxu1 %vm130_vm0, %v11273_v58 }
 0x21e   :  { %14009 = vst [vmem:[#allocation50_spill] sm:$0xff] %v12049_v44 }
 0x21f   :  { %v9893_v27 = vpop.f32.mrb[68].mxu1 }
 0x220   :  { %v2654_v52 = vpop.f32.mrb[69].mxu1  ;;  %v2726_v20 = vrot.slane %v9893_v27, 1 }
 0x221   :  { %v12055_v15 = vpop.f32.mrb[70].mxu1  ;;  %v2723_v63 = vrot.slane %v2654_v52, 1 }
 0x222   :  { %14010 = vst [vmem:[#allocation51_spill] sm:$0xff] %v12055_v15  ;;  %v13887_v8 = vrot.slane %v12055_v15, 1  ;;  %v12058_v40 = vpop.f32.mrb[71].mxu1 }
 0x223   :  { %14011 = vst [vmem:[#allocation52_spill] sm:$0xff] %v12058_v40  ;;  %v13889_v10 = vrot.slane %v12058_v40, 1 }
 0x224   :  { %v12067_v30 = vsel %vm1080_vm2, %v2726_v20, %v13887_v8  ;;  %10064 = vmatmul.mubr.msk.bf16.vlgmr.msra.gmra.mrb[72].mxu0 %vm130_vm0, %v11118_v31  ;;  %10086 = vmatmul.mubr.msk.bf16.vlgmr.msra.gmra.mrb[176].mxu1 %vm130_vm0, %v11286_v60  ;;  %v10786_v31 = vld [vmem:[%s13825_s1 + $0x250] sm:$0x1f]  }
 0x225   :  { %14012 = vst [vmem:[#allocation53_spill] sm:$0xff] %v12067_v30  ;;  %v12076_v27 = vsel %vm1080_vm2, %v2723_v63, %v13889_v10  ;;  %10102 = vmatpush3.bf16.msra.mxu0 %v10784_v48  ;;  %10067 = vmatprep.mubr.msk.bf16.mxu0 %vm130_vm0, %v11222_v47  ;;  %v4563_v30 = vsel %vm155_vm1, %v10786_v31, 0 }
 0x226   :  { %14013 = vst [vmem:[#allocation54_spill] sm:$0xff] %v12076_v27  ;;  %10089 = vmatprep.mubr.msk.bf16.mxu1 %vm130_vm0, %v11288_v61  ;;  %10103 = vmatprep.subr.bf16.mxu0 %v10785_v45 }
 0x227   :  { %v12085_v52 = vpop.f32.mrb[8].mxu0  ;;  %v9897_v20 = vpop.f32.mrb[72].mxu1 }
 0x228   :  { %v12087_v8 = vpop.f32.mrb[9].mxu0  ;;  %v2670_v9 = vpop.f32.mrb[73].mxu1  ;;  %v2744_v48 = vrot.slane %v9897_v20, 1 }
 0x229   :  { %v9678_v63 = vpop.f32.mrb[10].mxu0  ;;  %v12089_v10 = vpop.f32.mrb[74].mxu1  ;;  %10104 = vmatpush3.bf16.msra.mxu0 %v10785_v45  ;;  %v2741_v15 = vrot.slane %v2670_v9, 1 }
 0x22a   :  { %v13893_v47 = vrot.slane %v12089_v10, 1  ;;  %v908_v40 = vpop.f32.mrb[11].mxu0  ;;  %v12092_v61 = vpop.f32.mrb[75].mxu1  ;;  %10669 = vmatprep.subr.msk.bf16.mxu0 %vm155_vm1, %v10786_v31 }
 0x22b   :  { %v13894_v27 = vrot.slane %v12092_v61, 1 }
 0x22c   :  { %v12100_v62 = vsel %vm1080_vm2, %v2744_v48, %v13893_v47  ;;  %10068 = vmatmul.mubr.msk.bf16.gmra.mrb[76].mxu0 %vm130_vm0, %v11242_v51  ;;  %10090 = vmatmul.mubr.msk.bf16.gmra.mrb[180].mxu1 %vm130_vm0, %v11320_v7 }
 0x22d   :  { %v12109_v45 = vsel %vm1080_vm2, %v2741_v15, %v13894_v27  ;;  %10071 = vmatprep.mubr.msk.bf16.mxu0 %vm130_vm0, %v11187_v42  ;;  %10093 = vmatprep.mubr.msk.bf16.mxu1 %vm130_vm0, %v11328_v11 }
 0x22e   :  { %10106 = vmatpush3.bf16.msra.mxu0 %v4563_v30 }
 0x22f   :  { %v12115_v9 = vpop.f32.mrb[12].mxu0  ;;  %v9901_v31 = vpop.f32.mrb[76].mxu1 }
 0x230   :  { %v12117_v20 = vpop.f32.mrb[13].mxu0  ;;  %v2686_v51 = vpop.f32.mrb[77].mxu1  ;;  %v2762_v47 = vrot.slane %v9901_v31, 1 }
 0x231   :  { %v9682_v48 = vpop.f32.mrb[14].mxu0  ;;  %v12119_v7 = vpop.f32.mrb[78].mxu1  ;;  %v2759_v42 = vrot.slane %v2686_v51, 1 }
 0x232   :  { %14014 = vst [vmem:[#allocation55_spill] sm:$0xff] %v12119_v7  ;;  %v13896_v15 = vrot.slane %v12119_v7, 1  ;;  %v924_v27 = vpop.f32.mrb[15].mxu0  ;;  %v12122_v41 = vpop.f32.mrb[79].mxu1 }
 0x233   :  { %14015 = vst [vmem:[#allocation56_spill] sm:$0xff] %v12122_v41  ;;  %v13899_v44 = vrot.slane %v12122_v41, 1 }
 0x234   :  { %v12128_v30 = vsel %vm1080_vm2, %v2762_v47, %v13896_v15  ;;  %10072 = vmatmul.mubr.msk.bf16.gmra.mrb[80].mxu0 %vm130_vm0, %v11197_v43  ;;  %10094 = vmatmul.mubr.msk.bf16.gmra.mrb[184].mxu1 %vm130_vm0, %v11356_v28 }
 0x235   :  { %14016 = vst [vmem:[#allocation57_spill] sm:$0xff] %v12128_v30  ;;  %v12137_v31 = vsel %vm1080_vm2, %v2759_v42, %v13899_v44  ;;  %10075 = vmatprep.mubr.msk.bf16.mxu0 %vm130_vm0, %v11261_v56  ;;  %10097 = vmatprep.mubr.msk.bf16.mxu1 %vm130_vm0, %v11365_v34 }
 0x236   :  { %14017 = vst [vmem:[#allocation58_spill] sm:$0xff] %v12137_v31 }
 0x237   :  { %v9691_v51 = vpop.f32.mrb[16].mxu0  ;;  %v9911_v47 = vpop.f32.mrb[80].mxu1 }
 0x238   :  { %v1013_v15 = vpop.f32.mrb[17].mxu0  ;;  %v2905_v14 = vrot.slane %v9911_v47, 2  ;;  %v2834_v59 = vpop.f32.mrb[81].mxu1  ;;  %v1084_v41 = vrot.slane %v9691_v51, 1 }
 0x239   :  { %v9692_v43 = vpop.f32.mrb[18].mxu0  ;;  %v2902_v54 = vrot.slane %v2834_v59, 2  ;;  %v12143_v26 = vpop.f32.mrb[82].mxu1  ;;  %v1081_v56 = vrot.slane %v1013_v15, 1 }
 0x23a   :  { %v1085_v32 = vrot.slane %v9692_v43, 1  ;;  %v1016_v42 = vpop.f32.mrb[19].mxu0  ;;  %v13901_v44 = vrot.slane %v12143_v26, 2  ;;  %v12146_v31 = vpop.f32.mrb[83].mxu1 }
 0x23b   :  { %v1082_v30 = vrot.slane %v1016_v42, 1  ;;  %v13902_v34 = vrot.slane %v12146_v31, 2 }
 0x23c   :  { %v1086_v7 = vsel %vm1080_vm2, %v1084_v41, %v1085_v32  ;;  %v12150_v47 = vadd.f32 %v9678_v63, %v1085_v32  ;;  %10076 = vmatmul.mubr.msk.bf16.gmra.mrb[84].mxu0 %vm130_vm0, %v11271_v57  ;;  %10098 = vmatmul.mubr.msk.bf16.gmra.mrb[188].mxu1 %vm130_vm0, %v11389_v46  ;;  %v12159_v59 = vsel %vm2901_vm3, %v2905_v14, %v13901_v44 }
 0x23d   :  { %v12162_v15 = vadd.f32 %v12085_v52, %v1086_v7  ;;  %v1083_v51 = vsel %vm1080_vm2, %v1081_v56, %v1082_v30  ;;  %v12165_v43 = vadd.f32 %v1082_v30, %v908_v40  ;;  %10107 = vmatprep.mubr.msk.bf16.mxu0 %vm130_vm0, %v11273_v58  ;;  %v12172_v57 = vsel %vm2901_vm3, %v2902_v54, %v13902_v34 }
 0x23e   :  { %v12175_v46 = vadd.f32 %v1083_v51, %v12087_v8 }
 0x23f   :  { %v9695_v32 = vpop.f32.mrb[20].mxu0  ;;  %v9915_v41 = vpop.f32.mrb[84].mxu1 }
 0x240   :  { %v1029_v14 = vpop.f32.mrb[21].mxu0  ;;  %v2923_v52 = vrot.slane %v9915_v41, 2  ;;  %v2850_v63 = vpop.f32.mrb[85].mxu1  ;;  %v1102_v30 = vrot.slane %v9695_v32, 1 }
 0x241   :  { %v9696_v7 = vpop.f32.mrb[22].mxu0  ;;  %v2920_v42 = vrot.slane %v2850_v63, 2  ;;  %v12177_v40 = vpop.f32.mrb[86].mxu1  ;;  %v1099_v54 = vrot.slane %v1029_v14, 1 }
 0x242   :  { %14018 = vst [vmem:[#allocation59_spill] sm:$0xff] %v12177_v40  ;;  %v1103_v56 = vrot.slane %v9696_v7, 1  ;;  %v1032_v58 = vpop.f32.mrb[23].mxu0  ;;  %v13907_v44 = vrot.slane %v12177_v40, 2  ;;  %v12180_v6 = vpop.f32.mrb[87].mxu1 }
 0x243   :  { %14019 = vst [vmem:[#allocation60_spill] sm:$0xff] %v12180_v6  ;;  %v1100_v34 = vrot.slane %v1032_v58, 1  ;;  %v13906_v8 = vrot.slane %v12180_v6, 2 }
 0x244   :  { %v1104_v51 = vsel %vm1080_vm2, %v1102_v30, %v1103_v56  ;;  %v1112_v5 = vadd.f32 %v9682_v48, %v1103_v56  ;;  %10108 = vmatmul.mubr.msk.bf16.vlgmr.msra.gmra.mrb[88].mxu0 %vm130_vm0, %v11286_v60  ;;  %v12189_v32 = vsel %vm2901_vm3, %v2923_v52, %v13907_v44 }
 0x245   :  { %14020 = vst [vmem:[#allocation61_spill] sm:$0xff] %v12189_v32  ;;  %v1111_v41 = vadd.f32 %v12115_v9, %v1104_v51  ;;  %v1101_v63 = vsel %vm1080_vm2, %v1099_v54, %v1100_v34  ;;  %v1110_v7 = vadd.f32 %v1100_v34, %v924_v27  ;;  %10111 = vmatprep.mubr.msk.bf16.mxu0 %vm130_vm0, %v11403_v53 }
 0x246   :  { %v12198_v48 = vsel %vm2901_vm3, %v2920_v42, %v13906_v8  ;;  %v1109_v60 = vadd.f32 %v1101_v63, %v12117_v20 }
 0x247   :  { %14021 = vst [vmem:[#allocation62_spill] sm:$0xff] %v12198_v48  ;;  %v9919_v14 = vpop.f32.mrb[88].mxu1 }
 0x248   :  { %v2941_v30 = vrot.slane %v9919_v14, 1  ;;  %v2866_v56 = vpop.f32.mrb[89].mxu1 }
 0x249   :  { %v2938_v52 = vrot.slane %v2866_v56, 1  ;;  %v12201_v58 = vpop.f32.mrb[90].mxu1 }
 0x24a   :  { %14022 = vst [vmem:[#allocation63_spill] sm:$0xff] %v12201_v58  ;;  %v13905_v9 = vrot.slane %v12201_v58, 1  ;;  %v12204_v54 = vpop.f32.mrb[91].mxu1 }
 0x24b   :  { %14023 = vst [vmem:[#allocation64_spill] sm:$0xff] %v12204_v54  ;;  %v13904_v27 = vrot.slane %v12204_v54, 1 }
 0x24c   :  { %10112 = vmatmul.mubr.msk.bf16.gmra.mrb[92].mxu0 %vm130_vm0, %v11435_v1  ;;  %v12212_v53 = vsel %vm1080_vm2, %v2941_v30, %v13905_v9 }
 0x24d   :  { %14024 = vst [vmem:[#allocation65_spill] sm:$0xff] %v12212_v53  ;;  %10115 = vmatprep.mubr.msk.bf16.mxu0 %vm130_vm0, %v11328_v11  ;;  %v12219_v20 = vsel %vm1080_vm2, %v2938_v52, %v13904_v27 }
 0x24e   :  { %14025 = vst [vmem:[#allocation66_spill] sm:$0xff] %v12219_v20 }
 0x24f   :  { %v9923_v34 = vpop.f32.mrb[92].mxu1 }
 0x250   :  { %v2959_v42 = vrot.slane %v9923_v34, 1  ;;  %v2882_v51 = vpop.f32.mrb[93].mxu1 }
 0x251   :  { %v2956_v63 = vrot.slane %v2882_v51, 1  ;;  %v12221_v14 = vpop.f32.mrb[94].mxu1 }
 0x252   :  { %14026 = vst [vmem:[#allocation67_spill] sm:$0xff] %v12221_v14  ;;  %v13910_v1 = vrot.slane %v12221_v14, 1  ;;  %v12224_v56 = vpop.f32.mrb[95].mxu1 }
 0x253   :  { %14027 = vst [vmem:[#allocation68_spill] sm:$0xff] %v12224_v56  ;;  %v13913_v30 = vrot.slane %v12224_v56, 1 }
 0x254   :  { %10116 = vmatmul.mubr.msk.bf16.gmra.mrb[96].mxu0 %vm130_vm0, %v11356_v28  ;;  %v12232_v11 = vsel %vm1080_vm2, %v2959_v42, %v13910_v1 }
 0x255   :  { %14028 = vst [vmem:[#allocation69_spill] sm:$0xff] %v12232_v11  ;;  %10119 = vmatprep.mubr.msk.bf16.mxu0 %vm130_vm0, %v11469_v18  ;;  %v12239_v52 = vsel %vm1080_vm2, %v2956_v63, %v13913_v30 }
 0x256   :  { %14029 = vst [vmem:[#allocation70_spill] sm:$0xff] %v12239_v52 }
 0x257   :  { %v9713_v34 = vpop.f32.mrb[24].mxu0  ;;  %v9933_v51 = vpop.f32.mrb[96].mxu1 }
 0x258   :  { %v1182_v27 = vpop.f32.mrb[25].mxu0  ;;  %v3031_v9 = vpop.f32.mrb[97].mxu1  ;;  %v1252_v28 = vrot.slane %v9713_v34, 1  ;;  %v3101_v14 = vrot.slane %v9933_v51, 2 }
 0x259   :  { %v9714_v8 = vpop.f32.mrb[26].mxu0  ;;  %v12241_v44 = vpop.f32.mrb[98].mxu1  ;;  %v1249_v18 = vrot.slane %v1182_v27, 1  ;;  %v3098_v56 = vrot.slane %v3031_v9, 2 }
 0x25a   :  { %14030 = vst [vmem:[#allocation71_spill] sm:$0xff] %v12241_v44  ;;  %v1253_v54 = vrot.slane %v9714_v8, 1  ;;  %v13914_v42 = vrot.slane %v12241_v44, 2  ;;  %v1185_v1 = vpop.f32.mrb[27].mxu0  ;;  %v12244_v11 = vpop.f32.mrb[99].mxu1 }
 0x25b   :  { %14031 = vst [vmem:[#allocation72_spill] sm:$0xff] %v12244_v11  ;;  %v1250_v58 = vrot.slane %v1185_v1, 1  ;;  %v13915_v63 = vrot.slane %v12244_v11, 2 }
 0x25c   :  { %v1254_v30 = vsel %vm1080_vm2, %v1252_v28, %v1253_v54  ;;  %v12248_v52 = vadd.f32 %v1253_v54, %v1112_v5  ;;  %v12253_v34 = vsel %vm2901_vm3, %v3101_v14, %v13914_v42  ;;  %10120 = vmatmul.mubr.msk.bf16.gmra.mrb[100].mxu0 %vm130_vm0, %v11495_v3 }
 0x25d   :  { %14032 = vst [vmem:[#allocation73_spill] sm:$0xff] %v12253_v34  ;;  %v12257_v8 = vadd.f32 %v1254_v30, %v1111_v41  ;;  %v1251_v27 = vsel %vm1080_vm2, %v1249_v18, %v1250_v58  ;;  %v12260_v9 = vadd.f32 %v1250_v58, %v1110_v7  ;;  %v12265_v1 = vsel %vm2901_vm3, %v3098_v56, %v13915_v63 }
 0x25e   :  { %14033 = vst [vmem:[#allocation74_spill] sm:$0xff] %v12265_v1  ;;  %v12267_v5 = vadd.f32 %v1251_v27, %v1109_v60 }
 0x25f   :  { %v9717_v54 = vpop.f32.mrb[28].mxu0  ;;  %v9937_v51 = vpop.f32.mrb[100].mxu1 }
 0x260   :  { %v1198_v14 = vpop.f32.mrb[29].mxu0  ;;  %v3047_v28 = vpop.f32.mrb[101].mxu1  ;;  %v1270_v3 = vrot.slane %v9717_v54, 1  ;;  %v3119_v41 = vrot.slane %v9937_v51, 2 }
 0x261   :  { %v9718_v42 = vpop.f32.mrb[30].mxu0  ;;  %v12269_v20 = vpop.f32.mrb[102].mxu1  ;;  %v1267_v53 = vrot.slane %v1198_v14, 1  ;;  %v3116_v56 = vrot.slane %v3047_v28, 2 }
 0x262   :  { %v1271_v30 = vrot.slane %v9718_v42, 1  ;;  %v13917_v7 = vrot.slane %v12269_v20, 2  ;;  %v1201_v58 = vpop.f32.mrb[31].mxu0  ;;  %v12272_v18 = vpop.f32.mrb[103].mxu1 }
 0x263   :  { %v1268_v63 = vrot.slane %v1201_v58, 1  ;;  %v13918_v60 = vrot.slane %v12272_v18, 2 }
 0x264   :  { %v1272_v27 = vsel %vm1080_vm2, %v1270_v3, %v1271_v30  ;;  %v1280_v11 = vadd.f32 %v1271_v30, %v12150_v47  ;;  %v12280_v54 = vsel %vm2901_vm3, %v3119_v41, %v13917_v7 }
 0x265   :  { %v1279_v42 = vadd.f32 %v1272_v27, %v12162_v15  ;;  %v1269_v51 = vsel %vm1080_vm2, %v1267_v53, %v1268_v63  ;;  %v1278_v1 = vadd.f32 %v1268_v63, %v12165_v43  ;;  %v12288_v14 = vsel %vm2901_vm3, %v3116_v56, %v13918_v60 }
 0x266   :  { %v1277_v28 = vadd.f32 %v1269_v51, %v12175_v46 }
 0x267   :  { %v9941_v3 = vpop.f32.mrb[104].mxu1 }
 0x268   :  { %v3063_v47 = vpop.f32.mrb[105].mxu1  ;;  %v3137_v58 = vrot.slane %v9941_v3, 1 }
 0x269   :  { %v12291_v30 = vpop.f32.mrb[106].mxu1  ;;  %v3134_v15 = vrot.slane %v3063_v47, 1 }
 0x26a   :  { %14034 = vst [vmem:[#allocation75_spill] sm:$0xff] %v12291_v30  ;;  %v13921_v41 = vrot.slane %v12291_v30, 1  ;;  %v12294_v7 = vpop.f32.mrb[107].mxu1 }
 0x26b   :  { %14035 = vst [vmem:[#allocation76_spill] sm:$0xff] %v12294_v7  ;;  %v13920_v53 = vrot.slane %v12294_v7, 1 }
 0x26c   :  { %v12300_v43 = vsel %vm1080_vm2, %v3137_v58, %v13921_v41 }
 0x26d   :  { %14036 = vst [vmem:[#allocation77_spill] sm:$0xff] %v12300_v43  ;;  %v12305_v46 = vsel %vm1080_vm2, %v3134_v15, %v13920_v53 }
 0x26e   :  { %14037 = vst [vmem:[#allocation78_spill] sm:$0xff] %v12305_v46 }
 0x26f   :  { %v9945_v63 = vpop.f32.mrb[108].mxu1 }
 0x270   :  { %v3079_v56 = vpop.f32.mrb[109].mxu1  ;;  %v3155_v51 = vrot.slane %v9945_v63, 1 }
 0x271   :  { %v12307_v27 = vpop.f32.mrb[110].mxu1  ;;  %v3152_v60 = vrot.slane %v3079_v56, 1 }
 0x272   :  { %14038 = vst [vmem:[#allocation79_spill] sm:$0xff] %v12307_v27  ;;  %v13925_v3 = vrot.slane %v12307_v27, 1  ;;  %v12310_v47 = vpop.f32.mrb[111].mxu1 }
 0x273   :  { %14039 = vst [vmem:[#allocation80_spill] sm:$0xff] %v12310_v47  ;;  %v13927_v30 = vrot.slane %v12310_v47, 1 }
 0x274   :  { %v12316_v58 = vsel %vm1080_vm2, %v3155_v51, %v13925_v3 }
 0x275   :  { %14040 = vst [vmem:[#allocation81_spill] sm:$0xff] %v12316_v58  ;;  %v12321_v15 = vsel %vm1080_vm2, %v3152_v60, %v13927_v30 }
 0x276   :  { %14041 = vst [vmem:[#allocation82_spill] sm:$0xff] %v12321_v15 }
 0x277   :  { %v9735_v53 = vpop.f32.mrb[32].mxu0  ;;  %v9955_v41 = vpop.f32.mrb[112].mxu1 }
 0x278   :  { %v1350_v63 = vpop.f32.mrb[33].mxu0  ;;  %v3227_v7 = vpop.f32.mrb[113].mxu1  ;;  %v1420_v56 = vrot.slane %v9735_v53, 1  ;;  %v3297_v6 = vrot.slane %v9955_v41, 2 }
 0x279   :  { %v9736_v46 = vpop.f32.mrb[34].mxu0  ;;  %v12323_v43 = vpop.f32.mrb[114].mxu1  ;;  %v1417_v3 = vrot.slane %v1350_v63, 1  ;;  %v3294_v47 = vrot.slane %v3227_v7, 2 }
 0x27a   :  { %v1421_v48 = vrot.slane %v9736_v46, 1  ;;  %v13929_v27 = vrot.slane %v12323_v43, 2  ;;  %v1353_v34 = vpop.f32.mrb[35].mxu0  ;;  %v12326_v51 = vpop.f32.mrb[115].mxu1 }
 0x27b   :  { %14042 = vst [vmem:[#allocation83_spill] sm:$0xff] %v12326_v51  ;;  %v1418_v58 = vrot.slane %v1353_v34, 1  ;;  %v13931_v60 = vrot.slane %v12326_v51, 2 }
 0x27c   :  { %v1422_v30 = vsel %vm1080_vm2, %v1420_v56, %v1421_v48  ;;  %v12330_v15 = vadd.f32 %v1421_v48, %v1280_v11  ;;  %v12335_v53 = vsel %vm2901_vm3, %v3297_v6, %v13929_v27 }
 0x27d   :  { %14043 = vst [vmem:[#allocation84_spill] sm:$0xff] %v12335_v53  ;;  %v12337_v41 = vadd.f32 %v1422_v30, %v1279_v42  ;;  %v1419_v46 = vsel %vm1080_vm2, %v1417_v3, %v1418_v58  ;;  %v12340_v44 = vadd.f32 %v1418_v58, %v1278_v1  ;;  %v12345_v34 = vsel %vm2901_vm3, %v3294_v47, %v13931_v60 }
 0x27e   :  { %14044 = vst [vmem:[#allocation85_spill] sm:$0xff] %v12345_v34  ;;  %v12347_v7 = vadd.f32 %v1419_v46, %v1277_v28 }
 0x27f   :  { %v9739_v48 = vpop.f32.mrb[36].mxu0  ;;  %v9959_v11 = vpop.f32.mrb[116].mxu1 }
 0x280   :  { %v1366_v63 = vpop.f32.mrb[37].mxu0  ;;  %v3243_v56 = vpop.f32.mrb[117].mxu1  ;;  %v1438_v42 = vrot.slane %v9739_v48, 1  ;;  %v3315_v30 = vrot.slane %v9959_v11, 2 }
 0x281   :  { %v9740_v32 = vpop.f32.mrb[38].mxu0  ;;  %v12349_v6 = vpop.f32.mrb[118].mxu1  ;;  %v1435_v40 = vrot.slane %v1366_v63, 1  ;;  %v3312_v47 = vrot.slane %v3243_v56, 2 }
 0x282   :  { %14045 = vst [vmem:[#allocation86_spill] sm:$0xff] %v12349_v6  ;;  %v1439_v27 = vrot.slane %v9740_v32, 1  ;;  %v13933_v1 = vrot.slane %v12349_v6, 2  ;;  %v1369_v3 = vpop.f32.mrb[39].mxu0  ;;  %v12352_v58 = vpop.f32.mrb[119].mxu1 }
 0x283   :  { %14046 = vst [vmem:[#allocation87_spill] sm:$0xff] %v12352_v58  ;;  %v1436_v60 = vrot.slane %v1369_v3, 1  ;;  %v13934_v28 = vrot.slane %v12352_v58, 2 }
 0x284   :  { %v1440_v46 = vsel %vm1080_vm2, %v1438_v42, %v1439_v27  ;;  %v1448_v34 = vadd.f32 %v1439_v27, %v12248_v52  ;;  %v12360_v48 = vsel %vm2901_vm3, %v3315_v30, %v13933_v1 }
 0x285   :  { %14047 = vst [vmem:[#allocation88_spill] sm:$0xff] %v12360_v48  ;;  %v1447_v32 = vadd.f32 %v1440_v46, %v12257_v8  ;;  %v1437_v11 = vsel %vm1080_vm2, %v1435_v40, %v1436_v60  ;;  %v1446_v51 = vadd.f32 %v1436_v60, %v12260_v9  ;;  %v12368_v63 = vsel %vm2901_vm3, %v3312_v47, %v13934_v28 }
 0x286   :  { %14048 = vst [vmem:[#allocation89_spill] sm:$0xff] %v12368_v63  ;;  %v1445_v56 = vadd.f32 %v1437_v11, %v12267_v5 }
 0x287   :  { %v9963_v42 = vpop.f32.mrb[120].mxu1 }
 0x288   :  { %v3259_v52 = vpop.f32.mrb[121].mxu1  ;;  %v3333_v3 = vrot.slane %v9963_v42, 1 }
 0x289   :  { %v12371_v27 = vpop.f32.mrb[122].mxu1  ;;  %v3330_v8 = vrot.slane %v3259_v52, 1 }
 0x28a   :  { %14049 = vst [vmem:[#allocation90_spill] sm:$0xff] %v12371_v27  ;;  %v13937_v30 = vrot.slane %v12371_v27, 1  ;;  %v12374_v1 = vpop.f32.mrb[123].mxu1 }
 0x28b   :  { %14050 = vst [vmem:[#allocation91_spill] sm:$0xff] %v12374_v1  ;;  %v13936_v40 = vrot.slane %v12374_v1, 1 }
 0x28c   :  { %v12380_v9 = vsel %vm1080_vm2, %v3333_v3, %v13937_v30 }
 0x28d   :  { %14051 = vst [vmem:[#allocation92_spill] sm:$0xff] %v12380_v9  ;;  %v12385_v5 = vsel %vm1080_vm2, %v3330_v8, %v13936_v40 }
 0x28e   :  { %14052 = vst [vmem:[#allocation93_spill] sm:$0xff] %v12385_v5 }
 0x28f   :  { %v9967_v60 = vpop.f32.mrb[124].mxu1 }
 0x290   :  { %v3275_v47 = vpop.f32.mrb[125].mxu1  ;;  %v3351_v11 = vrot.slane %v9967_v60, 1 }
 0x291   :  { %v12387_v46 = vpop.f32.mrb[126].mxu1  ;;  %v3348_v28 = vrot.slane %v3275_v47, 1 }
 0x292   :  { %14053 = vst [vmem:[#allocation94_spill] sm:$0xff] %v12387_v46  ;;  %v13941_v42 = vrot.slane %v12387_v46, 1  ;;  %v12390_v52 = vpop.f32.mrb[127].mxu1 }
 0x293   :  { %14054 = vst [vmem:[#allocation95_spill] sm:$0xff] %v12390_v52  ;;  %v13943_v27 = vrot.slane %v12390_v52, 1 }
 0x294   :  { %v12396_v3 = vsel %vm1080_vm2, %v3351_v11, %v13941_v42 }
 0x295   :  { %14055 = vst [vmem:[#allocation96_spill] sm:$0xff] %v12396_v3  ;;  %v12401_v8 = vsel %vm1080_vm2, %v3348_v28, %v13943_v27 }
 0x296   :  { %14056 = vst [vmem:[#allocation97_spill] sm:$0xff] %v12401_v8 }
 0x297   :  { %v9757_v40 = vpop.f32.mrb[40].mxu0  ;;  %v9977_v30 = vpop.f32.mrb[128].mxu1 }
 0x298   :  { %v1518_v60 = vpop.f32.mrb[41].mxu0  ;;  %v3423_v1 = vpop.f32.mrb[129].mxu1  ;;  %v1588_v47 = vrot.slane %v9757_v40, 1  ;;  %v3493_v58 = vrot.slane %v9977_v30, 2 }
 0x299   :  { %v9758_v5 = vpop.f32.mrb[42].mxu0  ;;  %v12403_v9 = vpop.f32.mrb[130].mxu1  ;;  %v1585_v42 = vrot.slane %v1518_v60, 1  ;;  %v3490_v52 = vrot.slane %v3423_v1, 2 }
 0x29a   :  { %14057 = vst [vmem:[#allocation98_spill] sm:$0xff] %v12403_v9  ;;  %v1589_v63 = vrot.slane %v9758_v5, 1  ;;  %v13946_v46 = vrot.slane %v12403_v9, 2  ;;  %v1521_v48 = vpop.f32.mrb[43].mxu0  ;;  %v12406_v11 = vpop.f32.mrb[131].mxu1 }
 0x29b   :  { %14058 = vst [vmem:[#allocation99_spill] sm:$0xff] %v12406_v11  ;;  %v1586_v3 = vrot.slane %v1521_v48, 1  ;;  %v13948_v28 = vrot.slane %v12406_v11, 2 }
 0x29c   :  { %v1590_v27 = vsel %vm1080_vm2, %v1588_v47, %v1589_v63  ;;  %v12410_v8 = vadd.f32 %v1589_v63, %v1448_v34  ;;  %v12415_v40 = vsel %vm2901_vm3, %v3493_v58, %v13946_v46 }
 0x29d   :  { %14059 = vst [vmem:[#allocation100_spill] sm:$0xff] %v12415_v40  ;;  %v12417_v30 = vadd.f32 %v1590_v27, %v1447_v32  ;;  %v1587_v5 = vsel %vm1080_vm2, %v1585_v42, %v1586_v3  ;;  %v12420_v6 = vadd.f32 %v1586_v3, %v1446_v51  ;;  %v12425_v1 = vsel %vm2901_vm3, %v3490_v52, %v13948_v28 }
 0x29e   :  { %14060 = vst [vmem:[#allocation101_spill] sm:$0xff] %v12425_v1  ;;  %v12427_v48 = vadd.f32 %v1587_v5, %v1445_v56 }
 0x29f   :  { %v9761_v34 = vpop.f32.mrb[44].mxu0  ;;  %v9981_v63 = vpop.f32.mrb[132].mxu1 }
 0x2a0   :  { %v1534_v60 = vpop.f32.mrb[45].mxu0  ;;  %v3439_v47 = vpop.f32.mrb[133].mxu1  ;;  %v1606_v32 = vrot.slane %v9761_v34, 1  ;;  %v3511_v27 = vrot.slane %v9981_v63, 2 }
 0x2a1   :  { %v9762_v9 = vpop.f32.mrb[46].mxu0  ;;  %v12429_v58 = vpop.f32.mrb[134].mxu1  ;;  %v1603_v11 = vrot.slane %v1534_v60, 1  ;;  %v3508_v52 = vrot.slane %v3439_v47, 2 }
 0x2a2   :  { %14061 = vst [vmem:[#allocation102_spill] sm:$0xff] %v12429_v58  ;;  %v1607_v46 = vrot.slane %v9762_v9, 1  ;;  %v13949_v51 = vrot.slane %v12429_v58, 2  ;;  %v1537_v42 = vpop.f32.mrb[47].mxu0  ;;  %v12432_v3 = vpop.f32.mrb[135].mxu1 }
 0x2a3   :  { %14062 = vst [vmem:[#allocation103_spill] sm:$0xff] %v12432_v3  ;;  %v1604_v28 = vrot.slane %v1537_v42, 1  ;;  %v13950_v56 = vrot.slane %v12432_v3, 2 }
 0x2a4   :  { %v1608_v5 = vsel %vm1080_vm2, %v1606_v32, %v1607_v46  ;;  %v1616_v1 = vadd.f32 %v1607_v46, %v12330_v15  ;;  %v12440_v34 = vsel %vm2901_vm3, %v3511_v27, %v13949_v51 }
 0x2a5   :  { %14063 = vst [vmem:[#allocation104_spill] sm:$0xff] %v12440_v34  ;;  %v1615_v9 = vadd.f32 %v1608_v5, %v12337_v41  ;;  %v1605_v63 = vsel %vm1080_vm2, %v1603_v11, %v1604_v28  ;;  %v1614_v40 = vadd.f32 %v1604_v28, %v12340_v44  ;;  %v12448_v60 = vsel %vm2901_vm3, %v3508_v52, %v13950_v56 }
 0x2a6   :  { %14064 = vst [vmem:[#allocation105_spill] sm:$0xff] %v12448_v60  ;;  %v1613_v47 = vadd.f32 %v1605_v63, %v12347_v7 }
 0x2a7   :  { %v9985_v32 = vpop.f32.mrb[136].mxu1 }
 0x2a8   :  { %v3455_v15 = vpop.f32.mrb[137].mxu1  ;;  %v3529_v42 = vrot.slane %v9985_v32, 1 }
 0x2a9   :  { %v12451_v46 = vpop.f32.mrb[138].mxu1  ;;  %v3526_v41 = vrot.slane %v3455_v15, 1 }
 0x2aa   :  { %14065 = vst [vmem:[#allocation106_spill] sm:$0xff] %v12451_v46  ;;  %v13953_v27 = vrot.slane %v12451_v46, 1  ;;  %v12454_v51 = vpop.f32.mrb[139].mxu1 }
 0x2ab   :  { %14066 = vst [vmem:[#allocation107_spill] sm:$0xff] %v12454_v51  ;;  %v13952_v11 = vrot.slane %v12454_v51, 1 }
 0x2ac   :  { %v12460_v44 = vsel %vm1080_vm2, %v3529_v42, %v13953_v27 }
 0x2ad   :  { %14067 = vst [vmem:[#allocation108_spill] sm:$0xff] %v12460_v44  ;;  %v12465_v7 = vsel %vm1080_vm2, %v3526_v41, %v13952_v11 }
 0x2ae   :  { %14068 = vst [vmem:[#allocation109_spill] sm:$0xff] %v12465_v7 }
 0x2af   :  { %v9989_v28 = vpop.f32.mrb[140].mxu1 }
 0x2b0   :  { %v3471_v52 = vpop.f32.mrb[141].mxu1  ;;  %v3547_v63 = vrot.slane %v9989_v28, 1 }
 0x2b1   :  { %v12467_v5 = vpop.f32.mrb[142].mxu1  ;;  %v3544_v56 = vrot.slane %v3471_v52, 1 }
 0x2b2   :  { %14069 = vst [vmem:[#allocation110_spill] sm:$0xff] %v12467_v5  ;;  %v13957_v32 = vrot.slane %v12467_v5, 1  ;;  %v12470_v15 = vpop.f32.mrb[143].mxu1 }
 0x2b3   :  { %14070 = vst [vmem:[#allocation111_spill] sm:$0xff] %v12470_v15  ;;  %v13959_v46 = vrot.slane %v12470_v15, 1 }
 0x2b4   :  { %v12476_v42 = vsel %vm1080_vm2, %v3547_v63, %v13957_v32 }
 0x2b5   :  { %14071 = vst [vmem:[#allocation112_spill] sm:$0xff] %v12476_v42  ;;  %v12481_v41 = vsel %vm1080_vm2, %v3544_v56, %v13959_v46 }
 0x2b6   :  { %14072 = vst [vmem:[#allocation113_spill] sm:$0xff] %v12481_v41 }
 0x2b7   :  { %v9779_v11 = vpop.f32.mrb[48].mxu0  ;;  %v9999_v27 = vpop.f32.mrb[144].mxu1 }
 0x2b8   :  { %v1686_v28 = vpop.f32.mrb[49].mxu0  ;;  %v3619_v51 = vpop.f32.mrb[145].mxu1  ;;  %v1756_v52 = vrot.slane %v9779_v11, 1  ;;  %v3689_v60 = vrot.slane %v9999_v27, 2 }
 0x2b9   :  { %v9780_v7 = vpop.f32.mrb[50].mxu0  ;;  %v12483_v44 = vpop.f32.mrb[146].mxu1  ;;  %v1753_v32 = vrot.slane %v1686_v28, 1  ;;  %v3686_v15 = vrot.slane %v3619_v51, 2  ;;  %v14073_v51 = vrot.slane %v11345_v19, 1  ;;  %v14075_v19 = vrot.slane %v11772_v35, 1 }
 0x2ba   :  { %v1757_v3 = vrot.slane %v9780_v7, 1  ;;  %v3690_v5 = vrot.slane %v12483_v44, 2  ;;  %v1689_v34 = vpop.f32.mrb[51].mxu0  ;;  %v12486_v63 = vpop.f32.mrb[147].mxu1  ;;  %v14077_v35 = vrot.slane %v11856_v13, 1 }
 0x2bb   :  { %v1754_v42 = vrot.slane %v1689_v34, 1  ;;  %v3687_v56 = vrot.slane %v12486_v63, 2 }
 0x2bc   :  { %v1758_v46 = vsel %vm1080_vm2, %v1756_v52, %v1757_v3  ;;  %v1766_v41 = vadd.f32 %v1757_v3, %v1616_v1  ;;  %v12493_v58 = vsel %vm2901_vm3, %v3689_v60, %v3690_v5  ;;  %v14074_v3 = vrot.slane %v11348_v21, 1 }
 0x2bd   :  { %v1765_v27 = vadd.f32 %v1758_v46, %v1615_v9  ;;  %v1755_v11 = vsel %vm1080_vm2, %v1753_v32, %v1754_v42  ;;  %v1764_v7 = vadd.f32 %v1754_v42, %v1614_v40  ;;  %v12499_v28 = vsel %vm2901_vm3, %v3686_v15, %v3687_v56 }
 0x2be   :  { %v1970_v34 = vadd.f32 %v14073_v51, %v1766_v41  ;;  %v1763_v53 = vadd.f32 %v1755_v11, %v1613_v47  ;;  %v13961_v46 = vmov 0.0   ;;  %v14076_v41 = vrot.slane %v11775_v0, 1 }
 0x2bf   :  { %v1969_v1 = vadd.f32 %v11354_v25, %v1765_v27  ;;  %v1968_v60 = vadd.f32 %v14074_v3, %v1764_v7  ;;  %v9783_v52 = vpop.f32.mrb[52].mxu0  ;;  %v10003_v9 = vpop.f32.mrb[148].mxu1  ;;  %4762 = vst.msk [vmem:[#allocation2 + $0x7] sm:$0x1] %vm4761_vm4, %v13961_v46  ;;  %4763 = vst.msk [vmem:[#allocation2 + $0xf] sm:$0x1] %vm4761_vm4, %v13961_v46 }
 0x2c0   :  { %4764 = vst.msk [vmem:[#allocation2 + $0x17] sm:$0x1] %vm4761_vm4, %v13961_v46  ;;  %4765 = vst.msk [vmem:[#allocation2 + $0x1f] sm:$0x1] %vm4761_vm4, %v13961_v46  ;;  %v2184_v25 = vadd.f32 %v14075_v19, %v1970_v34  ;;  %v1967_v21 = vadd.f32 %v11361_v29, %v1763_v53  ;;  %v1774_v40 = vrot.slane %v9783_v52, 1  ;;  %v3707_v47 = vrot.slane %v10003_v9, 2 }
 0x2c1   :  { %v1702_v32 = vpop.f32.mrb[53].mxu0  ;;  %v12517_v15 = vpop.f32.mrb[149].mxu1  ;;  %v2183_v42 = vadd.f32 %v11781_v49, %v1969_v1  ;;  %v2182_v27 = vadd.f32 %v14076_v41, %v1968_v60  ;;  %v14078_v49 = vrot.slane %v11859_v37, 1  ;;  %v14079_v41 = vrot.slane %v12005_v16, 1 }
 0x2c2   :  { %v1771_v11 = vrot.slane %v1702_v32, 1  ;;  %v3704_v7 = vrot.slane %v12517_v15, 2  ;;  %v9784_v51 = vpop.f32.mrb[54].mxu0  ;;  %v12523_v3 = vpop.f32.mrb[150].mxu1  ;;  %v2362_v34 = vadd.f32 %v14077_v35, %v2184_v25  ;;  %v2181_v29 = vadd.f32 %v11790_v12, %v1967_v21  ;;  %v14128_v15 = vld [vmem:[#allocation10_spill] sm:$0xff] }
 0x2c3   :  { %v1775_v53 = vrot.slane %v9784_v51, 1  ;;  %v3708_v52 = vrot.slane %v12523_v3, 2  ;;  %v1705_v9 = vpop.f32.mrb[55].mxu0  ;;  %v12529_v19 = vpop.f32.mrb[151].mxu1  ;;  %v2361_v0 = vadd.f32 %v11870_v17, %v2183_v42  ;;  %v2360_v1 = vadd.f32 %v14078_v49, %v2182_v27  ;;  %v14152_v3 = vld [vmem:[#allocation101_spill] sm:$0xff] }
 0x2c4   :  { %v1772_v60 = vrot.slane %v1705_v9, 1  ;;  %v3705_v32 = vrot.slane %v12529_v19, 2  ;;  %v2576_v13 = vadd.f32 %v14079_v41, %v2362_v34  ;;  %v2359_v25 = vadd.f32 %v11883_v4, %v2181_v29 }
 0x2c5   :  { %v1776_v12 = vsel %vm1080_vm2, %v1774_v40, %v1775_v53  ;;  %v1784_v21 = vadd.f32 %v1775_v53, %v12410_v8  ;;  %v2575_v51 = vadd.f32 %v12014_v23, %v2361_v0  ;;  %v14080_v35 = vrot.slane %v12008_v2, 1 }
 0x2c6   :  { %v1783_v37 = vadd.f32 %v1776_v12, %v12417_v30  ;;  %v12547_v42 = vsel %vm2901_vm3, %v3707_v47, %v3708_v52  ;;  %v14081_v16 = vrot.slane %v12089_v10, 1  ;;  %v2573_v4 = vadd.f32 %v12025_v55, %v2359_v25 }
 0x2c7   :  { %v2574_v17 = vadd.f32 %v14080_v35, %v2360_v1  ;;  %v14082_v40 = vrot.slane %v11363_v33, 1  ;;  %v1773_v23 = vsel %vm1080_vm2, %v1771_v11, %v1772_v60  ;;  %v2753_v2 = vadd.f32 %v12100_v62, %v2575_v51  ;;  %v12560_v53 = vpop.f32.mrb[0].mxu0  ;;  %v12562_v10 = vpop.f32.mrb[152].mxu1 }
 0x2c8   :  { %v2754_v27 = vadd.f32 %v14081_v16, %v2576_v13  ;;  %v14083_v34 = vrot.slane %v12092_v61, 1  ;;  %v1987_v29 = vadd.f32 %v11382_v38, %v1783_v37  ;;  %v1781_v47 = vadd.f32 %v1773_v23, %v12427_v48  ;;  %v1718_v61 = vpop.f32.mrb[1].mxu0  ;;  %v12570_v49 = vpop.f32.mrb[153].mxu1  ;;  %v14092_v37 = vld [vmem:[#allocation23_spill] sm:$0xff] }
 0x2c9   :  { %v1988_v8 = vadd.f32 %v14082_v40, %v1784_v21  ;;  %v14084_v55 = vrot.slane %v12143_v26, 2  ;;  %v2751_v33 = vadd.f32 %v12109_v45, %v2573_v4  ;;  %v14085_v11 = vrot.slane %v11738_v24, 1  ;;  %v9788_v13 = vpop.f32.mrb[2].mxu0  ;;  %v12577_v25 = vpop.f32.mrb[154].mxu1 }
 0x2ca   :  { %v2752_v30 = vadd.f32 %v14083_v34, %v2574_v17  ;;  %v1782_v62 = vadd.f32 %v1772_v60, %v12420_v6  ;;  %v2914_v38 = vadd.f32 %v12159_v59, %v2753_v2  ;;  %v14086_v48 = vrot.slane %v12146_v31, 2  ;;  %v12586_v31 = vpop.f32.mrb[3].mxu0  ;;  %v12588_v51 = vpop.f32.mrb[155].mxu1  ;;  %v14091_v17 = vld [vmem:[#allocation33_spill] sm:$0xff]  ;;  %v14098_v34 = vld [vmem:[#allocation84_spill] sm:$0xff] }
 0x2cb   :  { %v2915_v9 = vadd.f32 %v14084_v55, %v2754_v27  ;;  %v2166_v0 = vadd.f32 %v14085_v11, %v1988_v8  ;;  %v2165_v41 = vadd.f32 %v11752_v50, %v1987_v29  ;;  %v1985_v26 = vadd.f32 %v11387_v39, %v1781_v47  ;;  %v14096_v8 = vld [vmem:[#allocation22_spill] sm:$0xff]  ;;  %v14101_v47 = vld [vmem:[#allocation45_spill] sm:$0xff] }
 0x2cc   :  { %v2913_v1 = vadd.f32 %v14086_v48, %v2752_v30  ;;  %v14087_v24 = vrot.slane %v12269_v20, 2  ;;  %v2912_v6 = vadd.f32 %v12172_v57, %v2751_v33  ;;  %v14088_v60 = vrot.slane %v11890_v22, 1  ;;  %v14099_v30 = vld [vmem:[#allocation83_spill] sm:$0xff]  ;;  %v14103_v11 = vld [vmem:[#allocation102_spill] sm:$0xff] }
 0x2cd   :  { %v14089_v59 = vrot.slane %v11372_v36, 1  ;;  %v3128_v39 = vadd.f32 %v12280_v54, %v2914_v38  ;;  %v14090_v50 = vrot.slane %v12272_v18, 2  ;;  %v2379_v20 = vadd.f32 %v14091_v17, %v2165_v41  ;;  %v14094_v36 = vld [vmem:[#allocation43_spill] sm:$0xff]  ;;  %v14108_v41 = vld [vmem:[#allocation32_spill] sm:$0xff] }
 0x2ce   :  { %v3129_v45 = vadd.f32 %v14087_v24, %v2915_v9  ;;  %v2380_v12 = vadd.f32 %v14088_v60, %v2166_v0  ;;  %v2163_v16 = vadd.f32 %v14092_v37, %v1985_v26  ;;  %v14093_v57 = vrot.slane %v12323_v43, 2  ;;  %v14102_v9 = vld [vmem:[#allocation34_spill] sm:$0xff]  ;;  %v14106_v38 = vld [vmem:[#allocation55_spill] sm:$0xff] }
 0x2cf   :  { %v1986_v21 = vadd.f32 %v14089_v59, %v1782_v62  ;;  %v3127_v35 = vadd.f32 %v14090_v50, %v2913_v1  ;;  %v3126_v27 = vadd.f32 %v12288_v14, %v2912_v6  ;;  %v14095_v4 = vrot.slane %v14094_v36, 1  ;;  %v14105_v62 = vld [vmem:[#allocation85_spill] sm:$0xff]  ;;  %v14111_v60 = vld [vmem:[#allocation103_spill] sm:$0xff]  ;;  %v14114_v50 = vld [vmem:[#allocation46_spill] sm:$0xff]  ;;  %v12619_v17 = vpop.f32.mrb[4].mxu0 }
 0x2d0   :  { %v3307_v22 = vadd.f32 %v14093_v57, %v3129_v45  ;;  %v14097_v23 = vrot.slane %v14096_v8, 1  ;;  %v3306_v54 = vadd.f32 %v14098_v34, %v3128_v39  ;;  %v14100_v18 = vrot.slane %v14099_v30, 2  ;;  %v14110_v45 = vld [vmem:[#allocation104_spill] sm:$0xff]  ;;  %v14121_v30 = vld [vmem:[#allocation58_spill] sm:$0xff] }
 0x2d1   :  { %v2558_v40 = vadd.f32 %v14095_v4, %v2380_v12  ;;  %v2557_v55 = vadd.f32 %v14101_v47, %v2379_v20  ;;  %v2377_v33 = vadd.f32 %v14102_v9, %v2163_v16  ;;  %v14104_v43 = vrot.slane %v14103_v11, 2  ;;  %v12621_v20 = vpop.f32.mrb[156].mxu1  ;;  %v14115_v16 = vld [vmem:[#allocation105_spill] sm:$0xff]  ;;  %v14118_v4 = vld [vmem:[#allocation44_spill] sm:$0xff]  ;;  %v14122_v9 = vld [vmem:[#allocation71_spill] sm:$0xff] }
 0x2d2   :  { %v2164_v2 = vadd.f32 %v14097_v23, %v1986_v21  ;;  %v3305_v29 = vadd.f32 %v14100_v18, %v3127_v35  ;;  %v3304_v14 = vadd.f32 %v14105_v62, %v3126_v27  ;;  %v14107_v48 = vrot.slane %v14106_v38, 1  ;;  %v14113_v21 = vld [vmem:[#allocation57_spill] sm:$0xff]  ;;  %v12632_v23 = vpop.f32.mrb[5].mxu0 }
 0x2d3   :  { %v3521_v0 = vadd.f32 %v14104_v43, %v3307_v22  ;;  %v14109_v26 = vrot.slane %v14108_v41, 1  ;;  %v3520_v6 = vadd.f32 %v14110_v45, %v3306_v54  ;;  %v14112_v12 = vrot.slane %v14111_v60, 2  ;;  %v14116_v22 = vld [vmem:[#allocation59_spill] sm:$0xff]  ;;  %v14126_v38 = vld [vmem:[#allocation73_spill] sm:$0xff]  ;;  %v14131_v60 = vld [vmem:[#allocation60_spill] sm:$0xff] }
 0x2d4   :  { %v2772_v1 = vadd.f32 %v14107_v48, %v2558_v40  ;;  %v2771_v39 = vadd.f32 %v14113_v21, %v2557_v55  ;;  %v2555_v35 = vadd.f32 %v14114_v50, %v2377_v33  ;;  %v3518_v57 = vadd.f32 %v14115_v16, %v3304_v14  ;;  %v12671_v14 = vld [vmem:[%s13827_s3 + $0x8] sm:$0x7f]  }
 0x2d5   :  { %v2378_v24 = vadd.f32 %v14109_v26, %v2164_v2  ;;  %v3519_v59 = vadd.f32 %v14112_v12, %v3305_v29  ;;  %v12625_v37 = vadd.f32 %v3690_v5, %v3521_v0  ;;  %v14117_v27 = vrot.slane %v14116_v22, 2  ;;  %v12634_v2 = vpop.f32.mrb[157].mxu1  ;;  %v14120_v5 = vld [vmem:[#allocation61_spill] sm:$0xff]  ;;  %v12645_v29 = vpop.f32.mrb[6].mxu0  ;;  %v14133_v21 = vld [vmem:[#allocation11_spill] sm:$0xff] }
 0x2d6   :  { %v14119_v40 = vrot.slane %v14118_v4, 1  ;;  %v12637_v34 = vadd.f32 %v12493_v58, %v3520_v6  ;;  %v2932_v54 = vadd.f32 %v14120_v5, %v2771_v39  ;;  %v2769_v18 = vadd.f32 %v14121_v30, %v2555_v35  ;;  %v12647_v47 = vpop.f32.mrb[158].mxu1  ;;  %v14124_v58 = vld [vmem:[#allocation56_spill] sm:$0xff] }
 0x2d7   :  { %v2933_v36 = vadd.f32 %v14117_v27, %v2772_v1  ;;  %v12641_v44 = vadd.f32 %v3687_v56, %v3519_v59  ;;  %v12650_v55 = vadd.f32 %v12499_v28, %v3518_v57  ;;  %v14123_v33 = vrot.slane %v14122_v9, 2  ;;  %v12661_v56 = vpop.f32.mrb[7].mxu0  ;;  %v12663_v62 = vpop.f32.mrb[159].mxu1  ;;  %v10787_v28 = vld [vmem:[%s13827_s3] sm:$0xff]   ;;  %v14134_v35 = vld [vmem:[#allocation88_spill] sm:$0xff] }
 0x2d8   :  { %v2556_v8 = vadd.f32 %v14119_v40, %v2378_v24  ;;  %v14125_v43 = vrot.slane %v14124_v58, 1  ;;  %v3706_v63 = vsel %vm2901_vm3, %v3704_v7, %v3705_v32  ;;  %v3110_v48 = vadd.f32 %v14126_v38, %v2932_v54  ;;  %v14127_v1 = vld [vmem:[#allocation62_spill] sm:$0xff]  ;;  %10123 = vmatprep.subr.bf16.mxu1 %v10787_v28  ;;  %v14136_v27 = vld [vmem:[#allocation20_spill] sm:$0xff]  ;;  %v14145_v58 = vld [vmem:[#allocation89_spill] sm:$0xff] }
 0x2d9   :  { %v3111_v11 = vadd.f32 %v14123_v33, %v2933_v36  ;;  %v2930_v41 = vadd.f32 %v14127_v1, %v2769_v18  ;;  %v1933_v7 = vadd.f32 %v12560_v53, %v14128_v15  ;;  %v3725_v26 = vrot.slane %v12562_v10, 1  ;;  %v14129_v24 = vld [vmem:[#allocation86_spill] sm:$0xff]  ;;  %10124 = vmatpush3.bf16.msra.mxu1 %v10787_v28  ;;  %v14141_v54 = vld [vmem:[#allocation72_spill] sm:$0xff]  ;;  %v12702_v1 = vpop.f32.mrb[56].mxu0 }
 0x2da   :  { %v2770_v0 = vadd.f32 %v14125_v43, %v2556_v8  ;;  %v14130_v45 = vrot.slane %v14129_v24, 2  ;;  %v14132_v12 = vrot.slane %v14131_v60, 2  ;;  %v1931_v39 = vadd.f32 %v14133_v21, %v1718_v61  ;;  %v14135_v57 = vld [vmem:[#allocation74_spill] sm:$0xff]  ;;  %v14143_v61 = vld [vmem:[#allocation21_spill] sm:$0xff]  ;;  %10670 = vmatprep.subr.msk.bf16.mxu1 %vm1080_vm2, %v12671_v14  ;;  %v14144_v33 = vld [vmem:[#allocation100_spill] sm:$0xff] }
 0x2db   :  { %v3722_v50 = vrot.slane %v12570_v49, 1  ;;  %v3324_v16 = vadd.f32 %v14134_v35, %v3110_v48  ;;  %v3108_v22 = vadd.f32 %v14135_v57, %v2930_v41  ;;  %v2147_v36 = vadd.f32 %v14136_v27, %v1933_v7  ;;  %v14137_v53 = vld [vmem:[#allocation6_spill] sm:$0xff]  ;;  %v12704_v41 = vpop.f32.mrb[160].mxu1  ;;  %v14149_v7 = vld [vmem:[#allocation87_spill] sm:$0xff]  ;;  %v14153_v35 = vld [vmem:[#allocation41_spill] sm:$0xff] }
 0x2dc   :  { %v3325_v6 = vadd.f32 %v14130_v45, %v3111_v11  ;;  %v2931_v59 = vadd.f32 %v14132_v12, %v2770_v0  ;;  %v14138_v4 = vrot.slane %v14137_v53, 1  ;;  %v14139_v40 = vld [vmem:[#allocation98_spill] sm:$0xff]  ;;  %v14142_v30 = vrot.slane %v14141_v54, 2  ;;  %v12720_v21 = vpop.f32.mrb[161].mxu1  ;;  %v14154_v57 = vld [vmem:[#allocation24_spill] sm:$0xff] }
 0x2dd   :  { %v14140_v8 = vrot.slane %v14139_v40, 2  ;;  %v2145_v9 = vadd.f32 %v14143_v61, %v1931_v39  ;;  %v3726_v49 = vrot.slane %v12577_v25, 1  ;;  %v3502_v11 = vadd.f32 %v14144_v33, %v3324_v16  ;;  %v14146_v0 = vld [vmem:[#allocation26_spill] sm:$0xff]  ;;  %v12731_v53 = vpop.f32.mrb[162].mxu1  ;;  %v14161_v33 = vld [vmem:[#allocation49_spill] sm:$0xff] }
 0x2de   :  { %v1934_v10 = vadd.f32 %v9788_v13, %v14138_v4  ;;  %v3109_v18 = vadd.f32 %v14142_v30, %v2931_v59  ;;  %v3322_v43 = vadd.f32 %v14145_v58, %v3108_v22  ;;  %v2325_v13 = vadd.f32 %v14146_v0, %v2147_v36  ;;  %v14147_v28 = vld [vmem:[#allocation18_spill] sm:$0xff]  ;;  %v12718_v59 = vpop.f32.mrb[57].mxu0  ;;  %v12742_v61 = vpop.f32.mrb[163].mxu1  ;;  %v14162_v58 = vld [vmem:[#allocation39_spill] sm:$0xff] }
 0x2df   :  { %v3503_v5 = vadd.f32 %v14140_v8, %v3325_v6  ;;  %v14148_v38 = vrot.slane %v14147_v28, 1  ;;  %v14150_v24 = vrot.slane %v14149_v7, 2  ;;  %v14151_v6 = vld [vmem:[#allocation27_spill] sm:$0xff]  ;;  %v12716_v12 = vsel %vm1080_vm2, %v3725_v26, %v3726_v49  ;;  %v12729_v36 = vpop.f32.mrb[58].mxu0  ;;  %v14158_v40 = vld [vmem:[#allocation42_spill] sm:$0xff] }
 0x2e0   :  { %v2323_v60 = vadd.f32 %v14151_v6, %v2145_v9  ;;  %v12723_v39 = vadd.f32 %v12547_v42, %v3502_v11  ;;  %v2539_v16 = vadd.f32 %v14153_v35, %v2325_v13  ;;  %v14155_v22 = vrot.slane %v14154_v57, 1  ;;  %v14156_v26 = vld [vmem:[#allocation99_spill] sm:$0xff]  ;;  %v14164_v13 = vld [vmem:[#allocation12_spill] sm:$0xff]  ;;  %v14168_v6 = vld [vmem:[#allocation65_spill] sm:$0xff] }
 0x2e1   :  { %v2148_v48 = vadd.f32 %v14148_v38, %v1934_v10  ;;  %v12708_v15 = vadd.f32 %v3708_v52, %v3503_v5  ;;  %v3323_v45 = vadd.f32 %v14150_v24, %v3109_v18  ;;  %v3500_v52 = vadd.f32 %v14152_v3, %v3322_v43  ;;  %v14159_v5 = vld [vmem:[#allocation7_spill] sm:$0xff]  ;;  %v12740_v18 = vpop.f32.mrb[59].mxu0 }
 0x2e2   :  { %v14157_v4 = vrot.slane %v14156_v26, 2  ;;  %v2537_v8 = vadd.f32 %v14158_v40, %v2323_v60  ;;  %v14160_v42 = vrot.slane %v14159_v5, 1  ;;  %v3723_v30 = vrot.slane %v12588_v51, 1  ;;  %v14166_v7 = vld [vmem:[#allocation19_spill] sm:$0xff] }
 0x2e3   :  { %v2326_v27 = vadd.f32 %v14155_v22, %v2148_v48  ;;  %v12744_v9 = vadd.f32 %v3706_v63, %v3500_v52  ;;  %v2717_v11 = vadd.f32 %v14161_v33, %v2539_v16  ;;  %v14163_v43 = vrot.slane %v14162_v58, 1  ;;  %v14169_v3 = vld [vmem:[#allocation47_spill] sm:$0xff]  ;;  %v14171_v16 = vld [vmem:[#allocation16_spill] sm:$0xff]  ;;  %v14173_v22 = vld [vmem:[#allocation25_spill] sm:$0xff] }
 0x2e4   :  { %v3501_v10 = vadd.f32 %v14157_v4, %v3323_v45  ;;  %v1932_v54 = vadd.f32 %v14160_v42, %v12586_v31  ;;  %v1951_v28 = vadd.f32 %v12619_v17, %v14164_v13  ;;  %v14165_v31 = vld [vmem:[#allocation50_spill] sm:$0xff]  ;;  %v14167_v24 = vrot.slane %v14166_v7, 1  ;;  %v14175_v4 = vld [vmem:[#allocation13_spill] sm:$0xff]  ;;  %v14180_v58 = vld [vmem:[#allocation8_spill] sm:$0xff]  ;;  %v12781_v13 = vpop.f32.mrb[164].mxu1 }
 0x2e5   :  { %v2540_v0 = vadd.f32 %v14163_v43, %v2326_v27  ;;  %v2715_v48 = vadd.f32 %v14165_v31, %v2537_v8  ;;  %v3724_v63 = vsel %vm1080_vm2, %v3722_v50, %v3723_v30  ;;  %v2950_v60 = vadd.f32 %v14168_v6, %v2717_v11  ;;  %v14176_v50 = vld [vmem:[#allocation63_spill] sm:$0xff]  ;;  %v14178_v42 = vld [vmem:[#allocation81_spill] sm:$0xff]  ;;  %v14179_v33 = vld [vmem:[#allocation30_spill] sm:$0xff] }
 0x2e6   :  { %v12753_v38 = vadd.f32 %v3705_v32, %v3501_v10  ;;  %v2146_v45 = vadd.f32 %v14167_v24, %v1932_v54  ;;  %v14170_v52 = vrot.slane %v14169_v3, 1  ;;  %v2129_v17 = vadd.f32 %v14171_v16, %v1951_v28  ;;  %v14172_v32 = vld [vmem:[#allocation66_spill] sm:$0xff]  ;;  %v14182_v28 = vld [vmem:[#allocation40_spill] sm:$0xff]  ;;  %v14185_v7 = vld [vmem:[#allocation17_spill] sm:$0xff] }
 0x2e7   :  { %v3743_v19 = vrot.slane %v12621_v20, 1  ;;  %v2948_v57 = vadd.f32 %v14172_v32, %v2715_v48  ;;  %v14174_v27 = vrot.slane %v14173_v22, 1  ;;  %v1949_v10 = vadd.f32 %v14175_v4, %v12632_v23  ;;  %v14184_v48 = vld [vmem:[#allocation82_spill] sm:$0xff]  ;;  %v14186_v3 = vld [vmem:[#allocation79_spill] sm:$0xff] }
 0x2e8   :  { %v2718_v35 = vadd.f32 %v14170_v52, %v2540_v0  ;;  %v3740_v40 = vrot.slane %v12634_v2, 1  ;;  %v14177_v8 = vrot.slane %v14176_v50, 1  ;;  %v3164_v54 = vadd.f32 %v14178_v42, %v2950_v60  ;;  %v12779_v0 = vpop.f32.mrb[60].mxu0  ;;  %v12790_v60 = vpop.f32.mrb[165].mxu1  ;;  %v14190_v22 = vld [vmem:[#allocation14_spill] sm:$0xff]  ;;  %v14194_v42 = vld [vmem:[#allocation93_spill] sm:$0xff] }
 0x2e9   :  { %v2324_v26 = vadd.f32 %v14174_v27, %v2146_v45  ;;  %v2343_v11 = vadd.f32 %v14179_v33, %v2129_v17  ;;  %v14181_v43 = vrot.slane %v14180_v58, 1  ;;  %v14183_v31 = vrot.slane %v14182_v28, 1  ;;  %v12788_v6 = vpop.f32.mrb[61].mxu0  ;;  %v14189_v17 = vld [vmem:[#allocation37_spill] sm:$0xff]  ;;  %v14195_v58 = vld [vmem:[#allocation31_spill] sm:$0xff] }
 0x2ea   :  { %v2951_v5 = vadd.f32 %v14177_v8, %v2718_v35  ;;  %v3162_v2 = vadd.f32 %v14184_v48, %v2948_v57  ;;  %v2127_v24 = vadd.f32 %v14185_v7, %v1949_v10  ;;  %v13964_v45 = vrot.slane %v12647_v47, 1  ;;  %v14188_v35 = vld [vmem:[#allocation92_spill] sm:$0xff]  ;;  %v12798_v4 = vpop.f32.mrb[62].mxu0  ;;  %v12800_v57 = vpop.f32.mrb[166].mxu1 }
 0x2eb   :  { %v1952_v20 = vadd.f32 %v12645_v29, %v14181_v43  ;;  %v2538_v23 = vadd.f32 %v14183_v31, %v2324_v26  ;;  %v14187_v52 = vrot.slane %v14186_v3, 1  ;;  %v3342_v16 = vadd.f32 %v14188_v35, %v3164_v54  ;;  %v14192_v10 = vld [vmem:[#allocation48_spill] sm:$0xff]  ;;  %v12809_v54 = vpop.f32.mrb[63].mxu0  ;;  %v14199_v3 = vld [vmem:[#allocation53_spill] sm:$0xff] }
 0x2ec   :  { %v2521_v32 = vadd.f32 %v14189_v17, %v2343_v11  ;;  %v14191_v27 = vrot.slane %v14190_v22, 1  ;;  %v14193_v50 = vrot.slane %v14192_v10, 1  ;;  %v3340_v33 = vadd.f32 %v14194_v42, %v3162_v2  ;;  %v12811_v11 = vpop.f32.mrb[167].mxu1  ;;  %v14198_v48 = vld [vmem:[#allocation112_spill] sm:$0xff]  ;;  %v14206_v42 = vld [vmem:[#allocation9_spill] sm:$0xff] }
 0x2ed   :  { %v3165_v29 = vadd.f32 %v14187_v52, %v2951_v5  ;;  %v2341_v43 = vadd.f32 %v14195_v58, %v2127_v24  ;;  %v3745_v5 = vsel %vm1080_vm2, %v3743_v19, %v13964_v45  ;;  %v3556_v7 = vadd.f32 %v14198_v48, %v3342_v16  ;;  %v14202_v17 = vld [vmem:[#allocation64_spill] sm:$0xff]  ;;  %v14205_v19 = vld [vmem:[#allocation38_spill] sm:$0xff]  ;;  %v14244_v45 = vld [vmem:[#allocation109_spill] sm:$0xff] }
 0x2ee   :  { %v2130_v26 = vadd.f32 %v14191_v27, %v1952_v20  ;;  %v2716_v8 = vadd.f32 %v14193_v50, %v2538_v23  ;;  %v14196_v20 = vld [vmem:[#allocation90_spill] sm:$0xff]  ;;  %v2735_v52 = vadd.f32 %v14199_v3, %v2521_v32  ;;  %v14200_v23 = vld [vmem:[#allocation28_spill] sm:$0xff]  ;;  %v14203_v24 = vrot.slane %v14202_v17, 1  ;;  %v14204_v27 = vld [vmem:[#allocation113_spill] sm:$0xff] }
 0x2ef   :  { %v14197_v28 = vrot.slane %v14196_v20, 1  ;;  %v14201_v35 = vrot.slane %v14200_v23, 1  ;;  %v3554_v10 = vadd.f32 %v14204_v27, %v3340_v33  ;;  %v2519_v50 = vadd.f32 %v14205_v19, %v2341_v43  ;;  %v14208_v20 = vld [vmem:[#allocation110_spill] sm:$0xff]  ;;  %v14210_v32 = vld [vmem:[#allocation69_spill] sm:$0xff]  ;;  %v14211_v3 = vld [vmem:[#allocation35_spill] sm:$0xff] }
 0x2f0   :  { %v2949_v22 = vadd.f32 %v14203_v24, %v2716_v8  ;;  %v14207_v58 = vrot.slane %v14206_v42, 1  ;;  %v3734_v16 = vadd.f32 %v12716_v12, %v3556_v7  ;;  %v2968_v48 = vadd.f32 %v14210_v32, %v2735_v52  ;;  %v14215_v24 = vld [vmem:[#allocation54_spill] sm:$0xff]  ;;  %v14216_v27 = vld [vmem:[#allocation15_spill] sm:$0xff]  ;;  %v14220_v7 = vld [vmem:[#allocation77_spill] sm:$0xff] }
 0x2f1   :  { %v3343_v31 = vadd.f32 %v14197_v28, %v3165_v29  ;;  %v2344_v2 = vadd.f32 %v14201_v35, %v2130_v26  ;;  %v14209_v29 = vrot.slane %v14208_v20, 1  ;;  %v14212_v26 = vrot.slane %v14211_v3, 1  ;;  %v14213_v35 = vld [vmem:[#allocation80_spill] sm:$0xff] }
 0x2f2   :  { %v1950_v46 = vadd.f32 %v14207_v58, %v12661_v56  ;;  %v14214_v8 = vrot.slane %v14213_v35, 1  ;;  %v3732_v33 = vadd.f32 %v3724_v63, %v3554_v10  ;;  %v2733_v43 = vadd.f32 %v14215_v24, %v2519_v50  ;;  %v14221_v63 = vld [vmem:[#allocation91_spill] sm:$0xff]  ;;  %v14223_v50 = vld [vmem:[#allocation70_spill] sm:$0xff] }
 0x2f3   :  { %v3557_v28 = vadd.f32 %v14209_v29, %v3343_v31  ;;  %v2522_v23 = vadd.f32 %v14212_v26, %v2344_v2  ;;  %v14217_v19 = vrot.slane %v14216_v27, 1  ;;  %v14218_v31 = vld [vmem:[#allocation51_spill] sm:$0xff]  ;;  %v3146_v52 = vadd.f32 %v14220_v7, %v2968_v48  ;;  %v12843_v2 = vpop.f32.mrb[64].mxu0  ;;  %v12845_v29 = vpop.f32.mrb[168].mxu1 }
 0x2f4   :  { %v3163_v17 = vadd.f32 %v14214_v8, %v2949_v22  ;;  %v14219_v58 = vrot.slane %v14218_v31, 1  ;;  %v13963_v20 = vrot.slane %v12663_v62, 1  ;;  %v14222_v22 = vrot.slane %v14221_v63, 1  ;;  %v12855_v26 = vpop.f32.mrb[169].mxu1  ;;  %v14226_v48 = vld [vmem:[#allocation67_spill] sm:$0xff]  ;;  %v14228_v8 = vld [vmem:[#allocation96_spill] sm:$0xff] }
 0x2f5   :  { %v2128_v42 = vadd.f32 %v14217_v19, %v1950_v46  ;;  %v3735_v56 = vadd.f32 %v3726_v49, %v3557_v28  ;;  %v2966_v32 = vadd.f32 %v14223_v50, %v2733_v43  ;;  %v14224_v46 = vld [vmem:[#allocation29_spill] sm:$0xff]  ;;  %v3885_v49 = vrot.slane %v12702_v1, 2  ;;  %v12853_v28 = vpop.f32.mrb[65].mxu0  ;;  %v12866_v19 = vpop.f32.mrb[170].mxu1  ;;  %v14229_v1 = vld [vmem:[#allocation111_spill] sm:$0xff] }
 0x2f6   :  { %v2736_v12 = vadd.f32 %v14219_v58, %v2522_v23  ;;  %v3341_v10 = vadd.f32 %v14222_v22, %v3163_v17  ;;  %v14225_v3 = vrot.slane %v14224_v46, 1  ;;  %v14227_v23 = vrot.slane %v14226_v48, 1  ;;  %v12864_v27 = vpop.f32.mrb[66].mxu0  ;;  %v14231_v58 = vld [vmem:[#allocation36_spill] sm:$0xff]  ;;  %v14233_v22 = vld [vmem:[#allocation78_spill] sm:$0xff]  ;;  %v12876_v46 = vpop.f32.mrb[171].mxu1 }
 0x2f7   :  { %v3360_v24 = vadd.f32 %v14228_v8, %v3146_v52  ;;  %v3742_v17 = vsel %vm1080_vm2, %v3740_v40, %v13963_v20  ;;  %v4081_v43 = vrot.slane %v12704_v41, 2  ;;  %v14232_v7 = vrot.slane %v14231_v58, 1  ;;  %v12874_v50 = vpop.f32.mrb[67].mxu0  ;;  %v14234_v40 = vld [vmem:[#allocation75_spill] sm:$0xff]  ;;  %v14236_v48 = vld [vmem:[#allocation108_spill] sm:$0xff] }
 0x2f8   :  { %v2342_v25 = vadd.f32 %v14225_v3, %v2128_v42  ;;  %v2969_v35 = vadd.f32 %v14227_v23, %v2736_v12  ;;  %v14230_v42 = vrot.slane %v14229_v1, 1  ;;  %v3144_v12 = vadd.f32 %v14233_v22, %v2966_v32  ;;  %v14237_v1 = vld [vmem:[#allocation52_spill] sm:$0xff]  ;;  %v14240_v22 = vld [vmem:[#allocation94_spill] sm:$0xff] }
 0x2f9   :  { %v3882_v52 = vrot.slane %v12718_v59, 2  ;;  %v14235_v41 = vrot.slane %v14234_v40, 1  ;;  %v3538_v23 = vadd.f32 %v14236_v48, %v3360_v24  ;;  %v4078_v8 = vrot.slane %v12720_v21, 2  ;;  %v14239_v59 = vld [vmem:[#allocation97_spill] sm:$0xff]  ;;  %v14242_v21 = vld [vmem:[#allocation68_spill] sm:$0xff] }
 0x2fa   :  { %v3555_v31 = vadd.f32 %v14230_v42, %v3341_v10  ;;  %v2520_v63 = vadd.f32 %v14232_v7, %v2342_v25  ;;  %v3886_v10 = vrot.slane %v12729_v36, 2  ;;  %v14238_v32 = vrot.slane %v14237_v1, 1 }
 0x2fb   :  { %v3147_v3 = vadd.f32 %v14235_v41, %v2969_v35  ;;  %v3358_v58 = vadd.f32 %v14239_v59, %v3144_v12  ;;  %v4082_v7 = vrot.slane %v12731_v53, 2  ;;  %v14241_v20 = vrot.slane %v14240_v22, 1 }
 0x2fc   :  { %v3733_v25 = vadd.f32 %v3723_v30, %v3555_v31  ;;  %v2734_v42 = vadd.f32 %v14238_v32, %v2520_v63  ;;  %v3752_v35 = vadd.f32 %v3745_v5, %v3538_v23  ;;  %v3887_v24 = vsel %vm2901_vm3, %v3885_v49, %v3886_v10  ;;  %v14245_v63 = vld [vmem:[#allocation106_spill] sm:$0xff]  ;;  %v12905_v49 = vpop.f32.mrb[68].mxu0 }
 0x2fd   :  { %v3361_v40 = vadd.f32 %v14241_v20, %v3147_v3  ;;  %v3895_v41 = vadd.f32 %v3886_v10, %v3735_v56  ;;  %v14243_v48 = vrot.slane %v14242_v21, 1  ;;  %v3536_v51 = vadd.f32 %v14244_v45, %v3358_v58  ;;  %v12907_v3 = vpop.f32.mrb[172].mxu1  ;;  %v14247_v45 = vld [vmem:[#allocation76_spill] sm:$0xff] }
 0x2fe   :  { %v3894_v30 = vadd.f32 %v3887_v24, %v3734_v16  ;;  %v12898_v31 = vsel %vm2901_vm3, %v4081_v43, %v4082_v7  ;;  %v14246_v12 = vrot.slane %v14245_v63, 1  ;;  %v3883_v20 = vrot.slane %v12740_v18, 2  ;;  %v12915_v59 = vpop.f32.mrb[173].mxu1 }
 0x2ff   :  { %v2967_v36 = vadd.f32 %v14243_v48, %v2734_v42  ;;  %v4079_v5 = vrot.slane %v12742_v61, 2  ;;  %v3903_v56 = vrot.slane %v12779_v0, 2  ;;  %v14248_v16 = vrot.slane %v14247_v45, 1  ;;  %v12913_v42 = vpop.f32.mrb[69].mxu0  ;;  %v12925_v24 = vpop.f32.mrb[174].mxu1 }
 0x300   :  { %v3539_v1 = vadd.f32 %v14246_v12, %v3361_v40  ;;  %v3750_v10 = vadd.f32 %v3742_v17, %v3536_v51  ;;  %v4099_v43 = vrot.slane %v12781_v13, 2  ;;  %v3900_v32 = vrot.slane %v12788_v6, 2  ;;  %v10034_v17 = vpop.f32.mrb[70].mxu0  ;;  %v14250_v13 = vld [vmem:[#allocation95_spill] sm:$0xff]  ;;  %v12931_v63 = vpop.f32.mrb[175].mxu1 }
 0x301   :  { %v3145_v23 = vadd.f32 %v14248_v16, %v2967_v36  ;;  %v14249_v18 = vrot.slane %v12647_v47, 1  ;;  %v3884_v0 = vsel %vm2901_vm3, %v3882_v52, %v3883_v20  ;;  %v3893_v22 = vadd.f32 %v3883_v20, %v3733_v25  ;;  %v3866_v51 = vpop.f32.mrb[71].mxu0 }
 0x302   :  { %v12923_v40 = vsel %vm2901_vm3, %v4078_v8, %v4079_v5  ;;  %v14251_v6 = vrot.slane %v14250_v13, 1  ;;  %v3892_v48 = vadd.f32 %v3884_v0, %v3732_v33  ;;  %v4096_v36 = vrot.slane %v12790_v60, 2  ;;  %v12962_v13 = vpop.f32.mrb[176].mxu1 }
 0x303   :  { %v3753_v58 = vadd.f32 %v14249_v18, %v3539_v1  ;;  %v3904_v47 = vrot.slane %v12798_v4, 2  ;;  %v4100_v52 = vrot.slane %v12800_v57, 2  ;;  %v3901_v25 = vrot.slane %v12809_v54, 2  ;;  %v14252_v1 = vld [vmem:[#allocation107_spill] sm:$0xff] }
 0x304   :  { %v3359_v21 = vadd.f32 %v14251_v6, %v3145_v23  ;;  %v4097_v8 = vrot.slane %v12811_v11, 2  ;;  %v3921_v12 = vrot.slane %v12843_v2, 2  ;;  %v14253_v20 = vrot.slane %v14252_v1, 1 }
 0x305   :  { %v3905_v33 = vsel %vm2901_vm3, %v3903_v56, %v3904_v47  ;;  %v12940_v16 = vadd.f32 %v3904_v47, %v3753_v58  ;;  %v4117_v60 = vrot.slane %v12845_v29, 2  ;;  %v4101_v23 = vsel %vm2901_vm3, %v4099_v43, %v4100_v52  ;;  %v10065_v43 = vpop.f32.mrb[72].mxu0 }
 0x306   :  { %v3537_v45 = vadd.f32 %v14253_v20, %v3359_v21  ;;  %v12943_v4 = vadd.f32 %v3905_v33, %v3752_v35  ;;  %v12946_v57 = vadd.f32 %v4100_v52, %v3895_v41  ;;  %v3902_v54 = vsel %vm2901_vm3, %v3900_v32, %v3901_v25  ;;  %v4207_v6 = vpop.f32.mrb[73].mxu0  ;;  %v4403_v21 = vpop.f32.mrb[177].mxu1 }
 0x307   :  { %v14254_v11 = vrot.slane %v12663_v62, 1  ;;  %v12951_v18 = vadd.f32 %v4101_v23, %v3894_v30  ;;  %v12953_v0 = vadd.f32 %v3902_v54, %v3750_v10  ;;  %v4098_v56 = vsel %vm2901_vm3, %v4096_v36, %v4097_v8  ;;  %v10066_v36 = vpop.f32.mrb[74].mxu0  ;;  %v12973_v47 = vpop.f32.mrb[178].mxu1 }
 0x308   :  { %v12956_v58 = vadd.f32 %v4098_v56, %v3892_v48  ;;  %v12958_v29 = vadd.f32 %v4097_v8, %v3893_v22  ;;  %v3918_v35 = vrot.slane %v12853_v28, 2  ;;  %v4114_v41 = vrot.slane %v12855_v26, 2  ;;  %v4210_v8 = vpop.f32.mrb[75].mxu0 }
 0x309   :  { %v3751_v2 = vadd.f32 %v14254_v11, %v3537_v45  ;;  %v3922_v62 = vrot.slane %v12864_v27, 2  ;;  %v4118_v30 = vrot.slane %v12866_v19, 2  ;;  %v3919_v10 = vrot.slane %v12874_v50, 2 }
 0x30a   :  { %v4115_v22 = vrot.slane %v12876_v46, 2  ;;  %v3939_v48 = vrot.slane %v12905_v49, 2  ;;  %v4135_v28 = vrot.slane %v12907_v3, 2  ;;  %v3936_v26 = vrot.slane %v12913_v42, 2  ;;  %v12983_v49 = vpop.f32.mrb[179].mxu1 }
 0x30b   :  { %v12964_v32 = vadd.f32 %v3901_v25, %v3751_v2  ;;  %v3923_v52 = vsel %vm2901_vm3, %v3921_v12, %v3922_v62  ;;  %v3931_v27 = vadd.f32 %v3922_v62, %v12625_v37  ;;  %v12980_v50 = vsel %vm2901_vm3, %v4117_v60, %v4118_v30  ;;  %v10091_v56 = vpop.f32.mrb[180].mxu1 }
 0x30c   :  { %v3920_v25 = vsel %vm2901_vm3, %v3918_v35, %v3919_v10  ;;  %v3930_v3 = vadd.f32 %v3923_v52, %v12637_v34  ;;  %v3929_v1 = vadd.f32 %v3919_v10, %v12641_v44  ;;  %v12991_v37 = vsel %vm2901_vm3, %v4114_v41, %v4115_v22  ;;  %v4419_v62 = vpop.f32.mrb[181].mxu1 }
 0x30d   :  { %v3928_v42 = vadd.f32 %v3920_v25, %v12650_v55  ;;  %v4132_v12 = vrot.slane %v12915_v59, 2  ;;  %v3940_v20 = vrot.slane %v10034_v17, 2  ;;  %v4136_v45 = vrot.slane %v12925_v24, 2 }
 0x30e   :  { %v3937_v33 = vrot.slane %v3866_v51, 2  ;;  %v4133_v60 = vrot.slane %v12931_v63, 2  ;;  %v4277_v23 = vrot.slane %v10065_v43, 2  ;;  %v4473_v34 = vrot.slane %v12962_v13, 2  ;;  %v10069_v63 = vpop.f32.mrb[76].mxu0 }
 0x30f   :  { %v4274_v54 = vrot.slane %v4207_v6, 2  ;;  %v3941_v55 = vsel %vm2901_vm3, %v3939_v48, %v3940_v20  ;;  %v12999_v44 = vadd.f32 %v3940_v20, %v12708_v15  ;;  %v4137_v11 = vsel %vm2901_vm3, %v4135_v28, %v4136_v45  ;;  %v4223_v13 = vpop.f32.mrb[77].mxu0  ;;  %v10092_v28 = vpop.f32.mrb[182].mxu1 }
 0x310   :  { %v13002_v2 = vadd.f32 %v4136_v45, %v3931_v27  ;;  %v3948_v59 = vadd.f32 %v3941_v55, %v12723_v39  ;;  %v13005_v17 = vadd.f32 %v4137_v11, %v3930_v3  ;;  %v3938_v24 = vsel %vm2901_vm3, %v3936_v26, %v3937_v33  ;;  %v4422_v3 = vpop.f32.mrb[183].mxu1 }
 0x311   :  { %v13009_v51 = vadd.f32 %v3937_v33, %v12753_v38  ;;  %v13012_v35 = vadd.f32 %v3938_v24, %v12744_v9  ;;  %v4134_v15 = vsel %vm2901_vm3, %v4132_v12, %v4133_v60  ;;  %v13015_v41 = vadd.f32 %v4133_v60, %v3929_v1  ;;  %v10070_v38 = vpop.f32.mrb[78].mxu0 }
 0x312   :  { %v4470_v43 = vrot.slane %v4403_v21, 2  ;;  %v13017_v39 = vadd.f32 %v4134_v15, %v3928_v42  ;;  %v4278_v10 = vrot.slane %v10066_v36, 2  ;;  %v4474_v6 = vrot.slane %v12973_v47, 2  ;;  %v4226_v25 = vpop.f32.mrb[79].mxu0 }
 0x313   :  { %v4275_v48 = vrot.slane %v4210_v8, 2  ;;  %v4471_v26 = vrot.slane %v12983_v49, 2  ;;  %v4295_v52 = vrot.slane %v10069_v63, 2  ;;  %v4491_v9 = vrot.slane %v10091_v56, 2  ;;  %v10073_v24 = vpop.f32.mrb[80].mxu0 }
 0x314   :  { %v4292_v27 = vrot.slane %v4223_v13, 2  ;;  %v4279_v1 = vsel %vm2901_vm3, %v4277_v23, %v4278_v10  ;;  %v4287_v21 = vadd.f32 %v4278_v10, %v12946_v57  ;;  %v4475_v36 = vsel %vm2901_vm3, %v4473_v34, %v4474_v6 }
 0x315   :  { %v4276_v42 = vsel %vm2901_vm3, %v4274_v54, %v4275_v48  ;;  %v4286_v8 = vadd.f32 %v4279_v1, %v12951_v18  ;;  %v4285_v20 = vadd.f32 %v4275_v48, %v12958_v29  ;;  %v4472_v45 = vsel %vm2901_vm3, %v4470_v43, %v4471_v26 }
 0x316   :  { %v4284_v12 = vadd.f32 %v4276_v42, %v12956_v58  ;;  %v4488_v33 = vrot.slane %v4419_v62, 2  ;;  %v4090_v57 = vadd.f32 %v12898_v31, %v12943_v4  ;;  %v4091_v60 = vadd.f32 %v4082_v7, %v12940_v16  ;;  %v10095_v31 = vpop.f32.mrb[184].mxu1 }
 0x317   :  { %v4296_v23 = vrot.slane %v10070_v38, 2  ;;  %v4492_v34 = vrot.slane %v10092_v28, 2  ;;  %v4088_v18 = vadd.f32 %v12923_v40, %v12953_v0  ;;  %v4089_v58 = vadd.f32 %v4079_v5, %v12964_v32  ;;  %v4239_v0 = vpop.f32.mrb[81].mxu0  ;;  %v4435_v63 = vpop.f32.mrb[185].mxu1 }
 0x318   :  { %v4293_v29 = vrot.slane %v4226_v25, 2  ;;  %v4489_v11 = vrot.slane %v4422_v3, 2  ;;  %v4126_v4 = vadd.f32 %v12980_v50, %v3948_v59  ;;  %v10074_v15 = vpop.f32.mrb[82].mxu0  ;;  %v10096_v43 = vpop.f32.mrb[186].mxu1  ;;  %v4313_v59 = vrot.slane %v10073_v24, 2 }
 0x319   :  { %v4297_v54 = vsel %vm2901_vm3, %v4295_v52, %v4296_v23  ;;  %v4305_v55 = vadd.f32 %v4296_v23, %v4091_v60  ;;  %v4493_v7 = vsel %vm2901_vm3, %v4491_v9, %v4492_v34  ;;  %v13046_v16 = vadd.f32 %v4492_v34, %v4287_v21  ;;  %v4242_v10 = vpop.f32.mrb[83].mxu0  ;;  %v4438_v48 = vpop.f32.mrb[187].mxu1 }
 0x31a   :  { %v4304_v53 = vadd.f32 %v4297_v54, %v4090_v57  ;;  %v4294_v40 = vsel %vm2901_vm3, %v4292_v27, %v4293_v29  ;;  %v13049_v61 = vadd.f32 %v4493_v7, %v4286_v8  ;;  %v4303_v32 = vadd.f32 %v4293_v29, %v4089_v58 }
 0x31b   :  { %v4302_v5 = vadd.f32 %v4294_v40, %v4088_v18  ;;  %v4490_v56 = vsel %vm2901_vm3, %v4488_v33, %v4489_v11  ;;  %v13054_v50 = vadd.f32 %v4489_v11, %v4285_v20  ;;  %v4509_v62 = vrot.slane %v10095_v31, 2 }
 0x31c   :  { %v13052_v13 = vadd.f32 %v4490_v56, %v4284_v12  ;;  %v4310_v38 = vrot.slane %v4239_v0, 2  ;;  %v4506_v28 = vrot.slane %v4435_v63, 2  ;;  %v4314_v52 = vrot.slane %v10074_v15, 2 }
 0x31d   :  { %v4510_v9 = vrot.slane %v10096_v43, 2  ;;  %v4311_v27 = vrot.slane %v4242_v10, 2  ;;  %v4507_v25 = vrot.slane %v4438_v48, 2  ;;  %v4127_v3 = vadd.f32 %v4118_v30, %v12999_v44  ;;  %v10077_v44 = vpop.f32.mrb[84].mxu0 }
 0x31e   :  { %v4124_v1 = vadd.f32 %v12991_v37, %v13012_v35  ;;  %v4315_v21 = vsel %vm2901_vm3, %v4313_v59, %v4314_v52  ;;  %v4323_v42 = vadd.f32 %v4314_v52, %v13002_v2  ;;  %v4125_v12 = vadd.f32 %v4115_v22, %v13009_v51  ;;  %v10099_v35 = vpop.f32.mrb[188].mxu1  ;;  %v4255_v23 = vpop.f32.mrb[85].mxu0 }
 0x31f   :  { %v4511_v8 = vsel %vm2901_vm3, %v4509_v62, %v4510_v9  ;;  %v4322_v20 = vadd.f32 %v4315_v21, %v13005_v17  ;;  %v4312_v33 = vsel %vm2901_vm3, %v4310_v38, %v4311_v27  ;;  %v4321_v19 = vadd.f32 %v4311_v27, %v13015_v41  ;;  %v4451_v46 = vpop.f32.mrb[189].mxu1  ;;  %v10078_v51 = vpop.f32.mrb[86].mxu0 }
 0x320   :  { %v4508_v30 = vsel %vm2901_vm3, %v4506_v28, %v4507_v25  ;;  %v4320_v37 = vadd.f32 %v4312_v33, %v13017_v39  ;;  %v4482_v57 = vadd.f32 %v4475_v36, %v4304_v53  ;;  %v4483_v2 = vadd.f32 %v4474_v6, %v4305_v55  ;;  %v10100_v34 = vpop.f32.mrb[190].mxu1  ;;  %v4258_v39 = vpop.f32.mrb[87].mxu0 }
 0x321   :  { %v4480_v60 = vadd.f32 %v4472_v45, %v4302_v5  ;;  %v4481_v22 = vadd.f32 %v4471_v26, %v4303_v32  ;;  %v4331_v17 = vrot.slane %v10077_v44, 2  ;;  %v4527_v41 = vrot.slane %v10099_v35, 2  ;;  %v4454_v54 = vpop.f32.mrb[191].mxu1  ;;  %v10109_v56 = vpop.f32.mrb[88].mxu0 }
 0x322   :  { %v4328_v18 = vrot.slane %v4255_v23, 2  ;;  %v4332_v58 = vrot.slane %v10078_v51, 2  ;;  %v4528_v29 = vrot.slane %v10100_v34, 2  ;;  %v4524_v11 = vrot.slane %v4451_v46, 2  ;;  %v4599_v43 = vpop.f32.mrb[89].mxu0 }
 0x323   :  { %v4329_v36 = vrot.slane %v4258_v39, 2  ;;  %v4525_v24 = vrot.slane %v4454_v54, 2  ;;  %v4847_v47 = vsel %vm1080_vm2, %v12671_v14, 0  ;;  %v10110_v62 = vpop.f32.mrb[90].mxu0  ;;  %v4669_v10 = vrot.slane %v10109_v56, 2 }
 0x324   :  { %v4333_v6 = vsel %vm2901_vm3, %v4331_v17, %v4332_v58  ;;  %v4341_v45 = vadd.f32 %v4332_v58, %v4127_v3  ;;  %v4529_v49 = vsel %vm2901_vm3, %v4527_v41, %v4528_v29  ;;  %v4537_v26 = vadd.f32 %v4528_v29, %v4323_v42  ;;  %10126 = vmatpush3.bf16.msra.mxu1 %v4847_v47  ;;  %v4602_v38 = vpop.f32.mrb[91].mxu0 }
 0x325   :  { %v4340_v55 = vadd.f32 %v4333_v6, %v4126_v4  ;;  %v4536_v31 = vadd.f32 %v4529_v49, %v4322_v20  ;;  %v4330_v53 = vsel %vm2901_vm3, %v4328_v18, %v4329_v36  ;;  %v4339_v7 = vadd.f32 %v4329_v36, %v4125_v12  ;;  %v10113_v21 = vpop.f32.mrb[92].mxu0 }
 0x326   :  { %v4338_v40 = vadd.f32 %v4330_v53, %v4124_v1  ;;  %v4526_v0 = vsel %vm2901_vm3, %v4524_v11, %v4525_v24  ;;  %v4535_v63 = vadd.f32 %v4525_v24, %v4321_v19  ;;  %v4519_v5 = vadd.f32 %v4510_v9, %v4341_v45  ;;  %v4615_v42 = vpop.f32.mrb[93].mxu0 }
 0x327   :  { %v4534_v32 = vadd.f32 %v4526_v0, %v4320_v37  ;;  %v4518_v14 = vadd.f32 %v4511_v8, %v4340_v55  ;;  %v4517_v15 = vadd.f32 %v4507_v25, %v4339_v7  ;;  %v4670_v48 = vrot.slane %v10110_v62, 2  ;;  %v10114_v8 = vpop.f32.mrb[94].mxu0 }
 0x328   :  { %v4516_v59 = vadd.f32 %v4508_v30, %v4338_v40  ;;  %v4666_v4 = vrot.slane %v4599_v43, 2  ;;  %v4667_v28 = vrot.slane %v4602_v38, 2  ;;  %v4687_v12 = vrot.slane %v10113_v21, 2  ;;  %v4618_v33 = vpop.f32.mrb[95].mxu0 }
 0x329   :  { %v4671_v52 = vsel %vm2901_vm3, %v4669_v10, %v4670_v48  ;;  %v4679_v27 = vadd.f32 %v4670_v48, %v13046_v16  ;;  %v4688_v20 = vrot.slane %v10114_v8, 2  ;;  %v4684_v19 = vrot.slane %v4615_v42, 2 }
 0x32a   :  { %v4678_v3 = vadd.f32 %v4671_v52, %v13049_v61  ;;  %v4668_v9 = vsel %vm2901_vm3, %v4666_v4, %v4667_v28  ;;  %v4677_v1 = vadd.f32 %v4667_v28, %v13054_v50  ;;  %v4685_v30 = vrot.slane %v4618_v33, 2  ;;  %v10789_v33 = vld [vmem:[%s13827_s3 + $0x20] sm:$0xff]  }
 0x32b   :  { %v4676_v25 = vadd.f32 %v4668_v9, %v13052_v13  ;;  %v4689_v37 = vsel %vm2901_vm3, %v4687_v12, %v4688_v20  ;;  %v4697_v44 = vadd.f32 %v4688_v20, %v4483_v2  ;;  %v10117_v13 = vpop.f32.mrb[96].mxu0  ;;  %10147 = vmatprep.subr.bf16.mxu0 %v10789_v33 }
 0x32c   :  { %v4696_v16 = vadd.f32 %v4689_v37, %v4482_v57  ;;  %v4686_v61 = vsel %vm2901_vm3, %v4684_v19, %v4685_v30  ;;  %v4695_v35 = vadd.f32 %v4685_v30, %v4481_v22  ;;  %v4631_v34 = vpop.f32.mrb[97].mxu0  ;;  %v4705_v18 = vrot.slane %v10117_v13, 2  ;;  %v10790_v19 = vld [vmem:[%s13827_s3 + $0x10] sm:$0xff]   ;;  %v10791_v30 = vld [vmem:[%s13827_s3 + $0x28] sm:$0x7f]   ;;  %10148 = vmatpush3.bf16.msra.mxu0 %v10789_v33 }
 0x32d   :  { %v4737_v23 = vmax.f32 %v4679_v27, %v4697_v44  ;;  %v4694_v46 = vadd.f32 %v4686_v61, %v4480_v60  ;;  %v10118_v41 = vpop.f32.mrb[98].mxu0  ;;  %v4702_v39 = vrot.slane %v4631_v34, 2  ;;  %10135 = vmatprep.subr.bf16.mxu1 %v10790_v19  ;;  %10672 = vmatprep.subr.msk.bf16.mxu0 %vm1080_vm2, %v10791_v30  ;;  %v5061_v37 = vsel %vm1080_vm2, %v10791_v30, 0  ;;  %v10794_v44 = vld [vmem:[%s13827_s3 + $0x40] sm:$0xff]   ;;  %v10796_v34 = vld [vmem:[%s13827_s3 + $0x48] sm:$0x7f]  }
 0x32e   :  { %v4736_v50 = vmax.f32 %v4678_v3, %v4696_v16  ;;  %v4735_v17 = vmax.f32 %v4677_v1, %v4695_v35  ;;  %v4706_v58 = vrot.slane %v10118_v41, 2  ;;  %v4634_v29 = vpop.f32.mrb[99].mxu0  ;;  %v10792_v35 = vld [vmem:[%s13827_s3 + $0x18] sm:$0x7f]  }
 0x32f   :  { %v4734_v51 = vmax.f32 %v4676_v25, %v4694_v46  ;;  %v4703_v54 = vrot.slane %v4634_v29, 2  ;;  %v10121_v60 = vpop.f32.mrb[100].mxu0  ;;  %v4959_v46 = vsel %vm1080_vm2, %v10792_v35, 0  ;;  %v5275_v29 = vsel %vm1080_vm2, %v10796_v34, 0 }
 0x330   :  { %v4707_v11 = vsel %vm2901_vm3, %v4705_v18, %v4706_v58  ;;  %v4715_v2 = vadd.f32 %v4706_v58, %v4537_v26  ;;  %v4647_v47 = vpop.f32.mrb[101].mxu0  ;;  %v4723_v45 = vrot.slane %v10121_v60, 2  ;;  %10150 = vmatpush3.bf16.msra.mxu0 %v5061_v37  ;;  %v10821_v37 = vld [vmem:[%s13827_s3 + $0x110] sm:$0xff]  }
 0x331   :  { %v4714_v57 = vadd.f32 %v4707_v11, %v4536_v31  ;;  %v4704_v36 = vsel %vm2901_vm3, %v4702_v39, %v4703_v54  ;;  %v4713_v22 = vadd.f32 %v4703_v54, %v4535_v63  ;;  %v10122_v6 = vpop.f32.mrb[102].mxu0  ;;  %v4720_v53 = vrot.slane %v4647_v47, 2  ;;  %v8763_v63 = vld [vmem:[%s13826_s2] ss:$0 sm:$0xff]  ;;  %s10914_s2 = smov 86   ;;  %10171 = vmatprep.subr.bf16.mxu0 %v10794_v44  ;;  %v10798_v54 = vld [vmem:[%s13827_s3 + $0x50] sm:$0xff]  }
 0x332   :  { %v4712_v24 = vadd.f32 %v4704_v36, %v4534_v32  ;;  %v4724_v49 = vrot.slane %v10122_v6, 2  ;;  %v4650_v55 = vpop.f32.mrb[103].mxu0  ;;  %v10797_v39 = vld [vmem:[%s13827_s3 + $0x60] sm:$0xff]   ;;  %v10800_v6 = vld [vmem:[%s13827_s3 + $0x58] sm:$0x7f]  }
 0x333   :  { %v4721_v7 = vrot.slane %v4650_v55, 2  ;;  %v5367_v55 = vsel %vm1080_vm2, %v10800_v6, 0 }
 0x334   :  { %v4725_v40 = vsel %vm2901_vm3, %v4723_v45, %v4724_v49  ;;  %v4733_v0 = vadd.f32 %v4724_v49, %v4519_v5  ;;  %v10801_v49 = vld [vmem:[%s13827_s3 + $0x70] sm:$0xff]  }
 0x335   :  { %v4732_v56 = vadd.f32 %v4725_v40, %v4518_v14  ;;  %v4722_v43 = vsel %vm2901_vm3, %v4720_v53, %v4721_v7  ;;  %v4731_v26 = vadd.f32 %v4721_v7, %v4517_v15  ;;  %v10802_v53 = vld [vmem:[%s13827_s3 + $0x80] sm:$0xff]  }
 0x336   :  { %v4741_v31 = vmax.f32 %v4715_v2, %v4733_v0  ;;  %v4730_v62 = vadd.f32 %v4722_v43, %v4516_v59  ;;  %v10803_v0 = vld [vmem:[%s13827_s3 + $0x78] sm:$0x7f]  }
 0x337   :  { %v4740_v10 = vmax.f32 %v4714_v57, %v4732_v56  ;;  %v4739_v32 = vmax.f32 %v4713_v22, %v4731_v26  ;;  %v10804_v56 = vld [vmem:[%s13827_s3 + $0x88] sm:$0x7f]   ;;  %v5575_v43 = vsel %vm1080_vm2, %v10803_v0, 0  ;;  %v10805_v26 = vld [vmem:[%s13827_s3 + $0x90] sm:$0xff]  }
 0x338   :  { %v4745_v48 = vmax.f32 %v4737_v23, %v4741_v31  ;;  %v4738_v38 = vmax.f32 %v4712_v24, %v4730_v62  ;;  %v10799_v24 = vld [vmem:[%s13827_s3 + $0x68] sm:$0x7f]   ;;  %v5679_v31 = vsel %vm1080_vm2, %v10804_v56, 0  ;;  %v10806_v62 = vld [vmem:[%s13827_s3 + $0xa0] sm:$0xff]  }
 0x339   :  { %v4744_v4 = vmax.f32 %v4736_v50, %v4740_v10  ;;  %v4743_v28 = vmax.f32 %v4735_v17, %v4739_v32  ;;  %v10793_v50 = vld [vmem:[%s13827_s3 + $0x30] sm:$0xff]   ;;  %v5471_v45 = vsel %vm1080_vm2, %v10799_v24, 0  ;;  %v10807_v10 = vld [vmem:[%s13827_s3 + $0x98] sm:$0x7f]  }
 0x33a   :  { %v4756_v52 = vadd.f32 %v8763_v63, %v4745_v48  ;;  %v4742_v5 = vmax.f32 %v4734_v51, %v4738_v38  ;;  %v10795_v51 = vld [vmem:[%s13827_s3 + $0x38] sm:$0x7f]   ;;  %v5783_v32 = vsel %vm1080_vm2, %v10807_v10, 0  ;;  %v10809_v48 = vld [vmem:[%s13827_s3 + $0xb0] sm:$0xff]  }
 0x33b   :  { %v4755_v14 = vadd.f32 %v8763_v63, %v4744_v4  ;;  %v4754_v15 = vadd.f32 %v8763_v63, %v4743_v28  ;;  %v5173_v58 = vsel %vm1080_vm2, %v10795_v51, 0  ;;  %v10810_v4 = vld [vmem:[%s13827_s3 + $0xc0] sm:$0xff]   ;;  %v10811_v28 = vld [vmem:[%s13827_s3 + $0xb8] sm:$0x7f]  }
 0x33c   :  { %v4760_v59 = vmax.f32 %v4756_v52, 0.0  ;;  %v4753_v27 = vadd.f32 %v8763_v63, %v4742_v5  ;;  %v10808_v63 = vld [vmem:[%s13827_s3 + $0xa8] sm:$0x7f]   ;;  %v6003_v5 = vsel %vm1080_vm2, %v10811_v28, 0 }
 0x33d   :  { %v4759_v3 = vmax.f32 %v4755_v14, 0.0  ;;  %v4758_v9 = vmax.f32 %v4754_v15, 0.0  ;;  %v5887_v38 = vsel %vm1080_vm2, %v10808_v63, 0  ;;  %v10812_v52 = vld [vmem:[%s13827_s3 + $0xc8] sm:$0x7f]   ;;  %v10813_v14 = vld [vmem:[%s13827_s3 + $0xd0] sm:$0xff]  }
 0x33e   :  { %4791 = vst.msk [vmem:[#allocation2 + $0xc] sm:$0x1] %vm4761_vm4, %v4760_v59  ;;  %v4757_v1 = vmax.f32 %v4753_v27, 0.0  ;;  %v6119_v15 = vsel %vm1080_vm2, %v10812_v52, 0  ;;  %v10815_v27 = vld [vmem:[%s13827_s3 + $0xd8] sm:$0x7f]  }
 0x33f   :  { %4793 = vst.msk [vmem:[#allocation2 + $0x1b] sm:$0x2] %vm4769_vm5, %v4760_v59  ;;  %4771 = vst.msk [vmem:[#allocation2 + $0x17] sm:$0x2] %vm4769_vm5, %v4759_v3 }
 0x340   :  { %4795 = vst.msk [vmem:[#allocation2 + $0xb] sm:$0x4] %vm4772_vm6, %v4760_v59  ;;  %4774 = vst.msk [vmem:[#allocation2 + $0x7] sm:$0x4] %vm4772_vm6, %v4759_v3 }
 0x341   :  { %4797 = vst.msk [vmem:[#allocation2 + $0x1a] sm:$0x8] %vm4775_vm7, %v4760_v59  ;;  %4777 = vst.msk [vmem:[#allocation2 + $0x16] sm:$0x8] %vm4775_vm7, %v4759_v3 }
 0x342   :  { %4799 = vst.msk [vmem:[#allocation2 + $0xa] sm:$0x10] %vm4778_vm8, %v4760_v59  ;;  %4780 = vst.msk [vmem:[#allocation2 + $0x6] sm:$0x10] %vm4778_vm8, %v4759_v3 }
 0x343   :  { %4801 = vst.msk [vmem:[#allocation2 + $0x19] sm:$0x20] %vm4781_vm9, %v4760_v59  ;;  %4783 = vst.msk [vmem:[#allocation2 + $0x15] sm:$0x20] %vm4781_vm9, %v4759_v3  ;;  %v10814_v59 = vld [vmem:[%s13827_s3 + $0xe0] sm:$0xff]  }
 0x344   :  { %4767 = vst.msk [vmem:[#allocation2 + $0x8] sm:$0x1] %vm4761_vm4, %v4759_v3  ;;  %4790 = vst.msk [vmem:[#allocation2 + $0x4] sm:$0x1] %vm4761_vm4, %v4758_v9 }
 0x345   :  { %4786 = vst.msk [vmem:[#allocation2 + $0x5] sm:$0x40] %vm4784_vm10, %v4759_v3  ;;  %4785 = vst.msk [vmem:[#allocation2 - $0x3] sm:$0x40] %vm4784_vm10, %v4757_v1 }
 0x346   :  { %4789 = vst.msk [vmem:[#allocation2 + $0x14] sm:$0x80] %vm4787_vm11, %v4759_v3  ;;  %4788 = vst.msk [vmem:[#allocation2 + $0xc] sm:$0x80] %vm4787_vm11, %v4757_v1  ;;  %v10816_v3 = vld [vmem:[%s13827_s3 + $0xe8] sm:$0x7f]  }
 0x347   :  { %4792 = vst.msk [vmem:[#allocation2 + $0x13] sm:$0x2] %vm4769_vm5, %v4758_v9  ;;  %4770 = vst.msk [vmem:[#allocation2 + $0xf] sm:$0x2] %vm4769_vm5, %v4757_v1 }
 0x348   :  { %4794 = vst.msk [vmem:[#allocation2 + $0x3] sm:$0x4] %vm4772_vm6, %v4758_v9  ;;  %4773 = vst.msk [vmem:[#allocation2 - $0x1] sm:$0x4] %vm4772_vm6, %v4757_v1 }
 0x349   :  { %4796 = vst.msk [vmem:[#allocation2 + $0x12] sm:$0x8] %vm4775_vm7, %v4758_v9  ;;  %4776 = vst.msk [vmem:[#allocation2 + $0xe] sm:$0x8] %vm4775_vm7, %v4757_v1 }
 0x34a   :  { %4798 = vst.msk [vmem:[#allocation2 + $0x2] sm:$0x10] %vm4778_vm8, %v4758_v9  ;;  %4779 = vst.msk [vmem:[#allocation2 - $0x2] sm:$0x10] %vm4778_vm8, %v4757_v1 }
 0x34b   :  { %4800 = vst.msk [vmem:[#allocation2 + $0x11] sm:$0x20] %vm4781_vm9, %v4758_v9  ;;  %4782 = vst.msk [vmem:[#allocation2 + $0xd] sm:$0x20] %vm4781_vm9, %v4757_v1  ;;  %v6235_v9 = vsel %vm1080_vm2, %v10815_v27, 0 }
 0x34c   :  { %4766 = vst.msk [vmem:[#allocation2] sm:$0x1] %vm4761_vm4, %v4757_v1  ;;  %v4803_v25 = vld [vmem:[#allocation2 + $0x8] sm:$0xff]  ;;  %v10817_v1 = vld [vmem:[%s13827_s3 + $0xf0] sm:$0xff]  }
 0x34d   :  { %v4806_v12 = vld [vmem:[#allocation2 + $0x18] sm:$0xff] }
 0x352   :  { %v4805_v8 = vld [vmem:[#allocation2 + $0x10] sm:$0xff] }
 0x353   :  { %v4802_v21 = vld [vmem:[#allocation2] sm:$0xff]  ;;  %v13131_v20 = vpack.c.bf16 %v4806_v12, %v4805_v8  ;;  %v10819_v8 = vld [vmem:[%s13827_s3 + $0xf8] sm:$0x7f]   ;;  %v10820_v12 = vld [vmem:[%s13827_s3 + $0x108] sm:$0x7f]  }
 0x354   :  { %v13125_v42 = vpack.c.bf16 %v4803_v25, %v4802_v21  ;;  %v6351_v25 = vsel %vm1080_vm2, %v10816_v3, 0  ;;  %v10818_v21 = vld [vmem:[%s13827_s3 + $0x100] sm:$0xff]   ;;  %v6467_v30 = vsel %vm1080_vm2, %v10819_v8, 0 }
 0x356   :  { %4809 = vrot.lane.b32.xlu1 %v13125_v42, %s10914_s2  ;;  %4814 = vrot.lane.b32.xlu0 %v13125_v42, %s10915_s24 }
 0x357   :  { %10127 = vmatprep.mubr.msk.bf16.mxu1 %vm4833_vm12, %v13125_v42 }
 0x35a   :  { %4812 = vrot.lane.b32.xlu1 %v13131_v20, %s10914_s2  ;;  %4816 = vrot.lane.b32.xlu0 %v13131_v20, %s10915_s24 }
 0x35e   :  { %4927 = vrot.lane.b32.xlu0 %v13125_v42, %s10912_s18 }
 0x3c8   :  { %v13151_v16 = vpop.permute.xlu1 %4809  ;;  %v4815_v61 = vpop.permute.xlu0 %4814 }
 0x3c9   :  { %5039 = vrot.lane.b32.xlu0 %v13151_v16, %s10912_s18  ;;  %4929 = vrot.lane.b32.xlu1 %v4815_v61, %s10912_s18 }
 0x3ca   :  { %10128 = vmatmul.mubr.msk.bf16.vlgmr.msra.gmra.mrb[192].mxu1 %vm4833_vm12, %v13151_v16 }
 0x3cb   :  { %10131 = vmatprep.mubr.msk.bf16.mxu1 %vm4833_vm12, %v13131_v20  ;;  %10136 = vmatpush3.bf16.msra.mxu1 %v10790_v19 }
 0x3cc   :  { %v4817_v23 = vpop.permute.xlu0 %4816  ;;  %10671 = vmatprep.subr.msk.bf16.mxu1 %vm1080_vm2, %v10792_v35  ;;  %v13171_v17 = vpop.permute.xlu1 %4812  ;;  %v10822_v35 = vld [vmem:[%s13827_s3 + $0x120] sm:$0xff]  }
 0x3cd   :  { %4931 = vrot.lane.b32.xlu1 %v13131_v20, %s10912_s18  ;;  %4933 = vrot.lane.b32.xlu0 %v4817_v23, %s10912_s18 }
 0x3cf   :  { %10138 = vmatpush3.bf16.msra.mxu1 %v4959_v46 }
 0x3d0   :  { %v13173_v13 = vpop.permute.xlu0 %4927  ;;  %10159 = vmatprep.subr.bf16.mxu1 %v10793_v50 }
 0x3d1   :  { %5041 = vrot.lane.b32.xlu1 %v13171_v17, %s10912_s18  ;;  %5141 = vrot.lane.b32.xlu0 %v13125_v42, %s10916_s19 }
 0x3d2   :  { %10132 = vmatmul.mubr.msk.bf16.gmra.mrb[196].mxu1 %vm4833_vm12, %v13171_v17  ;;  %10151 = vmatprep.mubr.msk.bf16.mxu0 %vm4833_vm12, %v13173_v13 }
 0x3d3   :  { %10139 = vmatprep.mubr.msk.bf16.mxu1 %vm4833_vm12, %v13173_v13 }
 0x3d5   :  { %5143 = vrot.lane.b32.xlu1 %v4815_v61, %s10916_s19  ;;  %5253 = vrot.lane.b32.xlu0 %v13151_v16, %s10916_s19  ;;  %v6583_v61 = vsel %vm1080_vm2, %v10820_v12, 0 }
 0x3d9   :  { %5145 = vrot.lane.b32.xlu1 %v13131_v20, %s10916_s19  ;;  %5147 = vrot.lane.b32.xlu0 %v4817_v23, %s10916_s19 }
 0x3dd   :  { %5255 = vrot.lane.b32.xlu1 %v13171_v17, %s10916_s19 }
 0x43b   :  { %v13193_v41 = vpop.permute.xlu1 %4929  ;;  %v13195_v18 = vpop.permute.xlu0 %5039 }
 0x43c   :  { %10140 = vmatmul.mubr.msk.bf16.vlgmr.msra.gmra.mrb[200].mxu1 %vm4833_vm12, %v13193_v41  ;;  %10152 = vmatmul.mubr.msk.bf16.vlgmr.msra.gmra.mrb[104].mxu0 %vm4833_vm12, %v13195_v18 }
 0x43d   :  { %10160 = vmatpush3.bf16.msra.mxu1 %v10793_v50  ;;  %10172 = vmatpush3.bf16.msra.mxu0 %v10794_v44 }
 0x43e   :  { %10673 = vmatprep.subr.msk.bf16.mxu1 %vm1080_vm2, %v10795_v51  ;;  %10674 = vmatprep.subr.msk.bf16.mxu0 %vm1080_vm2, %v10796_v34 }
 0x43f   :  { %v13211_v11 = vpop.permute.xlu1 %4931  ;;  %v13213_v2 = vpop.permute.xlu0 %4933 }
 0x440   :  { %10143 = vmatprep.mubr.msk.bf16.mxu1 %vm4833_vm12, %v13211_v11  ;;  %10155 = vmatprep.mubr.msk.bf16.mxu0 %vm4833_vm12, %v13211_v11 }
 0x441   :  { %10162 = vmatpush3.bf16.msra.mxu1 %v5173_v58  ;;  %10174 = vmatpush3.bf16.msra.mxu0 %v5275_v29  ;;  %v10823_v58 = vld [vmem:[%s13827_s3 + $0x118] sm:$0x7f]   ;;  %v10824_v29 = vld [vmem:[%s13827_s3 + $0x128] sm:$0x7f]  }
 0x442   :  { %10195 = vmatprep.subr.bf16.mxu1 %v10797_v39  ;;  %10183 = vmatprep.subr.bf16.mxu0 %v10798_v54 }
 0x443   :  { %v13219_v57 = vpop.permute.xlu1 %5041  ;;  %v13221_v36 = vpop.permute.xlu0 %5141 }
 0x444   :  { %10144 = vmatmul.mubr.msk.bf16.gmra.mrb[204].mxu1 %vm4833_vm12, %v13213_v2  ;;  %10156 = vmatmul.mubr.msk.bf16.gmra.mrb[108].mxu0 %vm4833_vm12, %v13219_v57 }
 0x445   :  { %10163 = vmatprep.mubr.msk.bf16.mxu1 %vm4833_vm12, %v13221_v36  ;;  %10175 = vmatprep.mubr.msk.bf16.mxu0 %vm4833_vm12, %v13221_v36 }
 0x447   :  { %v13231_v22 = vpop.permute.xlu1 %5143  ;;  %v13236_v60 = vpop.permute.xlu0 %5253 }
 0x44b   :  { %v13238_v47 = vpop.permute.xlu1 %5145  ;;  %v13261_v7 = vpop.permute.xlu0 %5147 }
 0x44c   :  { %10164 = vmatmul.mubr.msk.bf16.vlgmr.msra.gmra.mrb[208].mxu1 %vm4833_vm12, %v13231_v22  ;;  %10176 = vmatmul.mubr.msk.bf16.vlgmr.msra.gmra.mrb[112].mxu0 %vm4833_vm12, %v13236_v60 }
 0x44d   :  { %10196 = vmatpush3.bf16.msra.mxu1 %v10797_v39  ;;  %10167 = vmatprep.mubr.msk.bf16.mxu1 %vm4833_vm12, %v13238_v47  ;;  %v6699_v39 = vsel %vm1080_vm2, %v10823_v58, 0 }
 0x44e   :  { %10179 = vmatprep.mubr.msk.bf16.mxu0 %vm4833_vm12, %v13238_v47  ;;  %10184 = vmatpush3.bf16.msra.mxu0 %v10798_v54  ;;  %v10825_v54 = vld [vmem:[%s13827_s3 + $0x130] sm:$0xff]  }
 0x44f   :  { %10676 = vmatprep.subr.msk.bf16.mxu1 %vm1080_vm2, %v10799_v24  ;;  %10675 = vmatprep.subr.msk.bf16.mxu0 %vm1080_vm2, %v10800_v6  ;;  %v13263_v40 = vpop.permute.xlu1 %5255  ;;  %v6815_v24 = vsel %vm1080_vm2, %v10824_v29, 0  ;;  %v10826_v6 = vld [vmem:[%s13827_s3 + $0x140] sm:$0xff]  }
 0x451   :  { %10198 = vmatpush3.bf16.msra.mxu1 %v5471_v45  ;;  %v10827_v45 = vld [vmem:[%s13827_s3 + $0x138] sm:$0x7f]  }
 0x452   :  { %10186 = vmatpush3.bf16.msra.mxu0 %v5367_v55  ;;  %10207 = vmatprep.subr.bf16.mxu1 %v10801_v49  ;;  %v6931_v55 = vsel %vm1080_vm2, %v10827_v45, 0 }
 0x453   :  { %10219 = vmatprep.subr.bf16.mxu0 %v10802_v53 }
 0x454   :  { %10168 = vmatmul.mubr.msk.bf16.gmra.mrb[212].mxu1 %vm4833_vm12, %v13261_v7  ;;  %10180 = vmatmul.mubr.msk.bf16.gmra.mrb[116].mxu0 %vm4833_vm12, %v13263_v40 }
 0x455   :  { %10187 = vmatprep.mubr.msk.bf16.mxu0 %vm4833_vm12, %v13125_v42  ;;  %10199 = vmatprep.mubr.msk.bf16.mxu1 %vm4833_vm12, %v13173_v13 }
 0x45c   :  { %10188 = vmatmul.mubr.msk.bf16.vlgmr.msra.gmra.mrb[120].mxu0 %vm4833_vm12, %v13151_v16  ;;  %10200 = vmatmul.mubr.msk.bf16.vlgmr.msra.gmra.mrb[216].mxu1 %vm4833_vm12, %v13193_v41 }
 0x45d   :  { %10208 = vmatpush3.bf16.msra.mxu1 %v10801_v49  ;;  %10191 = vmatprep.mubr.msk.bf16.mxu0 %vm4833_vm12, %v13131_v20  ;;  %v10828_v49 = vld [vmem:[%s13827_s3 + $0x148] sm:$0x7f]  }
 0x45e   :  { %10203 = vmatprep.mubr.msk.bf16.mxu1 %vm4833_vm12, %v13211_v11  ;;  %10220 = vmatpush3.bf16.msra.mxu0 %v10802_v53  ;;  %v10829_v53 = vld [vmem:[%s13827_s3 + $0x150] sm:$0xff]  }
 0x45f   :  { %10677 = vmatprep.subr.msk.bf16.mxu1 %vm1080_vm2, %v10803_v0  ;;  %10678 = vmatprep.subr.msk.bf16.mxu0 %vm1080_vm2, %v10804_v56  ;;  %v7047_v0 = vsel %vm1080_vm2, %v10828_v49, 0  ;;  %v10830_v56 = vld [vmem:[%s13827_s3 + $0x160] sm:$0xff]  }
 0x461   :  { %10210 = vmatpush3.bf16.msra.mxu1 %v5575_v43  ;;  %v10831_v43 = vld [vmem:[%s13827_s3 + $0x158] sm:$0x7f]  }
 0x462   :  { %10222 = vmatpush3.bf16.msra.mxu0 %v5679_v31  ;;  %10231 = vmatprep.subr.bf16.mxu1 %v10805_v26  ;;  %v10833_v31 = vld [vmem:[%s13827_s3 + $0x170] sm:$0xff]  }
 0x463   :  { %10243 = vmatprep.subr.bf16.mxu0 %v10806_v62 }
 0x464   :  { %10192 = vmatmul.mubr.msk.bf16.gmra.mrb[112].mxu0 %vm4833_vm12, %v13171_v17  ;;  %10204 = vmatmul.mubr.msk.bf16.gmra.mrb[220].mxu1 %vm4833_vm12, %v13213_v2 }
 0x465   :  { %10211 = vmatprep.mubr.msk.bf16.mxu1 %vm4833_vm12, %v13173_v13  ;;  %10223 = vmatprep.mubr.msk.bf16.mxu0 %vm4833_vm12, %v13221_v36 }
 0x46c   :  { %10212 = vmatmul.mubr.msk.bf16.vlgmr.msra.gmra.mrb[224].mxu1 %vm4833_vm12, %v13195_v18  ;;  %10224 = vmatmul.mubr.msk.bf16.vlgmr.msra.gmra.mrb[124].mxu0 %vm4833_vm12, %v13231_v22 }
 0x46d   :  { %10232 = vmatpush3.bf16.msra.mxu1 %v10805_v26  ;;  %10215 = vmatprep.mubr.msk.bf16.mxu1 %vm4833_vm12, %v13211_v11  ;;  %v10832_v26 = vld [vmem:[%s13827_s3 + $0x168] sm:$0x7f]  }
 0x46e   :  { %10227 = vmatprep.mubr.msk.bf16.mxu0 %vm4833_vm12, %v13238_v47  ;;  %10244 = vmatpush3.bf16.msra.mxu0 %v10806_v62  ;;  %v10834_v62 = vld [vmem:[%s13827_s3 + $0x180] sm:$0xff]  }
 0x46f   :  { %10679 = vmatprep.subr.msk.bf16.mxu1 %vm1080_vm2, %v10807_v10  ;;  %10680 = vmatprep.subr.msk.bf16.mxu0 %vm1080_vm2, %v10808_v63  ;;  %v10836_v10 = vld [vmem:[%s13827_s3 + $0x188] sm:$0x7f]  }
 0x471   :  { %10234 = vmatpush3.bf16.msra.mxu1 %v5783_v32 }
 0x472   :  { %10246 = vmatpush3.bf16.msra.mxu0 %v5887_v38  ;;  %10255 = vmatprep.subr.bf16.mxu1 %v10809_v48 }
 0x473   :  { %10267 = vmatprep.subr.bf16.mxu0 %v10810_v4 }
 0x474   :  { %10216 = vmatmul.mubr.msk.bf16.gmra.mrb[228].mxu1 %vm4833_vm12, %v13219_v57  ;;  %10228 = vmatmul.mubr.msk.bf16.gmra.mrb[128].mxu0 %vm4833_vm12, %v13261_v7 }
 0x475   :  { %10235 = vmatprep.mubr.msk.bf16.mxu1 %vm4833_vm12, %v13221_v36  ;;  %10247 = vmatprep.mubr.msk.bf16.mxu0 %vm4833_vm12, %v13125_v42 }
 0x47c   :  { %10236 = vmatmul.mubr.msk.bf16.vlgmr.msra.gmra.mrb[232].mxu1 %vm4833_vm12, %v13236_v60  ;;  %10248 = vmatmul.mubr.msk.bf16.vlgmr.msra.gmra.mrb[132].mxu0 %vm4833_vm12, %v13151_v16 }
 0x47d   :  { %10256 = vmatpush3.bf16.msra.mxu1 %v10809_v48  ;;  %10239 = vmatprep.mubr.msk.bf16.mxu1 %vm4833_vm12, %v13238_v47 }
 0x47e   :  { %10251 = vmatprep.mubr.msk.bf16.mxu0 %vm4833_vm12, %v13131_v20  ;;  %10268 = vmatpush3.bf16.msra.mxu0 %v10810_v4 }
 0x47f   :  { %10681 = vmatprep.subr.msk.bf16.mxu1 %vm1080_vm2, %v10811_v28  ;;  %10682 = vmatprep.subr.msk.bf16.mxu0 %vm1080_vm2, %v10812_v52 }
 0x481   :  { %10258 = vmatpush3.bf16.msra.mxu1 %v6003_v5 }
 0x482   :  { %10270 = vmatpush3.bf16.msra.mxu0 %v6119_v15  ;;  %10279 = vmatprep.subr.bf16.mxu1 %v10813_v14 }
 0x483   :  { %10291 = vmatprep.subr.bf16.mxu0 %v10814_v59 }
 0x484   :  { %10240 = vmatmul.mubr.msk.bf16.gmra.mrb[236].mxu1 %vm4833_vm12, %v13263_v40  ;;  %10252 = vmatmul.mubr.msk.bf16.gmra.mrb[136].mxu0 %vm4833_vm12, %v13171_v17 }
 0x485   :  { %10259 = vmatprep.mubr.msk.bf16.mxu1 %vm4833_vm12, %v13173_v13  ;;  %10271 = vmatprep.mubr.msk.bf16.mxu0 %vm4833_vm12, %v13173_v13 }
 0x48c   :  { %10260 = vmatmul.mubr.msk.bf16.vlgmr.msra.gmra.mrb[240].mxu1 %vm4833_vm12, %v13193_v41  ;;  %10272 = vmatmul.mubr.msk.bf16.vlgmr.msra.gmra.mrb[140].mxu0 %vm4833_vm12, %v13195_v18 }
 0x48d   :  { %10280 = vmatpush3.bf16.msra.mxu1 %v10813_v14  ;;  %10263 = vmatprep.mubr.msk.bf16.mxu1 %vm4833_vm12, %v13211_v11 }
 0x48e   :  { %10275 = vmatprep.mubr.msk.bf16.mxu0 %vm4833_vm12, %v13211_v11  ;;  %10292 = vmatpush3.bf16.msra.mxu0 %v10814_v59 }
 0x48f   :  { %10683 = vmatprep.subr.msk.bf16.mxu1 %vm1080_vm2, %v10815_v27  ;;  %10684 = vmatprep.subr.msk.bf16.mxu0 %vm1080_vm2, %v10816_v3 }
 0x491   :  { %10282 = vmatpush3.bf16.msra.mxu1 %v6235_v9 }
 0x492   :  { %10294 = vmatpush3.bf16.msra.mxu0 %v6351_v25  ;;  %10303 = vmatprep.subr.bf16.mxu1 %v10817_v1 }
 0x493   :  { %10315 = vmatprep.subr.bf16.mxu0 %v10818_v21 }
 0x494   :  { %10264 = vmatmul.mubr.msk.bf16.gmra.mrb[244].mxu1 %vm4833_vm12, %v13213_v2  ;;  %10276 = vmatmul.mubr.msk.bf16.gmra.mrb[144].mxu0 %vm4833_vm12, %v13219_v57 }
 0x495   :  { %10283 = vmatprep.mubr.msk.bf16.mxu1 %vm4833_vm12, %v13221_v36  ;;  %10295 = vmatprep.mubr.msk.bf16.mxu0 %vm4833_vm12, %v13221_v36 }
 0x49c   :  { %10284 = vmatmul.mubr.msk.bf16.vlgmr.msra.gmra.mrb[248].mxu1 %vm4833_vm12, %v13231_v22  ;;  %10296 = vmatmul.mubr.msk.bf16.vlgmr.msra.gmra.mrb[148].mxu0 %vm4833_vm12, %v13236_v60 }
 0x49d   :  { %v13411_v33 = vpop.f32.mrb[192].mxu1  ;;  %10304 = vmatpush3.bf16.msra.mxu1 %v10817_v1  ;;  %10287 = vmatprep.mubr.msk.bf16.mxu1 %vm4833_vm12, %v13238_v47 }
 0x49e   :  { %v13415_v19 = vpop.f32.mrb[193].mxu1  ;;  %10299 = vmatprep.mubr.msk.bf16.mxu0 %vm4833_vm12, %v13238_v47  ;;  %10316 = vmatpush3.bf16.msra.mxu0 %v10818_v21 }
 0x49f   :  { %v13423_v44 = vpop.f32.mrb[194].mxu1  ;;  %10685 = vmatprep.subr.msk.bf16.mxu1 %vm1080_vm2, %v10819_v8  ;;  %10686 = vmatprep.subr.msk.bf16.mxu0 %vm1080_vm2, %v10820_v12 }
 0x4a0   :  { %v13431_v23 = vpop.f32.mrb[195].mxu1 }
 0x4a1   :  { %10306 = vmatpush3.bf16.msra.mxu1 %v6467_v30 }
 0x4a2   :  { %10318 = vmatpush3.bf16.msra.mxu0 %v6583_v61  ;;  %10327 = vmatprep.subr.bf16.mxu1 %v10821_v37 }
 0x4a3   :  { %10339 = vmatprep.subr.bf16.mxu0 %v10822_v35 }
 0x4a4   :  { %10288 = vmatmul.mubr.msk.bf16.gmra.mrb[252].mxu1 %vm4833_vm12, %v13261_v7  ;;  %10300 = vmatmul.mubr.msk.bf16.gmra.mrb[152].mxu0 %vm4833_vm12, %v13263_v40 }
 0x4a5   :  { %v13437_v46 = vpop.f32.mrb[196].mxu1  ;;  %10307 = vmatprep.mubr.msk.bf16.mxu1 %vm4833_vm12, %v13125_v42  ;;  %10319 = vmatprep.mubr.msk.bf16.mxu0 %vm4833_vm12, %v13173_v13 }
 0x4a6   :  { %v13443_v50 = vpop.f32.mrb[197].mxu1 }
 0x4a7   :  { %v13445_v51 = vpop.f32.mrb[198].mxu1 }
 0x4a8   :  { %v13447_v34 = vpop.f32.mrb[199].mxu1 }
 0x4ac   :  { %10308 = vmatmul.mubr.msk.bf16.vlgmr.msra.gmra.mrb[0].mxu1 %vm4833_vm12, %v13151_v16  ;;  %10320 = vmatmul.mubr.msk.bf16.vlgmr.msra.gmra.mrb[156].mxu0 %vm4833_vm12, %v13193_v41 }
 0x4ad   :  { %10328 = vmatpush3.bf16.msra.mxu1 %v10821_v37  ;;  %10311 = vmatprep.mubr.msk.bf16.mxu1 %vm4833_vm12, %v13131_v20 }
 0x4ae   :  { %10323 = vmatprep.mubr.msk.bf16.mxu0 %vm4833_vm12, %v13211_v11  ;;  %10340 = vmatpush3.bf16.msra.mxu0 %v10822_v35 }
 0x4af   :  { %10687 = vmatprep.subr.msk.bf16.mxu1 %vm1080_vm2, %v10823_v58  ;;  %10688 = vmatprep.subr.msk.bf16.mxu0 %vm1080_vm2, %v10824_v29 }
 0x4b1   :  { %10330 = vmatpush3.bf16.msra.mxu1 %v6699_v39 }
 0x4b2   :  { %10342 = vmatpush3.bf16.msra.mxu0 %v6815_v24  ;;  %10351 = vmatprep.subr.bf16.mxu1 %v10825_v54 }
 0x4b3   :  { %10363 = vmatprep.subr.bf16.mxu0 %v10826_v6 }
 0x4b4   :  { %10312 = vmatmul.mubr.msk.bf16.gmra.mrb[4].mxu1 %vm4833_vm12, %v13171_v17  ;;  %10324 = vmatmul.mubr.msk.bf16.gmra.mrb[160].mxu0 %vm4833_vm12, %v13213_v2 }
 0x4b5   :  { %10331 = vmatprep.mubr.msk.bf16.mxu1 %vm4833_vm12, %v13173_v13  ;;  %10343 = vmatprep.mubr.msk.bf16.mxu0 %vm4833_vm12, %v13221_v36 }
 0x4bc   :  { %10332 = vmatmul.mubr.msk.bf16.vlgmr.msra.gmra.mrb[8].mxu1 %vm4833_vm12, %v13195_v18  ;;  %10344 = vmatmul.mubr.msk.bf16.vlgmr.msra.gmra.mrb[164].mxu0 %vm4833_vm12, %v13231_v22 }
 0x4bd   :  { %10352 = vmatpush3.bf16.msra.mxu1 %v10825_v54  ;;  %10335 = vmatprep.mubr.msk.bf16.mxu1 %vm4833_vm12, %v13211_v11 }
 0x4be   :  { %10347 = vmatprep.mubr.msk.bf16.mxu0 %vm4833_vm12, %v13238_v47  ;;  %10364 = vmatpush3.bf16.msra.mxu0 %v10826_v6 }
 0x4bf   :  { %10689 = vmatprep.subr.msk.bf16.mxu1 %vm1080_vm2, %v10827_v45  ;;  %10690 = vmatprep.subr.msk.bf16.mxu0 %vm1080_vm2, %v10828_v49 }
 0x4c1   :  { %10354 = vmatpush3.bf16.msra.mxu1 %v6931_v55 }
 0x4c2   :  { %10366 = vmatpush3.bf16.msra.mxu0 %v7047_v0  ;;  %10375 = vmatprep.subr.bf16.mxu1 %v10829_v53 }
 0x4c3   :  { %10387 = vmatprep.subr.bf16.mxu0 %v10830_v56 }
 0x4c4   :  { %10336 = vmatmul.mubr.msk.bf16.gmra.mrb[12].mxu1 %vm4833_vm12, %v13219_v57  ;;  %10348 = vmatmul.mubr.msk.bf16.gmra.mrb[168].mxu0 %vm4833_vm12, %v13261_v7 }
 0x4c5   :  { %10355 = vmatprep.mubr.msk.bf16.mxu1 %vm4833_vm12, %v13221_v36  ;;  %10367 = vmatprep.mubr.msk.bf16.mxu0 %vm4833_vm12, %v13125_v42  ;;  %v7163_v42 = vsel %vm1080_vm2, %v10831_v43, 0 }
 0x4cc   :  { %10356 = vmatmul.mubr.msk.bf16.vlgmr.msra.gmra.mrb[16].mxu1 %vm4833_vm12, %v13236_v60  ;;  %10368 = vmatmul.mubr.msk.bf16.vlgmr.msra.gmra.mrb[172].mxu0 %vm4833_vm12, %v13151_v16  ;;  %v7279_v16 = vsel %vm1080_vm2, %v10832_v26, 0 }
 0x4cd   :  { %10376 = vmatpush3.bf16.msra.mxu1 %v10829_v53  ;;  %10359 = vmatprep.mubr.msk.bf16.mxu1 %vm4833_vm12, %v13238_v47 }
 0x4ce   :  { %10371 = vmatprep.mubr.msk.bf16.mxu0 %vm4833_vm12, %v13131_v20  ;;  %10388 = vmatpush3.bf16.msra.mxu0 %v10830_v56  ;;  %v10835_v20 = vld [vmem:[%s13827_s3 + $0x178] sm:$0x7f]  }
 0x4cf   :  { %10691 = vmatprep.subr.msk.bf16.mxu1 %vm1080_vm2, %v10831_v43  ;;  %10692 = vmatprep.subr.msk.bf16.mxu0 %vm1080_vm2, %v10832_v26 }
 0x4d1   :  { %10378 = vmatpush3.bf16.msra.mxu1 %v7163_v42 }
 0x4d2   :  { %10390 = vmatpush3.bf16.msra.mxu0 %v7279_v16  ;;  %10399 = vmatprep.subr.bf16.mxu1 %v10833_v31 }
 0x4d3   :  { %10411 = vmatprep.subr.bf16.mxu0 %v10834_v62 }
 0x4d4   :  { %10360 = vmatmul.mubr.msk.bf16.gmra.mrb[20].mxu1 %vm4833_vm12, %v13263_v40  ;;  %10372 = vmatmul.mubr.msk.bf16.gmra.mrb[176].mxu0 %vm4833_vm12, %v13171_v17  ;;  %v7395_v17 = vsel %vm1080_vm2, %v10835_v20, 0 }
 0x4d5   :  { %10379 = vmatprep.mubr.msk.bf16.mxu1 %vm4833_vm12, %v13173_v13  ;;  %10391 = vmatprep.mubr.msk.bf16.mxu0 %vm4833_vm12, %v13173_v13  ;;  %v7511_v13 = vsel %vm1080_vm2, %v10836_v10, 0 }
 0x4dc   :  { %10380 = vmatmul.mubr.msk.bf16.vlgmr.msra.gmra.mrb[24].mxu1 %vm4833_vm12, %v13193_v41  ;;  %10392 = vmatmul.mubr.msk.bf16.vlgmr.msra.gmra.mrb[180].mxu0 %vm4833_vm12, %v13195_v18  ;;  %v14255_v41 = vmov 0.0  }
 0x4dd   :  { %10400 = vmatpush3.bf16.msra.mxu1 %v10833_v31  ;;  %10383 = vmatprep.mubr.msk.bf16.mxu1 %vm4833_vm12, %v13211_v11 }
 0x4de   :  { %10395 = vmatprep.mubr.msk.bf16.mxu0 %vm4833_vm12, %v13211_v11  ;;  %10412 = vmatpush3.bf16.msra.mxu0 %v10834_v62 }
 0x4df   :  { %10693 = vmatprep.subr.msk.bf16.mxu1 %vm1080_vm2, %v10835_v20  ;;  %10694 = vmatprep.subr.msk.bf16.mxu0 %vm1080_vm2, %v10836_v10 }
 0x4e1   :  { %10402 = vmatpush3.bf16.msra.mxu1 %v7395_v17 }
 0x4e2   :  { %10414 = vmatpush3.bf16.msra.mxu0 %v7511_v13  ;;  %10423 = vmatprep.subr.bf16.mxu1 %v14255_v41 }
 0x4e3   :  { %10437 = vmatprep.subr.bf16.mxu0 %v14255_v41 }
 0x4e4   :  { %10384 = vmatmul.mubr.msk.bf16.gmra.mrb[28].mxu1 %vm4833_vm12, %v13213_v2  ;;  %10396 = vmatmul.mubr.msk.bf16.gmra.mrb[184].mxu0 %vm4833_vm12, %v13219_v57 }
 0x4e5   :  { %10403 = vmatprep.mubr.msk.bf16.mxu1 %vm4833_vm12, %v13221_v36  ;;  %10415 = vmatprep.mubr.msk.bf16.mxu0 %vm4833_vm12, %v13221_v36 }
 0x4ec   :  { %10404 = vmatmul.mubr.msk.bf16.vlgmr.msra.gmra.mrb[32].mxu1 %vm4833_vm12, %v13231_v22  ;;  %10416 = vmatmul.mubr.msk.bf16.vlgmr.msra.gmra.mrb[188].mxu0 %vm4833_vm12, %v13236_v60 }
 0x4ed   :  { %10407 = vmatprep.mubr.msk.bf16.mxu1 %vm4833_vm12, %v13238_v47  ;;  %10419 = vmatprep.mubr.msk.bf16.mxu0 %vm4833_vm12, %v13238_v47 }
 0x4f4   :  { %10408 = vmatmul.mubr.msk.bf16.gmra.mrb[36].mxu1 %vm4833_vm12, %v13261_v7  ;;  %10420 = vmatmul.mubr.msk.bf16.gmra.mrb[192].mxu0 %vm4833_vm12, %v13263_v40 }
 0x4f5   :  { %10433 = vmatprep.mubr.msk.bf16.mxu1 %vm10917_vm13, %v14255_v41  ;;  %10447 = vmatprep.mubr.msk.bf16.mxu0 %vm10917_vm13, %v14255_v41 }
 0x50f   :  { %v10141_v18 = vpop.f32.mrb[200].mxu1  ;;  %v10153_v11 = vpop.f32.mrb[104].mxu0 }
 0x510   :  { %v5028_v2 = vadd.f32 %v10141_v18, %v13415_v19  ;;  %v4995_v57 = vpop.f32.mrb[201].mxu1  ;;  %v5097_v36 = vpop.f32.mrb[105].mxu0 }
 0x511   :  { %v5026_v22 = vadd.f32 %v13411_v33, %v4995_v57  ;;  %v10142_v60 = vpop.f32.mrb[202].mxu1  ;;  %v10154_v63 = vpop.f32.mrb[106].mxu0 }
 0x512   :  { %v5128_v32 = vadd.f32 %v5097_v36, %v5028_v2  ;;  %v5029_v48 = vadd.f32 %v10142_v60, %v13431_v23  ;;  %v4998_v47 = vpop.f32.mrb[203].mxu1  ;;  %v5100_v38 = vpop.f32.mrb[107].mxu0 }
 0x513   :  { %v5027_v7 = vadd.f32 %v13423_v44, %v4998_v47  ;;  %v5130_v4 = vadd.f32 %v10153_v11, %v5026_v22 }
 0x514   :  { %v5129_v28 = vadd.f32 %v5100_v38, %v5029_v48 }
 0x515   :  { %v5131_v40 = vadd.f32 %v10154_v63, %v5027_v7 }
 0x517   :  { %v10145_v52 = vpop.f32.mrb[204].mxu1  ;;  %v10157_v5 = vpop.f32.mrb[108].mxu0 }
 0x518   :  { %v5032_v14 = vadd.f32 %v10145_v52, %v13443_v50  ;;  %v5011_v15 = vpop.f32.mrb[205].mxu1  ;;  %v5113_v59 = vpop.f32.mrb[109].mxu0 }
 0x519   :  { %v5030_v27 = vadd.f32 %v13437_v46, %v5011_v15  ;;  %v10146_v3 = vpop.f32.mrb[206].mxu1  ;;  %v10158_v9 = vpop.f32.mrb[110].mxu0 }
 0x51a   :  { %v5132_v1 = vadd.f32 %v5113_v59, %v5032_v14  ;;  %v5033_v25 = vadd.f32 %v10146_v3, %v13447_v34  ;;  %v5014_v21 = vpop.f32.mrb[207].mxu1  ;;  %v5116_v8 = vpop.f32.mrb[111].mxu0 }
 0x51b   :  { %v5031_v12 = vadd.f32 %v13445_v51, %v5014_v21  ;;  %v5134_v33 = vadd.f32 %v10157_v5, %v5030_v27 }
 0x51c   :  { %v5133_v19 = vadd.f32 %v5116_v8, %v5033_v25 }
 0x51d   :  { %v5135_v30 = vadd.f32 %v10158_v9, %v5031_v12 }
 0x51f   :  { %v10165_v37 = vpop.f32.mrb[208].mxu1 }
 0x520   :  { %v5242_v44 = vadd.f32 %v10165_v37, %v5128_v32  ;;  %v5209_v61 = vpop.f32.mrb[209].mxu1 }
 0x521   :  { %v5240_v35 = vadd.f32 %v5209_v61, %v5130_v4  ;;  %v10166_v23 = vpop.f32.mrb[210].mxu1 }
 0x522   :  { %v5243_v50 = vadd.f32 %v10166_v23, %v5129_v28  ;;  %v5212_v58 = vpop.f32.mrb[211].mxu1 }
 0x523   :  { %v5241_v46 = vadd.f32 %v5212_v58, %v5131_v40 }
 0x527   :  { %v10169_v29 = vpop.f32.mrb[212].mxu1  ;;  %v10181_v39 = vpop.f32.mrb[116].mxu0 }
 0x528   :  { %v5246_v54 = vadd.f32 %v10169_v29, %v5132_v1  ;;  %v5225_v24 = vpop.f32.mrb[213].mxu1  ;;  %v5327_v34 = vpop.f32.mrb[117].mxu0 }
 0x529   :  { %v5244_v6 = vadd.f32 %v5225_v24, %v5134_v33  ;;  %v10170_v45 = vpop.f32.mrb[214].mxu1  ;;  %v10182_v49 = vpop.f32.mrb[118].mxu0 }
 0x52a   :  { %v5346_v51 = vadd.f32 %v5327_v34, %v5246_v54  ;;  %v5247_v55 = vadd.f32 %v10170_v45, %v5133_v19  ;;  %v5228_v53 = vpop.f32.mrb[215].mxu1  ;;  %v5330_v0 = vpop.f32.mrb[119].mxu0 }
 0x52b   :  { %v5348_v56 = vadd.f32 %v10181_v39, %v5244_v6  ;;  %v5245_v43 = vadd.f32 %v5228_v53, %v5135_v30 }
 0x52c   :  { %v5347_v26 = vadd.f32 %v5330_v0, %v5247_v55 }
 0x52d   :  { %v5349_v42 = vadd.f32 %v10182_v49, %v5245_v43 }
 0x52f   :  { %v10189_v31 = vpop.f32.mrb[120].mxu0  ;;  %v10201_v16 = vpop.f32.mrb[216].mxu1 }
 0x530   :  { %v5444_v62 = vrot.slane %v10189_v31, 1  ;;  %v5403_v20 = vpop.f32.mrb[121].mxu0  ;;  %v5507_v10 = vpop.f32.mrb[217].mxu1  ;;  %v5548_v60 = vrot.slane %v10201_v16, 1 }
 0x531   :  { %v5436_v17 = vrot.slane %v5403_v20, 1  ;;  %v5540_v13 = vrot.slane %v5507_v10, 1  ;;  %v10190_v18 = vpop.f32.mrb[122].mxu0  ;;  %v10202_v11 = vpop.f32.mrb[218].mxu1 }
 0x532   :  { %v5448_v2 = vadd.f32 %v5444_v62, %v5348_v56  ;;  %v5445_v57 = vrot.slane %v10190_v18, 1  ;;  %v5406_v36 = vpop.f32.mrb[123].mxu0  ;;  %v5510_v22 = vpop.f32.mrb[219].mxu1  ;;  %v5549_v7 = vrot.slane %v10202_v11, 1 }
 0x533   :  { %v5440_v63 = vadd.f32 %v5436_v17, %v5346_v51  ;;  %v5437_v32 = vrot.slane %v5406_v36, 1  ;;  %v5541_v48 = vrot.slane %v5510_v22, 1 }
 0x534   :  { %v5544_v47 = vadd.f32 %v5540_v13, %v5448_v2  ;;  %v5449_v38 = vadd.f32 %v5445_v57, %v5349_v42 }
 0x535   :  { %v5441_v4 = vadd.f32 %v5437_v32, %v5347_v26  ;;  %v5552_v28 = vadd.f32 %v5548_v60, %v5440_v63 }
 0x536   :  { %v5545_v40 = vadd.f32 %v5541_v48, %v5449_v38 }
 0x537   :  { %v10193_v52 = vpop.f32.mrb[112].mxu0  ;;  %v10205_v5 = vpop.f32.mrb[220].mxu1  ;;  %v5553_v14 = vadd.f32 %v5549_v7, %v5441_v4 }
 0x538   :  { %v10533_v15 = vadd.f32 %v10193_v52, %v5240_v35  ;;  %v5419_v59 = vpop.f32.mrb[113].mxu0  ;;  %v5523_v27 = vpop.f32.mrb[221].mxu1 }
 0x539   :  { %v10534_v3 = vadd.f32 %v5419_v59, %v5242_v44  ;;  %v10194_v9 = vpop.f32.mrb[114].mxu0  ;;  %v10206_v1 = vpop.f32.mrb[222].mxu1 }
 0x53a   :  { %v5554_v25 = vadd.f32 %v10533_v15, %v5523_v27  ;;  %v10535_v21 = vadd.f32 %v10194_v9, %v5241_v46  ;;  %v5422_v8 = vpop.f32.mrb[115].mxu0  ;;  %v5526_v12 = vpop.f32.mrb[223].mxu1 }
 0x53b   :  { %v10536_v33 = vadd.f32 %v5422_v8, %v5243_v50  ;;  %v5556_v19 = vadd.f32 %v10534_v3, %v10205_v5 }
 0x53c   :  { %v5555_v30 = vadd.f32 %v10535_v21, %v5526_v12 }
 0x53d   :  { %v5557_v37 = vadd.f32 %v10536_v33, %v10206_v1 }
 0x53f   :  { %v10213_v61 = vpop.f32.mrb[224].mxu1  ;;  %v10225_v23 = vpop.f32.mrb[124].mxu0 }
 0x540   :  { %v5652_v58 = vrot.slane %v10213_v61, 1  ;;  %v5611_v29 = vpop.f32.mrb[225].mxu1  ;;  %v5715_v39 = vpop.f32.mrb[125].mxu0  ;;  %v5756_v46 = vrot.slane %v10225_v23, 1 }
 0x541   :  { %v5644_v54 = vrot.slane %v5611_v29, 1  ;;  %v5748_v35 = vrot.slane %v5715_v39, 1  ;;  %v10214_v24 = vpop.f32.mrb[226].mxu1  ;;  %v10226_v34 = vpop.f32.mrb[126].mxu0 }
 0x542   :  { %v5656_v44 = vadd.f32 %v5652_v58, %v5544_v47  ;;  %v5653_v6 = vrot.slane %v10214_v24, 1  ;;  %v5614_v45 = vpop.f32.mrb[227].mxu1  ;;  %v5718_v49 = vpop.f32.mrb[127].mxu0  ;;  %v5757_v56 = vrot.slane %v10226_v34, 1 }
 0x543   :  { %v5648_v51 = vadd.f32 %v5644_v54, %v5552_v28  ;;  %v5645_v55 = vrot.slane %v5614_v45, 1  ;;  %v5749_v50 = vrot.slane %v5718_v49, 1 }
 0x544   :  { %v5752_v53 = vadd.f32 %v5748_v35, %v5656_v44  ;;  %v5657_v0 = vadd.f32 %v5653_v6, %v5545_v40 }
 0x545   :  { %v5649_v43 = vadd.f32 %v5645_v55, %v5553_v14  ;;  %v5760_v26 = vadd.f32 %v5756_v46, %v5648_v51 }
 0x546   :  { %v5753_v42 = vadd.f32 %v5749_v50, %v5657_v0 }
 0x547   :  { %v10217_v31 = vpop.f32.mrb[228].mxu1  ;;  %v10229_v16 = vpop.f32.mrb[128].mxu0  ;;  %v5761_v62 = vadd.f32 %v5757_v56, %v5649_v43 }
 0x548   :  { %v5660_v20 = vadd.f32 %v10217_v31, %v5554_v25  ;;  %v5627_v10 = vpop.f32.mrb[229].mxu1  ;;  %v5731_v17 = vpop.f32.mrb[129].mxu0 }
 0x549   :  { %v5658_v13 = vadd.f32 %v5627_v10, %v5556_v19  ;;  %v10218_v18 = vpop.f32.mrb[230].mxu1  ;;  %v10230_v11 = vpop.f32.mrb[130].mxu0  ;;  %v10838_v10 = vld [vmem:[%s13829_s5] sm:$0xff]  }
 0x54a   :  { %v5762_v2 = vadd.f32 %v5731_v17, %v5660_v20  ;;  %v5661_v57 = vadd.f32 %v10218_v18, %v5555_v30  ;;  %v5630_v36 = vpop.f32.mrb[231].mxu1  ;;  %v5734_v22 = vpop.f32.mrb[131].mxu0  ;;  %v10837_v20 = vld [vmem:[%s13829_s5 + $0x28] sm:$0xff]   ;;  %10438 = vmatpush3.bf16.msra.mxu0 %v10838_v10 }
 0x54b   :  { %v5659_v60 = vadd.f32 %v5630_v36, %v5557_v37  ;;  %v5764_v63 = vadd.f32 %v10229_v16, %v5658_v13  ;;  %10424 = vmatpush3.bf16.msra.mxu1 %v10837_v20  ;;  %10439 = vmatprep.subr.bf16.mxu0 %v14255_v41 }
 0x54c   :  { %v5763_v32 = vadd.f32 %v5734_v22, %v5661_v57  ;;  %10425 = vmatprep.subr.bf16.mxu1 %v14255_v41 }
 0x54d   :  { %v5765_v48 = vadd.f32 %v10230_v11, %v5659_v60 }
 0x54f   :  { %v10237_v47 = vpop.f32.mrb[232].mxu1  ;;  %v10249_v38 = vpop.f32.mrb[132].mxu0 }
 0x550   :  { %v5860_v7 = vrot.slane %v10237_v47, 1  ;;  %v5819_v4 = vpop.f32.mrb[233].mxu1  ;;  %v5923_v28 = vpop.f32.mrb[133].mxu0  ;;  %v5964_v12 = vrot.slane %v10249_v38, 1 }
 0x551   :  { %v5852_v40 = vrot.slane %v5819_v4, 1  ;;  %v10238_v52 = vpop.f32.mrb[234].mxu1  ;;  %v10250_v5 = vpop.f32.mrb[134].mxu0  ;;  %v5956_v33 = vrot.slane %v5923_v28, 1 }
 0x552   :  { %v5864_v14 = vadd.f32 %v5860_v7, %v5752_v53  ;;  %v5861_v15 = vrot.slane %v10238_v52, 1  ;;  %v5822_v59 = vpop.f32.mrb[235].mxu1  ;;  %v5926_v27 = vpop.f32.mrb[135].mxu0  ;;  %v5965_v23 = vrot.slane %v10250_v5, 1 }
 0x553   :  { %v5856_v3 = vadd.f32 %v5852_v40, %v5760_v26  ;;  %v5853_v9 = vrot.slane %v5822_v59, 1  ;;  %v5957_v58 = vrot.slane %v5926_v27, 1 }
 0x554   :  { %v5865_v1 = vadd.f32 %v5861_v15, %v5753_v42  ;;  %v10842_v15 = vld [vmem:[%s13829_s5 + $0x10] sm:$0xff]  }
 0x555   :  { %v5857_v25 = vadd.f32 %v5853_v9, %v5761_v62 }
 0x557   :  { %v10241_v21 = vpop.f32.mrb[236].mxu1  ;;  %v10253_v8 = vpop.f32.mrb[136].mxu0 }
 0x558   :  { %v5868_v19 = vadd.f32 %v10241_v21, %v5762_v2  ;;  %v5980_v30 = vrot.slane %v10253_v8, 1  ;;  %v5835_v37 = vpop.f32.mrb[237].mxu1  ;;  %v5939_v61 = vpop.f32.mrb[137].mxu0 }
 0x559   :  { %v5866_v29 = vadd.f32 %v5835_v37, %v5764_v63  ;;  %v5972_v39 = vrot.slane %v5939_v61, 1  ;;  %v10242_v54 = vpop.f32.mrb[238].mxu1  ;;  %v10254_v35 = vpop.f32.mrb[138].mxu0  ;;  %v10839_v63 = vld [vmem:[%s13829_s5 + $0x30] sm:$0xff]  }
 0x55a   :  { %v5968_v24 = vadd.f32 %v5964_v12, %v5868_v19  ;;  %v13593_v34 = vadd.f32 %v5980_v30, %v5864_v14  ;;  %v5869_v44 = vadd.f32 %v10242_v54, %v5763_v32  ;;  %v5981_v6 = vrot.slane %v10254_v35, 1  ;;  %v5838_v45 = vpop.f32.mrb[239].mxu1  ;;  %v5942_v49 = vpop.f32.mrb[139].mxu0  ;;  %v10840_v32 = vld [vmem:[%s13829_s5 + $0x8] sm:$0xff]   ;;  %10426 = vmatpush3.bf16.msra.mxu1 %v10839_v63  ;;  %v10841_v14 = vld [vmem:[%s13829_s5 + $0x38] sm:$0xff]  }
 0x55b   :  { %v5960_v46 = vadd.f32 %v5956_v33, %v5866_v29  ;;  %v5976_v51 = vadd.f32 %v5972_v39, %v5856_v3  ;;  %v5867_v55 = vadd.f32 %v5838_v45, %v5765_v48  ;;  %v5973_v50 = vrot.slane %v5942_v49, 1  ;;  %10440 = vmatpush3.bf16.msra.mxu0 %v10840_v32  ;;  %10427 = vmatprep.subr.bf16.mxu1 %v14255_v41 }
 0x55c   :  { %v5969_v53 = vadd.f32 %v5965_v23, %v5869_v44  ;;  %v13595_v0 = vadd.f32 %v5981_v6, %v5865_v1  ;;  %10441 = vmatprep.subr.bf16.mxu0 %v14255_v41  ;;  %v10843_v23 = vld [vmem:[%s13829_s5 + $0x40] sm:$0xff]  }
 0x55d   :  { %v5961_v56 = vadd.f32 %v5957_v58, %v5867_v55  ;;  %v13597_v43 = vadd.f32 %v5973_v50, %v5857_v25  ;;  %v10844_v58 = vld [vmem:[%s13829_s5 + $0x18] sm:$0xff]  }
 0x55e   :  { %10428 = vmatpush3.bf16.msra.mxu1 %v10841_v14 }
 0x55f   :  { %v10261_v26 = vpop.f32.mrb[240].mxu1  ;;  %v10273_v42 = vpop.f32.mrb[140].mxu0  ;;  %10442 = vmatpush3.bf16.msra.mxu0 %v10842_v15  ;;  %10429 = vmatprep.subr.bf16.mxu1 %v14255_v41 }
 0x560   :  { %v6080_v31 = vrot.slane %v10261_v26, 1  ;;  %v6039_v16 = vpop.f32.mrb[241].mxu1  ;;  %v6155_v62 = vpop.f32.mrb[141].mxu0  ;;  %v6196_v57 = vrot.slane %v10273_v42, 1  ;;  %10443 = vmatprep.subr.bf16.mxu0 %v14255_v41 }
 0x561   :  { %v6072_v17 = vrot.slane %v6039_v16, 1  ;;  %v6188_v13 = vrot.slane %v6155_v62, 1  ;;  %v10262_v18 = vpop.f32.mrb[242].mxu1  ;;  %v10274_v11 = vpop.f32.mrb[142].mxu0 }
 0x562   :  { %v6084_v2 = vadd.f32 %v6080_v31, %v5960_v46  ;;  %v6081_v36 = vrot.slane %v10262_v18, 1  ;;  %v6042_v22 = vpop.f32.mrb[243].mxu1  ;;  %v6158_v60 = vpop.f32.mrb[143].mxu0  ;;  %v6197_v28 = vrot.slane %v10274_v11, 1  ;;  %10430 = vmatpush3.bf16.msra.mxu1 %v10843_v23 }
 0x563   :  { %v6076_v48 = vadd.f32 %v6072_v17, %v5968_v24  ;;  %v6073_v47 = vrot.slane %v6042_v22, 1  ;;  %v6189_v38 = vrot.slane %v6158_v60, 1  ;;  %10444 = vmatpush3.bf16.msra.mxu0 %v10844_v58  ;;  %10431 = vmatprep.subr.bf16.mxu1 %v14255_v41 }
 0x564   :  { %v6192_v7 = vadd.f32 %v6188_v13, %v6084_v2  ;;  %v6085_v4 = vadd.f32 %v6081_v36, %v5961_v56  ;;  %10445 = vmatprep.subr.bf16.mxu0 %v14255_v41 }
 0x565   :  { %v6077_v40 = vadd.f32 %v6073_v47, %v5969_v53  ;;  %v6200_v52 = vadd.f32 %v6196_v57, %v6076_v48 }
 0x566   :  { %v13617_v5 = vadd.f32 %v6189_v38, %v6085_v4 }
 0x567   :  { %v10265_v59 = vpop.f32.mrb[244].mxu1  ;;  %v10277_v27 = vpop.f32.mrb[144].mxu0  ;;  %v6201_v3 = vadd.f32 %v6197_v28, %v6077_v40 }
 0x568   :  { %v6096_v9 = vrot.slane %v10265_v59, 1  ;;  %v6055_v1 = vpop.f32.mrb[245].mxu1  ;;  %v6171_v25 = vpop.f32.mrb[145].mxu0  ;;  %v6212_v29 = vrot.slane %v10277_v27, 1 }
 0x569   :  { %v6088_v21 = vrot.slane %v6055_v1, 1  ;;  %v6204_v8 = vrot.slane %v6171_v25, 1  ;;  %v10266_v12 = vpop.f32.mrb[246].mxu1  ;;  %v10278_v33 = vpop.f32.mrb[146].mxu0 }
 0x56a   :  { %v6100_v19 = vadd.f32 %v6096_v9, %v5976_v51  ;;  %v6097_v30 = vrot.slane %v10266_v12, 1  ;;  %v6058_v37 = vpop.f32.mrb[247].mxu1  ;;  %v6174_v61 = vpop.f32.mrb[147].mxu0  ;;  %v6213_v6 = vrot.slane %v10278_v33, 1  ;;  %v10846_v51 = vld [vmem:[%s13829_s5 + $0x20] sm:$0xff]  }
 0x56b   :  { %v6092_v39 = vadd.f32 %v6088_v21, %v13593_v34  ;;  %v6089_v54 = vrot.slane %v6058_v37, 1  ;;  %v6205_v35 = vrot.slane %v6174_v61, 1  ;;  %v10845_v34 = vld [vmem:[%s13829_s5 + $0x48] sm:$0xff]   ;;  %10446 = vmatpush3.bf16.msra.mxu0 %v10846_v51 }
 0x56c   :  { %v6208_v24 = vadd.f32 %v6204_v8, %v6100_v19  ;;  %v6101_v44 = vadd.f32 %v6097_v30, %v13597_v43  ;;  %10432 = vmatpush3.bf16.msra.mxu1 %v10845_v34  ;;  %10465 = vmatprep.subr.bf16.mxu0 %v14255_v41 }
 0x56d   :  { %v6093_v45 = vadd.f32 %v6089_v54, %v13595_v0  ;;  %v6216_v49 = vadd.f32 %v6212_v29, %v6092_v39  ;;  %10451 = vmatprep.subr.bf16.mxu1 %v14255_v41 }
 0x56e   :  { %v6209_v46 = vadd.f32 %v6205_v35, %v6101_v44 }
 0x56f   :  { %v10285_v55 = vpop.f32.mrb[248].mxu1  ;;  %v10297_v50 = vpop.f32.mrb[148].mxu0  ;;  %v6217_v53 = vadd.f32 %v6213_v6, %v6093_v45 }
 0x570   :  { %v6312_v0 = vrot.slane %v10285_v55, 1  ;;  %v6271_v56 = vpop.f32.mrb[249].mxu1  ;;  %v6387_v43 = vpop.f32.mrb[149].mxu0  ;;  %v6428_v13 = vrot.slane %v10297_v50, 1 }
 0x571   :  { %v6304_v26 = vrot.slane %v6271_v56, 1  ;;  %v6420_v42 = vrot.slane %v6387_v43, 1  ;;  %v10286_v31 = vpop.f32.mrb[250].mxu1  ;;  %v10298_v16 = vpop.f32.mrb[150].mxu0 }
 0x572   :  { %v6316_v62 = vadd.f32 %v6312_v0, %v6192_v7  ;;  %v6313_v20 = vrot.slane %v10286_v31, 1  ;;  %v6274_v10 = vpop.f32.mrb[251].mxu1  ;;  %v6390_v17 = vpop.f32.mrb[151].mxu0  ;;  %v6429_v22 = vrot.slane %v10298_v16, 1 }
 0x573   :  { %v6308_v18 = vadd.f32 %v6304_v26, %v6200_v52  ;;  %v6305_v11 = vrot.slane %v6274_v10, 1  ;;  %v6421_v2 = vrot.slane %v6390_v17, 1 }
 0x574   :  { %v13648_v57 = vadd.f32 %v6420_v42, %v6316_v62  ;;  %v6317_v36 = vadd.f32 %v6313_v20, %v13617_v5 }
 0x575   :  { %v6309_v60 = vadd.f32 %v6305_v11, %v6201_v3  ;;  %v6432_v63 = vadd.f32 %v6428_v13, %v6308_v18 }
 0x576   :  { %v13651_v32 = vadd.f32 %v6421_v2, %v6317_v36 }
 0x577   :  { %v10289_v48 = vpop.f32.mrb[252].mxu1  ;;  %v10301_v47 = vpop.f32.mrb[152].mxu0  ;;  %v13653_v38 = vadd.f32 %v6429_v22, %v6309_v60 }
 0x578   :  { %v6328_v7 = vrot.slane %v10289_v48, 1  ;;  %v6287_v4 = vpop.f32.mrb[253].mxu1  ;;  %v6403_v28 = vpop.f32.mrb[153].mxu0  ;;  %v6444_v1 = vrot.slane %v10301_v47, 1 }
 0x579   :  { %v6320_v40 = vrot.slane %v6287_v4, 1  ;;  %v6436_v52 = vrot.slane %v6403_v28, 1  ;;  %v10290_v14 = vpop.f32.mrb[254].mxu1  ;;  %v10302_v15 = vpop.f32.mrb[154].mxu0 }
 0x57a   :  { %v6332_v59 = vadd.f32 %v6328_v7, %v6208_v24  ;;  %v6329_v27 = vrot.slane %v10290_v14, 1  ;;  %v6290_v9 = vpop.f32.mrb[255].mxu1  ;;  %v6406_v5 = vpop.f32.mrb[155].mxu0  ;;  %v6445_v33 = vrot.slane %v10302_v15, 1 }
 0x57b   :  { %v6324_v3 = vadd.f32 %v6320_v40, %v6216_v49  ;;  %v6321_v25 = vrot.slane %v6290_v9, 1  ;;  %v6437_v21 = vrot.slane %v6406_v5, 1 }
 0x57c   :  { %v6440_v8 = vadd.f32 %v6436_v52, %v6332_v59  ;;  %v6333_v12 = vadd.f32 %v6329_v27, %v6209_v46 }
 0x57d   :  { %v6325_v19 = vadd.f32 %v6321_v25, %v6217_v53  ;;  %v6448_v30 = vadd.f32 %v6444_v1, %v6324_v3 }
 0x57e   :  { %v6441_v37 = vadd.f32 %v6437_v21, %v6333_v12 }
 0x57f   :  { %v10309_v61 = vpop.f32.mrb[0].mxu1  ;;  %v10321_v23 = vpop.f32.mrb[156].mxu0  ;;  %v6449_v58 = vadd.f32 %v6445_v33, %v6325_v19 }
 0x580   :  { %v6544_v29 = vrot.slane %v10309_v61, 2  ;;  %v6503_v39 = vpop.f32.mrb[1].mxu1  ;;  %v6619_v54 = vpop.f32.mrb[157].mxu0  ;;  %v6660_v55 = vrot.slane %v10321_v23, 2 }
 0x581   :  { %v6536_v35 = vrot.slane %v6503_v39, 2  ;;  %v6652_v24 = vrot.slane %v6619_v54, 2  ;;  %v10310_v44 = vpop.f32.mrb[2].mxu1  ;;  %v10322_v6 = vpop.f32.mrb[158].mxu0 }
 0x582   :  { %v6548_v45 = vadd.f32 %v6544_v29, %v6448_v30  ;;  %v6545_v49 = vrot.slane %v10310_v44, 2  ;;  %v6506_v34 = vpop.f32.mrb[3].mxu1  ;;  %v6622_v51 = vpop.f32.mrb[159].mxu0  ;;  %v6661_v43 = vrot.slane %v10322_v6, 2 }
 0x583   :  { %v6540_v46 = vadd.f32 %v6536_v35, %v6440_v8  ;;  %v6537_v50 = vrot.slane %v6506_v34, 2  ;;  %v6653_v53 = vrot.slane %v6622_v51, 2 }
 0x584   :  { %v6656_v0 = vadd.f32 %v6652_v24, %v6548_v45  ;;  %v6549_v56 = vadd.f32 %v6545_v49, %v6449_v58 }
 0x585   :  { %v6541_v26 = vadd.f32 %v6537_v50, %v6441_v37  ;;  %v6664_v42 = vadd.f32 %v6660_v55, %v6540_v46 }
 0x586   :  { %v6657_v31 = vadd.f32 %v6653_v53, %v6549_v56 }
 0x587   :  { %v10313_v16 = vpop.f32.mrb[4].mxu1  ;;  %v10325_v62 = vpop.f32.mrb[160].mxu0  ;;  %v6665_v20 = vadd.f32 %v6661_v43, %v6541_v26 }
 0x588   :  { %v6560_v10 = vrot.slane %v10313_v16, 1  ;;  %v6519_v17 = vpop.f32.mrb[5].mxu1  ;;  %v6635_v13 = vpop.f32.mrb[161].mxu0  ;;  %v6676_v7 = vrot.slane %v10325_v62, 1 }
 0x589   :  { %v6552_v18 = vrot.slane %v6519_v17, 1  ;;  %v6668_v11 = vrot.slane %v6635_v13, 1  ;;  %v10314_v2 = vpop.f32.mrb[6].mxu1  ;;  %v10326_v36 = vpop.f32.mrb[162].mxu0 }
 0x58a   :  { %v6564_v22 = vadd.f32 %v6560_v10, %v6432_v63  ;;  %v6561_v60 = vrot.slane %v10314_v2, 1  ;;  %v6522_v48 = vpop.f32.mrb[7].mxu1  ;;  %v6638_v47 = vpop.f32.mrb[163].mxu0  ;;  %v6677_v15 = vrot.slane %v10326_v36, 1 }
 0x58b   :  { %v6556_v4 = vadd.f32 %v6552_v18, %v13648_v57  ;;  %v6553_v28 = vrot.slane %v6522_v48, 1  ;;  %v6669_v40 = vrot.slane %v6638_v47, 1 }
 0x58c   :  { %v6672_v52 = vadd.f32 %v6668_v11, %v6564_v22  ;;  %v6565_v14 = vadd.f32 %v6561_v60, %v13653_v38 }
 0x58d   :  { %v6557_v59 = vadd.f32 %v6553_v28, %v13651_v32  ;;  %v6680_v27 = vadd.f32 %v6676_v7, %v6556_v4 }
 0x58e   :  { %v6673_v9 = vadd.f32 %v6669_v40, %v6565_v14 }
 0x58f   :  { %v10333_v5 = vpop.f32.mrb[8].mxu1  ;;  %v10345_v1 = vpop.f32.mrb[164].mxu0  ;;  %v6681_v3 = vadd.f32 %v6677_v15, %v6557_v59 }
 0x590   :  { %v6776_v63 = vrot.slane %v10333_v5, 2  ;;  %v6735_v25 = vpop.f32.mrb[9].mxu1  ;;  %v6851_v21 = vpop.f32.mrb[165].mxu0  ;;  %v6892_v38 = vrot.slane %v10345_v1, 2 }
 0x591   :  { %v6768_v8 = vrot.slane %v6735_v25, 2  ;;  %v6884_v12 = vrot.slane %v6851_v21, 2  ;;  %v10334_v33 = vpop.f32.mrb[10].mxu1  ;;  %v10346_v57 = vpop.f32.mrb[166].mxu0 }
 0x592   :  { %v6780_v19 = vadd.f32 %v6776_v63, %v6656_v0  ;;  %v6777_v30 = vrot.slane %v10334_v33, 2  ;;  %v6738_v37 = vpop.f32.mrb[11].mxu1  ;;  %v6854_v61 = vpop.f32.mrb[167].mxu0  ;;  %v6893_v54 = vrot.slane %v10346_v57, 2 }
 0x593   :  { %v6772_v23 = vadd.f32 %v6768_v8, %v6664_v42  ;;  %v6769_v58 = vrot.slane %v6738_v37, 2  ;;  %v6885_v32 = vrot.slane %v6854_v61, 2 }
 0x594   :  { %v6888_v29 = vadd.f32 %v6884_v12, %v6780_v19  ;;  %v6781_v39 = vadd.f32 %v6777_v30, %v6657_v31 }
 0x595   :  { %v6773_v35 = vadd.f32 %v6769_v58, %v6665_v20  ;;  %v6896_v24 = vadd.f32 %v6892_v38, %v6772_v23 }
 0x596   :  { %v6889_v44 = vadd.f32 %v6885_v32, %v6781_v39 }
 0x597   :  { %v10337_v6 = vpop.f32.mrb[12].mxu1  ;;  %v10349_v45 = vpop.f32.mrb[168].mxu0  ;;  %v6897_v49 = vadd.f32 %v6893_v54, %v6773_v35 }
 0x598   :  { %v6792_v34 = vrot.slane %v10337_v6, 1  ;;  %v6751_v51 = vpop.f32.mrb[13].mxu1  ;;  %v6867_v55 = vpop.f32.mrb[169].mxu0  ;;  %v6908_v16 = vrot.slane %v10349_v45, 1 }
 0x599   :  { %v6784_v46 = vrot.slane %v6751_v51, 1  ;;  %v6900_v50 = vrot.slane %v6867_v55, 1  ;;  %v10338_v53 = vpop.f32.mrb[14].mxu1  ;;  %v10350_v0 = vpop.f32.mrb[170].mxu0 }
 0x59a   :  { %v6796_v56 = vadd.f32 %v6792_v34, %v6672_v52  ;;  %v6793_v43 = vrot.slane %v10338_v53, 1  ;;  %v6754_v26 = vpop.f32.mrb[15].mxu1  ;;  %v6870_v42 = vpop.f32.mrb[171].mxu0  ;;  %v6909_v13 = vrot.slane %v10350_v0, 1 }
 0x59b   :  { %v6788_v31 = vadd.f32 %v6784_v46, %v6680_v27  ;;  %v6785_v62 = vrot.slane %v6754_v26, 1  ;;  %v6901_v20 = vrot.slane %v6870_v42, 1 }
 0x59c   :  { %v6904_v10 = vadd.f32 %v6900_v50, %v6796_v56  ;;  %v6797_v17 = vadd.f32 %v6793_v43, %v6673_v9 }
 0x59d   :  { %v6789_v18 = vadd.f32 %v6785_v62, %v6681_v3  ;;  %v6912_v11 = vadd.f32 %v6908_v16, %v6788_v31 }
 0x59e   :  { %v6905_v2 = vadd.f32 %v6901_v20, %v6797_v17 }
 0x59f   :  { %v10357_v36 = vpop.f32.mrb[16].mxu1  ;;  %v10369_v22 = vpop.f32.mrb[172].mxu0  ;;  %v6913_v60 = vadd.f32 %v6909_v13, %v6789_v18 }
 0x5a0   :  { %v7008_v48 = vrot.slane %v10357_v36, 2  ;;  %v6967_v47 = vpop.f32.mrb[17].mxu1  ;;  %v7083_v7 = vpop.f32.mrb[173].mxu0  ;;  %v7124_v33 = vrot.slane %v10369_v22, 2 }
 0x5a1   :  { %v7000_v4 = vrot.slane %v6967_v47, 2  ;;  %v10358_v28 = vpop.f32.mrb[18].mxu1  ;;  %v10370_v40 = vpop.f32.mrb[174].mxu0  ;;  %v7116_v57 = vrot.slane %v7083_v7, 2 }
 0x5a2   :  { %v7012_v52 = vadd.f32 %v7008_v48, %v6888_v29  ;;  %v7009_v14 = vrot.slane %v10358_v28, 2  ;;  %v6970_v15 = vpop.f32.mrb[19].mxu1  ;;  %v7086_v59 = vpop.f32.mrb[175].mxu0  ;;  %v7125_v6 = vrot.slane %v10370_v40, 2 }
 0x5a3   :  { %v7004_v27 = vadd.f32 %v7000_v4, %v6896_v24  ;;  %v7001_v5 = vrot.slane %v6970_v15, 2  ;;  %v7117_v51 = vrot.slane %v7086_v59, 2 }
 0x5a4   :  { %v7013_v9 = vadd.f32 %v7009_v14, %v6889_v44 }
 0x5a5   :  { %v7005_v1 = vadd.f32 %v7001_v5, %v6897_v49 }
 0x5a7   :  { %v10361_v3 = vpop.f32.mrb[20].mxu1  ;;  %v10373_v63 = vpop.f32.mrb[176].mxu0 }
 0x5a8   :  { %v7024_v25 = vrot.slane %v10361_v3, 1  ;;  %v7140_v21 = vrot.slane %v10373_v63, 2  ;;  %v6983_v8 = vpop.f32.mrb[21].mxu1  ;;  %v7099_v12 = vpop.f32.mrb[177].mxu0 }
 0x5a9   :  { %v7016_v19 = vrot.slane %v6983_v8, 1  ;;  %v7132_v30 = vrot.slane %v7099_v12, 2  ;;  %v10362_v37 = vpop.f32.mrb[22].mxu1  ;;  %v10374_v61 = vpop.f32.mrb[178].mxu0 }
 0x5aa   :  { %v7028_v38 = vadd.f32 %v7024_v25, %v6904_v10  ;;  %v7144_v23 = vadd.f32 %v7140_v21, %v7012_v52  ;;  %v7025_v58 = vrot.slane %v10362_v37, 1  ;;  %v7141_v32 = vrot.slane %v10374_v61, 2  ;;  %v6986_v29 = vpop.f32.mrb[23].mxu1  ;;  %v7102_v39 = vpop.f32.mrb[179].mxu0 }
 0x5ab   :  { %v7020_v54 = vadd.f32 %v7016_v19, %v6912_v11  ;;  %v7136_v35 = vadd.f32 %v7132_v30, %v7004_v27  ;;  %v7017_v24 = vrot.slane %v6986_v29, 1  ;;  %v7133_v44 = vrot.slane %v7102_v39, 2 }
 0x5ac   :  { %v7029_v45 = vadd.f32 %v7025_v58, %v6905_v2  ;;  %v7145_v49 = vadd.f32 %v7141_v32, %v7013_v9  ;;  %v7128_v34 = vadd.f32 %v7124_v33, %v7028_v38 }
 0x5ad   :  { %v7021_v55 = vadd.f32 %v7017_v24, %v6913_v60  ;;  %v7137_v46 = vadd.f32 %v7133_v44, %v7005_v1  ;;  %v7120_v50 = vadd.f32 %v7116_v57, %v7020_v54 }
 0x5ae   :  { %v7129_v53 = vadd.f32 %v7125_v6, %v7029_v45 }
 0x5af   :  { %v10381_v0 = vpop.f32.mrb[24].mxu1  ;;  %v10393_v56 = vpop.f32.mrb[180].mxu0  ;;  %v7121_v43 = vadd.f32 %v7117_v51, %v7021_v55 }
 0x5b0   :  { %v7240_v26 = vrot.slane %v10381_v0, 2  ;;  %v7199_v42 = vpop.f32.mrb[25].mxu1  ;;  %v7315_v16 = vpop.f32.mrb[181].mxu0  ;;  %v7356_v2 = vrot.slane %v10393_v56, 2 }
 0x5b1   :  { %v7232_v31 = vrot.slane %v7199_v42, 2  ;;  %v7348_v62 = vrot.slane %v7315_v16, 2  ;;  %v10382_v20 = vpop.f32.mrb[26].mxu1  ;;  %v10394_v10 = vpop.f32.mrb[182].mxu0 }
 0x5b2   :  { %v7244_v17 = vadd.f32 %v7240_v26, %v7120_v50  ;;  %v7241_v13 = vrot.slane %v10382_v20, 2  ;;  %v7202_v18 = vpop.f32.mrb[27].mxu1  ;;  %v7318_v11 = vpop.f32.mrb[183].mxu0  ;;  %v7357_v7 = vrot.slane %v10394_v10, 2 }
 0x5b3   :  { %v7236_v36 = vadd.f32 %v7232_v31, %v7128_v34  ;;  %v7233_v22 = vrot.slane %v7202_v18, 2  ;;  %v7349_v60 = vrot.slane %v7318_v11, 2 }
 0x5b4   :  { %v7352_v48 = vadd.f32 %v7348_v62, %v7244_v17  ;;  %v7245_v47 = vadd.f32 %v7241_v13, %v7121_v43 }
 0x5b5   :  { %v7237_v4 = vadd.f32 %v7233_v22, %v7129_v53  ;;  %v7360_v28 = vadd.f32 %v7356_v2, %v7236_v36 }
 0x5b6   :  { %v7353_v40 = vadd.f32 %v7349_v60, %v7245_v47 }
 0x5b7   :  { %v10385_v52 = vpop.f32.mrb[28].mxu1  ;;  %v10397_v14 = vpop.f32.mrb[184].mxu0  ;;  %v7361_v15 = vadd.f32 %v7357_v7, %v7237_v4 }
 0x5b8   :  { %v7256_v59 = vrot.slane %v10385_v52, 2  ;;  %v7215_v27 = vpop.f32.mrb[29].mxu1  ;;  %v7331_v5 = vpop.f32.mrb[185].mxu0  ;;  %v7372_v33 = vrot.slane %v10397_v14, 2 }
 0x5b9   :  { %v7248_v9 = vrot.slane %v7215_v27, 2  ;;  %v7364_v1 = vrot.slane %v7331_v5, 2  ;;  %v10386_v3 = vpop.f32.mrb[30].mxu1  ;;  %v10398_v63 = vpop.f32.mrb[186].mxu0 }
 0x5ba   :  { %v7260_v25 = vadd.f32 %v7256_v59, %v7136_v35  ;;  %v7257_v21 = vrot.slane %v10386_v3, 2  ;;  %v7218_v8 = vpop.f32.mrb[31].mxu1  ;;  %v7334_v12 = vpop.f32.mrb[187].mxu0  ;;  %v7373_v38 = vrot.slane %v10398_v63, 2 }
 0x5bb   :  { %v7252_v57 = vadd.f32 %v7248_v9, %v7144_v23  ;;  %v7249_v19 = vrot.slane %v7218_v8, 2  ;;  %v7365_v30 = vrot.slane %v7334_v12, 2  ;;  %v9010_v12 = vld [vmem:[%s13828_s4] ss:$0 sm:$0xff] }
 0x5bc   :  { %v7368_v37 = vadd.f32 %v7364_v1, %v7260_v25  ;;  %v7261_v61 = vadd.f32 %v7257_v21, %v7137_v46 }
 0x5bd   :  { %v7253_v58 = vadd.f32 %v7249_v19, %v7145_v49  ;;  %v7376_v32 = vadd.f32 %v7372_v33, %v7252_v57 }
 0x5be   :  { %v7369_v29 = vadd.f32 %v7365_v30, %v7261_v61 }
 0x5bf   :  { %v10405_v39 = vpop.f32.mrb[32].mxu1  ;;  %v10417_v54 = vpop.f32.mrb[188].mxu0  ;;  %v7377_v24 = vadd.f32 %v7373_v38, %v7253_v58 }
 0x5c0   :  { %v7472_v44 = vrot.slane %v10405_v39, 2  ;;  %v7431_v6 = vpop.f32.mrb[33].mxu1  ;;  %v7547_v45 = vpop.f32.mrb[189].mxu0  ;;  %v7588_v56 = vrot.slane %v10417_v54, 2 }
 0x5c1   :  { %v7464_v35 = vrot.slane %v7431_v6, 2  ;;  %v7580_v34 = vrot.slane %v7547_v45, 2  ;;  %v10406_v51 = vpop.f32.mrb[34].mxu1  ;;  %v10418_v55 = vpop.f32.mrb[190].mxu0 }
 0x5c2   :  { %v7476_v50 = vadd.f32 %v7472_v44, %v7352_v48  ;;  %v7473_v23 = vrot.slane %v10406_v51, 2  ;;  %v7434_v53 = vpop.f32.mrb[35].mxu1  ;;  %v7550_v0 = vpop.f32.mrb[191].mxu0  ;;  %v7589_v31 = vrot.slane %v10418_v55, 2 }
 0x5c3   :  { %v7468_v46 = vadd.f32 %v7464_v35, %v7360_v28  ;;  %v7465_v43 = vrot.slane %v7434_v53, 2  ;;  %v7581_v49 = vrot.slane %v7550_v0, 2 }
 0x5c4   :  { %v7584_v26 = vadd.f32 %v7580_v34, %v7476_v50  ;;  %v7477_v42 = vadd.f32 %v7473_v23, %v7353_v40  ;;  %v10847_v34 = vld [vmem:[%s13829_s5 + $0x50] sm:$0xff]  }
 0x5c5   :  { %v7592_v16 = vadd.f32 %v7588_v56, %v7468_v46  ;;  %v7469_v62 = vadd.f32 %v7465_v43, %v7361_v15  ;;  %v10848_v46 = vld [vmem:[%s13829_s5 + $0x78] sm:$0xff]  }
 0x5c6   :  { %v7585_v20 = vadd.f32 %v7581_v49, %v7477_v42  ;;  %v10850_v42 = vld [vmem:[%s13829_s5 + $0x80] sm:$0xff]  }
 0x5c7   :  { %v7610_v10 = vmax.f32 %v7584_v26, %v7592_v16  ;;  %v7593_v17 = vadd.f32 %v7589_v31, %v7469_v62  ;;  %v10409_v13 = vpop.f32.mrb[36].mxu1  ;;  %v10421_v18 = vpop.f32.mrb[192].mxu0  ;;  %v10849_v26 = vld [vmem:[%s13829_s5 + $0x58] sm:$0xff]   ;;  %v10851_v16 = vld [vmem:[%s13829_s5 + $0x60] sm:$0xff]   ;;  %v10852_v31 = vld [vmem:[%s13829_s5 + $0x88] sm:$0xff]  }
 0x5c8   :  { %v7488_v11 = vrot.slane %v10409_v13, 2  ;;  %v7447_v2 = vpop.f32.mrb[37].mxu1  ;;  %v7563_v36 = vpop.f32.mrb[193].mxu0  ;;  %v7604_v14 = vrot.slane %v10421_v18, 2  ;;  %v10853_v62 = vld [vmem:[%s13829_s5 + $0x68] sm:$0xff]   ;;  %v10857_v13 = vld [vmem:[%s13829_s5 + $0xa0] sm:$0xff]  }
 0x5c9   :  { %v7611_v22 = vmax.f32 %v7585_v20, %v7593_v17  ;;  %v7480_v60 = vrot.slane %v7447_v2, 2  ;;  %v7596_v48 = vrot.slane %v7563_v36, 2  ;;  %v10410_v47 = vpop.f32.mrb[38].mxu1  ;;  %v10422_v7 = vpop.f32.mrb[194].mxu0  ;;  %v10854_v20 = vld [vmem:[%s13829_s5 + $0x90] sm:$0xff]   ;;  %v10856_v17 = vld [vmem:[%s13829_s5 + $0x98] sm:$0xff]  }
 0x5ca   :  { %v7492_v4 = vadd.f32 %v7488_v11, %v7368_v37  ;;  %v7489_v28 = vrot.slane %v10410_v47, 2  ;;  %v7450_v52 = vpop.f32.mrb[39].mxu1  ;;  %v7566_v40 = vpop.f32.mrb[195].mxu0  ;;  %v7605_v3 = vrot.slane %v10422_v7, 2  ;;  %v10858_v2 = vld [vmem:[%s13829_s5 + $0xa8] sm:$0xff]   ;;  %v10859_v36 = vld [vmem:[%s13829_s5 + $0xb0] sm:$0xff]  }
 0x5cb   :  { %v7484_v59 = vadd.f32 %v7480_v60, %v7376_v32  ;;  %v7481_v15 = vrot.slane %v7450_v52, 2  ;;  %v7597_v27 = vrot.slane %v7566_v40, 2  ;;  %v10861_v60 = vld [vmem:[%s13829_s5 + $0xc0] sm:$0xff]   ;;  %v10863_v7 = vld [vmem:[%s13831_s7 + $0x8] sm:$0xff]  }
 0x5cc   :  { %v7600_v5 = vadd.f32 %v7596_v48, %v7492_v4  ;;  %v7493_v9 = vadd.f32 %v7489_v28, %v7369_v29  ;;  %v10862_v47 = vld [vmem:[%s13831_s7] sm:$0xff]   ;;  %v10864_v4 = vld [vmem:[%s13831_s7 + $0x10] sm:$0xff]   ;;  %v10865_v28 = vld [vmem:[%s13831_s7 + $0x18] sm:$0xff]  }
 0x5cd   :  { %v7608_v1 = vadd.f32 %v7604_v14, %v7484_v59  ;;  %v7485_v63 = vadd.f32 %v7481_v15, %v7377_v24  ;;  %v10866_v52 = vld [vmem:[%s13831_s7 + $0x20] sm:$0xff]   ;;  %v10867_v40 = vld [vmem:[%s13831_s7 + $0x28] sm:$0xff]   ;;  %v10868_v14 = vld [vmem:[%s13831_s7 + $0x30] sm:$0xff]  }
 0x5ce   :  { %v7601_v25 = vadd.f32 %v7597_v27, %v7493_v9  ;;  %v10869_v59 = vld [vmem:[%s13831_s7 + $0x38] sm:$0xff]   ;;  %v10870_v15 = vld [vmem:[%s13833_s9] sm:$0xff]   ;;  %v10871_v27 = vld [vmem:[%s13833_s9 + $0x8] sm:$0xff]  }
 0x5cf   :  { %v7612_v21 = vmax.f32 %v7600_v5, %v7608_v1  ;;  %v7609_v8 = vadd.f32 %v7605_v3, %v7485_v63  ;;  %v10872_v5 = vld [vmem:[%s13833_s9 + $0x10] sm:$0xff]   ;;  %v10873_v9 = vld [vmem:[%s13833_s9 + $0x18] sm:$0xff]   ;;  %v10874_v1 = vld [vmem:[%s13833_s9 + $0x20] sm:$0xff]  }
 0x5d0   :  { %v10875_v3 = vld [vmem:[%s13833_s9 + $0x28] sm:$0xff]  }
 0x5d1   :  { %v7614_v33 = vmax.f32 %v7610_v10, %v7612_v21  ;;  %v7613_v57 = vmax.f32 %v7601_v25, %v7609_v8  ;;  %v10855_v10 = vld [vmem:[%s13829_s5 + $0x70] sm:$0xff]  }
 0x5d3   :  { %v7623_v19 = vadd.f32 %v9010_v12, %v7614_v33  ;;  %v7615_v30 = vmax.f32 %v7611_v22, %v7613_v57  ;;  %v10860_v22 = vld [vmem:[%s13829_s5 + $0xb8] sm:$0xff]  }
 0x5d5   :  { %v7625_v37 = vmax.f32 %v7623_v19, 0.0  ;;  %v7624_v61 = vadd.f32 %v9010_v12, %v7615_v30 }
 0x5d7   :  { %v7627_v38 = vpack.c.bf16 %v7625_v37, %v7625_v37  ;;  %v7626_v58 = vmax.f32 %v7624_v61, 0.0 }
 0x5d9   :  { %v7652_v32 = vunpack.c.l.b16 %v7627_v38  ;;  %v7628_v29 = vpack.c.bf16 %v7626_v58, %v7626_v58 }
 0x5db   :  { %v7654_v39 = vrot.slane %v7652_v32, 1  ;;  %v7653_v54 = vunpack.c.l.b16 %v7628_v29  ;;  %v7819_v24 = vrot.slane %v7652_v32, 2  ;;  %v7997_v44 = vrot.slane %v7652_v32, 4 }
 0x5dc   :  { %v7908_v50 = vrot.slane %v7652_v32, 3 }
 0x5dd   :  { %v7656_v6 = vsel %vm7655_vm14, %v7653_v54, %v7654_v39  ;;  %v7820_v45 = vrot.slane %v7653_v54, 1  ;;  %v7998_v35 = vrot.slane %v7653_v54, 3  ;;  %v7732_v51 = vrot.slane %v7653_v54, 7 }
 0x5de   :  { %v7657_v55 = vpack.c.b16 %v7656_v6, %v7656_v6  ;;  %v7909_v23 = vrot.slane %v7653_v54, 2 }
 0x5df   :  { %v7821_v53 = vsel %vm7655_vm14, %v7820_v45, %v7819_v24  ;;  %v7999_v0 = vsel %vm7655_vm14, %v7998_v35, %v7997_v44  ;;  %v7733_v56 = vsel %vm7655_vm14, %v7732_v51, %v7652_v32  ;;  %v9081_v45 = vld [vmem:[%s13830_s6] ss:$0 sm:$0xff] }
 0x5e0   :  { %10434 = vmatmul.mubr.msk.bf16.vlgmr.msra.gmra.mrb[40].mxu1 %vm7688_vm15, %v7657_v55  ;;  %v7734_v43 = vpack.c.b16 %v7733_v56, %v7733_v56  ;;  %v7910_v49 = vsel %vm7655_vm14, %v7909_v23, %v7908_v50  ;;  %v7822_v18 = vpack.c.b16 %v7821_v53, %v7821_v53  ;;  %v8000_v48 = vpack.c.b16 %v7999_v0, %v7999_v0  ;;  %v10876_v0 = vld [vmem:[%s13833_s9 + $0x30] sm:$0xff]   ;;  %v10877_v56 = vld [vmem:[%s13833_s9 + $0x38] sm:$0xff]   ;;  %s10918_s9 = smov [#allocation3]  }
 0x5e1   :  { %10452 = vmatpush3.bf16.msra.mxu1 %v10847_v34  ;;  %10461 = vmatprep.mubr.msk.bf16.mxu1 %vm10917_vm13, %v14255_v41  ;;  %v7911_v11 = vpack.c.b16 %v7910_v49, %v7910_v49  ;;  %s8316_s25 = sshll.u32 %s10918_s9, 4  ;;  %s8317_s25 = int_to_ptr.vmem [resolvable:$true] %s8316_s25 }
 0x5e2   :  { %10448 = vmatmul.mubr.msk.bf16.vlgmr.msra.gmra.mrb[196].mxu0 %vm7688_vm15, %v7734_v43  ;;  %10453 = vmatprep.subr.bf16.mxu1 %v14255_v41  ;;  %p10891_p1 = scmp.lt.s32.totalorder %s8317_s25, %s8317_s25 }
 0x5e3   :  { %10466 = vmatpush3.bf16.msra.mxu0 %v10848_v46  ;;  %10475 = vmatprep.mubr.msk.bf16.mxu0 %vm10917_vm13, %v14255_v41  ;;  %v9082_v46 = vld [vmem:[%s13832_s8] ss:$0 sm:$0xff]  ;;  %s10886_s8 = scalar_lea.vmem %s8317_s25, 32 }
 0x5e4   :  { %10467 = vmatprep.subr.bf16.mxu0 %v14255_v41  ;;  %p10887_p0 = scmp.ne.s32.totalorder %s8317_s25, %s10886_s8  ;;  %p10892_p2 = scmp.lt.s32.totalorder %s10886_s8, %s10886_s8 }
 0x5e5   :  { %10454 = vmatpush3.bf16.msra.mxu1 %v10849_v26 }
 0x5e6   :  { %10455 = vmatprep.subr.bf16.mxu1 %v14255_v41  ;;  %p10893_p3 = por %p10892_p2, %p10891_p1 }
 0x5e7   :  { %10468 = vmatpush3.bf16.msra.mxu0 %v10850_v42 }
 0x5e8   :  { %10469 = vmatprep.subr.bf16.mxu0 %v14255_v41  ;;  %p10894_p4 = pnand %p10893_p3, %p10887_p0 }
 0x5e9   :  { %10456 = vmatpush3.bf16.msra.mxu1 %v10851_v16 }
 0x5ea   :  { %10457 = vmatprep.subr.bf16.mxu1 %v14255_v41 }
 0x5eb   :  { %10470 = vmatpush3.bf16.msra.mxu0 %v10852_v31 }
 0x5ec   :  { %10471 = vmatprep.subr.bf16.mxu0 %v14255_v41 }
 0x5ed   :  { %10458 = vmatpush3.bf16.msra.mxu1 %v10853_v62 }
 0x5ee   :  { %10459 = vmatprep.subr.bf16.mxu1 %v14255_v41 }
 0x5ef   :  { %10472 = vmatpush3.bf16.msra.mxu0 %v10854_v20  ;;  %v9091_v20 = vld [vmem:[%s13834_s10] ss:$0 sm:$0xff] }
 0x5f0   :  { %10473 = vmatprep.subr.bf16.mxu0 %v14255_v41 }
 0x5f1   :  { %10460 = vmatpush3.bf16.msra.mxu1 %v10855_v10 }
 0x5f2   :  { %10479 = vmatprep.subr.bf16.mxu1 %v14255_v41 }
 0x5f3   :  { %10474 = vmatpush3.bf16.msra.mxu0 %v10856_v17 }
 0x5f4   :  { %10462 = vmatmul.mubr.msk.bf16.vlgmr.msra.gmra.mrb[44].mxu1 %vm7688_vm15, %v7822_v18  ;;  %10493 = vmatprep.subr.bf16.mxu0 %v14255_v41 }
 0x5f5   :  { %10480 = vmatpush3.bf16.msra.mxu1 %v10857_v13  ;;  %10489 = vmatprep.mubr.msk.bf16.mxu1 %vm10917_vm13, %v14255_v41 }
 0x5f6   :  { %10476 = vmatmul.mubr.msk.bf16.vlgmr.msra.gmra.mrb[200].mxu0 %vm7688_vm15, %v7911_v11  ;;  %10481 = vmatprep.subr.bf16.mxu1 %v14255_v41 }
 0x5f7   :  { %10509 = vmatprep.mubr.msk.bf16.mxu0 %vm10917_vm13, %v14255_v41  ;;  %10494 = vmatpush3.bf16.msra.mxu0 %v10862_v47 }
 0x5f8   :  { %10495 = vmatprep.subr.bf16.mxu0 %v14255_v41 }
 0x5f9   :  { %10482 = vmatpush3.bf16.msra.mxu1 %v10858_v2 }
 0x5fa   :  { %10483 = vmatprep.subr.bf16.mxu1 %v14255_v41 }
 0x5fb   :  { %10496 = vmatpush3.bf16.msra.mxu0 %v10863_v7 }
 0x5fc   :  { %10497 = vmatprep.subr.bf16.mxu0 %v14255_v41 }
 0x5fd   :  { %10484 = vmatpush3.bf16.msra.mxu1 %v10859_v36 }
 0x5fe   :  { %10485 = vmatprep.subr.bf16.mxu1 %v14255_v41 }
 0x5ff   :  { %10498 = vmatpush3.bf16.msra.mxu0 %v10864_v4 }
 0x600   :  { %10499 = vmatprep.subr.bf16.mxu0 %v14255_v41 }
 0x601   :  { %10486 = vmatpush3.bf16.msra.mxu1 %v10860_v22 }
 0x602   :  { %10487 = vmatprep.subr.bf16.mxu1 %v14255_v41 }
 0x603   :  { %10500 = vmatpush3.bf16.msra.mxu0 %v10865_v28 }
 0x604   :  { %10501 = vmatprep.subr.bf16.mxu0 %v14255_v41 }
 0x605   :  { %10488 = vmatpush3.bf16.msra.mxu1 %v10861_v60 }
 0x606   :  { %10513 = vmatprep.subr.bf16.mxu1 %v14255_v41 }
 0x607   :  { %10502 = vmatpush3.bf16.msra.mxu0 %v10866_v52 }
 0x608   :  { %10490 = vmatmul.mubr.msk.bf16.vlgmr.msra.gmra.mrb[48].mxu1 %vm7688_vm15, %v8000_v48  ;;  %10503 = vmatprep.subr.bf16.mxu0 %v14255_v41 }
 0x609   :  { %10529 = vmatprep.mubr.msk.bf16.mxu1 %vm10917_vm13, %v14255_v41  ;;  %10514 = vmatpush3.bf16.msra.mxu1 %v10870_v15 }
 0x60a   :  { %10515 = vmatprep.subr.bf16.mxu1 %v14255_v41 }
 0x60b   :  { %10504 = vmatpush3.bf16.msra.mxu0 %v10867_v40 }
 0x60c   :  { %10505 = vmatprep.subr.bf16.mxu0 %v14255_v41 }
 0x60d   :  { %10516 = vmatpush3.bf16.msra.mxu1 %v10871_v27 }
 0x60e   :  { %10517 = vmatprep.subr.bf16.mxu1 %v14255_v41 }
 0x60f   :  { %10506 = vmatpush3.bf16.msra.mxu0 %v10868_v14 }
 0x610   :  { %10507 = vmatprep.subr.bf16.mxu0 %v14255_v41 }
 0x611   :  { %10518 = vmatpush3.bf16.msra.mxu1 %v10872_v5 }
 0x612   :  { %10519 = vmatprep.subr.bf16.mxu1 %v14255_v41 }
 0x613   :  { %10508 = vmatpush3.bf16.msra.mxu0 %v10869_v59 }
 0x615   :  { %10520 = vmatpush3.bf16.msra.mxu1 %v10873_v9 }
 0x616   :  { %10521 = vmatprep.subr.bf16.mxu1 %v14255_v41 }
 0x619   :  { %10522 = vmatpush3.bf16.msra.mxu1 %v10874_v1 }
 0x61a   :  { %10523 = vmatprep.subr.bf16.mxu1 %v14255_v41 }
 0x61d   :  { %10524 = vmatpush3.bf16.msra.mxu1 %v10875_v3 }
 0x61e   :  { %10525 = vmatprep.subr.bf16.mxu1 %v14255_v41 }
 0x621   :  { %10526 = vmatpush3.bf16.msra.mxu1 %v10876_v0 }
 0x622   :  { %10527 = vmatprep.subr.bf16.mxu1 %v14255_v41 }
 0x625   :  { %10528 = vmatpush3.bf16.msra.mxu1 %v10877_v56 }
 0x6b3   :  { %v7726_v63 = vpop.f32.mrb[40].mxu1 }
 0x6b4   :  { %v10435_v25 = vpop.f32.mrb[41].mxu1 }
 0x6b5   :  { %v7729_v21 = vpop.f32.mrb[42].mxu1  ;;  %v7802_v8 = vpop.f32.mrb[196].mxu0 }
 0x6b6   :  { %v7803_v12 = vadd.f32 %v7802_v8, %v7726_v63  ;;  %v10436_v33 = vpop.f32.mrb[43].mxu1  ;;  %v10449_v57 = vpop.f32.mrb[197].mxu0 }
 0x6b7   :  { %v7805_v19 = vpop.f32.mrb[198].mxu0 }
 0x6b8   :  { %v10450_v30 = vpop.f32.mrb[199].mxu0 }
 0x6c7   :  { %v7890_v37 = vpop.f32.mrb[44].mxu1 }
 0x6c8   :  { %v7896_v61 = vadd.f32 %v7890_v37, %v7803_v12  ;;  %v10463_v38 = vpop.f32.mrb[45].mxu1 }
 0x6c9   :  { %v7893_v58 = vpop.f32.mrb[46].mxu1  ;;  %v7979_v32 = vpop.f32.mrb[200].mxu0 }
 0x6ca   :  { %v7985_v29 = vadd.f32 %v7979_v32, %v7896_v61  ;;  %v10464_v39 = vpop.f32.mrb[47].mxu1  ;;  %v10477_v54 = vpop.f32.mrb[201].mxu0 }
 0x6cb   :  { %v7982_v24 = vpop.f32.mrb[202].mxu0 }
 0x6cc   :  { %v10478_v44 = vpop.f32.mrb[203].mxu0 }
 0x6db   :  { %v8068_v6 = vpop.f32.mrb[48].mxu1 }
 0x6dc   :  { %v8074_v35 = vadd.f32 %v8068_v6, %v7985_v29  ;;  %v10491_v34 = vpop.f32.mrb[49].mxu1 }
 0x6dd   :  { %v8071_v51 = vpop.f32.mrb[50].mxu1 }
 0x6de   :  { %v8082_v55 = vadd.f32 %v9081_v45, %v8074_v35  ;;  %v10492_v50 = vpop.f32.mrb[51].mxu1 }
 0x6e0   :  { %v8083_v23 = vmax.f32 %v8082_v55, 0.0 }
 0x6e2   :  { %v8084_v53 = vpack.c.bf16 %v8083_v23, %v8083_v23 }
 0x6e4   :  { %10510 = vmatmul.mubr.bf16.vlgmr.msra.gmra.mrb[204].mxu0 %v8084_v53 }
 0x7b7   :  { %v8190_v43 = vpop.f32.mrb[204].mxu0 }
 0x7b8   :  { %v8191_v49 = vadd.f32 %v9082_v46, %v8190_v43  ;;  %v10511_v26 = vpop.f32.mrb[205].mxu0 }
 0x7b9   :  { %v8193_v42 = vpop.f32.mrb[206].mxu0 }
 0x7ba   :  { %v8196_v16 = vmax.f32 %v8191_v49, 0.0  ;;  %v10512_v31 = vpop.f32.mrb[207].mxu0 }
 0x7bc   :  { %v8197_v62 = vpack.c.bf16 %v8196_v16, %v8196_v16 }
 0x7be   :  { %10530 = vmatmul.mubr.bf16.vlgmr.msra.gmra.mrb[52].mxu1 %v8197_v62 }
 0x891   :  { %v8303_v41 = vpop.f32.mrb[52].mxu1 }
 0x892   :  { %v8304_v10 = vadd.f32 %v9091_v20, %v8303_v41  ;;  %v10531_v17 = vpop.f32.mrb[53].mxu1 }
 0x893   :  { %v8306_v13 = vpop.f32.mrb[54].mxu1 }
 0x894   :  { %8309 = vst [vmem:[#allocation3] sm:$0x3] %v8304_v10  ;;  %v10532_v18 = vpop.f32.mrb[55].mxu1 }
 0x895   :  { %10897 = shalt.err (!%p10894_p4)
}
 0x896   :  { %s10898_s10 = scalar_lea.hbm %s13835_s11, 32 }
 0x897   :  { %p10899_p5 = scmp.ne.s32.totalorder %s13835_s11, %s10898_s10  ;;  %p10902_p6 = scmp.lt.u32.totalorder %s10898_s10, %s13835_s11 }
 0x899   :  { %p10904_p7 = pnand %p10902_p6, %p10899_p5 }
 0x89b   :  { %10907 = shalt.err (!%p10904_p7)
}
 0x89c   :  { %8319 = dma.vmem_to_hbm [thread:$0]  %s8317_s25, 32, %s13835_s11, [#allocation4]  }
 0x89d   :  { %10908 = dma.done.wait [#allocation4], 32  }
 0x89e   :  { %10909 = vsyncadd [#allocation4], 4294967264 }
 0x89f   :  { %8323 = vsyncpa [#allocation4], 1 }

</bundles_post_ra>
